<compile_context>
chip_gen: v6e
topology: v6e:2x2x1
jax: 0.10.0
libtpu: 0.0.40
codegen_flags: <defaults>
</compile_context>

<pallas_src>
import numpy as np
import jax
import jax.numpy as jnp
from jax.experimental import pallas as pl
from jax.experimental.pallas import tpu as pltpu

EPS = 1e-5

# Problem configuration (small, consistent with the module).
N, C_IN, H, W = 2, 4, 16, 16
C_OUT = 8                       # must be divisible by 4
KH, KW, PAD = 3, 3, 1           # stride=1, dilation=1, groups=1
LG = ((2, 2), (2, 2), (1, 1))   # local_group
C1, C2, C3 = C_OUT // 2, C_OUT // 4, C_OUT // 4
PH, PW = H // LG[0][0], W // LG[0][1]       # 8x8 patches for branches 1 & 2
P1 = LG[0][0] * LG[0][1]
P2 = LG[1][0] * LG[1][1]
P3 = LG[2][0] * LG[2][1]
CL = C_OUT                      # channel group size in the lane dim (lane = w*CL + c)
HP = H + 2                      # padded rows per image (main conv / branch 3)
PP = PH + 2                     # padded rows per image (patch convs)


# -----------------------------------------------------------------------------
# In-kernel helpers (trace-time unrolled; values / refs only).
# -----------------------------------------------------------------------------
def _bn_affine(bands, gamma_rep, beta_rep, msel, count):
    """Training-mode BatchNorm folded into a per-lane affine (scale, shift).

    bands: list of (rows, L) f32 slabs of the same tensor (one per batch image);
    gamma_rep / beta_rep: (1, L) per-channel params replicated over w lane-groups;
    msel: (L, L) 0/1 selector, msel[i, j] = (i % CL == j % CL), so `v @ msel`
    is "sum over w, broadcast back to every w" in one tiny dot;
    count: elements per channel.  Two-pass (biased) variance.
    """
    inv_m = 1.0 / float(count)
    colsum = bands[0].sum(axis=0, keepdims=True)
    for b in bands[1:]:
        colsum = colsum + b.sum(axis=0, keepdims=True)
    mu = jnp.dot(colsum, msel, preferred_element_type=jnp.float32) * inv_m
    sqsum = None
    for b in bands:
        d = b - mu
        s = (d * d).sum(axis=0, keepdims=True)
        sqsum = s if sqsum is None else sqsum + s
    var = jnp.dot(sqsum, msel, preferred_element_type=jnp.float32) * inv_m
    scale = gamma_rep * jax.lax.rsqrt(var + EPS)
    shift = beta_rep - mu * scale
    return scale, shift


def _conv3(src_ref, row0, rows, t_ref, tbase, bias):
    """'same' 3x3 conv = 3 row-shifted MXU dots against block-Toeplitz RHS slabs."""
    acc = jnp.dot(src_ref[row0 + 0:row0 + 0 + rows, :], t_ref[tbase + 0],
                  preferred_element_type=jnp.float32)
    acc = acc + jnp.dot(src_ref[row0 + 1:row0 + 1 + rows, :], t_ref[tbase + 1],
                        preferred_element_type=jnp.float32)
    acc = acc + jnp.dot(src_ref[row0 + 2:row0 + 2 + rows, :], t_ref[tbase + 2],
                        preferred_element_type=jnp.float32)
    return acc + bias


# -----------------------------------------------------------------------------
# The single fused kernel.
# -----------------------------------------------------------------------------
def _fused_kernel(x_ref, t0_ref, b0v_ref,
                  g1_ref, be1_ref, t1_ref, b1v_ref,
                  g2_ref, be2_ref, t2_ref, b2v_ref,
                  g3_ref, be3_ref, t3_ref, b3v_ref,
                  gf_ref, bf_ref, m64_ref, m128_ref,
                  out_ref,
                  xpad_ref, xc_ref, b1_ref, b2_ref, ppad_ref, fpad_ref):
    m64 = m64_ref[...]
    m128 = m128_ref[...]

    # Zero the padded staging buffers ONCE; only their interiors are rewritten
    # below, so the halo stays zero (independent zero padding per image/patch).
    xpad_ref[...] = jnp.zeros_like(xpad_ref)
    ppad_ref[...] = jnp.zeros_like(ppad_ref)
    fpad_ref[...] = jnp.zeros_like(fpad_ref)

    # ---- main 3x3 conv over the full image: C_IN -> C_OUT ------------------
    for n in range(N):
        xpad_ref[n * HP + 1:n * HP + 1 + H, C_IN:C_IN + W * C_IN] = \
            x_ref[n * H:(n + 1) * H, :]
    for n in range(N):
        xc_ref[n * H:(n + 1) * H, :] = _conv3(xpad_ref, n * HP, H, t0_ref, 0,
                                              b0v_ref[...])

    # ---- branches 1 & 2: per-patch BN -> ReLU -> per-patch conv ------------
    # The two patches of a row band share rows, so their convs are batched in
    # one block-diagonal dot; outputs land contiguously in global (w,c) lanes.
    for pi in range(2):
        r0 = pi * PH
        # branch 1: input xc (all C_OUT channels valid), output -> channels 0..C1-1
        for pj in range(2):
            k = 2 * pi + pj
            l0 = pj * PW * CL
            bands = [xc_ref[n * H + r0:n * H + r0 + PH, l0:l0 + PW * CL]
                     for n in range(N)]
            sc, sh = _bn_affine(bands, g1_ref[k:k + 1, :], be1_ref[k:k + 1, :],
                                m64, N * PH * PW)
            il = pj * PP * CL + CL
            for n in range(N):
                ppad_ref[n * PP + 1:n * PP + 1 + PH, il:il + PW * CL] = \
                    jnp.maximum(bands[n] * sc + sh, 0.0)
        for n in range(N):
            b1_ref[n * H + r0:n * H + r0 + PH, :] = \
                _conv3(ppad_ref, n * PP, PH, t1_ref, 3 * pi, b1v_ref[pi:pi + 1, :])

        # branch 2: input b1 (channels 0..C1-1 valid, rest exactly 0),
        # output placed at channels C1..C1+C2-1.
        for pj in range(2):
            k = 2 * pi + pj
            l0 = pj * PW * CL
            bands = [b1_ref[n * H + r0:n * H + r0 + PH, l0:l0 + PW * CL]
                     for n in range(N)]
            sc, sh = _bn_affine(bands, g2_ref[k:k + 1, :], be2_ref[k:k + 1, :],
                                m64, N * PH * PW)
            il = pj * PP * CL + CL
            for n in range(N):
                ppad_ref[n * PP + 1:n * PP + 1 + PH, il:il + PW * CL] = \
                    jnp.maximum(bands[n] * sc + sh, 0.0)
        for n in range(N):
            b2_ref[n * H + r0:n * H + r0 + PH, :] = \
                _conv3(ppad_ref, n * PP, PH, t2_ref, 3 * pi, b2v_ref[pi:pi + 1, :])

    # ---- branch 3: whole-image BN -> ReLU -> conv, output -> channels 6..7 --
    sc3, sh3 = _bn_affine([b2_ref[...]], g3_ref[...], be3_ref[...], m128, N * H * W)
    for n in range(N):
        fpad_ref[n * HP + 1:n * HP + 1 + H, CL:CL + W * CL] = \
            jnp.maximum(b2_ref[n * H:(n + 1) * H, :] * sc3 + sh3, 0.0)
    for n in range(N):
        b3n = _conv3(fpad_ref, n * HP, H, t3_ref, 0, b3v_ref[...])
        # residual + channel concat: branches occupy disjoint channel lanes.
        out_ref[n * H:(n + 1) * H, :] = (xc_ref[n * H:(n + 1) * H, :]
                                         + b1_ref[n * H:(n + 1) * H, :]
                                         + b2_ref[n * H:(n + 1) * H, :] + b3n)

    # ---- final training-mode BN + ReLU --------------------------------------
    scf, shf = _bn_affine([out_ref[...]], gf_ref[...], bf_ref[...], m128, N * H * W)
    out_ref[...] = jnp.maximum(out_ref[...] * scf + shf, 0.0)


# -----------------------------------------------------------------------------
# Wrapper: weight/param re-layout (pure plumbing) + single pallas_call.
# -----------------------------------------------------------------------------
def _toeplitz(w, wp, in_g, in_off, out_g, out_off):
    """Block-Toeplitz RHS slabs: the kw taps and the w dim folded into the matmul.

    Returns (KH, (wp+2)*in_g, wp*out_g) with
    T[kh, (wo+kw)*in_g + in_off + ci, wo*out_g + out_off + co] = w[kh, kw, ci, co].
    """
    kh, kw, ci, co = w.shape
    sel = np.zeros((kw, wp, wp + 2), np.float32)
    for a in range(kw):
        for b in range(wp):
            sel[a, b, b + a] = 1.0
    t = jnp.einsum('abp,haij->hpibj', jnp.asarray(sel), w)
    full = jnp.zeros((kh, wp + 2, in_g, wp, out_g), w.dtype)
    full = full.at[:, :, in_off:in_off + ci, :, out_off:out_off + co].set(t)
    return full.reshape(kh, (wp + 2) * in_g, wp * out_g)


def _pair_toeplitz(w_pair, wp, in_g, in_off, out_g, out_off):
    """Two per-patch Toeplitz slabs packed block-diagonally (2 patches per dot)."""
    ta = _toeplitz(w_pair[0], wp, in_g, in_off, out_g, out_off)
    tb = _toeplitz(w_pair[1], wp, in_g, in_off, out_g, out_off)
    kh, r, c = ta.shape
    z = jnp.zeros((kh, 2 * r, 2 * c), ta.dtype)
    return z.at[:, :r, :c].set(ta).at[:, r:, c:].set(tb)


def _lane_bias(b, wp, out_g, out_off):
    co = b.shape[-1]
    v = jnp.zeros((wp, out_g), b.dtype).at[:, out_off:out_off + co].set(b)
    return v.reshape(1, wp * out_g)


def _lane_tile(v, wp, out_g, out_off):
    v = v if v.ndim == 2 else v.reshape(1, -1)
    c = v.shape[-1]
    z = jnp.zeros((v.shape[0], out_g), v.dtype).at[:, out_off:out_off + c].set(v)
    return jnp.tile(z, (1, wp))


def _full_spec(shape):
    nd = len(shape)
    return pl.BlockSpec(shape, lambda i, _nd=nd: (0,) * _nd)


def hierarchical_forward(x_nhwc, p):
    """x_nhwc: (N, H, W, C_IN) float32 -> (N, H, W, C_OUT) float32."""
    # Lane-dense 2-D view (pure row-major reshape): rows=(n,h), lanes=(w,c).
    x2d = x_nhwc.reshape(N * H, W * C_IN)

    # Conv weights as block-Toeplitz RHS slabs (each conv = 3 row-shifted dots).
    t0 = _toeplitz(p["w0"], W, C_IN, 0, CL, 0)                                   # (3,  72, 128)
    t1 = jnp.concatenate([_pair_toeplitz(p["w1"][2 * i:2 * i + 2], PW, CL, 0, CL, 0)
                          for i in range(2)], axis=0)                            # (6, 160, 128)
    t2 = jnp.concatenate([_pair_toeplitz(p["w2"][2 * i:2 * i + 2], PW, CL, 0, CL, C1)
                          for i in range(2)], axis=0)                            # (6, 160, 128)
    t3 = _toeplitz(p["w3"][0], W, CL, C1, CL, C1 + C2)                           # (3, 144, 128)

    # Biases / BN params pre-tiled to (w, c) lane vectors.
    b0v = _lane_bias(p["b0"], W, CL, 0)                                          # (1, 128)
    b1v = jnp.concatenate([jnp.concatenate([_lane_bias(p["b1"][2 * i + j], PW, CL, 0)
                                            for j in range(2)], axis=1)
                           for i in range(2)], axis=0)                           # (2, 128)
    b2v = jnp.concatenate([jnp.concatenate([_lane_bias(p["b2"][2 * i + j], PW, CL, C1)
                                            for j in range(2)], axis=1)
                           for i in range(2)], axis=0)                           # (2, 128)
    b3v = _lane_bias(p["b3"][0], W, CL, C1 + C2)                                 # (1, 128)

    g1t, be1t = _lane_tile(p["g1"], PW, CL, 0), _lane_tile(p["be1"], PW, CL, 0)  # (4, 64)
    g2t, be2t = _lane_tile(p["g2"], PW, CL, 0), _lane_tile(p["be2"], PW, CL, 0)  # (4, 64)
    g3t, be3t = _lane_tile(p["g3"], W, CL, C1), _lane_tile(p["be3"], W, CL, C1)  # (1, 128)
    gft, bft = _lane_tile(p["gf"], W, CL, 0), _lane_tile(p["bf"], W, CL, 0)      # (1, 128)

    # 0/1 channel-selector: vec @ msel = per-channel sum replicated over w.
    lane = np.arange(W * CL)
    m128 = jnp.asarray((lane[:, None] % CL == lane[None, :] % CL).astype(np.float32))
    m64 = m128[:PW * CL, :PW * CL]

    inputs = (x2d, t0, b0v, g1t, be1t, t1, b1v, g2t, be2t, t2, b2v,
              g3t, be3t, t3, b3v, gft, bft, m64, m128)

    def dflops(m, k, nn):
        return 2 * m * k * nn
    flops = (N * KH * dflops(H, (W + 2) * C_IN, W * CL)
             + 2 * 2 * N * KH * dflops(PH, 2 * (PW + 2) * CL, W * CL)
             + N * KH * dflops(H, (W + 2) * CL, W * CL)
             + 20 * dflops(1, W * CL, W * CL))
    bytes_accessed = (sum(int(np.prod(a.shape)) * 4 for a in inputs)
                      + N * H * W * C_OUT * 4)

    out2d = pl.pallas_call(
        _fused_kernel,
        out_shape=jax.ShapeDtypeStruct((N * H, W * CL), jnp.float32),
        grid=(1,),
        in_specs=[_full_spec(a.shape) for a in inputs],
        out_specs=_full_spec((N * H, W * CL)),
        scratch_shapes=[
            pltpu.VMEM((N * HP, (W + 2) * C_IN), jnp.float32),     # xpad  (36,  72)
            pltpu.VMEM((N * H, W * CL), jnp.float32),              # xc    (32, 128)
            pltpu.VMEM((N * H, W * CL), jnp.float32),              # b1    (32, 128)
            pltpu.VMEM((N * H, W * CL), jnp.float32),              # b2    (32, 128)
            pltpu.VMEM((N * PP, 2 * (PW + 2) * CL), jnp.float32),  # ppad  (20, 160)
            pltpu.VMEM((N * HP, (W + 2) * CL), jnp.float32),       # fpad  (36, 144)
        ],
        compiler_params=pltpu.CompilerParams(
            dimension_semantics=("arbitrary",),
            vmem_limit_bytes=32 * 1024 * 1024),
        cost_estimate=pl.CostEstimate(flops=flops, transcendentals=2048,
                                      bytes_accessed=bytes_accessed),
    )(*inputs)
    return out2d.reshape(N, H, W, C_OUT)


# -----------------------------------------------------------------------------
# Deterministic parameter init (synthetic; shapes from the module __init__).
# -----------------------------------------------------------------------------
def init_params(key):
    ks = jax.random.split(key, 16)

    def r(k, shape, scale=0.1):
        return scale * jax.random.normal(k, shape, jnp.float32)

    p = {}
    p["w0"] = r(ks[0], (KH, KW, C_IN, C_OUT))
    p["b0"] = r(ks[1], (C_OUT,))
    p["g1"], p["be1"] = 1.0 + r(ks[2], (P1, C_OUT)), r(ks[3], (P1, C_OUT))
    p["w1"], p["b1"] = r(ks[4], (P1, KH, KW, C_OUT, C1)), r(ks[5], (P1, C1))
    p["g2"], p["be2"] = 1.0 + r(ks[6], (P2, C1)), r(ks[7], (P2, C1))
    p["w2"], p["b2"] = r(ks[8], (P2, KH, KW, C1, C2)), r(ks[9], (P2, C2))
    p["g3"], p["be3"] = 1.0 + r(ks[10], (P3, C2)), r(ks[11], (P3, C2))
    p["w3"], p["b3"] = r(ks[12], (P3, KH, KW, C2, C3)), r(ks[13], (P3, C3))
    p["gf"], p["bf"] = 1.0 + r(ks[14], (C_OUT,)), r(ks[15], (C_OUT,))
    return p


# -----------------------------------------------------------------------------
# Pure-JAX reference (ground truth for the correctness check).
# -----------------------------------------------------------------------------
def _conv2d_ref(x, w, b, pad):
    y = jax.lax.conv_general_dilated(
        x, w, window_strides=(1, 1), padding=[(pad, pad), (pad, pad)],
        dimension_numbers=("NHWC", "HWIO", "NHWC"),
        precision=jax.lax.Precision.HIGHEST)
    return y + b.reshape(1, 1, 1, -1)


def _bn_relu_ref(x, gamma, beta):
    mu = jnp.mean(x, axis=(0, 1, 2))
    var = jnp.mean((x - mu) ** 2, axis=(0, 1, 2))
    return jnp.maximum((x - mu) / jnp.sqrt(var + EPS) * gamma + beta, 0.0)


def _region_ref(x, g, be, w, b, lh, lw):
    nb, hh, ww, _ = x.shape
    ph, pw = hh // lh, ww // lw
    rows = []
    for i in range(lh):
        cols = []
        for j in range(lw):
            k = i * lw + j
            patch = x[:, i * ph:(i + 1) * ph, j * pw:(j + 1) * pw, :]
            patch = _bn_relu_ref(patch, g[k], be[k])
            cols.append(_conv2d_ref(patch, w[k], b[k], PAD))
        rows.append(jnp.concatenate(cols, axis=2))
    return jnp.concatenate(rows, axis=1)


def reference_forward(x, p):
    xc = _conv2d_ref(x, p["w0"], p["b0"], PAD)
    b1 = _region_ref(xc, p["g1"], p["be1"], p["w1"], p["b1"], *LG[0])
    b2 = _region_ref(b1, p["g2"], p["be2"], p["w2"], p["b2"], *LG[1])
    b3 = _region_ref(b2, p["g3"], p["be3"], p["w3"], p["b3"], *LG[2])
    y = xc + jnp.concatenate([b1, b2, b3], axis=-1)
    mu = jnp.mean(y, axis=(0, 1, 2))
    var = jnp.mean((y - mu) ** 2, axis=(0, 1, 2))
    return jnp.maximum((y - mu) / jnp.sqrt(var + EPS) * p["gf"] + p["bf"], 0.0)


if __name__ == "__main__":
    key = jax.random.PRNGKey(0)
    kx, kp = jax.random.split(key)

    # PyTorch-layout input (NCHW), transposed once to NHWC for the kernel.
    x_nchw = jax.random.normal(kx, (N, C_IN, H, W), jnp.float32)
    x_nhwc = jnp.transpose(x_nchw, (0, 2, 3, 1))

    params = init_params(kp)

    out = jax.jit(hierarchical_forward)(x_nhwc, params)
    out = jax.block_until_ready(out)

    ref = reference_forward(x_nhwc, params)
    # MXU dots run at default precision while the reference uses HIGHEST; the
    # tolerance covers that (structural errors would be orders larger).
    np.testing.assert_allclose(np.asarray(out), np.asarray(ref),
                               rtol=5e-3, atol=5e-3)
    print("KERNEL_OK")
</pallas_src>

<mosaic_0001>
module attributes {stable_mosaic.version = 11 : i64} {
  func.func @_fused_kernel(%arg0: i32, %arg1: memref<32x64xf32, #tpu.memory_space<vmem>>, %arg2: memref<3x72x128xf32, #tpu.memory_space<vmem>>, %arg3: memref<1x128xf32, #tpu.memory_space<vmem>>, %arg4: memref<4x64xf32, #tpu.memory_space<vmem>>, %arg5: memref<4x64xf32, #tpu.memory_space<vmem>>, %arg6: memref<6x160x128xf32, #tpu.memory_space<vmem>>, %arg7: memref<2x128xf32, #tpu.memory_space<vmem>>, %arg8: memref<4x64xf32, #tpu.memory_space<vmem>>, %arg9: memref<4x64xf32, #tpu.memory_space<vmem>>, %arg10: memref<6x160x128xf32, #tpu.memory_space<vmem>>, %arg11: memref<2x128xf32, #tpu.memory_space<vmem>>, %arg12: memref<1x128xf32, #tpu.memory_space<vmem>>, %arg13: memref<1x128xf32, #tpu.memory_space<vmem>>, %arg14: memref<3x144x128xf32, #tpu.memory_space<vmem>>, %arg15: memref<1x128xf32, #tpu.memory_space<vmem>>, %arg16: memref<1x128xf32, #tpu.memory_space<vmem>>, %arg17: memref<1x128xf32, #tpu.memory_space<vmem>>, %arg18: memref<64x64xf32, #tpu.memory_space<vmem>>, %arg19: memref<128x128xf32, #tpu.memory_space<vmem>>, %arg20: memref<32x128xf32, #tpu.memory_space<vmem>>, %arg21: memref<36x72xf32, #tpu.memory_space<vmem>>, %arg22: memref<32x128xf32, #tpu.memory_space<vmem>>, %arg23: memref<32x128xf32, #tpu.memory_space<vmem>>, %arg24: memref<32x128xf32, #tpu.memory_space<vmem>>, %arg25: memref<20x160xf32, #tpu.memory_space<vmem>>, %arg26: memref<36x144xf32, #tpu.memory_space<vmem>>) attributes {dimension_semantics = [#tpu.dimension_semantics<arbitrary>], iteration_bounds = array<i64: 1>, scalar_prefetch = 0 : i64, scratch_operands = 6 : i64, tpu.core_type = #tpu.core_type<tc>, window_params = [{pipeline_mode = #tpu.pipeline_mode<synchronous>, transform_indices = @transform_0, window_bounds = array<i64: 32, 64>}, {pipeline_mode = #tpu.pipeline_mode<synchronous>, transform_indices = @transform_1, window_bounds = array<i64: 3, 72, 128>}, {pipeline_mode = #tpu.pipeline_mode<synchronous>, transform_indices = @transform_2, window_bounds = array<i64: 1, 128>}, {pipeline_mode = #tpu.pipeline_mode<synchronous>, transform_indices = @transform_3, window_bounds = array<i64: 4, 64>}, {pipeline_mode = #tpu.pipeline_mode<synchronous>, transform_indices = @transform_4, window_bounds = array<i64: 4, 64>}, {pipeline_mode = #tpu.pipeline_mode<synchronous>, transform_indices = @transform_5, window_bounds = array<i64: 6, 160, 128>}, {pipeline_mode = #tpu.pipeline_mode<synchronous>, transform_indices = @transform_6, window_bounds = array<i64: 2, 128>}, {pipeline_mode = #tpu.pipeline_mode<synchronous>, transform_indices = @transform_7, window_bounds = array<i64: 4, 64>}, {pipeline_mode = #tpu.pipeline_mode<synchronous>, transform_indices = @transform_8, window_bounds = array<i64: 4, 64>}, {pipeline_mode = #tpu.pipeline_mode<synchronous>, transform_indices = @transform_9, window_bounds = array<i64: 6, 160, 128>}, {pipeline_mode = #tpu.pipeline_mode<synchronous>, transform_indices = @transform_10, window_bounds = array<i64: 2, 128>}, {pipeline_mode = #tpu.pipeline_mode<synchronous>, transform_indices = @transform_11, window_bounds = array<i64: 1, 128>}, {pipeline_mode = #tpu.pipeline_mode<synchronous>, transform_indices = @transform_12, window_bounds = array<i64: 1, 128>}, {pipeline_mode = #tpu.pipeline_mode<synchronous>, transform_indices = @transform_13, window_bounds = array<i64: 3, 144, 128>}, {pipeline_mode = #tpu.pipeline_mode<synchronous>, transform_indices = @transform_14, window_bounds = array<i64: 1, 128>}, {pipeline_mode = #tpu.pipeline_mode<synchronous>, transform_indices = @transform_15, window_bounds = array<i64: 1, 128>}, {pipeline_mode = #tpu.pipeline_mode<synchronous>, transform_indices = @transform_16, window_bounds = array<i64: 1, 128>}, {pipeline_mode = #tpu.pipeline_mode<synchronous>, transform_indices = @transform_17, window_bounds = array<i64: 64, 64>}, {pipeline_mode = #tpu.pipeline_mode<synchronous>, transform_indices = @transform_18, window_bounds = array<i64: 128, 128>}, {pipeline_mode = #tpu.pipeline_mode<synchronous>, transform_indices = @transform_19, window_bounds = array<i64: 32, 128>}]} {
    %c0 = arith.constant 0 : index
    %c0_0 = arith.constant 0 : index
    %0 = vector.load %arg18[%c0, %c0_0] : memref<64x64xf32, #tpu.memory_space<vmem>>, vector<64x64xf32>
    %c0_1 = arith.constant 0 : index
    %c0_2 = arith.constant 0 : index
    %1 = vector.load %arg19[%c0_1, %c0_2] : memref<128x128xf32, #tpu.memory_space<vmem>>, vector<128x128xf32>
    %cst = arith.constant 0.000000e+00 : f32
    %2 = vector.broadcast %cst : f32 to vector<36x72xf32>
    %c0_3 = arith.constant 0 : index
    %c0_4 = arith.constant 0 : index
    %3 = vector.load %arg21[%c0_3, %c0_4] : memref<36x72xf32, #tpu.memory_space<vmem>>, vector<36x72xf32>
    tpu.vector_store %arg21[%c0_3, %c0_4], %2 {strides = array<i32>} : memref<36x72xf32, #tpu.memory_space<vmem>>, vector<36x72xf32>,
    %cst_5 = arith.constant 0.000000e+00 : f32
    %4 = vector.broadcast %cst_5 : f32 to vector<20x160xf32>
    %c0_6 = arith.constant 0 : index
    %c0_7 = arith.constant 0 : index
    %5 = vector.load %arg25[%c0_6, %c0_7] : memref<20x160xf32, #tpu.memory_space<vmem>>, vector<20x160xf32>
    tpu.vector_store %arg25[%c0_6, %c0_7], %4 {strides = array<i32>} : memref<20x160xf32, #tpu.memory_space<vmem>>, vector<20x160xf32>,
    %cst_8 = arith.constant 0.000000e+00 : f32
    %6 = vector.broadcast %cst_8 : f32 to vector<36x144xf32>
    %c0_9 = arith.constant 0 : index
    %c0_10 = arith.constant 0 : index
    %7 = vector.load %arg26[%c0_9, %c0_10] : memref<36x144xf32, #tpu.memory_space<vmem>>, vector<36x144xf32>
    tpu.vector_store %arg26[%c0_9, %c0_10], %6 {strides = array<i32>} : memref<36x144xf32, #tpu.memory_space<vmem>>, vector<36x144xf32>,
    %c0_11 = arith.constant 0 : index
    %c0_12 = arith.constant 0 : index
    %8 = vector.load %arg1[%c0_11, %c0_12] : memref<32x64xf32, #tpu.memory_space<vmem>>, vector<16x64xf32>
    %c1 = arith.constant 1 : index
    %c4 = arith.constant 4 : index
    %9 = vector.load %arg21[%c1, %c4] : memref<36x72xf32, #tpu.memory_space<vmem>>, vector<16x64xf32>
    tpu.vector_store %arg21[%c1, %c4], %8 {strides = array<i32>} : memref<36x72xf32, #tpu.memory_space<vmem>>, vector<16x64xf32>,
    %c16 = arith.constant 16 : index
    %c0_13 = arith.constant 0 : index
    %10 = vector.load %arg1[%c16, %c0_13] : memref<32x64xf32, #tpu.memory_space<vmem>>, vector<16x64xf32>
    %c19 = arith.constant 19 : index
    %c4_14 = arith.constant 4 : index
    %11 = vector.load %arg21[%c19, %c4_14] : memref<36x72xf32, #tpu.memory_space<vmem>>, vector<16x64xf32>
    tpu.vector_store %arg21[%c19, %c4_14], %10 {strides = array<i32>} : memref<36x72xf32, #tpu.memory_space<vmem>>, vector<16x64xf32>,
    %c0_15 = arith.constant 0 : index
    %c0_16 = arith.constant 0 : index
    %12 = vector.load %arg3[%c0_15, %c0_16] : memref<1x128xf32, #tpu.memory_space<vmem>>, vector<1x128xf32>
    %c0_17 = arith.constant 0 : index
    %c0_18 = arith.constant 0 : index
    %13 = vector.load %arg21[%c0_17, %c0_18] : memref<36x72xf32, #tpu.memory_space<vmem>>, vector<16x72xf32>
    %c0_19 = arith.constant 0 : index
    %c0_20 = arith.constant 0 : index
    %c0_21 = arith.constant 0 : index
    %14 = vector.load %arg2[%c0_19, %c0_20, %c0_21] : memref<3x72x128xf32, #tpu.memory_space<vmem>>, vector<1x72x128xf32>
    %15 = vector.shape_cast %14 : vector<1x72x128xf32> to vector<72x128xf32>
    %cst_22 = arith.constant dense<0.000000e+00> : vector<16x128xf32>
    %16 = tpu.matmul %13, %15, %cst_22 {dimension_numbers = #tpu.dot_dimension_numbers<[1], [0], [0], [1], [0, 0, 1, 1], [], []>} : vector<16x72xf32>, vector<72x128xf32>, vector<16x128xf32> -> vector<16x128xf32>
    %c1_23 = arith.constant 1 : index
    %c0_24 = arith.constant 0 : index
    %17 = vector.load %arg21[%c1_23, %c0_24] : memref<36x72xf32, #tpu.memory_space<vmem>>, vector<16x72xf32>
    %c1_25 = arith.constant 1 : index
    %c0_26 = arith.constant 0 : index
    %c0_27 = arith.constant 0 : index
    %18 = vector.load %arg2[%c1_25, %c0_26, %c0_27] : memref<3x72x128xf32, #tpu.memory_space<vmem>>, vector<1x72x128xf32>
    %19 = vector.shape_cast %18 : vector<1x72x128xf32> to vector<72x128xf32>
    %cst_28 = arith.constant dense<0.000000e+00> : vector<16x128xf32>
    %20 = tpu.matmul %17, %19, %cst_28 {dimension_numbers = #tpu.dot_dimension_numbers<[1], [0], [0], [1], [0, 0, 1, 1], [], []>} : vector<16x72xf32>, vector<72x128xf32>, vector<16x128xf32> -> vector<16x128xf32>
    %21 = arith.addf %16, %20 : vector<16x128xf32>
    %c2 = arith.constant 2 : index
    %c0_29 = arith.constant 0 : index
    %22 = vector.load %arg21[%c2, %c0_29] : memref<36x72xf32, #tpu.memory_space<vmem>>, vector<16x72xf32>
    %c2_30 = arith.constant 2 : index
    %c0_31 = arith.constant 0 : index
    %c0_32 = arith.constant 0 : index
    %23 = vector.load %arg2[%c2_30, %c0_31, %c0_32] : memref<3x72x128xf32, #tpu.memory_space<vmem>>, vector<1x72x128xf32>
    %24 = vector.shape_cast %23 : vector<1x72x128xf32> to vector<72x128xf32>
    %cst_33 = arith.constant dense<0.000000e+00> : vector<16x128xf32>
    %25 = tpu.matmul %22, %24, %cst_33 {dimension_numbers = #tpu.dot_dimension_numbers<[1], [0], [0], [1], [0, 0, 1, 1], [], []>} : vector<16x72xf32>, vector<72x128xf32>, vector<16x128xf32> -> vector<16x128xf32>
    %26 = arith.addf %21, %25 : vector<16x128xf32>
    %27 = vector.broadcast %12 : vector<1x128xf32> to vector<16x128xf32>
    %28 = arith.addf %26, %27 : vector<16x128xf32>
    %c0_34 = arith.constant 0 : index
    %c0_35 = arith.constant 0 : index
    %29 = vector.load %arg22[%c0_34, %c0_35] : memref<32x128xf32, #tpu.memory_space<vmem>>, vector<16x128xf32>
    tpu.vector_store %arg22[%c0_34, %c0_35], %28 {strides = array<i32>} : memref<32x128xf32, #tpu.memory_space<vmem>>, vector<16x128xf32>,
    %c0_36 = arith.constant 0 : index
    %c0_37 = arith.constant 0 : index
    %30 = vector.load %arg3[%c0_36, %c0_37] : memref<1x128xf32, #tpu.memory_space<vmem>>, vector<1x128xf32>
    %c18 = arith.constant 18 : index
    %c0_38 = arith.constant 0 : index
    %31 = vector.load %arg21[%c18, %c0_38] : memref<36x72xf32, #tpu.memory_space<vmem>>, vector<16x72xf32>
    %c0_39 = arith.constant 0 : index
    %c0_40 = arith.constant 0 : index
    %c0_41 = arith.constant 0 : index
    %32 = vector.load %arg2[%c0_39, %c0_40, %c0_41] : memref<3x72x128xf32, #tpu.memory_space<vmem>>, vector<1x72x128xf32>
    %33 = vector.shape_cast %32 : vector<1x72x128xf32> to vector<72x128xf32>
    %cst_42 = arith.constant dense<0.000000e+00> : vector<16x128xf32>
    %34 = tpu.matmul %31, %33, %cst_42 {dimension_numbers = #tpu.dot_dimension_numbers<[1], [0], [0], [1], [0, 0, 1, 1], [], []>} : vector<16x72xf32>, vector<72x128xf32>, vector<16x128xf32> -> vector<16x128xf32>
    %c19_43 = arith.constant 19 : index
    %c0_44 = arith.constant 0 : index
    %35 = vector.load %arg21[%c19_43, %c0_44] : memref<36x72xf32, #tpu.memory_space<vmem>>, vector<16x72xf32>
    %c1_45 = arith.constant 1 : index
    %c0_46 = arith.constant 0 : index
    %c0_47 = arith.constant 0 : index
    %36 = vector.load %arg2[%c1_45, %c0_46, %c0_47] : memref<3x72x128xf32, #tpu.memory_space<vmem>>, vector<1x72x128xf32>
    %37 = vector.shape_cast %36 : vector<1x72x128xf32> to vector<72x128xf32>
    %cst_48 = arith.constant dense<0.000000e+00> : vector<16x128xf32>
    %38 = tpu.matmul %35, %37, %cst_48 {dimension_numbers = #tpu.dot_dimension_numbers<[1], [0], [0], [1], [0, 0, 1, 1], [], []>} : vector<16x72xf32>, vector<72x128xf32>, vector<16x128xf32> -> vector<16x128xf32>
    %39 = arith.addf %34, %38 : vector<16x128xf32>
    %c20 = arith.constant 20 : index
    %c0_49 = arith.constant 0 : index
    %40 = vector.load %arg21[%c20, %c0_49] : memref<36x72xf32, #tpu.memory_space<vmem>>, vector<16x72xf32>
    %c2_50 = arith.constant 2 : index
    %c0_51 = arith.constant 0 : index
    %c0_52 = arith.constant 0 : index
    %41 = vector.load %arg2[%c2_50, %c0_51, %c0_52] : memref<3x72x128xf32, #tpu.memory_space<vmem>>, vector<1x72x128xf32>
    %42 = vector.shape_cast %41 : vector<1x72x128xf32> to vector<72x128xf32>
    %cst_53 = arith.constant dense<0.000000e+00> : vector<16x128xf32>
    %43 = tpu.matmul %40, %42, %cst_53 {dimension_numbers = #tpu.dot_dimension_numbers<[1], [0], [0], [1], [0, 0, 1, 1], [], []>} : vector<16x72xf32>, vector<72x128xf32>, vector<16x128xf32> -> vector<16x128xf32>
    %44 = arith.addf %39, %43 : vector<16x128xf32>
    %45 = vector.broadcast %30 : vector<1x128xf32> to vector<16x128xf32>
    %46 = arith.addf %44, %45 : vector<16x128xf32>
    %c16_54 = arith.constant 16 : index
    %c0_55 = arith.constant 0 : index
    %47 = vector.load %arg22[%c16_54, %c0_55] : memref<32x128xf32, #tpu.memory_space<vmem>>, vector<16x128xf32>
    tpu.vector_store %arg22[%c16_54, %c0_55], %46 {strides = array<i32>} : memref<32x128xf32, #tpu.memory_space<vmem>>, vector<16x128xf32>,
    %c0_56 = arith.constant 0 : index
    %c0_57 = arith.constant 0 : index
    %48 = vector.load %arg22[%c0_56, %c0_57] : memref<32x128xf32, #tpu.memory_space<vmem>>, vector<8x64xf32>
    %c16_58 = arith.constant 16 : index
    %c0_59 = arith.constant 0 : index
    %49 = vector.load %arg22[%c16_58, %c0_59] : memref<32x128xf32, #tpu.memory_space<vmem>>, vector<8x64xf32>
    %c0_60 = arith.constant 0 : index
    %c0_61 = arith.constant 0 : index
    %50 = vector.load %arg4[%c0_60, %c0_61] : memref<4x64xf32, #tpu.memory_space<vmem>>, vector<1x64xf32>
    %c0_62 = arith.constant 0 : index
    %c0_63 = arith.constant 0 : index
    %51 = vector.load %arg5[%c0_62, %c0_63] : memref<4x64xf32, #tpu.memory_space<vmem>>, vector<1x64xf32>
    %cst_64 = arith.constant dense<0.000000e+00> : vector<64xf32>
    %52 = vector.multi_reduction <add>, %48, %cst_64 [0] : vector<8x64xf32> to vector<64xf32>
    %53 = vector.shape_cast %52 : vector<64xf32> to vector<1x64xf32>
    %cst_65 = arith.constant dense<0.000000e+00> : vector<64xf32>
    %54 = vector.multi_reduction <add>, %49, %cst_65 [0] : vector<8x64xf32> to vector<64xf32>
    %55 = vector.shape_cast %54 : vector<64xf32> to vector<1x64xf32>
    %56 = arith.addf %53, %55 : vector<1x64xf32>
    %cst_66 = arith.constant dense<0.000000e+00> : vector<1x64xf32>
    %57 = tpu.matmul %56, %0, %cst_66 {dimension_numbers = #tpu.dot_dimension_numbers<[1], [0], [0], [1], [0, 0, 1, 1], [], []>} : vector<1x64xf32>, vector<64x64xf32>, vector<1x64xf32> -> vector<1x64xf32>
    %cst_67 = arith.constant 7.812500e-03 : f32
    %58 = vector.broadcast %cst_67 : f32 to vector<1x64xf32>
    %59 = arith.mulf %57, %58 : vector<1x64xf32>
    %60 = vector.broadcast %59 : vector<1x64xf32> to vector<8x64xf32>
    %61 = arith.subf %48, %60 : vector<8x64xf32>
    %62 = arith.mulf %61, %61 : vector<8x64xf32>
    %cst_68 = arith.constant dense<0.000000e+00> : vector<64xf32>
    %63 = vector.multi_reduction <add>, %62, %cst_68 [0] : vector<8x64xf32> to vector<64xf32>
    %64 = vector.shape_cast %63 : vector<64xf32> to vector<1x64xf32>
    %65 = vector.broadcast %59 : vector<1x64xf32> to vector<8x64xf32>
    %66 = arith.subf %49, %65 : vector<8x64xf32>
    %67 = arith.mulf %66, %66 : vector<8x64xf32>
    %cst_69 = arith.constant dense<0.000000e+00> : vector<64xf32>
    %68 = vector.multi_reduction <add>, %67, %cst_69 [0] : vector<8x64xf32> to vector<64xf32>
    %69 = vector.shape_cast %68 : vector<64xf32> to vector<1x64xf32>
    %70 = arith.addf %64, %69 : vector<1x64xf32>
    %cst_70 = arith.constant dense<0.000000e+00> : vector<1x64xf32>
    %71 = tpu.matmul %70, %0, %cst_70 {dimension_numbers = #tpu.dot_dimension_numbers<[1], [0], [0], [1], [0, 0, 1, 1], [], []>} : vector<1x64xf32>, vector<64x64xf32>, vector<1x64xf32> -> vector<1x64xf32>
    %cst_71 = arith.constant 7.812500e-03 : f32
    %72 = vector.broadcast %cst_71 : f32 to vector<1x64xf32>
    %73 = arith.mulf %71, %72 : vector<1x64xf32>
    %cst_72 = arith.constant 9.99999974E-6 : f32
    %74 = vector.broadcast %cst_72 : f32 to vector<1x64xf32>
    %75 = arith.addf %73, %74 : vector<1x64xf32>
    %76 = math.rsqrt %75 : vector<1x64xf32>
    %77 = arith.mulf %50, %76 : vector<1x64xf32>
    %78 = arith.mulf %59, %77 : vector<1x64xf32>
    %79 = arith.subf %51, %78 : vector<1x64xf32>
    %80 = vector.broadcast %77 : vector<1x64xf32> to vector<8x64xf32>
    %81 = arith.mulf %48, %80 : vector<8x64xf32>
    %82 = vector.broadcast %79 : vector<1x64xf32> to vector<8x64xf32>
    %83 = arith.addf %81, %82 : vector<8x64xf32>
    %cst_73 = arith.constant 0.000000e+00 : f32
    %84 = vector.broadcast %cst_73 : f32 to vector<8x64xf32>
    %85 = arith.maximumf %83, %84 : vector<8x64xf32>
    %c1_74 = arith.constant 1 : index
    %c8 = arith.constant 8 : index
    %86 = vector.load %arg25[%c1_74, %c8] : memref<20x160xf32, #tpu.memory_space<vmem>>, vector<8x64xf32>
    tpu.vector_store %arg25[%c1_74, %c8], %85 {strides = array<i32>} : memref<20x160xf32, #tpu.memory_space<vmem>>, vector<8x64xf32>,
    %87 = vector.broadcast %77 : vector<1x64xf32> to vector<8x64xf32>
    %88 = arith.mulf %49, %87 : vector<8x64xf32>
    %89 = vector.broadcast %79 : vector<1x64xf32> to vector<8x64xf32>
    %90 = arith.addf %88, %89 : vector<8x64xf32>
    %cst_75 = arith.constant 0.000000e+00 : f32
    %91 = vector.broadcast %cst_75 : f32 to vector<8x64xf32>
    %92 = arith.maximumf %90, %91 : vector<8x64xf32>
    %c11 = arith.constant 11 : index
    %c8_76 = arith.constant 8 : index
    %93 = vector.load %arg25[%c11, %c8_76] : memref<20x160xf32, #tpu.memory_space<vmem>>, vector<8x64xf32>
    tpu.vector_store %arg25[%c11, %c8_76], %92 {strides = array<i32>} : memref<20x160xf32, #tpu.memory_space<vmem>>, vector<8x64xf32>,
    %c0_77 = arith.constant 0 : index
    %c64 = arith.constant 64 : index
    %94 = vector.load %arg22[%c0_77, %c64] : memref<32x128xf32, #tpu.memory_space<vmem>>, vector<8x64xf32>
    %c16_78 = arith.constant 16 : index
    %c64_79 = arith.constant 64 : index
    %95 = vector.load %arg22[%c16_78, %c64_79] : memref<32x128xf32, #tpu.memory_space<vmem>>, vector<8x64xf32>
    %c1_80 = arith.constant 1 : index
    %c0_81 = arith.constant 0 : index
    %96 = vector.load %arg4[%c1_80, %c0_81] : memref<4x64xf32, #tpu.memory_space<vmem>>, vector<1x64xf32>
    %c1_82 = arith.constant 1 : index
    %c0_83 = arith.constant 0 : index
    %97 = vector.load %arg5[%c1_82, %c0_83] : memref<4x64xf32, #tpu.memory_space<vmem>>, vector<1x64xf32>
    %cst_84 = arith.constant dense<0.000000e+00> : vector<64xf32>
    %98 = vector.multi_reduction <add>, %94, %cst_84 [0] : vector<8x64xf32> to vector<64xf32>
    %99 = vector.shape_cast %98 : vector<64xf32> to vector<1x64xf32>
    %cst_85 = arith.constant dense<0.000000e+00> : vector<64xf32>
    %100 = vector.multi_reduction <add>, %95, %cst_85 [0] : vector<8x64xf32> to vector<64xf32>
    %101 = vector.shape_cast %100 : vector<64xf32> to vector<1x64xf32>
    %102 = arith.addf %99, %101 : vector<1x64xf32>
    %cst_86 = arith.constant dense<0.000000e+00> : vector<1x64xf32>
    %103 = tpu.matmul %102, %0, %cst_86 {dimension_numbers = #tpu.dot_dimension_numbers<[1], [0], [0], [1], [0, 0, 1, 1], [], []>} : vector<1x64xf32>, vector<64x64xf32>, vector<1x64xf32> -> vector<1x64xf32>
    %cst_87 = arith.constant 7.812500e-03 : f32
    %104 = vector.broadcast %cst_87 : f32 to vector<1x64xf32>
    %105 = arith.mulf %103, %104 : vector<1x64xf32>
    %106 = vector.broadcast %105 : vector<1x64xf32> to vector<8x64xf32>
    %107 = arith.subf %94, %106 : vector<8x64xf32>
    %108 = arith.mulf %107, %107 : vector<8x64xf32>
    %cst_88 = arith.constant dense<0.000000e+00> : vector<64xf32>
    %109 = vector.multi_reduction <add>, %108, %cst_88 [0] : vector<8x64xf32> to vector<64xf32>
    %110 = vector.shape_cast %109 : vector<64xf32> to vector<1x64xf32>
    %111 = vector.broadcast %105 : vector<1x64xf32> to vector<8x64xf32>
    %112 = arith.subf %95, %111 : vector<8x64xf32>
    %113 = arith.mulf %112, %112 : vector<8x64xf32>
    %cst_89 = arith.constant dense<0.000000e+00> : vector<64xf32>
    %114 = vector.multi_reduction <add>, %113, %cst_89 [0] : vector<8x64xf32> to vector<64xf32>
    %115 = vector.shape_cast %114 : vector<64xf32> to vector<1x64xf32>
    %116 = arith.addf %110, %115 : vector<1x64xf32>
    %cst_90 = arith.constant dense<0.000000e+00> : vector<1x64xf32>
    %117 = tpu.matmul %116, %0, %cst_90 {dimension_numbers = #tpu.dot_dimension_numbers<[1], [0], [0], [1], [0, 0, 1, 1], [], []>} : vector<1x64xf32>, vector<64x64xf32>, vector<1x64xf32> -> vector<1x64xf32>
    %cst_91 = arith.constant 7.812500e-03 : f32
    %118 = vector.broadcast %cst_91 : f32 to vector<1x64xf32>
    %119 = arith.mulf %117, %118 : vector<1x64xf32>
    %cst_92 = arith.constant 9.99999974E-6 : f32
    %120 = vector.broadcast %cst_92 : f32 to vector<1x64xf32>
    %121 = arith.addf %119, %120 : vector<1x64xf32>
    %122 = math.rsqrt %121 : vector<1x64xf32>
    %123 = arith.mulf %96, %122 : vector<1x64xf32>
    %124 = arith.mulf %105, %123 : vector<1x64xf32>
    %125 = arith.subf %97, %124 : vector<1x64xf32>
    %126 = vector.broadcast %123 : vector<1x64xf32> to vector<8x64xf32>
    %127 = arith.mulf %94, %126 : vector<8x64xf32>
    %128 = vector.broadcast %125 : vector<1x64xf32> to vector<8x64xf32>
    %129 = arith.addf %127, %128 : vector<8x64xf32>
    %cst_93 = arith.constant 0.000000e+00 : f32
    %130 = vector.broadcast %cst_93 : f32 to vector<8x64xf32>
    %131 = arith.maximumf %129, %130 : vector<8x64xf32>
    %c1_94 = arith.constant 1 : index
    %c88 = arith.constant 88 : index
    %132 = vector.load %arg25[%c1_94, %c88] : memref<20x160xf32, #tpu.memory_space<vmem>>, vector<8x64xf32>
    tpu.vector_store %arg25[%c1_94, %c88], %131 {strides = array<i32>} : memref<20x160xf32, #tpu.memory_space<vmem>>, vector<8x64xf32>,
    %133 = vector.broadcast %123 : vector<1x64xf32> to vector<8x64xf32>
    %134 = arith.mulf %95, %133 : vector<8x64xf32>
    %135 = vector.broadcast %125 : vector<1x64xf32> to vector<8x64xf32>
    %136 = arith.addf %134, %135 : vector<8x64xf32>
    %cst_95 = arith.constant 0.000000e+00 : f32
    %137 = vector.broadcast %cst_95 : f32 to vector<8x64xf32>
    %138 = arith.maximumf %136, %137 : vector<8x64xf32>
    %c11_96 = arith.constant 11 : index
    %c88_97 = arith.constant 88 : index
    %139 = vector.load %arg25[%c11_96, %c88_97] : memref<20x160xf32, #tpu.memory_space<vmem>>, vector<8x64xf32>
    tpu.vector_store %arg25[%c11_96, %c88_97], %138 {strides = array<i32>} : memref<20x160xf32, #tpu.memory_space<vmem>>, vector<8x64xf32>,
    %c0_98 = arith.constant 0 : index
    %c0_99 = arith.constant 0 : index
    %140 = vector.load %arg7[%c0_98, %c0_99] : memref<2x128xf32, #tpu.memory_space<vmem>>, vector<1x128xf32>
    %c0_100 = arith.constant 0 : index
    %c0_101 = arith.constant 0 : index
    %141 = vector.load %arg25[%c0_100, %c0_101] : memref<20x160xf32, #tpu.memory_space<vmem>>, vector<8x160xf32>
    %c0_102 = arith.constant 0 : index
    %c0_103 = arith.constant 0 : index
    %c0_104 = arith.constant 0 : index
    %142 = vector.load %arg6[%c0_102, %c0_103, %c0_104] : memref<6x160x128xf32, #tpu.memory_space<vmem>>, vector<1x160x128xf32>
    %143 = vector.shape_cast %142 : vector<1x160x128xf32> to vector<160x128xf32>
    %cst_105 = arith.constant dense<0.000000e+00> : vector<8x128xf32>
    %144 = tpu.matmul %141, %143, %cst_105 {dimension_numbers = #tpu.dot_dimension_numbers<[1], [0], [0], [1], [0, 0, 1, 1], [], []>} : vector<8x160xf32>, vector<160x128xf32>, vector<8x128xf32> -> vector<8x128xf32>
    %c1_106 = arith.constant 1 : index
    %c0_107 = arith.constant 0 : index
    %145 = vector.load %arg25[%c1_106, %c0_107] : memref<20x160xf32, #tpu.memory_space<vmem>>, vector<8x160xf32>
    %c1_108 = arith.constant 1 : index
    %c0_109 = arith.constant 0 : index
    %c0_110 = arith.constant 0 : index
    %146 = vector.load %arg6[%c1_108, %c0_109, %c0_110] : memref<6x160x128xf32, #tpu.memory_space<vmem>>, vector<1x160x128xf32>
    %147 = vector.shape_cast %146 : vector<1x160x128xf32> to vector<160x128xf32>
    %cst_111 = arith.constant dense<0.000000e+00> : vector<8x128xf32>
    %148 = tpu.matmul %145, %147, %cst_111 {dimension_numbers = #tpu.dot_dimension_numbers<[1], [0], [0], [1], [0, 0, 1, 1], [], []>} : vector<8x160xf32>, vector<160x128xf32>, vector<8x128xf32> -> vector<8x128xf32>
    %149 = arith.addf %144, %148 : vector<8x128xf32>
    %c2_112 = arith.constant 2 : index
    %c0_113 = arith.constant 0 : index
    %150 = vector.load %arg25[%c2_112, %c0_113] : memref<20x160xf32, #tpu.memory_space<vmem>>, vector<8x160xf32>
    %c2_114 = arith.constant 2 : index
    %c0_115 = arith.constant 0 : index
    %c0_116 = arith.constant 0 : index
    %151 = vector.load %arg6[%c2_114, %c0_115, %c0_116] : memref<6x160x128xf32, #tpu.memory_space<vmem>>, vector<1x160x128xf32>
    %152 = vector.shape_cast %151 : vector<1x160x128xf32> to vector<160x128xf32>
    %cst_117 = arith.constant dense<0.000000e+00> : vector<8x128xf32>
    %153 = tpu.matmul %150, %152, %cst_117 {dimension_numbers = #tpu.dot_dimension_numbers<[1], [0], [0], [1], [0, 0, 1, 1], [], []>} : vector<8x160xf32>, vector<160x128xf32>, vector<8x128xf32> -> vector<8x128xf32>
    %154 = arith.addf %149, %153 : vector<8x128xf32>
    %155 = vector.broadcast %140 : vector<1x128xf32> to vector<8x128xf32>
    %156 = arith.addf %154, %155 : vector<8x128xf32>
    %c0_118 = arith.constant 0 : index
    %c0_119 = arith.constant 0 : index
    %157 = vector.load %arg23[%c0_118, %c0_119] : memref<32x128xf32, #tpu.memory_space<vmem>>, vector<8x128xf32>
    tpu.vector_store %arg23[%c0_118, %c0_119], %156 {strides = array<i32>} : memref<32x128xf32, #tpu.memory_space<vmem>>, vector<8x128xf32>,
    %c0_120 = arith.constant 0 : index
    %c0_121 = arith.constant 0 : index
    %158 = vector.load %arg7[%c0_120, %c0_121] : memref<2x128xf32, #tpu.memory_space<vmem>>, vector<1x128xf32>
    %c10 = arith.constant 10 : index
    %c0_122 = arith.constant 0 : index
    %159 = vector.load %arg25[%c10, %c0_122] : memref<20x160xf32, #tpu.memory_space<vmem>>, vector<8x160xf32>
    %c0_123 = arith.constant 0 : index
    %c0_124 = arith.constant 0 : index
    %c0_125 = arith.constant 0 : index
    %160 = vector.load %arg6[%c0_123, %c0_124, %c0_125] : memref<6x160x128xf32, #tpu.memory_space<vmem>>, vector<1x160x128xf32>
    %161 = vector.shape_cast %160 : vector<1x160x128xf32> to vector<160x128xf32>
    %cst_126 = arith.constant dense<0.000000e+00> : vector<8x128xf32>
    %162 = tpu.matmul %159, %161, %cst_126 {dimension_numbers = #tpu.dot_dimension_numbers<[1], [0], [0], [1], [0, 0, 1, 1], [], []>} : vector<8x160xf32>, vector<160x128xf32>, vector<8x128xf32> -> vector<8x128xf32>
    %c11_127 = arith.constant 11 : index
    %c0_128 = arith.constant 0 : index
    %163 = vector.load %arg25[%c11_127, %c0_128] : memref<20x160xf32, #tpu.memory_space<vmem>>, vector<8x160xf32>
    %c1_129 = arith.constant 1 : index
    %c0_130 = arith.constant 0 : index
    %c0_131 = arith.constant 0 : index
    %164 = vector.load %arg6[%c1_129, %c0_130, %c0_131] : memref<6x160x128xf32, #tpu.memory_space<vmem>>, vector<1x160x128xf32>
    %165 = vector.shape_cast %164 : vector<1x160x128xf32> to vector<160x128xf32>
    %cst_132 = arith.constant dense<0.000000e+00> : vector<8x128xf32>
    %166 = tpu.matmul %163, %165, %cst_132 {dimension_numbers = #tpu.dot_dimension_numbers<[1], [0], [0], [1], [0, 0, 1, 1], [], []>} : vector<8x160xf32>, vector<160x128xf32>, vector<8x128xf32> -> vector<8x128xf32>
    %167 = arith.addf %162, %166 : vector<8x128xf32>
    %c12 = arith.constant 12 : index
    %c0_133 = arith.constant 0 : index
    %168 = vector.load %arg25[%c12, %c0_133] : memref<20x160xf32, #tpu.memory_space<vmem>>, vector<8x160xf32>
    %c2_134 = arith.constant 2 : index
    %c0_135 = arith.constant 0 : index
    %c0_136 = arith.constant 0 : index
    %169 = vector.load %arg6[%c2_134, %c0_135, %c0_136] : memref<6x160x128xf32, #tpu.memory_space<vmem>>, vector<1x160x128xf32>
    %170 = vector.shape_cast %169 : vector<1x160x128xf32> to vector<160x128xf32>
    %cst_137 = arith.constant dense<0.000000e+00> : vector<8x128xf32>
    %171 = tpu.matmul %168, %170, %cst_137 {dimension_numbers = #tpu.dot_dimension_numbers<[1], [0], [0], [1], [0, 0, 1, 1], [], []>} : vector<8x160xf32>, vector<160x128xf32>, vector<8x128xf32> -> vector<8x128xf32>
    %172 = arith.addf %167, %171 : vector<8x128xf32>
    %173 = vector.broadcast %158 : vector<1x128xf32> to vector<8x128xf32>
    %174 = arith.addf %172, %173 : vector<8x128xf32>
    %c16_138 = arith.constant 16 : index
    %c0_139 = arith.constant 0 : index
    %175 = vector.load %arg23[%c16_138, %c0_139] : memref<32x128xf32, #tpu.memory_space<vmem>>, vector<8x128xf32>
    tpu.vector_store %arg23[%c16_138, %c0_139], %174 {strides = array<i32>} : memref<32x128xf32, #tpu.memory_space<vmem>>, vector<8x128xf32>,
    %c0_140 = arith.constant 0 : index
    %c0_141 = arith.constant 0 : index
    %176 = vector.load %arg23[%c0_140, %c0_141] : memref<32x128xf32, #tpu.memory_space<vmem>>, vector<8x64xf32>
    %c16_142 = arith.constant 16 : index
    %c0_143 = arith.constant 0 : index
    %177 = vector.load %arg23[%c16_142, %c0_143] : memref<32x128xf32, #tpu.memory_space<vmem>>, vector<8x64xf32>
    %c0_144 = arith.constant 0 : index
    %c0_145 = arith.constant 0 : index
    %178 = vector.load %arg8[%c0_144, %c0_145] : memref<4x64xf32, #tpu.memory_space<vmem>>, vector<1x64xf32>
    %c0_146 = arith.constant 0 : index
    %c0_147 = arith.constant 0 : index
    %179 = vector.load %arg9[%c0_146, %c0_147] : memref<4x64xf32, #tpu.memory_space<vmem>>, vector<1x64xf32>
    %cst_148 = arith.constant dense<0.000000e+00> : vector<64xf32>
    %180 = vector.multi_reduction <add>, %176, %cst_148 [0] : vector<8x64xf32> to vector<64xf32>
    %181 = vector.shape_cast %180 : vector<64xf32> to vector<1x64xf32>
    %cst_149 = arith.constant dense<0.000000e+00> : vector<64xf32>
    %182 = vector.multi_reduction <add>, %177, %cst_149 [0] : vector<8x64xf32> to vector<64xf32>
    %183 = vector.shape_cast %182 : vector<64xf32> to vector<1x64xf32>
    %184 = arith.addf %181, %183 : vector<1x64xf32>
    %cst_150 = arith.constant dense<0.000000e+00> : vector<1x64xf32>
    %185 = tpu.matmul %184, %0, %cst_150 {dimension_numbers = #tpu.dot_dimension_numbers<[1], [0], [0], [1], [0, 0, 1, 1], [], []>} : vector<1x64xf32>, vector<64x64xf32>, vector<1x64xf32> -> vector<1x64xf32>
    %cst_151 = arith.constant 7.812500e-03 : f32
    %186 = vector.broadcast %cst_151 : f32 to vector<1x64xf32>
    %187 = arith.mulf %185, %186 : vector<1x64xf32>
    %188 = vector.broadcast %187 : vector<1x64xf32> to vector<8x64xf32>
    %189 = arith.subf %176, %188 : vector<8x64xf32>
    %190 = arith.mulf %189, %189 : vector<8x64xf32>
    %cst_152 = arith.constant dense<0.000000e+00> : vector<64xf32>
    %191 = vector.multi_reduction <add>, %190, %cst_152 [0] : vector<8x64xf32> to vector<64xf32>
    %192 = vector.shape_cast %191 : vector<64xf32> to vector<1x64xf32>
    %193 = vector.broadcast %187 : vector<1x64xf32> to vector<8x64xf32>
    %194 = arith.subf %177, %193 : vector<8x64xf32>
    %195 = arith.mulf %194, %194 : vector<8x64xf32>
    %cst_153 = arith.constant dense<0.000000e+00> : vector<64xf32>
    %196 = vector.multi_reduction <add>, %195, %cst_153 [0] : vector<8x64xf32> to vector<64xf32>
    %197 = vector.shape_cast %196 : vector<64xf32> to vector<1x64xf32>
    %198 = arith.addf %192, %197 : vector<1x64xf32>
    %cst_154 = arith.constant dense<0.000000e+00> : vector<1x64xf32>
    %199 = tpu.matmul %198, %0, %cst_154 {dimension_numbers = #tpu.dot_dimension_numbers<[1], [0], [0], [1], [0, 0, 1, 1], [], []>} : vector<1x64xf32>, vector<64x64xf32>, vector<1x64xf32> -> vector<1x64xf32>
    %cst_155 = arith.constant 7.812500e-03 : f32
    %200 = vector.broadcast %cst_155 : f32 to vector<1x64xf32>
    %201 = arith.mulf %199, %200 : vector<1x64xf32>
    %cst_156 = arith.constant 9.99999974E-6 : f32
    %202 = vector.broadcast %cst_156 : f32 to vector<1x64xf32>
    %203 = arith.addf %201, %202 : vector<1x64xf32>
    %204 = math.rsqrt %203 : vector<1x64xf32>
    %205 = arith.mulf %178, %204 : vector<1x64xf32>
    %206 = arith.mulf %187, %205 : vector<1x64xf32>
    %207 = arith.subf %179, %206 : vector<1x64xf32>
    %208 = vector.broadcast %205 : vector<1x64xf32> to vector<8x64xf32>
    %209 = arith.mulf %176, %208 : vector<8x64xf32>
    %210 = vector.broadcast %207 : vector<1x64xf32> to vector<8x64xf32>
    %211 = arith.addf %209, %210 : vector<8x64xf32>
    %cst_157 = arith.constant 0.000000e+00 : f32
    %212 = vector.broadcast %cst_157 : f32 to vector<8x64xf32>
    %213 = arith.maximumf %211, %212 : vector<8x64xf32>
    %c1_158 = arith.constant 1 : index
    %c8_159 = arith.constant 8 : index
    %214 = vector.load %arg25[%c1_158, %c8_159] : memref<20x160xf32, #tpu.memory_space<vmem>>, vector<8x64xf32>
    tpu.vector_store %arg25[%c1_158, %c8_159], %213 {strides = array<i32>} : memref<20x160xf32, #tpu.memory_space<vmem>>, vector<8x64xf32>,
    %215 = vector.broadcast %205 : vector<1x64xf32> to vector<8x64xf32>
    %216 = arith.mulf %177, %215 : vector<8x64xf32>
    %217 = vector.broadcast %207 : vector<1x64xf32> to vector<8x64xf32>
    %218 = arith.addf %216, %217 : vector<8x64xf32>
    %cst_160 = arith.constant 0.000000e+00 : f32
    %219 = vector.broadcast %cst_160 : f32 to vector<8x64xf32>
    %220 = arith.maximumf %218, %219 : vector<8x64xf32>
    %c11_161 = arith.constant 11 : index
    %c8_162 = arith.constant 8 : index
    %221 = vector.load %arg25[%c11_161, %c8_162] : memref<20x160xf32, #tpu.memory_space<vmem>>, vector<8x64xf32>
    tpu.vector_store %arg25[%c11_161, %c8_162], %220 {strides = array<i32>} : memref<20x160xf32, #tpu.memory_space<vmem>>, vector<8x64xf32>,
    %c0_163 = arith.constant 0 : index
    %c64_164 = arith.constant 64 : index
    %222 = vector.load %arg23[%c0_163, %c64_164] : memref<32x128xf32, #tpu.memory_space<vmem>>, vector<8x64xf32>
    %c16_165 = arith.constant 16 : index
    %c64_166 = arith.constant 64 : index
    %223 = vector.load %arg23[%c16_165, %c64_166] : memref<32x128xf32, #tpu.memory_space<vmem>>, vector<8x64xf32>
    %c1_167 = arith.constant 1 : index
    %c0_168 = arith.constant 0 : index
    %224 = vector.load %arg8[%c1_167, %c0_168] : memref<4x64xf32, #tpu.memory_space<vmem>>, vector<1x64xf32>
    %c1_169 = arith.constant 1 : index
    %c0_170 = arith.constant 0 : index
    %225 = vector.load %arg9[%c1_169, %c0_170] : memref<4x64xf32, #tpu.memory_space<vmem>>, vector<1x64xf32>
    %cst_171 = arith.constant dense<0.000000e+00> : vector<64xf32>
    %226 = vector.multi_reduction <add>, %222, %cst_171 [0] : vector<8x64xf32> to vector<64xf32>
    %227 = vector.shape_cast %226 : vector<64xf32> to vector<1x64xf32>
    %cst_172 = arith.constant dense<0.000000e+00> : vector<64xf32>
    %228 = vector.multi_reduction <add>, %223, %cst_172 [0] : vector<8x64xf32> to vector<64xf32>
    %229 = vector.shape_cast %228 : vector<64xf32> to vector<1x64xf32>
    %230 = arith.addf %227, %229 : vector<1x64xf32>
    %cst_173 = arith.constant dense<0.000000e+00> : vector<1x64xf32>
    %231 = tpu.matmul %230, %0, %cst_173 {dimension_numbers = #tpu.dot_dimension_numbers<[1], [0], [0], [1], [0, 0, 1, 1], [], []>} : vector<1x64xf32>, vector<64x64xf32>, vector<1x64xf32> -> vector<1x64xf32>
    %cst_174 = arith.constant 7.812500e-03 : f32
    %232 = vector.broadcast %cst_174 : f32 to vector<1x64xf32>
    %233 = arith.mulf %231, %232 : vector<1x64xf32>
    %234 = vector.broadcast %233 : vector<1x64xf32> to vector<8x64xf32>
    %235 = arith.subf %222, %234 : vector<8x64xf32>
    %236 = arith.mulf %235, %235 : vector<8x64xf32>
    %cst_175 = arith.constant dense<0.000000e+00> : vector<64xf32>
    %237 = vector.multi_reduction <add>, %236, %cst_175 [0] : vector<8x64xf32> to vector<64xf32>
    %238 = vector.shape_cast %237 : vector<64xf32> to vector<1x64xf32>
    %239 = vector.broadcast %233 : vector<1x64xf32> to vector<8x64xf32>
    %240 = arith.subf %223, %239 : vector<8x64xf32>
    %241 = arith.mulf %240, %240 : vector<8x64xf32>
    %cst_176 = arith.constant dense<0.000000e+00> : vector<64xf32>
    %242 = vector.multi_reduction <add>, %241, %cst_176 [0] : vector<8x64xf32> to vector<64xf32>
    %243 = vector.shape_cast %242 : vector<64xf32> to vector<1x64xf32>
    %244 = arith.addf %238, %243 : vector<1x64xf32>
    %cst_177 = arith.constant dense<0.000000e+00> : vector<1x64xf32>
    %245 = tpu.matmul %244, %0, %cst_177 {dimension_numbers = #tpu.dot_dimension_numbers<[1], [0], [0], [1], [0, 0, 1, 1], [], []>} : vector<1x64xf32>, vector<64x64xf32>, vector<1x64xf32> -> vector<1x64xf32>
    %cst_178 = arith.constant 7.812500e-03 : f32
    %246 = vector.broadcast %cst_178 : f32 to vector<1x64xf32>
    %247 = arith.mulf %245, %246 : vector<1x64xf32>
    %cst_179 = arith.constant 9.99999974E-6 : f32
    %248 = vector.broadcast %cst_179 : f32 to vector<1x64xf32>
    %249 = arith.addf %247, %248 : vector<1x64xf32>
    %250 = math.rsqrt %249 : vector<1x64xf32>
    %251 = arith.mulf %224, %250 : vector<1x64xf32>
    %252 = arith.mulf %233, %251 : vector<1x64xf32>
    %253 = arith.subf %225, %252 : vector<1x64xf32>
    %254 = vector.broadcast %251 : vector<1x64xf32> to vector<8x64xf32>
    %255 = arith.mulf %222, %254 : vector<8x64xf32>
    %256 = vector.broadcast %253 : vector<1x64xf32> to vector<8x64xf32>
    %257 = arith.addf %255, %256 : vector<8x64xf32>
    %cst_180 = arith.constant 0.000000e+00 : f32
    %258 = vector.broadcast %cst_180 : f32 to vector<8x64xf32>
    %259 = arith.maximumf %257, %258 : vector<8x64xf32>
    %c1_181 = arith.constant 1 : index
    %c88_182 = arith.constant 88 : index
    %260 = vector.load %arg25[%c1_181, %c88_182] : memref<20x160xf32, #tpu.memory_space<vmem>>, vector<8x64xf32>
    tpu.vector_store %arg25[%c1_181, %c88_182], %259 {strides = array<i32>} : memref<20x160xf32, #tpu.memory_space<vmem>>, vector<8x64xf32>,
    %261 = vector.broadcast %251 : vector<1x64xf32> to vector<8x64xf32>
    %262 = arith.mulf %223, %261 : vector<8x64xf32>
    %263 = vector.broadcast %253 : vector<1x64xf32> to vector<8x64xf32>
    %264 = arith.addf %262, %263 : vector<8x64xf32>
    %cst_183 = arith.constant 0.000000e+00 : f32
    %265 = vector.broadcast %cst_183 : f32 to vector<8x64xf32>
    %266 = arith.maximumf %264, %265 : vector<8x64xf32>
    %c11_184 = arith.constant 11 : index
    %c88_185 = arith.constant 88 : index
    %267 = vector.load %arg25[%c11_184, %c88_185] : memref<20x160xf32, #tpu.memory_space<vmem>>, vector<8x64xf32>
    tpu.vector_store %arg25[%c11_184, %c88_185], %266 {strides = array<i32>} : memref<20x160xf32, #tpu.memory_space<vmem>>, vector<8x64xf32>,
    %c0_186 = arith.constant 0 : index
    %c0_187 = arith.constant 0 : index
    %268 = vector.load %arg11[%c0_186, %c0_187] : memref<2x128xf32, #tpu.memory_space<vmem>>, vector<1x128xf32>
    %c0_188 = arith.constant 0 : index
    %c0_189 = arith.constant 0 : index
    %269 = vector.load %arg25[%c0_188, %c0_189] : memref<20x160xf32, #tpu.memory_space<vmem>>, vector<8x160xf32>
    %c0_190 = arith.constant 0 : index
    %c0_191 = arith.constant 0 : index
    %c0_192 = arith.constant 0 : index
    %270 = vector.load %arg10[%c0_190, %c0_191, %c0_192] : memref<6x160x128xf32, #tpu.memory_space<vmem>>, vector<1x160x128xf32>
    %271 = vector.shape_cast %270 : vector<1x160x128xf32> to vector<160x128xf32>
    %cst_193 = arith.constant dense<0.000000e+00> : vector<8x128xf32>
    %272 = tpu.matmul %269, %271, %cst_193 {dimension_numbers = #tpu.dot_dimension_numbers<[1], [0], [0], [1], [0, 0, 1, 1], [], []>} : vector<8x160xf32>, vector<160x128xf32>, vector<8x128xf32> -> vector<8x128xf32>
    %c1_194 = arith.constant 1 : index
    %c0_195 = arith.constant 0 : index
    %273 = vector.load %arg25[%c1_194, %c0_195] : memref<20x160xf32, #tpu.memory_space<vmem>>, vector<8x160xf32>
    %c1_196 = arith.constant 1 : index
    %c0_197 = arith.constant 0 : index
    %c0_198 = arith.constant 0 : index
    %274 = vector.load %arg10[%c1_196, %c0_197, %c0_198] : memref<6x160x128xf32, #tpu.memory_space<vmem>>, vector<1x160x128xf32>
    %275 = vector.shape_cast %274 : vector<1x160x128xf32> to vector<160x128xf32>
    %cst_199 = arith.constant dense<0.000000e+00> : vector<8x128xf32>
    %276 = tpu.matmul %273, %275, %cst_199 {dimension_numbers = #tpu.dot_dimension_numbers<[1], [0], [0], [1], [0, 0, 1, 1], [], []>} : vector<8x160xf32>, vector<160x128xf32>, vector<8x128xf32> -> vector<8x128xf32>
    %277 = arith.addf %272, %276 : vector<8x128xf32>
    %c2_200 = arith.constant 2 : index
    %c0_201 = arith.constant 0 : index
    %278 = vector.load %arg25[%c2_200, %c0_201] : memref<20x160xf32, #tpu.memory_space<vmem>>, vector<8x160xf32>
    %c2_202 = arith.constant 2 : index
    %c0_203 = arith.constant 0 : index
    %c0_204 = arith.constant 0 : index
    %279 = vector.load %arg10[%c2_202, %c0_203, %c0_204] : memref<6x160x128xf32, #tpu.memory_space<vmem>>, vector<1x160x128xf32>
    %280 = vector.shape_cast %279 : vector<1x160x128xf32> to vector<160x128xf32>
    %cst_205 = arith.constant dense<0.000000e+00> : vector<8x128xf32>
    %281 = tpu.matmul %278, %280, %cst_205 {dimension_numbers = #tpu.dot_dimension_numbers<[1], [0], [0], [1], [0, 0, 1, 1], [], []>} : vector<8x160xf32>, vector<160x128xf32>, vector<8x128xf32> -> vector<8x128xf32>
    %282 = arith.addf %277, %281 : vector<8x128xf32>
    %283 = vector.broadcast %268 : vector<1x128xf32> to vector<8x128xf32>
    %284 = arith.addf %282, %283 : vector<8x128xf32>
    %c0_206 = arith.constant 0 : index
    %c0_207 = arith.constant 0 : index
    %285 = vector.load %arg24[%c0_206, %c0_207] : memref<32x128xf32, #tpu.memory_space<vmem>>, vector<8x128xf32>
    tpu.vector_store %arg24[%c0_206, %c0_207], %284 {strides = array<i32>} : memref<32x128xf32, #tpu.memory_space<vmem>>, vector<8x128xf32>,
    %c0_208 = arith.constant 0 : index
    %c0_209 = arith.constant 0 : index
    %286 = vector.load %arg11[%c0_208, %c0_209] : memref<2x128xf32, #tpu.memory_space<vmem>>, vector<1x128xf32>
    %c10_210 = arith.constant 10 : index
    %c0_211 = arith.constant 0 : index
    %287 = vector.load %arg25[%c10_210, %c0_211] : memref<20x160xf32, #tpu.memory_space<vmem>>, vector<8x160xf32>
    %c0_212 = arith.constant 0 : index
    %c0_213 = arith.constant 0 : index
    %c0_214 = arith.constant 0 : index
    %288 = vector.load %arg10[%c0_212, %c0_213, %c0_214] : memref<6x160x128xf32, #tpu.memory_space<vmem>>, vector<1x160x128xf32>
    %289 = vector.shape_cast %288 : vector<1x160x128xf32> to vector<160x128xf32>
    %cst_215 = arith.constant dense<0.000000e+00> : vector<8x128xf32>
    %290 = tpu.matmul %287, %289, %cst_215 {dimension_numbers = #tpu.dot_dimension_numbers<[1], [0], [0], [1], [0, 0, 1, 1], [], []>} : vector<8x160xf32>, vector<160x128xf32>, vector<8x128xf32> -> vector<8x128xf32>
    %c11_216 = arith.constant 11 : index
    %c0_217 = arith.constant 0 : index
    %291 = vector.load %arg25[%c11_216, %c0_217] : memref<20x160xf32, #tpu.memory_space<vmem>>, vector<8x160xf32>
    %c1_218 = arith.constant 1 : index
    %c0_219 = arith.constant 0 : index
    %c0_220 = arith.constant 0 : index
    %292 = vector.load %arg10[%c1_218, %c0_219, %c0_220] : memref<6x160x128xf32, #tpu.memory_space<vmem>>, vector<1x160x128xf32>
    %293 = vector.shape_cast %292 : vector<1x160x128xf32> to vector<160x128xf32>
    %cst_221 = arith.constant dense<0.000000e+00> : vector<8x128xf32>
    %294 = tpu.matmul %291, %293, %cst_221 {dimension_numbers = #tpu.dot_dimension_numbers<[1], [0], [0], [1], [0, 0, 1, 1], [], []>} : vector<8x160xf32>, vector<160x128xf32>, vector<8x128xf32> -> vector<8x128xf32>
    %295 = arith.addf %290, %294 : vector<8x128xf32>
    %c12_222 = arith.constant 12 : index
    %c0_223 = arith.constant 0 : index
    %296 = vector.load %arg25[%c12_222, %c0_223] : memref<20x160xf32, #tpu.memory_space<vmem>>, vector<8x160xf32>
    %c2_224 = arith.constant 2 : index
    %c0_225 = arith.constant 0 : index
    %c0_226 = arith.constant 0 : index
    %297 = vector.load %arg10[%c2_224, %c0_225, %c0_226] : memref<6x160x128xf32, #tpu.memory_space<vmem>>, vector<1x160x128xf32>
    %298 = vector.shape_cast %297 : vector<1x160x128xf32> to vector<160x128xf32>
    %cst_227 = arith.constant dense<0.000000e+00> : vector<8x128xf32>
    %299 = tpu.matmul %296, %298, %cst_227 {dimension_numbers = #tpu.dot_dimension_numbers<[1], [0], [0], [1], [0, 0, 1, 1], [], []>} : vector<8x160xf32>, vector<160x128xf32>, vector<8x128xf32> -> vector<8x128xf32>
    %300 = arith.addf %295, %299 : vector<8x128xf32>
    %301 = vector.broadcast %286 : vector<1x128xf32> to vector<8x128xf32>
    %302 = arith.addf %300, %301 : vector<8x128xf32>
    %c16_228 = arith.constant 16 : index
    %c0_229 = arith.constant 0 : index
    %303 = vector.load %arg24[%c16_228, %c0_229] : memref<32x128xf32, #tpu.memory_space<vmem>>, vector<8x128xf32>
    tpu.vector_store %arg24[%c16_228, %c0_229], %302 {strides = array<i32>} : memref<32x128xf32, #tpu.memory_space<vmem>>, vector<8x128xf32>,
    %c8_230 = arith.constant 8 : index
    %c0_231 = arith.constant 0 : index
    %304 = vector.load %arg22[%c8_230, %c0_231] : memref<32x128xf32, #tpu.memory_space<vmem>>, vector<8x64xf32>
    %c24 = arith.constant 24 : index
    %c0_232 = arith.constant 0 : index
    %305 = vector.load %arg22[%c24, %c0_232] : memref<32x128xf32, #tpu.memory_space<vmem>>, vector<8x64xf32>
    %c2_233 = arith.constant 2 : index
    %c0_234 = arith.constant 0 : index
    %306 = vector.load %arg4[%c2_233, %c0_234] : memref<4x64xf32, #tpu.memory_space<vmem>>, vector<1x64xf32>
    %c2_235 = arith.constant 2 : index
    %c0_236 = arith.constant 0 : index
    %307 = vector.load %arg5[%c2_235, %c0_236] : memref<4x64xf32, #tpu.memory_space<vmem>>, vector<1x64xf32>
    %cst_237 = arith.constant dense<0.000000e+00> : vector<64xf32>
    %308 = vector.multi_reduction <add>, %304, %cst_237 [0] : vector<8x64xf32> to vector<64xf32>
    %309 = vector.shape_cast %308 : vector<64xf32> to vector<1x64xf32>
    %cst_238 = arith.constant dense<0.000000e+00> : vector<64xf32>
    %310 = vector.multi_reduction <add>, %305, %cst_238 [0] : vector<8x64xf32> to vector<64xf32>
    %311 = vector.shape_cast %310 : vector<64xf32> to vector<1x64xf32>
    %312 = arith.addf %309, %311 : vector<1x64xf32>
    %cst_239 = arith.constant dense<0.000000e+00> : vector<1x64xf32>
    %313 = tpu.matmul %312, %0, %cst_239 {dimension_numbers = #tpu.dot_dimension_numbers<[1], [0], [0], [1], [0, 0, 1, 1], [], []>} : vector<1x64xf32>, vector<64x64xf32>, vector<1x64xf32> -> vector<1x64xf32>
    %cst_240 = arith.constant 7.812500e-03 : f32
    %314 = vector.broadcast %cst_240 : f32 to vector<1x64xf32>
    %315 = arith.mulf %313, %314 : vector<1x64xf32>
    %316 = vector.broadcast %315 : vector<1x64xf32> to vector<8x64xf32>
    %317 = arith.subf %304, %316 : vector<8x64xf32>
    %318 = arith.mulf %317, %317 : vector<8x64xf32>
    %cst_241 = arith.constant dense<0.000000e+00> : vector<64xf32>
    %319 = vector.multi_reduction <add>, %318, %cst_241 [0] : vector<8x64xf32> to vector<64xf32>
    %320 = vector.shape_cast %319 : vector<64xf32> to vector<1x64xf32>
    %321 = vector.broadcast %315 : vector<1x64xf32> to vector<8x64xf32>
    %322 = arith.subf %305, %321 : vector<8x64xf32>
    %323 = arith.mulf %322, %322 : vector<8x64xf32>
    %cst_242 = arith.constant dense<0.000000e+00> : vector<64xf32>
    %324 = vector.multi_reduction <add>, %323, %cst_242 [0] : vector<8x64xf32> to vector<64xf32>
    %325 = vector.shape_cast %324 : vector<64xf32> to vector<1x64xf32>
    %326 = arith.addf %320, %325 : vector<1x64xf32>
    %cst_243 = arith.constant dense<0.000000e+00> : vector<1x64xf32>
    %327 = tpu.matmul %326, %0, %cst_243 {dimension_numbers = #tpu.dot_dimension_numbers<[1], [0], [0], [1], [0, 0, 1, 1], [], []>} : vector<1x64xf32>, vector<64x64xf32>, vector<1x64xf32> -> vector<1x64xf32>
    %cst_244 = arith.constant 7.812500e-03 : f32
    %328 = vector.broadcast %cst_244 : f32 to vector<1x64xf32>
    %329 = arith.mulf %327, %328 : vector<1x64xf32>
    %cst_245 = arith.constant 9.99999974E-6 : f32
    %330 = vector.broadcast %cst_245 : f32 to vector<1x64xf32>
    %331 = arith.addf %329, %330 : vector<1x64xf32>
    %332 = math.rsqrt %331 : vector<1x64xf32>
    %333 = arith.mulf %306, %332 : vector<1x64xf32>
    %334 = arith.mulf %315, %333 : vector<1x64xf32>
    %335 = arith.subf %307, %334 : vector<1x64xf32>
    %336 = vector.broadcast %333 : vector<1x64xf32> to vector<8x64xf32>
    %337 = arith.mulf %304, %336 : vector<8x64xf32>
    %338 = vector.broadcast %335 : vector<1x64xf32> to vector<8x64xf32>
    %339 = arith.addf %337, %338 : vector<8x64xf32>
    %cst_246 = arith.constant 0.000000e+00 : f32
    %340 = vector.broadcast %cst_246 : f32 to vector<8x64xf32>
    %341 = arith.maximumf %339, %340 : vector<8x64xf32>
    %c1_247 = arith.constant 1 : index
    %c8_248 = arith.constant 8 : index
    %342 = vector.load %arg25[%c1_247, %c8_248] : memref<20x160xf32, #tpu.memory_space<vmem>>, vector<8x64xf32>
    tpu.vector_store %arg25[%c1_247, %c8_248], %341 {strides = array<i32>} : memref<20x160xf32, #tpu.memory_space<vmem>>, vector<8x64xf32>,
    %343 = vector.broadcast %333 : vector<1x64xf32> to vector<8x64xf32>
    %344 = arith.mulf %305, %343 : vector<8x64xf32>
    %345 = vector.broadcast %335 : vector<1x64xf32> to vector<8x64xf32>
    %346 = arith.addf %344, %345 : vector<8x64xf32>
    %cst_249 = arith.constant 0.000000e+00 : f32
    %347 = vector.broadcast %cst_249 : f32 to vector<8x64xf32>
    %348 = arith.maximumf %346, %347 : vector<8x64xf32>
    %c11_250 = arith.constant 11 : index
    %c8_251 = arith.constant 8 : index
    %349 = vector.load %arg25[%c11_250, %c8_251] : memref<20x160xf32, #tpu.memory_space<vmem>>, vector<8x64xf32>
    tpu.vector_store %arg25[%c11_250, %c8_251], %348 {strides = array<i32>} : memref<20x160xf32, #tpu.memory_space<vmem>>, vector<8x64xf32>,
    %c8_252 = arith.constant 8 : index
    %c64_253 = arith.constant 64 : index
    %350 = vector.load %arg22[%c8_252, %c64_253] : memref<32x128xf32, #tpu.memory_space<vmem>>, vector<8x64xf32>
    %c24_254 = arith.constant 24 : index
    %c64_255 = arith.constant 64 : index
    %351 = vector.load %arg22[%c24_254, %c64_255] : memref<32x128xf32, #tpu.memory_space<vmem>>, vector<8x64xf32>
    %c3 = arith.constant 3 : index
    %c0_256 = arith.constant 0 : index
    %352 = vector.load %arg4[%c3, %c0_256] : memref<4x64xf32, #tpu.memory_space<vmem>>, vector<1x64xf32>
    %c3_257 = arith.constant 3 : index
    %c0_258 = arith.constant 0 : index
    %353 = vector.load %arg5[%c3_257, %c0_258] : memref<4x64xf32, #tpu.memory_space<vmem>>, vector<1x64xf32>
    %cst_259 = arith.constant dense<0.000000e+00> : vector<64xf32>
    %354 = vector.multi_reduction <add>, %350, %cst_259 [0] : vector<8x64xf32> to vector<64xf32>
    %355 = vector.shape_cast %354 : vector<64xf32> to vector<1x64xf32>
    %cst_260 = arith.constant dense<0.000000e+00> : vector<64xf32>
    %356 = vector.multi_reduction <add>, %351, %cst_260 [0] : vector<8x64xf32> to vector<64xf32>
    %357 = vector.shape_cast %356 : vector<64xf32> to vector<1x64xf32>
    %358 = arith.addf %355, %357 : vector<1x64xf32>
    %cst_261 = arith.constant dense<0.000000e+00> : vector<1x64xf32>
    %359 = tpu.matmul %358, %0, %cst_261 {dimension_numbers = #tpu.dot_dimension_numbers<[1], [0], [0], [1], [0, 0, 1, 1], [], []>} : vector<1x64xf32>, vector<64x64xf32>, vector<1x64xf32> -> vector<1x64xf32>
    %cst_262 = arith.constant 7.812500e-03 : f32
    %360 = vector.broadcast %cst_262 : f32 to vector<1x64xf32>
    %361 = arith.mulf %359, %360 : vector<1x64xf32>
    %362 = vector.broadcast %361 : vector<1x64xf32> to vector<8x64xf32>
    %363 = arith.subf %350, %362 : vector<8x64xf32>
    %364 = arith.mulf %363, %363 : vector<8x64xf32>
    %cst_263 = arith.constant dense<0.000000e+00> : vector<64xf32>
    %365 = vector.multi_reduction <add>, %364, %cst_263 [0] : vector<8x64xf32> to vector<64xf32>
    %366 = vector.shape_cast %365 : vector<64xf32> to vector<1x64xf32>
    %367 = vector.broadcast %361 : vector<1x64xf32> to vector<8x64xf32>
    %368 = arith.subf %351, %367 : vector<8x64xf32>
    %369 = arith.mulf %368, %368 : vector<8x64xf32>
    %cst_264 = arith.constant dense<0.000000e+00> : vector<64xf32>
    %370 = vector.multi_reduction <add>, %369, %cst_264 [0] : vector<8x64xf32> to vector<64xf32>
    %371 = vector.shape_cast %370 : vector<64xf32> to vector<1x64xf32>
    %372 = arith.addf %366, %371 : vector<1x64xf32>
    %cst_265 = arith.constant dense<0.000000e+00> : vector<1x64xf32>
    %373 = tpu.matmul %372, %0, %cst_265 {dimension_numbers = #tpu.dot_dimension_numbers<[1], [0], [0], [1], [0, 0, 1, 1], [], []>} : vector<1x64xf32>, vector<64x64xf32>, vector<1x64xf32> -> vector<1x64xf32>
    %cst_266 = arith.constant 7.812500e-03 : f32
    %374 = vector.broadcast %cst_266 : f32 to vector<1x64xf32>
    %375 = arith.mulf %373, %374 : vector<1x64xf32>
    %cst_267 = arith.constant 9.99999974E-6 : f32
    %376 = vector.broadcast %cst_267 : f32 to vector<1x64xf32>
    %377 = arith.addf %375, %376 : vector<1x64xf32>
    %378 = math.rsqrt %377 : vector<1x64xf32>
    %379 = arith.mulf %352, %378 : vector<1x64xf32>
    %380 = arith.mulf %361, %379 : vector<1x64xf32>
    %381 = arith.subf %353, %380 : vector<1x64xf32>
    %382 = vector.broadcast %379 : vector<1x64xf32> to vector<8x64xf32>
    %383 = arith.mulf %350, %382 : vector<8x64xf32>
    %384 = vector.broadcast %381 : vector<1x64xf32> to vector<8x64xf32>
    %385 = arith.addf %383, %384 : vector<8x64xf32>
    %cst_268 = arith.constant 0.000000e+00 : f32
    %386 = vector.broadcast %cst_268 : f32 to vector<8x64xf32>
    %387 = arith.maximumf %385, %386 : vector<8x64xf32>
    %c1_269 = arith.constant 1 : index
    %c88_270 = arith.constant 88 : index
    %388 = vector.load %arg25[%c1_269, %c88_270] : memref<20x160xf32, #tpu.memory_space<vmem>>, vector<8x64xf32>
    tpu.vector_store %arg25[%c1_269, %c88_270], %387 {strides = array<i32>} : memref<20x160xf32, #tpu.memory_space<vmem>>, vector<8x64xf32>,
    %389 = vector.broadcast %379 : vector<1x64xf32> to vector<8x64xf32>
    %390 = arith.mulf %351, %389 : vector<8x64xf32>
    %391 = vector.broadcast %381 : vector<1x64xf32> to vector<8x64xf32>
    %392 = arith.addf %390, %391 : vector<8x64xf32>
    %cst_271 = arith.constant 0.000000e+00 : f32
    %393 = vector.broadcast %cst_271 : f32 to vector<8x64xf32>
    %394 = arith.maximumf %392, %393 : vector<8x64xf32>
    %c11_272 = arith.constant 11 : index
    %c88_273 = arith.constant 88 : index
    %395 = vector.load %arg25[%c11_272, %c88_273] : memref<20x160xf32, #tpu.memory_space<vmem>>, vector<8x64xf32>
    tpu.vector_store %arg25[%c11_272, %c88_273], %394 {strides = array<i32>} : memref<20x160xf32, #tpu.memory_space<vmem>>, vector<8x64xf32>,
    %c1_274 = arith.constant 1 : index
    %c0_275 = arith.constant 0 : index
    %396 = vector.load %arg7[%c1_274, %c0_275] : memref<2x128xf32, #tpu.memory_space<vmem>>, vector<1x128xf32>
    %c0_276 = arith.constant 0 : index
    %c0_277 = arith.constant 0 : index
    %397 = vector.load %arg25[%c0_276, %c0_277] : memref<20x160xf32, #tpu.memory_space<vmem>>, vector<8x160xf32>
    %c3_278 = arith.constant 3 : index
    %c0_279 = arith.constant 0 : index
    %c0_280 = arith.constant 0 : index
    %398 = vector.load %arg6[%c3_278, %c0_279, %c0_280] : memref<6x160x128xf32, #tpu.memory_space<vmem>>, vector<1x160x128xf32>
    %399 = vector.shape_cast %398 : vector<1x160x128xf32> to vector<160x128xf32>
    %cst_281 = arith.constant dense<0.000000e+00> : vector<8x128xf32>
    %400 = tpu.matmul %397, %399, %cst_281 {dimension_numbers = #tpu.dot_dimension_numbers<[1], [0], [0], [1], [0, 0, 1, 1], [], []>} : vector<8x160xf32>, vector<160x128xf32>, vector<8x128xf32> -> vector<8x128xf32>
    %c1_282 = arith.constant 1 : index
    %c0_283 = arith.constant 0 : index
    %401 = vector.load %arg25[%c1_282, %c0_283] : memref<20x160xf32, #tpu.memory_space<vmem>>, vector<8x160xf32>
    %c4_284 = arith.constant 4 : index
    %c0_285 = arith.constant 0 : index
    %c0_286 = arith.constant 0 : index
    %402 = vector.load %arg6[%c4_284, %c0_285, %c0_286] : memref<6x160x128xf32, #tpu.memory_space<vmem>>, vector<1x160x128xf32>
    %403 = vector.shape_cast %402 : vector<1x160x128xf32> to vector<160x128xf32>
    %cst_287 = arith.constant dense<0.000000e+00> : vector<8x128xf32>
    %404 = tpu.matmul %401, %403, %cst_287 {dimension_numbers = #tpu.dot_dimension_numbers<[1], [0], [0], [1], [0, 0, 1, 1], [], []>} : vector<8x160xf32>, vector<160x128xf32>, vector<8x128xf32> -> vector<8x128xf32>
    %405 = arith.addf %400, %404 : vector<8x128xf32>
    %c2_288 = arith.constant 2 : index
    %c0_289 = arith.constant 0 : index
    %406 = vector.load %arg25[%c2_288, %c0_289] : memref<20x160xf32, #tpu.memory_space<vmem>>, vector<8x160xf32>
    %c5 = arith.constant 5 : index
    %c0_290 = arith.constant 0 : index
    %c0_291 = arith.constant 0 : index
    %407 = vector.load %arg6[%c5, %c0_290, %c0_291] : memref<6x160x128xf32, #tpu.memory_space<vmem>>, vector<1x160x128xf32>
    %408 = vector.shape_cast %407 : vector<1x160x128xf32> to vector<160x128xf32>
    %cst_292 = arith.constant dense<0.000000e+00> : vector<8x128xf32>
    %409 = tpu.matmul %406, %408, %cst_292 {dimension_numbers = #tpu.dot_dimension_numbers<[1], [0], [0], [1], [0, 0, 1, 1], [], []>} : vector<8x160xf32>, vector<160x128xf32>, vector<8x128xf32> -> vector<8x128xf32>
    %410 = arith.addf %405, %409 : vector<8x128xf32>
    %411 = vector.broadcast %396 : vector<1x128xf32> to vector<8x128xf32>
    %412 = arith.addf %410, %411 : vector<8x128xf32>
    %c8_293 = arith.constant 8 : index
    %c0_294 = arith.constant 0 : index
    %413 = vector.load %arg23[%c8_293, %c0_294] : memref<32x128xf32, #tpu.memory_space<vmem>>, vector<8x128xf32>
    tpu.vector_store %arg23[%c8_293, %c0_294], %412 {strides = array<i32>} : memref<32x128xf32, #tpu.memory_space<vmem>>, vector<8x128xf32>,
    %c1_295 = arith.constant 1 : index
    %c0_296 = arith.constant 0 : index
    %414 = vector.load %arg7[%c1_295, %c0_296] : memref<2x128xf32, #tpu.memory_space<vmem>>, vector<1x128xf32>
    %c10_297 = arith.constant 10 : index
    %c0_298 = arith.constant 0 : index
    %415 = vector.load %arg25[%c10_297, %c0_298] : memref<20x160xf32, #tpu.memory_space<vmem>>, vector<8x160xf32>
    %c3_299 = arith.constant 3 : index
    %c0_300 = arith.constant 0 : index
    %c0_301 = arith.constant 0 : index
    %416 = vector.load %arg6[%c3_299, %c0_300, %c0_301] : memref<6x160x128xf32, #tpu.memory_space<vmem>>, vector<1x160x128xf32>
    %417 = vector.shape_cast %416 : vector<1x160x128xf32> to vector<160x128xf32>
    %cst_302 = arith.constant dense<0.000000e+00> : vector<8x128xf32>
    %418 = tpu.matmul %415, %417, %cst_302 {dimension_numbers = #tpu.dot_dimension_numbers<[1], [0], [0], [1], [0, 0, 1, 1], [], []>} : vector<8x160xf32>, vector<160x128xf32>, vector<8x128xf32> -> vector<8x128xf32>
    %c11_303 = arith.constant 11 : index
    %c0_304 = arith.constant 0 : index
    %419 = vector.load %arg25[%c11_303, %c0_304] : memref<20x160xf32, #tpu.memory_space<vmem>>, vector<8x160xf32>
    %c4_305 = arith.constant 4 : index
    %c0_306 = arith.constant 0 : index
    %c0_307 = arith.constant 0 : index
    %420 = vector.load %arg6[%c4_305, %c0_306, %c0_307] : memref<6x160x128xf32, #tpu.memory_space<vmem>>, vector<1x160x128xf32>
    %421 = vector.shape_cast %420 : vector<1x160x128xf32> to vector<160x128xf32>
    %cst_308 = arith.constant dense<0.000000e+00> : vector<8x128xf32>
    %422 = tpu.matmul %419, %421, %cst_308 {dimension_numbers = #tpu.dot_dimension_numbers<[1], [0], [0], [1], [0, 0, 1, 1], [], []>} : vector<8x160xf32>, vector<160x128xf32>, vector<8x128xf32> -> vector<8x128xf32>
    %423 = arith.addf %418, %422 : vector<8x128xf32>
    %c12_309 = arith.constant 12 : index
    %c0_310 = arith.constant 0 : index
    %424 = vector.load %arg25[%c12_309, %c0_310] : memref<20x160xf32, #tpu.memory_space<vmem>>, vector<8x160xf32>
    %c5_311 = arith.constant 5 : index
    %c0_312 = arith.constant 0 : index
    %c0_313 = arith.constant 0 : index
    %425 = vector.load %arg6[%c5_311, %c0_312, %c0_313] : memref<6x160x128xf32, #tpu.memory_space<vmem>>, vector<1x160x128xf32>
    %426 = vector.shape_cast %425 : vector<1x160x128xf32> to vector<160x128xf32>
    %cst_314 = arith.constant dense<0.000000e+00> : vector<8x128xf32>
    %427 = tpu.matmul %424, %426, %cst_314 {dimension_numbers = #tpu.dot_dimension_numbers<[1], [0], [0], [1], [0, 0, 1, 1], [], []>} : vector<8x160xf32>, vector<160x128xf32>, vector<8x128xf32> -> vector<8x128xf32>
    %428 = arith.addf %423, %427 : vector<8x128xf32>
    %429 = vector.broadcast %414 : vector<1x128xf32> to vector<8x128xf32>
    %430 = arith.addf %428, %429 : vector<8x128xf32>
    %c24_315 = arith.constant 24 : index
    %c0_316 = arith.constant 0 : index
    %431 = vector.load %arg23[%c24_315, %c0_316] : memref<32x128xf32, #tpu.memory_space<vmem>>, vector<8x128xf32>
    tpu.vector_store %arg23[%c24_315, %c0_316], %430 {strides = array<i32>} : memref<32x128xf32, #tpu.memory_space<vmem>>, vector<8x128xf32>,
    %c8_317 = arith.constant 8 : index
    %c0_318 = arith.constant 0 : index
    %432 = vector.load %arg23[%c8_317, %c0_318] : memref<32x128xf32, #tpu.memory_space<vmem>>, vector<8x64xf32>
    %c24_319 = arith.constant 24 : index
    %c0_320 = arith.constant 0 : index
    %433 = vector.load %arg23[%c24_319, %c0_320] : memref<32x128xf32, #tpu.memory_space<vmem>>, vector<8x64xf32>
    %c2_321 = arith.constant 2 : index
    %c0_322 = arith.constant 0 : index
    %434 = vector.load %arg8[%c2_321, %c0_322] : memref<4x64xf32, #tpu.memory_space<vmem>>, vector<1x64xf32>
    %c2_323 = arith.constant 2 : index
    %c0_324 = arith.constant 0 : index
    %435 = vector.load %arg9[%c2_323, %c0_324] : memref<4x64xf32, #tpu.memory_space<vmem>>, vector<1x64xf32>
    %cst_325 = arith.constant dense<0.000000e+00> : vector<64xf32>
    %436 = vector.multi_reduction <add>, %432, %cst_325 [0] : vector<8x64xf32> to vector<64xf32>
    %437 = vector.shape_cast %436 : vector<64xf32> to vector<1x64xf32>
    %cst_326 = arith.constant dense<0.000000e+00> : vector<64xf32>
    %438 = vector.multi_reduction <add>, %433, %cst_326 [0] : vector<8x64xf32> to vector<64xf32>
    %439 = vector.shape_cast %438 : vector<64xf32> to vector<1x64xf32>
    %440 = arith.addf %437, %439 : vector<1x64xf32>
    %cst_327 = arith.constant dense<0.000000e+00> : vector<1x64xf32>
    %441 = tpu.matmul %440, %0, %cst_327 {dimension_numbers = #tpu.dot_dimension_numbers<[1], [0], [0], [1], [0, 0, 1, 1], [], []>} : vector<1x64xf32>, vector<64x64xf32>, vector<1x64xf32> -> vector<1x64xf32>
    %cst_328 = arith.constant 7.812500e-03 : f32
    %442 = vector.broadcast %cst_328 : f32 to vector<1x64xf32>
    %443 = arith.mulf %441, %442 : vector<1x64xf32>
    %444 = vector.broadcast %443 : vector<1x64xf32> to vector<8x64xf32>
    %445 = arith.subf %432, %444 : vector<8x64xf32>
    %446 = arith.mulf %445, %445 : vector<8x64xf32>
    %cst_329 = arith.constant dense<0.000000e+00> : vector<64xf32>
    %447 = vector.multi_reduction <add>, %446, %cst_329 [0] : vector<8x64xf32> to vector<64xf32>
    %448 = vector.shape_cast %447 : vector<64xf32> to vector<1x64xf32>
    %449 = vector.broadcast %443 : vector<1x64xf32> to vector<8x64xf32>
    %450 = arith.subf %433, %449 : vector<8x64xf32>
    %451 = arith.mulf %450, %450 : vector<8x64xf32>
    %cst_330 = arith.constant dense<0.000000e+00> : vector<64xf32>
    %452 = vector.multi_reduction <add>, %451, %cst_330 [0] : vector<8x64xf32> to vector<64xf32>
    %453 = vector.shape_cast %452 : vector<64xf32> to vector<1x64xf32>
    %454 = arith.addf %448, %453 : vector<1x64xf32>
    %cst_331 = arith.constant dense<0.000000e+00> : vector<1x64xf32>
    %455 = tpu.matmul %454, %0, %cst_331 {dimension_numbers = #tpu.dot_dimension_numbers<[1], [0], [0], [1], [0, 0, 1, 1], [], []>} : vector<1x64xf32>, vector<64x64xf32>, vector<1x64xf32> -> vector<1x64xf32>
    %cst_332 = arith.constant 7.812500e-03 : f32
    %456 = vector.broadcast %cst_332 : f32 to vector<1x64xf32>
    %457 = arith.mulf %455, %456 : vector<1x64xf32>
    %cst_333 = arith.constant 9.99999974E-6 : f32
    %458 = vector.broadcast %cst_333 : f32 to vector<1x64xf32>
    %459 = arith.addf %457, %458 : vector<1x64xf32>
    %460 = math.rsqrt %459 : vector<1x64xf32>
    %461 = arith.mulf %434, %460 : vector<1x64xf32>
    %462 = arith.mulf %443, %461 : vector<1x64xf32>
    %463 = arith.subf %435, %462 : vector<1x64xf32>
    %464 = vector.broadcast %461 : vector<1x64xf32> to vector<8x64xf32>
    %465 = arith.mulf %432, %464 : vector<8x64xf32>
    %466 = vector.broadcast %463 : vector<1x64xf32> to vector<8x64xf32>
    %467 = arith.addf %465, %466 : vector<8x64xf32>
    %cst_334 = arith.constant 0.000000e+00 : f32
    %468 = vector.broadcast %cst_334 : f32 to vector<8x64xf32>
    %469 = arith.maximumf %467, %468 : vector<8x64xf32>
    %c1_335 = arith.constant 1 : index
    %c8_336 = arith.constant 8 : index
    %470 = vector.load %arg25[%c1_335, %c8_336] : memref<20x160xf32, #tpu.memory_space<vmem>>, vector<8x64xf32>
    tpu.vector_store %arg25[%c1_335, %c8_336], %469 {strides = array<i32>} : memref<20x160xf32, #tpu.memory_space<vmem>>, vector<8x64xf32>,
    %471 = vector.broadcast %461 : vector<1x64xf32> to vector<8x64xf32>
    %472 = arith.mulf %433, %471 : vector<8x64xf32>
    %473 = vector.broadcast %463 : vector<1x64xf32> to vector<8x64xf32>
    %474 = arith.addf %472, %473 : vector<8x64xf32>
    %cst_337 = arith.constant 0.000000e+00 : f32
    %475 = vector.broadcast %cst_337 : f32 to vector<8x64xf32>
    %476 = arith.maximumf %474, %475 : vector<8x64xf32>
    %c11_338 = arith.constant 11 : index
    %c8_339 = arith.constant 8 : index
    %477 = vector.load %arg25[%c11_338, %c8_339] : memref<20x160xf32, #tpu.memory_space<vmem>>, vector<8x64xf32>
    tpu.vector_store %arg25[%c11_338, %c8_339], %476 {strides = array<i32>} : memref<20x160xf32, #tpu.memory_space<vmem>>, vector<8x64xf32>,
    %c8_340 = arith.constant 8 : index
    %c64_341 = arith.constant 64 : index
    %478 = vector.load %arg23[%c8_340, %c64_341] : memref<32x128xf32, #tpu.memory_space<vmem>>, vector<8x64xf32>
    %c24_342 = arith.constant 24 : index
    %c64_343 = arith.constant 64 : index
    %479 = vector.load %arg23[%c24_342, %c64_343] : memref<32x128xf32, #tpu.memory_space<vmem>>, vector<8x64xf32>
    %c3_344 = arith.constant 3 : index
    %c0_345 = arith.constant 0 : index
    %480 = vector.load %arg8[%c3_344, %c0_345] : memref<4x64xf32, #tpu.memory_space<vmem>>, vector<1x64xf32>
    %c3_346 = arith.constant 3 : index
    %c0_347 = arith.constant 0 : index
    %481 = vector.load %arg9[%c3_346, %c0_347] : memref<4x64xf32, #tpu.memory_space<vmem>>, vector<1x64xf32>
    %cst_348 = arith.constant dense<0.000000e+00> : vector<64xf32>
    %482 = vector.multi_reduction <add>, %478, %cst_348 [0] : vector<8x64xf32> to vector<64xf32>
    %483 = vector.shape_cast %482 : vector<64xf32> to vector<1x64xf32>
    %cst_349 = arith.constant dense<0.000000e+00> : vector<64xf32>
    %484 = vector.multi_reduction <add>, %479, %cst_349 [0] : vector<8x64xf32> to vector<64xf32>
    %485 = vector.shape_cast %484 : vector<64xf32> to vector<1x64xf32>
    %486 = arith.addf %483, %485 : vector<1x64xf32>
    %cst_350 = arith.constant dense<0.000000e+00> : vector<1x64xf32>
    %487 = tpu.matmul %486, %0, %cst_350 {dimension_numbers = #tpu.dot_dimension_numbers<[1], [0], [0], [1], [0, 0, 1, 1], [], []>} : vector<1x64xf32>, vector<64x64xf32>, vector<1x64xf32> -> vector<1x64xf32>
    %cst_351 = arith.constant 7.812500e-03 : f32
    %488 = vector.broadcast %cst_351 : f32 to vector<1x64xf32>
    %489 = arith.mulf %487, %488 : vector<1x64xf32>
    %490 = vector.broadcast %489 : vector<1x64xf32> to vector<8x64xf32>
    %491 = arith.subf %478, %490 : vector<8x64xf32>
    %492 = arith.mulf %491, %491 : vector<8x64xf32>
    %cst_352 = arith.constant dense<0.000000e+00> : vector<64xf32>
    %493 = vector.multi_reduction <add>, %492, %cst_352 [0] : vector<8x64xf32> to vector<64xf32>
    %494 = vector.shape_cast %493 : vector<64xf32> to vector<1x64xf32>
    %495 = vector.broadcast %489 : vector<1x64xf32> to vector<8x64xf32>
    %496 = arith.subf %479, %495 : vector<8x64xf32>
    %497 = arith.mulf %496, %496 : vector<8x64xf32>
    %cst_353 = arith.constant dense<0.000000e+00> : vector<64xf32>
    %498 = vector.multi_reduction <add>, %497, %cst_353 [0] : vector<8x64xf32> to vector<64xf32>
    %499 = vector.shape_cast %498 : vector<64xf32> to vector<1x64xf32>
    %500 = arith.addf %494, %499 : vector<1x64xf32>
    %cst_354 = arith.constant dense<0.000000e+00> : vector<1x64xf32>
    %501 = tpu.matmul %500, %0, %cst_354 {dimension_numbers = #tpu.dot_dimension_numbers<[1], [0], [0], [1], [0, 0, 1, 1], [], []>} : vector<1x64xf32>, vector<64x64xf32>, vector<1x64xf32> -> vector<1x64xf32>
    %cst_355 = arith.constant 7.812500e-03 : f32
    %502 = vector.broadcast %cst_355 : f32 to vector<1x64xf32>
    %503 = arith.mulf %501, %502 : vector<1x64xf32>
    %cst_356 = arith.constant 9.99999974E-6 : f32
    %504 = vector.broadcast %cst_356 : f32 to vector<1x64xf32>
    %505 = arith.addf %503, %504 : vector<1x64xf32>
    %506 = math.rsqrt %505 : vector<1x64xf32>
    %507 = arith.mulf %480, %506 : vector<1x64xf32>
    %508 = arith.mulf %489, %507 : vector<1x64xf32>
    %509 = arith.subf %481, %508 : vector<1x64xf32>
    %510 = vector.broadcast %507 : vector<1x64xf32> to vector<8x64xf32>
    %511 = arith.mulf %478, %510 : vector<8x64xf32>
    %512 = vector.broadcast %509 : vector<1x64xf32> to vector<8x64xf32>
    %513 = arith.addf %511, %512 : vector<8x64xf32>
    %cst_357 = arith.constant 0.000000e+00 : f32
    %514 = vector.broadcast %cst_357 : f32 to vector<8x64xf32>
    %515 = arith.maximumf %513, %514 : vector<8x64xf32>
    %c1_358 = arith.constant 1 : index
    %c88_359 = arith.constant 88 : index
    %516 = vector.load %arg25[%c1_358, %c88_359] : memref<20x160xf32, #tpu.memory_space<vmem>>, vector<8x64xf32>
    tpu.vector_store %arg25[%c1_358, %c88_359], %515 {strides = array<i32>} : memref<20x160xf32, #tpu.memory_space<vmem>>, vector<8x64xf32>,
    %517 = vector.broadcast %507 : vector<1x64xf32> to vector<8x64xf32>
    %518 = arith.mulf %479, %517 : vector<8x64xf32>
    %519 = vector.broadcast %509 : vector<1x64xf32> to vector<8x64xf32>
    %520 = arith.addf %518, %519 : vector<8x64xf32>
    %cst_360 = arith.constant 0.000000e+00 : f32
    %521 = vector.broadcast %cst_360 : f32 to vector<8x64xf32>
    %522 = arith.maximumf %520, %521 : vector<8x64xf32>
    %c11_361 = arith.constant 11 : index
    %c88_362 = arith.constant 88 : index
    %523 = vector.load %arg25[%c11_361, %c88_362] : memref<20x160xf32, #tpu.memory_space<vmem>>, vector<8x64xf32>
    tpu.vector_store %arg25[%c11_361, %c88_362], %522 {strides = array<i32>} : memref<20x160xf32, #tpu.memory_space<vmem>>, vector<8x64xf32>,
    %c1_363 = arith.constant 1 : index
    %c0_364 = arith.constant 0 : index
    %524 = vector.load %arg11[%c1_363, %c0_364] : memref<2x128xf32, #tpu.memory_space<vmem>>, vector<1x128xf32>
    %c0_365 = arith.constant 0 : index
    %c0_366 = arith.constant 0 : index
    %525 = vector.load %arg25[%c0_365, %c0_366] : memref<20x160xf32, #tpu.memory_space<vmem>>, vector<8x160xf32>
    %c3_367 = arith.constant 3 : index
    %c0_368 = arith.constant 0 : index
    %c0_369 = arith.constant 0 : index
    %526 = vector.load %arg10[%c3_367, %c0_368, %c0_369] : memref<6x160x128xf32, #tpu.memory_space<vmem>>, vector<1x160x128xf32>
    %527 = vector.shape_cast %526 : vector<1x160x128xf32> to vector<160x128xf32>
    %cst_370 = arith.constant dense<0.000000e+00> : vector<8x128xf32>
    %528 = tpu.matmul %525, %527, %cst_370 {dimension_numbers = #tpu.dot_dimension_numbers<[1], [0], [0], [1], [0, 0, 1, 1], [], []>} : vector<8x160xf32>, vector<160x128xf32>, vector<8x128xf32> -> vector<8x128xf32>
    %c1_371 = arith.constant 1 : index
    %c0_372 = arith.constant 0 : index
    %529 = vector.load %arg25[%c1_371, %c0_372] : memref<20x160xf32, #tpu.memory_space<vmem>>, vector<8x160xf32>
    %c4_373 = arith.constant 4 : index
    %c0_374 = arith.constant 0 : index
    %c0_375 = arith.constant 0 : index
    %530 = vector.load %arg10[%c4_373, %c0_374, %c0_375] : memref<6x160x128xf32, #tpu.memory_space<vmem>>, vector<1x160x128xf32>
    %531 = vector.shape_cast %530 : vector<1x160x128xf32> to vector<160x128xf32>
    %cst_376 = arith.constant dense<0.000000e+00> : vector<8x128xf32>
    %532 = tpu.matmul %529, %531, %cst_376 {dimension_numbers = #tpu.dot_dimension_numbers<[1], [0], [0], [1], [0, 0, 1, 1], [], []>} : vector<8x160xf32>, vector<160x128xf32>, vector<8x128xf32> -> vector<8x128xf32>
    %533 = arith.addf %528, %532 : vector<8x128xf32>
    %c2_377 = arith.constant 2 : index
    %c0_378 = arith.constant 0 : index
    %534 = vector.load %arg25[%c2_377, %c0_378] : memref<20x160xf32, #tpu.memory_space<vmem>>, vector<8x160xf32>
    %c5_379 = arith.constant 5 : index
    %c0_380 = arith.constant 0 : index
    %c0_381 = arith.constant 0 : index
    %535 = vector.load %arg10[%c5_379, %c0_380, %c0_381] : memref<6x160x128xf32, #tpu.memory_space<vmem>>, vector<1x160x128xf32>
    %536 = vector.shape_cast %535 : vector<1x160x128xf32> to vector<160x128xf32>
    %cst_382 = arith.constant dense<0.000000e+00> : vector<8x128xf32>
    %537 = tpu.matmul %534, %536, %cst_382 {dimension_numbers = #tpu.dot_dimension_numbers<[1], [0], [0], [1], [0, 0, 1, 1], [], []>} : vector<8x160xf32>, vector<160x128xf32>, vector<8x128xf32> -> vector<8x128xf32>
    %538 = arith.addf %533, %537 : vector<8x128xf32>
    %539 = vector.broadcast %524 : vector<1x128xf32> to vector<8x128xf32>
    %540 = arith.addf %538, %539 : vector<8x128xf32>
    %c8_383 = arith.constant 8 : index
    %c0_384 = arith.constant 0 : index
    %541 = vector.load %arg24[%c8_383, %c0_384] : memref<32x128xf32, #tpu.memory_space<vmem>>, vector<8x128xf32>
    tpu.vector_store %arg24[%c8_383, %c0_384], %540 {strides = array<i32>} : memref<32x128xf32, #tpu.memory_space<vmem>>, vector<8x128xf32>,
    %c1_385 = arith.constant 1 : index
    %c0_386 = arith.constant 0 : index
    %542 = vector.load %arg11[%c1_385, %c0_386] : memref<2x128xf32, #tpu.memory_space<vmem>>, vector<1x128xf32>
    %c10_387 = arith.constant 10 : index
    %c0_388 = arith.constant 0 : index
    %543 = vector.load %arg25[%c10_387, %c0_388] : memref<20x160xf32, #tpu.memory_space<vmem>>, vector<8x160xf32>
    %c3_389 = arith.constant 3 : index
    %c0_390 = arith.constant 0 : index
    %c0_391 = arith.constant 0 : index
    %544 = vector.load %arg10[%c3_389, %c0_390, %c0_391] : memref<6x160x128xf32, #tpu.memory_space<vmem>>, vector<1x160x128xf32>
    %545 = vector.shape_cast %544 : vector<1x160x128xf32> to vector<160x128xf32>
    %cst_392 = arith.constant dense<0.000000e+00> : vector<8x128xf32>
    %546 = tpu.matmul %543, %545, %cst_392 {dimension_numbers = #tpu.dot_dimension_numbers<[1], [0], [0], [1], [0, 0, 1, 1], [], []>} : vector<8x160xf32>, vector<160x128xf32>, vector<8x128xf32> -> vector<8x128xf32>
    %c11_393 = arith.constant 11 : index
    %c0_394 = arith.constant 0 : index
    %547 = vector.load %arg25[%c11_393, %c0_394] : memref<20x160xf32, #tpu.memory_space<vmem>>, vector<8x160xf32>
    %c4_395 = arith.constant 4 : index
    %c0_396 = arith.constant 0 : index
    %c0_397 = arith.constant 0 : index
    %548 = vector.load %arg10[%c4_395, %c0_396, %c0_397] : memref<6x160x128xf32, #tpu.memory_space<vmem>>, vector<1x160x128xf32>
    %549 = vector.shape_cast %548 : vector<1x160x128xf32> to vector<160x128xf32>
    %cst_398 = arith.constant dense<0.000000e+00> : vector<8x128xf32>
    %550 = tpu.matmul %547, %549, %cst_398 {dimension_numbers = #tpu.dot_dimension_numbers<[1], [0], [0], [1], [0, 0, 1, 1], [], []>} : vector<8x160xf32>, vector<160x128xf32>, vector<8x128xf32> -> vector<8x128xf32>
    %551 = arith.addf %546, %550 : vector<8x128xf32>
    %c12_399 = arith.constant 12 : index
    %c0_400 = arith.constant 0 : index
    %552 = vector.load %arg25[%c12_399, %c0_400] : memref<20x160xf32, #tpu.memory_space<vmem>>, vector<8x160xf32>
    %c5_401 = arith.constant 5 : index
    %c0_402 = arith.constant 0 : index
    %c0_403 = arith.constant 0 : index
    %553 = vector.load %arg10[%c5_401, %c0_402, %c0_403] : memref<6x160x128xf32, #tpu.memory_space<vmem>>, vector<1x160x128xf32>
    %554 = vector.shape_cast %553 : vector<1x160x128xf32> to vector<160x128xf32>
    %cst_404 = arith.constant dense<0.000000e+00> : vector<8x128xf32>
    %555 = tpu.matmul %552, %554, %cst_404 {dimension_numbers = #tpu.dot_dimension_numbers<[1], [0], [0], [1], [0, 0, 1, 1], [], []>} : vector<8x160xf32>, vector<160x128xf32>, vector<8x128xf32> -> vector<8x128xf32>
    %556 = arith.addf %551, %555 : vector<8x128xf32>
    %557 = vector.broadcast %542 : vector<1x128xf32> to vector<8x128xf32>
    %558 = arith.addf %556, %557 : vector<8x128xf32>
    %c24_405 = arith.constant 24 : index
    %c0_406 = arith.constant 0 : index
    %559 = vector.load %arg24[%c24_405, %c0_406] : memref<32x128xf32, #tpu.memory_space<vmem>>, vector<8x128xf32>
    tpu.vector_store %arg24[%c24_405, %c0_406], %558 {strides = array<i32>} : memref<32x128xf32, #tpu.memory_space<vmem>>, vector<8x128xf32>,
    %c0_407 = arith.constant 0 : index
    %c0_408 = arith.constant 0 : index
    %560 = vector.load %arg24[%c0_407, %c0_408] : memref<32x128xf32, #tpu.memory_space<vmem>>, vector<32x128xf32>
    %c0_409 = arith.constant 0 : index
    %c0_410 = arith.constant 0 : index
    %561 = vector.load %arg12[%c0_409, %c0_410] : memref<1x128xf32, #tpu.memory_space<vmem>>, vector<1x128xf32>
    %c0_411 = arith.constant 0 : index
    %c0_412 = arith.constant 0 : index
    %562 = vector.load %arg13[%c0_411, %c0_412] : memref<1x128xf32, #tpu.memory_space<vmem>>, vector<1x128xf32>
    %cst_413 = arith.constant dense<0.000000e+00> : vector<128xf32>
    %563 = vector.multi_reduction <add>, %560, %cst_413 [0] : vector<32x128xf32> to vector<128xf32>
    %564 = vector.shape_cast %563 : vector<128xf32> to vector<1x128xf32>
    %cst_414 = arith.constant dense<0.000000e+00> : vector<1x128xf32>
    %565 = tpu.matmul %564, %1, %cst_414 {dimension_numbers = #tpu.dot_dimension_numbers<[1], [0], [0], [1], [0, 0, 1, 1], [], []>} : vector<1x128xf32>, vector<128x128xf32>, vector<1x128xf32> -> vector<1x128xf32>
    %cst_415 = arith.constant 0.001953125 : f32
    %566 = vector.broadcast %cst_415 : f32 to vector<1x128xf32>
    %567 = arith.mulf %565, %566 : vector<1x128xf32>
    %568 = vector.broadcast %567 : vector<1x128xf32> to vector<32x128xf32>
    %569 = arith.subf %560, %568 : vector<32x128xf32>
    %570 = arith.mulf %569, %569 : vector<32x128xf32>
    %cst_416 = arith.constant dense<0.000000e+00> : vector<128xf32>
    %571 = vector.multi_reduction <add>, %570, %cst_416 [0] : vector<32x128xf32> to vector<128xf32>
    %572 = vector.shape_cast %571 : vector<128xf32> to vector<1x128xf32>
    %cst_417 = arith.constant dense<0.000000e+00> : vector<1x128xf32>
    %573 = tpu.matmul %572, %1, %cst_417 {dimension_numbers = #tpu.dot_dimension_numbers<[1], [0], [0], [1], [0, 0, 1, 1], [], []>} : vector<1x128xf32>, vector<128x128xf32>, vector<1x128xf32> -> vector<1x128xf32>
    %cst_418 = arith.constant 0.001953125 : f32
    %574 = vector.broadcast %cst_418 : f32 to vector<1x128xf32>
    %575 = arith.mulf %573, %574 : vector<1x128xf32>
    %cst_419 = arith.constant 9.99999974E-6 : f32
    %576 = vector.broadcast %cst_419 : f32 to vector<1x128xf32>
    %577 = arith.addf %575, %576 : vector<1x128xf32>
    %578 = math.rsqrt %577 : vector<1x128xf32>
    %579 = arith.mulf %561, %578 : vector<1x128xf32>
    %580 = arith.mulf %567, %579 : vector<1x128xf32>
    %581 = arith.subf %562, %580 : vector<1x128xf32>
    %c0_420 = arith.constant 0 : index
    %c0_421 = arith.constant 0 : index
    %582 = vector.load %arg24[%c0_420, %c0_421] : memref<32x128xf32, #tpu.memory_space<vmem>>, vector<16x128xf32>
    %583 = vector.broadcast %579 : vector<1x128xf32> to vector<16x128xf32>
    %584 = arith.mulf %582, %583 : vector<16x128xf32>
    %585 = vector.broadcast %581 : vector<1x128xf32> to vector<16x128xf32>
    %586 = arith.addf %584, %585 : vector<16x128xf32>
    %cst_422 = arith.constant 0.000000e+00 : f32
    %587 = vector.broadcast %cst_422 : f32 to vector<16x128xf32>
    %588 = arith.maximumf %586, %587 : vector<16x128xf32>
    %c1_423 = arith.constant 1 : index
    %c8_424 = arith.constant 8 : index
    %589 = vector.load %arg26[%c1_423, %c8_424] : memref<36x144xf32, #tpu.memory_space<vmem>>, vector<16x128xf32>
    tpu.vector_store %arg26[%c1_423, %c8_424], %588 {strides = array<i32>} : memref<36x144xf32, #tpu.memory_space<vmem>>, vector<16x128xf32>,
    %c16_425 = arith.constant 16 : index
    %c0_426 = arith.constant 0 : index
    %590 = vector.load %arg24[%c16_425, %c0_426] : memref<32x128xf32, #tpu.memory_space<vmem>>, vector<16x128xf32>
    %591 = vector.broadcast %579 : vector<1x128xf32> to vector<16x128xf32>
    %592 = arith.mulf %590, %591 : vector<16x128xf32>
    %593 = vector.broadcast %581 : vector<1x128xf32> to vector<16x128xf32>
    %594 = arith.addf %592, %593 : vector<16x128xf32>
    %cst_427 = arith.constant 0.000000e+00 : f32
    %595 = vector.broadcast %cst_427 : f32 to vector<16x128xf32>
    %596 = arith.maximumf %594, %595 : vector<16x128xf32>
    %c19_428 = arith.constant 19 : index
    %c8_429 = arith.constant 8 : index
    %597 = vector.load %arg26[%c19_428, %c8_429] : memref<36x144xf32, #tpu.memory_space<vmem>>, vector<16x128xf32>
    tpu.vector_store %arg26[%c19_428, %c8_429], %596 {strides = array<i32>} : memref<36x144xf32, #tpu.memory_space<vmem>>, vector<16x128xf32>,
    %c0_430 = arith.constant 0 : index
    %c0_431 = arith.constant 0 : index
    %598 = vector.load %arg15[%c0_430, %c0_431] : memref<1x128xf32, #tpu.memory_space<vmem>>, vector<1x128xf32>
    %c0_432 = arith.constant 0 : index
    %c0_433 = arith.constant 0 : index
    %599 = vector.load %arg26[%c0_432, %c0_433] : memref<36x144xf32, #tpu.memory_space<vmem>>, vector<16x144xf32>
    %c0_434 = arith.constant 0 : index
    %c0_435 = arith.constant 0 : index
    %c0_436 = arith.constant 0 : index
    %600 = vector.load %arg14[%c0_434, %c0_435, %c0_436] : memref<3x144x128xf32, #tpu.memory_space<vmem>>, vector<1x144x128xf32>
    %601 = vector.shape_cast %600 : vector<1x144x128xf32> to vector<144x128xf32>
    %cst_437 = arith.constant dense<0.000000e+00> : vector<16x128xf32>
    %602 = tpu.matmul %599, %601, %cst_437 {dimension_numbers = #tpu.dot_dimension_numbers<[1], [0], [0], [1], [0, 0, 1, 1], [], []>} : vector<16x144xf32>, vector<144x128xf32>, vector<16x128xf32> -> vector<16x128xf32>
    %c1_438 = arith.constant 1 : index
    %c0_439 = arith.constant 0 : index
    %603 = vector.load %arg26[%c1_438, %c0_439] : memref<36x144xf32, #tpu.memory_space<vmem>>, vector<16x144xf32>
    %c1_440 = arith.constant 1 : index
    %c0_441 = arith.constant 0 : index
    %c0_442 = arith.constant 0 : index
    %604 = vector.load %arg14[%c1_440, %c0_441, %c0_442] : memref<3x144x128xf32, #tpu.memory_space<vmem>>, vector<1x144x128xf32>
    %605 = vector.shape_cast %604 : vector<1x144x128xf32> to vector<144x128xf32>
    %cst_443 = arith.constant dense<0.000000e+00> : vector<16x128xf32>
    %606 = tpu.matmul %603, %605, %cst_443 {dimension_numbers = #tpu.dot_dimension_numbers<[1], [0], [0], [1], [0, 0, 1, 1], [], []>} : vector<16x144xf32>, vector<144x128xf32>, vector<16x128xf32> -> vector<16x128xf32>
    %607 = arith.addf %602, %606 : vector<16x128xf32>
    %c2_444 = arith.constant 2 : index
    %c0_445 = arith.constant 0 : index
    %608 = vector.load %arg26[%c2_444, %c0_445] : memref<36x144xf32, #tpu.memory_space<vmem>>, vector<16x144xf32>
    %c2_446 = arith.constant 2 : index
    %c0_447 = arith.constant 0 : index
    %c0_448 = arith.constant 0 : index
    %609 = vector.load %arg14[%c2_446, %c0_447, %c0_448] : memref<3x144x128xf32, #tpu.memory_space<vmem>>, vector<1x144x128xf32>
    %610 = vector.shape_cast %609 : vector<1x144x128xf32> to vector<144x128xf32>
    %cst_449 = arith.constant dense<0.000000e+00> : vector<16x128xf32>
    %611 = tpu.matmul %608, %610, %cst_449 {dimension_numbers = #tpu.dot_dimension_numbers<[1], [0], [0], [1], [0, 0, 1, 1], [], []>} : vector<16x144xf32>, vector<144x128xf32>, vector<16x128xf32> -> vector<16x128xf32>
    %612 = arith.addf %607, %611 : vector<16x128xf32>
    %613 = vector.broadcast %598 : vector<1x128xf32> to vector<16x128xf32>
    %614 = arith.addf %612, %613 : vector<16x128xf32>
    %c0_450 = arith.constant 0 : index
    %c0_451 = arith.constant 0 : index
    %615 = vector.load %arg22[%c0_450, %c0_451] : memref<32x128xf32, #tpu.memory_space<vmem>>, vector<16x128xf32>
    %c0_452 = arith.constant 0 : index
    %c0_453 = arith.constant 0 : index
    %616 = vector.load %arg23[%c0_452, %c0_453] : memref<32x128xf32, #tpu.memory_space<vmem>>, vector<16x128xf32>
    %617 = arith.addf %615, %616 : vector<16x128xf32>
    %c0_454 = arith.constant 0 : index
    %c0_455 = arith.constant 0 : index
    %618 = vector.load %arg24[%c0_454, %c0_455] : memref<32x128xf32, #tpu.memory_space<vmem>>, vector<16x128xf32>
    %619 = arith.addf %617, %618 : vector<16x128xf32>
    %620 = arith.addf %619, %614 : vector<16x128xf32>
    %c0_456 = arith.constant 0 : index
    %c0_457 = arith.constant 0 : index
    %621 = vector.load %arg20[%c0_456, %c0_457] : memref<32x128xf32, #tpu.memory_space<vmem>>, vector<16x128xf32>
    tpu.vector_store %arg20[%c0_456, %c0_457], %620 {strides = array<i32>} : memref<32x128xf32, #tpu.memory_space<vmem>>, vector<16x128xf32>,
    %c0_458 = arith.constant 0 : index
    %c0_459 = arith.constant 0 : index
    %622 = vector.load %arg15[%c0_458, %c0_459] : memref<1x128xf32, #tpu.memory_space<vmem>>, vector<1x128xf32>
    %c18_460 = arith.constant 18 : index
    %c0_461 = arith.constant 0 : index
    %623 = vector.load %arg26[%c18_460, %c0_461] : memref<36x144xf32, #tpu.memory_space<vmem>>, vector<16x144xf32>
    %c0_462 = arith.constant 0 : index
    %c0_463 = arith.constant 0 : index
    %c0_464 = arith.constant 0 : index
    %624 = vector.load %arg14[%c0_462, %c0_463, %c0_464] : memref<3x144x128xf32, #tpu.memory_space<vmem>>, vector<1x144x128xf32>
    %625 = vector.shape_cast %624 : vector<1x144x128xf32> to vector<144x128xf32>
    %cst_465 = arith.constant dense<0.000000e+00> : vector<16x128xf32>
    %626 = tpu.matmul %623, %625, %cst_465 {dimension_numbers = #tpu.dot_dimension_numbers<[1], [0], [0], [1], [0, 0, 1, 1], [], []>} : vector<16x144xf32>, vector<144x128xf32>, vector<16x128xf32> -> vector<16x128xf32>
    %c19_466 = arith.constant 19 : index
    %c0_467 = arith.constant 0 : index
    %627 = vector.load %arg26[%c19_466, %c0_467] : memref<36x144xf32, #tpu.memory_space<vmem>>, vector<16x144xf32>
    %c1_468 = arith.constant 1 : index
    %c0_469 = arith.constant 0 : index
    %c0_470 = arith.constant 0 : index
    %628 = vector.load %arg14[%c1_468, %c0_469, %c0_470] : memref<3x144x128xf32, #tpu.memory_space<vmem>>, vector<1x144x128xf32>
    %629 = vector.shape_cast %628 : vector<1x144x128xf32> to vector<144x128xf32>
    %cst_471 = arith.constant dense<0.000000e+00> : vector<16x128xf32>
    %630 = tpu.matmul %627, %629, %cst_471 {dimension_numbers = #tpu.dot_dimension_numbers<[1], [0], [0], [1], [0, 0, 1, 1], [], []>} : vector<16x144xf32>, vector<144x128xf32>, vector<16x128xf32> -> vector<16x128xf32>
    %631 = arith.addf %626, %630 : vector<16x128xf32>
    %c20_472 = arith.constant 20 : index
    %c0_473 = arith.constant 0 : index
    %632 = vector.load %arg26[%c20_472, %c0_473] : memref<36x144xf32, #tpu.memory_space<vmem>>, vector<16x144xf32>
    %c2_474 = arith.constant 2 : index
    %c0_475 = arith.constant 0 : index
    %c0_476 = arith.constant 0 : index
    %633 = vector.load %arg14[%c2_474, %c0_475, %c0_476] : memref<3x144x128xf32, #tpu.memory_space<vmem>>, vector<1x144x128xf32>
    %634 = vector.shape_cast %633 : vector<1x144x128xf32> to vector<144x128xf32>
    %cst_477 = arith.constant dense<0.000000e+00> : vector<16x128xf32>
    %635 = tpu.matmul %632, %634, %cst_477 {dimension_numbers = #tpu.dot_dimension_numbers<[1], [0], [0], [1], [0, 0, 1, 1], [], []>} : vector<16x144xf32>, vector<144x128xf32>, vector<16x128xf32> -> vector<16x128xf32>
    %636 = arith.addf %631, %635 : vector<16x128xf32>
    %637 = vector.broadcast %622 : vector<1x128xf32> to vector<16x128xf32>
    %638 = arith.addf %636, %637 : vector<16x128xf32>
    %c16_478 = arith.constant 16 : index
    %c0_479 = arith.constant 0 : index
    %639 = vector.load %arg22[%c16_478, %c0_479] : memref<32x128xf32, #tpu.memory_space<vmem>>, vector<16x128xf32>
    %c16_480 = arith.constant 16 : index
    %c0_481 = arith.constant 0 : index
    %640 = vector.load %arg23[%c16_480, %c0_481] : memref<32x128xf32, #tpu.memory_space<vmem>>, vector<16x128xf32>
    %641 = arith.addf %639, %640 : vector<16x128xf32>
    %c16_482 = arith.constant 16 : index
    %c0_483 = arith.constant 0 : index
    %642 = vector.load %arg24[%c16_482, %c0_483] : memref<32x128xf32, #tpu.memory_space<vmem>>, vector<16x128xf32>
    %643 = arith.addf %641, %642 : vector<16x128xf32>
    %644 = arith.addf %643, %638 : vector<16x128xf32>
    %c16_484 = arith.constant 16 : index
    %c0_485 = arith.constant 0 : index
    %645 = vector.load %arg20[%c16_484, %c0_485] : memref<32x128xf32, #tpu.memory_space<vmem>>, vector<16x128xf32>
    tpu.vector_store %arg20[%c16_484, %c0_485], %644 {strides = array<i32>} : memref<32x128xf32, #tpu.memory_space<vmem>>, vector<16x128xf32>,
    %c0_486 = arith.constant 0 : index
    %c0_487 = arith.constant 0 : index
    %646 = vector.load %arg20[%c0_486, %c0_487] : memref<32x128xf32, #tpu.memory_space<vmem>>, vector<32x128xf32>
    %c0_488 = arith.constant 0 : index
    %c0_489 = arith.constant 0 : index
    %647 = vector.load %arg16[%c0_488, %c0_489] : memref<1x128xf32, #tpu.memory_space<vmem>>, vector<1x128xf32>
    %c0_490 = arith.constant 0 : index
    %c0_491 = arith.constant 0 : index
    %648 = vector.load %arg17[%c0_490, %c0_491] : memref<1x128xf32, #tpu.memory_space<vmem>>, vector<1x128xf32>
    %cst_492 = arith.constant dense<0.000000e+00> : vector<128xf32>
    %649 = vector.multi_reduction <add>, %646, %cst_492 [0] : vector<32x128xf32> to vector<128xf32>
    %650 = vector.shape_cast %649 : vector<128xf32> to vector<1x128xf32>
    %cst_493 = arith.constant dense<0.000000e+00> : vector<1x128xf32>
    %651 = tpu.matmul %650, %1, %cst_493 {dimension_numbers = #tpu.dot_dimension_numbers<[1], [0], [0], [1], [0, 0, 1, 1], [], []>} : vector<1x128xf32>, vector<128x128xf32>, vector<1x128xf32> -> vector<1x128xf32>
    %cst_494 = arith.constant 0.001953125 : f32
    %652 = vector.broadcast %cst_494 : f32 to vector<1x128xf32>
    %653 = arith.mulf %651, %652 : vector<1x128xf32>
    %654 = vector.broadcast %653 : vector<1x128xf32> to vector<32x128xf32>
    %655 = arith.subf %646, %654 : vector<32x128xf32>
    %656 = arith.mulf %655, %655 : vector<32x128xf32>
    %cst_495 = arith.constant dense<0.000000e+00> : vector<128xf32>
    %657 = vector.multi_reduction <add>, %656, %cst_495 [0] : vector<32x128xf32> to vector<128xf32>
    %658 = vector.shape_cast %657 : vector<128xf32> to vector<1x128xf32>
    %cst_496 = arith.constant dense<0.000000e+00> : vector<1x128xf32>
    %659 = tpu.matmul %658, %1, %cst_496 {dimension_numbers = #tpu.dot_dimension_numbers<[1], [0], [0], [1], [0, 0, 1, 1], [], []>} : vector<1x128xf32>, vector<128x128xf32>, vector<1x128xf32> -> vector<1x128xf32>
    %cst_497 = arith.constant 0.001953125 : f32
    %660 = vector.broadcast %cst_497 : f32 to vector<1x128xf32>
    %661 = arith.mulf %659, %660 : vector<1x128xf32>
    %cst_498 = arith.constant 9.99999974E-6 : f32
    %662 = vector.broadcast %cst_498 : f32 to vector<1x128xf32>
    %663 = arith.addf %661, %662 : vector<1x128xf32>
    %664 = math.rsqrt %663 : vector<1x128xf32>
    %665 = arith.mulf %647, %664 : vector<1x128xf32>
    %666 = arith.mulf %653, %665 : vector<1x128xf32>
    %667 = arith.subf %648, %666 : vector<1x128xf32>
    %c0_499 = arith.constant 0 : index
    %c0_500 = arith.constant 0 : index
    %668 = vector.load %arg20[%c0_499, %c0_500] : memref<32x128xf32, #tpu.memory_space<vmem>>, vector<32x128xf32>
    %669 = vector.broadcast %665 : vector<1x128xf32> to vector<32x128xf32>
    %670 = arith.mulf %668, %669 : vector<32x128xf32>
    %671 = vector.broadcast %667 : vector<1x128xf32> to vector<32x128xf32>
    %672 = arith.addf %670, %671 : vector<32x128xf32>
    %cst_501 = arith.constant 0.000000e+00 : f32
    %673 = vector.broadcast %cst_501 : f32 to vector<32x128xf32>
    %674 = arith.maximumf %672, %673 : vector<32x128xf32>
    %c0_502 = arith.constant 0 : index
    %c0_503 = arith.constant 0 : index
    %675 = vector.load %arg20[%c0_502, %c0_503] : memref<32x128xf32, #tpu.memory_space<vmem>>, vector<32x128xf32>
    tpu.vector_store %arg20[%c0_502, %c0_503], %674 {strides = array<i32>} : memref<32x128xf32, #tpu.memory_space<vmem>>, vector<32x128xf32>,
    return
  }
  func.func @transform_0(%arg0: i32) -> (i32, i32) {
    %c0_i32 = arith.constant 0 : i32
    %c0_i32_0 = arith.constant 0 : i32
    %c0_i32_1 = arith.constant 0 : i32
    return %c0_i32, %c0_i32_0 : i32, i32
  }
  func.func @transform_1(%arg0: i32) -> (i32, i32, i32) {
    %c0_i32 = arith.constant 0 : i32
    %c0_i32_0 = arith.constant 0 : i32
    %c0_i32_1 = arith.constant 0 : i32
    %c0_i32_2 = arith.constant 0 : i32
    return %c0_i32, %c0_i32_0, %c0_i32_1 : i32, i32, i32
  }
  func.func @transform_2(%arg0: i32) -> (i32, i32) {
    %c0_i32 = arith.constant 0 : i32
    %c0_i32_0 = arith.constant 0 : i32
    %c0_i32_1 = arith.constant 0 : i32
    return %c0_i32, %c0_i32_0 : i32, i32
  }
  func.func @transform_3(%arg0: i32) -> (i32, i32) {
    %c0_i32 = arith.constant 0 : i32
    %c0_i32_0 = arith.constant 0 : i32
    %c0_i32_1 = arith.constant 0 : i32
    return %c0_i32, %c0_i32_0 : i32, i32
  }
  func.func @transform_4(%arg0: i32) -> (i32, i32) {
    %c0_i32 = arith.constant 0 : i32
    %c0_i32_0 = arith.constant 0 : i32
    %c0_i32_1 = arith.constant 0 : i32
    return %c0_i32, %c0_i32_0 : i32, i32
  }
  func.func @transform_5(%arg0: i32) -> (i32, i32, i32) {
    %c0_i32 = arith.constant 0 : i32
    %c0_i32_0 = arith.constant 0 : i32
    %c0_i32_1 = arith.constant 0 : i32
    %c0_i32_2 = arith.constant 0 : i32
    return %c0_i32, %c0_i32_0, %c0_i32_1 : i32, i32, i32
  }
  func.func @transform_6(%arg0: i32) -> (i32, i32) {
    %c0_i32 = arith.constant 0 : i32
    %c0_i32_0 = arith.constant 0 : i32
    %c0_i32_1 = arith.constant 0 : i32
    return %c0_i32, %c0_i32_0 : i32, i32
  }
  func.func @transform_7(%arg0: i32) -> (i32, i32) {
    %c0_i32 = arith.constant 0 : i32
    %c0_i32_0 = arith.constant 0 : i32
    %c0_i32_1 = arith.constant 0 : i32
    return %c0_i32, %c0_i32_0 : i32, i32
  }
  func.func @transform_8(%arg0: i32) -> (i32, i32) {
    %c0_i32 = arith.constant 0 : i32
    %c0_i32_0 = arith.constant 0 : i32
    %c0_i32_1 = arith.constant 0 : i32
    return %c0_i32, %c0_i32_0 : i32, i32
  }
  func.func @transform_9(%arg0: i32) -> (i32, i32, i32) {
    %c0_i32 = arith.constant 0 : i32
    %c0_i32_0 = arith.constant 0 : i32
    %c0_i32_1 = arith.constant 0 : i32
    %c0_i32_2 = arith.constant 0 : i32
    return %c0_i32, %c0_i32_0, %c0_i32_1 : i32, i32, i32
  }
  func.func @transform_10(%arg0: i32) -> (i32, i32) {
    %c0_i32 = arith.constant 0 : i32
    %c0_i32_0 = arith.constant 0 : i32
    %c0_i32_1 = arith.constant 0 : i32
    return %c0_i32, %c0_i32_0 : i32, i32
  }
  func.func @transform_11(%arg0: i32) -> (i32, i32) {
    %c0_i32 = arith.constant 0 : i32
    %c0_i32_0 = arith.constant 0 : i32
    %c0_i32_1 = arith.constant 0 : i32
    return %c0_i32, %c0_i32_0 : i32, i32
  }
  func.func @transform_12(%arg0: i32) -> (i32, i32) {
    %c0_i32 = arith.constant 0 : i32
    %c0_i32_0 = arith.constant 0 : i32
    %c0_i32_1 = arith.constant 0 : i32
    return %c0_i32, %c0_i32_0 : i32, i32
  }
  func.func @transform_13(%arg0: i32) -> (i32, i32, i32) {
    %c0_i32 = arith.constant 0 : i32
    %c0_i32_0 = arith.constant 0 : i32
    %c0_i32_1 = arith.constant 0 : i32
    %c0_i32_2 = arith.constant 0 : i32
    return %c0_i32, %c0_i32_0, %c0_i32_1 : i32, i32, i32
  }
  func.func @transform_14(%arg0: i32) -> (i32, i32) {
    %c0_i32 = arith.constant 0 : i32
    %c0_i32_0 = arith.constant 0 : i32
    %c0_i32_1 = arith.constant 0 : i32
    return %c0_i32, %c0_i32_0 : i32, i32
  }
  func.func @transform_15(%arg0: i32) -> (i32, i32) {
    %c0_i32 = arith.constant 0 : i32
    %c0_i32_0 = arith.constant 0 : i32
    %c0_i32_1 = arith.constant 0 : i32
    return %c0_i32, %c0_i32_0 : i32, i32
  }
  func.func @transform_16(%arg0: i32) -> (i32, i32) {
    %c0_i32 = arith.constant 0 : i32
    %c0_i32_0 = arith.constant 0 : i32
    %c0_i32_1 = arith.constant 0 : i32
    return %c0_i32, %c0_i32_0 : i32, i32
  }
  func.func @transform_17(%arg0: i32) -> (i32, i32) {
    %c0_i32 = arith.constant 0 : i32
    %c0_i32_0 = arith.constant 0 : i32
    %c0_i32_1 = arith.constant 0 : i32
    return %c0_i32, %c0_i32_0 : i32, i32
  }
  func.func @transform_18(%arg0: i32) -> (i32, i32) {
    %c0_i32 = arith.constant 0 : i32
    %c0_i32_0 = arith.constant 0 : i32
    %c0_i32_1 = arith.constant 0 : i32
    return %c0_i32, %c0_i32_0 : i32, i32
  }
  func.func @transform_19(%arg0: i32) -> (i32, i32) {
    %c0_i32 = arith.constant 0 : i32
    %c0_i32_0 = arith.constant 0 : i32
    %c0_i32_1 = arith.constant 0 : i32
    return %c0_i32, %c0_i32_0 : i32, i32
  }
}

</mosaic_0001>

<bundles_post_ra>
// kernel: tile.54
= control target key start
LH: loop header
LB: loop body
LE: loop exit
PB: predicated region body
PF: predicated region fallthrough
CT: control target
= control target key end

     0   :  { %s69_s8 = smov 56   ;;  %s70_s11 = smov 40   ;;  %vm3_vm0 = vcmask 64512   ;;  %vm9_vm1 = vcmask 523712   ;;  %vm15_vm2 = vcmask 458112   ;;  %vm21_vm3 = vcmask 392512   ;;  %s113_s0 = inlined_call_operand.vmem [shape: f32[4,8,8], index: 0, kind: input, shape index: {}]   ;;  %s114_s1 = inlined_call_operand.vmem [shape: f32[4,64], index: 1, kind: output, shape index: {}]  }
   0x1   :  { %v55_v0 = vld [vmem:[%s113_s0 + $0x7] ss:$8 sm:$0xf]   ;;  %v57_v1 = vld [vmem:[%s113_s0 + $0x5] ss:$8 sm:$0xf]  }
   0x2   :  { %7 = vrot.lane.b32.xlu0 %v55_v0, %s69_s8  ;;  %19 = vrot.lane.b32.xlu1 %v57_v1, %s70_s11  ;;  %v56_v2 = vld [vmem:[%s113_s0 + $0x6] ss:$8 sm:$0xf]   ;;  %v58_v3 = vld [vmem:[%s113_s0 + $0x4] ss:$8 sm:$0xf]  }
   0x3   :  { %s71_s16 = smov 48   ;;  %v2_v4 = vld [vmem:[%s113_s0] ss:$8 sm:$0xf]   ;;  %s72_s19 = smov 32   ;;  %vm27_vm4 = vcmask 326912  }
   0x4   :  { %v59_v5 = vld [vmem:[%s113_s0 + $0x3] ss:$8 sm:$0xf]   ;;  %4 = vst.msk [vmem:[#allocation0] sm:$0xf] %vm3_vm0, %v2_v4   ;;  %s73_s24 = smov 24  }
   0x5   :  { %v60_v6 = vld [vmem:[%s113_s0 + $0x2] ss:$8 sm:$0xf]   ;;  %s74_s25 = smov 16   ;;  %vm33_vm5 = vcmask 261312   ;;  %vm39_vm6 = vcmask 195712  }
   0x6   :  { %13 = vrot.lane.b32.xlu0 %v56_v2, %s71_s16  ;;  %25 = vrot.lane.b32.xlu1 %v58_v3, %s72_s19  ;;  %v61_v7 = vld [vmem:[%s113_s0 + $0x1] ss:$8 sm:$0xf]   ;;  %s75_s0 = smov 8   ;;  %vm45_vm7 = vcmask 130112  }
   0xa   :  { %31 = vrot.lane.b32.xlu0 %v59_v5, %s73_s24  ;;  %37 = vrot.lane.b32.xlu1 %v60_v6, %s74_s25 }
   0xe   :  { %43 = vrot.lane.b32.xlu0 %v61_v7, %s75_s0 }
  0x74   :  { %v8_v8 = vpop.permute.xlu0 %7   ;;  %v20_v9 = vpop.permute.xlu1 %19  }
  0x75   :  { %10 = vst.msk [vmem:[#allocation0] sm:$0xf] %vm9_vm1, %v8_v8  }
  0x78   :  { %v14_v10 = vpop.permute.xlu0 %13   ;;  %v26_v11 = vpop.permute.xlu1 %25  }
  0x79   :  { %16 = vst.msk [vmem:[#allocation0] sm:$0xf] %vm15_vm2, %v14_v10  }
  0x7a   :  { %22 = vst.msk [vmem:[#allocation0] sm:$0xf] %vm21_vm3, %v20_v9  }
  0x7b   :  { %28 = vst.msk [vmem:[#allocation0] sm:$0xf] %vm27_vm4, %v26_v11  }
  0x7c   :  { %v32_v12 = vpop.permute.xlu0 %31   ;;  %v38_v13 = vpop.permute.xlu1 %37  }
  0x7d   :  { %34 = vst.msk [vmem:[#allocation0] sm:$0xf] %vm33_vm5, %v32_v12  }
  0x7e   :  { %40 = vst.msk [vmem:[#allocation0] sm:$0xf] %vm39_vm6, %v38_v13  }
  0x80   :  { %v44_v14 = vpop.permute.xlu0 %43  }
  0x81   :  { %46 = vst.msk [vmem:[#allocation0] sm:$0xf] %vm45_vm7, %v44_v14  }
  0x88   :  { %v51_v15 = vld [vmem:[#allocation0] sm:$0xf] }
  0x89   :  { %54 = vst [vmem:[%s114_s1] sm:$0xf] %v51_v15 }

// kernel: hierarchical_forward.1
= control target key start
LH: loop header
LB: loop body
LE: loop exit
PB: predicated region body
PF: predicated region fallthrough
CT: control target
= control target key end

     0   :  { %vm86_vm0 = vcmask 588800   ;;  %v7920_v2 = vmov 0.0   ;;  %s7921_s22 = smov 4   ;;  %vm91_vm1 = vcmask 584704   ;;  %vm123_vm2 = vcmask 556064   ;;  %s7923_s29 = smov 64   ;;  %s12080_s0 = inlined_call_operand.vmem [shape: f32[32,64], index: 0, kind: input, shape index: {}]   ;;  %s12081_s1 = inlined_call_operand.vmem [shape: f32[3,72,128], index: 1, kind: input, shape index: {}]   ;;  %s12082_s17 = inlined_call_operand.vmem [shape: f32[64,64], index: 17, kind: input, shape index: {}]   ;;  %s12083_s2 = inlined_call_operand.vmem [shape: f32[1,128], index: 2, kind: input, shape index: {}]   ;;  %s12084_s3 = inlined_call_operand.vmem [shape: f32[4,64], index: 3, kind: input, shape index: {}]   ;;  %s12085_s4 = inlined_call_operand.vmem [shape: f32[4,64], index: 4, kind: input, shape index: {}]   ;;  %s12086_s5 = inlined_call_operand.vmem [shape: f32[6,160,128], index: 5, kind: input, shape index: {}]   ;;  %s12087_s6 = inlined_call_operand.vmem [shape: f32[2,128], index: 6, kind: input, shape index: {}]   ;;  %s12088_s7 = inlined_call_operand.vmem [shape: f32[4,64], index: 7, kind: input, shape index: {}]   ;;  %s12089_s8 = inlined_call_operand.vmem [shape: f32[4,64], index: 8, kind: input, shape index: {}]   ;;  %s12090_s9 = inlined_call_operand.vmem [shape: f32[6,160,128], index: 9, kind: input, shape index: {}]   ;;  %s12091_s18 = inlined_call_operand.vmem [shape: f32[128,128], index: 18, kind: input, shape index: {}]   ;;  %s12092_s10 = inlined_call_operand.vmem [shape: f32[2,128], index: 10, kind: input, shape index: {}]   ;;  %s12093_s13 = inlined_call_operand.vmem [shape: f32[3,144,128], index: 13, kind: input, shape index: {}]   ;;  %s12094_s11 = inlined_call_operand.vmem [shape: f32[1,128], index: 11, kind: input, shape index: {}]   ;;  %s12095_s12 = inlined_call_operand.vmem [shape: f32[1,128], index: 12, kind: input, shape index: {}]   ;;  %s12096_s14 = inlined_call_operand.vmem [shape: f32[1,128], index: 14, kind: input, shape index: {}]   ;;  %s12097_s15 = inlined_call_operand.vmem [shape: f32[1,128], index: 15, kind: input, shape index: {}]   ;;  %s12098_s16 = inlined_call_operand.vmem [shape: f32[1,128], index: 16, kind: input, shape index: {}]   ;;  %s12099_s19 = inlined_call_operand.vmem [shape: f32[32,128], index: 19, kind: output, shape index: {}]  }
   0x1   :  { %12113 = sst [smem:[#allocation10_spill]] %s12080_s0  ;;  %87 = vst.msk [vmem:[#allocation2] sm:$0xff] %vm86_vm0, %v7920_v2  ;;  %88 = vst.msk [vmem:[#allocation2 + $0x8] sm:$0xff] %vm86_vm0, %v7920_v2  ;;  %vm7922_vm3 = vmmov 0   ;;  %vm950_vm4 = vcmask 1048064   ;;  %vm722_vm5 = vcmask 523264  }
   0x2   :  { %12114 = sst [smem:[#allocation11_spill]] %s12081_s1  ;;  %89 = vst.msk [vmem:[#allocation2 + $0x10] sm:$0xff] %vm86_vm0, %v7920_v2  ;;  %90 = vst.msk [vmem:[#allocation2 + $0x18] sm:$0xff] %vm86_vm0, %v7920_v2  ;;  %vm94_vm6 = vcmask 261120   ;;  %s7924_s1 = smov 8   ;;  %vm99_vm7 = vcmask 257024  }
   0x3   :  { %12115 = sst [smem:[#allocation12_spill]] %s12082_s17  ;;  %93 = vst [vmem:[#allocation6] sm:$0xff] %v7920_v2  ;;  %96 = vst [vmem:[#allocation6 + $0x10] sm:$0xff] %v7920_v2  ;;  %vm930_vm8 = vcmask 588865   ;;  %vm12107_vm9 = vcmask 581696   ;;  %vm12109_vm10 = vcmask 588867  }
   0x4   :  { %12116 = sst [smem:[#allocation13_spill]] %s12083_s2  ;;  %98 = vst [vmem:[#allocation6 + $0x20] sm:$0xf] %v7920_v2  ;;  %101 = vst [vmem:[#allocation7] sm:$0xff] %v7920_v2  ;;  %vm12108_vm11 = vcmask 583744   ;;  %vm1174_vm12 = vcmask 1048257  }
   0x5   :  { %s12117_s20 = sld [smem:[#allocation10_spill]]  ;;  %104 = vst [vmem:[#allocation7 + $0x10] sm:$0xff] %v7920_v2  ;;  %106 = vst [vmem:[#allocation7 + $0x20] sm:$0xff] %v7920_v2  ;;  %vm1176_vm13 = vcmask 195585   ;;  %vm1178_vm14 = vcmask 1041088   ;;  %vm12103_vm15 = vcmask 188416  }
   0x6   :  { %108 = vst [vmem:[#allocation7 + $0x30] sm:$0xff] %v7920_v2  ;;  %110 = vst [vmem:[#allocation7 + $0x40] sm:$0xf] %v7920_v2  ;;  %s12118_s2 = sld [smem:[#allocation11_spill]] }
   0x7   :  { %92 = vst.msk [vmem:[#allocation2 + $0x20] sm:$0xf] %vm91_vm1, %v7920_v2  ;;  %s12119_s26 = sld [smem:[#allocation12_spill]]  ;;  %vm1192_vm1 = vcmask 195587  }
   0x8   :  { %s12120_s28 = sld [smem:[#allocation13_spill]]  ;;  %95 = vst.msk [vmem:[#allocation6 + $0x8] sm:$0xff] %vm94_vm6, %v7920_v2  ;;  %97 = vst.msk [vmem:[#allocation6 + $0x18] sm:$0xff] %vm94_vm6, %v7920_v2 }
   0xb   :  { %v113_v0 = vld [vmem:[%s12117_s20] sm:$0xff]  ;;  %v126_v1 = vld [vmem:[%s12117_s20 + $0x10] sm:$0xff]  ;;  %v114_v3 = vld [vmem:[%s12117_s20 + $0x8] sm:$0xff] }
   0xc   :  { %117 = vrot.lane.b32.xlu0 %v113_v0, %s7921_s22  ;;  %130 = vrot.lane.b32.xlu1 %v126_v1, %s7921_s22  ;;  %v8054_v4 = vld [vmem:[%s12118_s2 + $0x88] sm:$0xff]  ;;  %v127_v5 = vld [vmem:[%s12117_s20 + $0x18] sm:$0xff]  ;;  %s7925_s20 = smov 24  }
   0xd   :  { %7279 = vmatprep.subr.mxu0 %v8054_v4  ;;  %v8063_v6 = vld [vmem:[%s12118_s2 + $0x40] sm:$0xff]  ;;  %v8075_v8 = vld [vmem:[%s12118_s2 + $0x38] sm:$0xff]  ;;  %v8087_v10 = vld [vmem:[%s12118_s2 + $0x30] sm:$0xff] }
   0xe   :  { %v8068_v7 = vld [vmem:[%s12118_s2 + $0x80] sm:$0xff]  ;;  %7300 = vmatprep.subr.mxu1 %v8063_v6  ;;  %7280 = vmatpush3.msra.mxu0 %v8054_v4  ;;  %v8082_v9 = vld [vmem:[%s12118_s2 + $0x78] sm:$0xff]  ;;  %v8094_v11 = vld [vmem:[%s12118_s2 + $0x70] sm:$0xff] }
   0xf   :  { %7301 = vmatpush3.msra.mxu1 %v8063_v6  ;;  %7281 = vmatprep.subr.mxu0 %v8068_v7  ;;  %v8101_v12 = vld [vmem:[%s12118_s2 + $0x28] sm:$0xff]  ;;  %v8115_v14 = vld [vmem:[%s12118_s2 + $0x20] sm:$0xff]  ;;  %v8130_v16 = vld [vmem:[%s12118_s2 + $0x18] sm:$0xff] }
  0x10   :  { %119 = vrot.lane.b32.xlu0 %v114_v3, %s7921_s22  ;;  %132 = vrot.lane.b32.xlu1 %v127_v5, %s7921_s22  ;;  %v8108_v13 = vld [vmem:[%s12118_s2 + $0x68] sm:$0xff]  ;;  %v8123_v15 = vld [vmem:[%s12118_s2 + $0x60] sm:$0xff] }
  0x11   :  { %7302 = vmatprep.subr.mxu1 %v8075_v8  ;;  %7282 = vmatpush3.msra.mxu0 %v8068_v7  ;;  %v8137_v17 = vld [vmem:[%s12118_s2 + $0x58] sm:$0xff]  ;;  %v8144_v18 = vld [vmem:[%s12118_s2 + $0x10] sm:$0xff]  ;;  %v8158_v20 = vld [vmem:[%s12118_s2 + $0x8] sm:$0xff] }
  0x12   :  { %7303 = vmatpush3.msra.mxu1 %v8075_v8  ;;  %7283 = vmatprep.subr.mxu0 %v8082_v9  ;;  %v8151_v19 = vld [vmem:[%s12118_s2 + $0x50] sm:$0xff]  ;;  %v8165_v21 = vld [vmem:[%s12118_s2 + $0x48] sm:$0xff]  ;;  %v8172_v22 = vld [vmem:[%s12118_s2] sm:$0xff] }
  0x13   :  { %7304 = vmatprep.subr.mxu1 %v8087_v10  ;;  %7284 = vmatpush3.msra.mxu0 %v8082_v9  ;;  %v8179_v23 = vld [vmem:[%s12118_s2 + $0xd0] sm:$0xff]  ;;  %v8193_v30 = vld [vmem:[%s12118_s2 + $0xc8] sm:$0xff]  ;;  %v6436_v34 = vld [vmem:[%s12118_s2 + $0xc0] sm:$0xff] }
  0x14   :  { %7305 = vmatpush3.msra.mxu1 %v8087_v10  ;;  %7285 = vmatprep.subr.mxu0 %v8094_v11  ;;  %v6435_v35 = vld [vmem:[%s12118_s2 + $0xb8] sm:$0xff]  ;;  %v6434_v36 = vld [vmem:[%s12118_s2 + $0xb0] sm:$0xff]  ;;  %v6433_v37 = vld [vmem:[%s12118_s2 + $0xa8] sm:$0xff] }
  0x15   :  { %7306 = vmatprep.subr.mxu1 %v8101_v12  ;;  %7286 = vmatpush3.msra.mxu0 %v8094_v11  ;;  %v6432_v38 = vld [vmem:[%s12118_s2 + $0xa0] sm:$0xff]  ;;  %v6431_v39 = vld [vmem:[%s12118_s2 + $0x98] sm:$0xff]  ;;  %v6430_v40 = vld [vmem:[%s12118_s2 + $0x90] sm:$0xff] }
  0x16   :  { %7307 = vmatpush3.msra.mxu1 %v8101_v12  ;;  %7287 = vmatprep.subr.mxu0 %v8108_v13  ;;  %v8273_v48 = vld [vmem:[%s12119_s26 + $0x38] sm:$0xff]  ;;  %v8278_v49 = vld [vmem:[%s12119_s26 + $0x30] sm:$0xff]  ;;  %v8290_v50 = vld [vmem:[%s12119_s26 + $0x28] sm:$0xff] }
  0x17   :  { %7308 = vmatprep.subr.mxu1 %v8115_v14  ;;  %7288 = vmatpush3.msra.mxu0 %v8108_v13  ;;  %v8299_v51 = vld [vmem:[%s12119_s26 + $0x20] sm:$0xff]  ;;  %v8308_v52 = vld [vmem:[%s12119_s26 + $0x18] sm:$0xff]  ;;  %v8317_v53 = vld [vmem:[%s12119_s26 + $0x10] sm:$0xff] }
  0x18   :  { %7309 = vmatpush3.msra.mxu1 %v8115_v14  ;;  %7289 = vmatprep.subr.mxu0 %v8123_v15  ;;  %v8326_v54 = vld [vmem:[%s12119_s26 + $0x8] sm:$0xff]  ;;  %v8335_v55 = vld [vmem:[%s12119_s26] sm:$0xff] }
  0x19   :  { %7310 = vmatprep.subr.mxu1 %v8130_v16  ;;  %7290 = vmatpush3.msra.mxu0 %v8123_v15  ;;  %v6441_v60 = vld [vmem:[%s12120_s28] ss:$0 sm:$0xff] }
  0x1a   :  { %7311 = vmatpush3.msra.mxu1 %v8130_v16  ;;  %7291 = vmatprep.subr.mxu0 %v8137_v17 }
  0x1b   :  { %7312 = vmatprep.subr.mxu1 %v8144_v18  ;;  %7292 = vmatpush3.msra.mxu0 %v8137_v17 }
  0x1c   :  { %7313 = vmatpush3.msra.mxu1 %v8144_v18  ;;  %7293 = vmatprep.subr.mxu0 %v8151_v19 }
  0x1d   :  { %7314 = vmatprep.subr.mxu1 %v8158_v20  ;;  %7294 = vmatpush3.msra.mxu0 %v8151_v19 }
  0x1e   :  { %7315 = vmatpush3.msra.mxu1 %v8158_v20  ;;  %7295 = vmatprep.subr.mxu0 %v8165_v21 }
  0x1f   :  { %7316 = vmatprep.subr.mxu1 %v8172_v22  ;;  %7296 = vmatpush3.msra.mxu0 %v8165_v21 }
  0x20   :  { %7317 = vmatpush3.msra.mxu1 %v8172_v22  ;;  %7321 = vmatprep.subr.mxu0 %v8179_v23 }
  0x21   :  { %7342 = vmatprep.subr.mxu1 %v8054_v4 }
  0x7e   :  { %v118_v24 = vpop.permute.xlu0 %117  ;;  %v131_v25 = vpop.permute.xlu1 %130 }
  0x7f   :  { %124 = vst.msk [vmem:[#allocation2 + $0x1] sm:$0xff] %vm123_vm2, %v118_v24  ;;  %136 = vst.msk [vmem:[#allocation2 + $0x13] sm:$0xff] %vm123_vm2, %v131_v25 }
  0x82   :  { %v120_v26 = vpop.permute.xlu0 %119  ;;  %v133_v27 = vpop.permute.xlu1 %132 }
  0x83   :  { %125 = vst.msk [vmem:[#allocation2 + $0x9] sm:$0xff] %vm123_vm2, %v120_v26  ;;  %137 = vst.msk [vmem:[#allocation2 + $0x1b] sm:$0xff] %vm123_vm2, %v133_v27  ;;  %vm12104_vm2 = vcmask 1043136  }
  0x86   :  { %v150_v28 = vld [vmem:[#allocation2 + $0x1] sm:$0xff]  ;;  %v441_v41 = vld [vmem:[#allocation2 + $0x13] sm:$0xff] }
  0x87   :  { %v139_v29 = vld [vmem:[#allocation2] sm:$0xff]  ;;  %7297 = vmatprep.mubr.msk.f32.mxu0 %vm86_vm0, %v150_v28  ;;  %v430_v44 = vld [vmem:[#allocation2 + $0x12] sm:$0xff] }
  0x88   :  { %7318 = vmatprep.mubr.msk.f32.mxu1 %vm86_vm0, %v139_v29 }
  0x8a   :  { %v151_v31 = vld [vmem:[#allocation2 + $0x9] sm:$0xff]  ;;  %v442_v42 = vld [vmem:[#allocation2 + $0x1b] sm:$0xff] }
  0x8b   :  { %v140_v32 = vld [vmem:[#allocation2 + $0x8] sm:$0xff]  ;;  %7298 = vmatmul.mubr.msk.f32.vlgmr.msra.gmra.mxu0 %vm86_vm0, %v151_v31  ;;  %v614_v45 = vld [vmem:[#allocation2 + $0x14] sm:$0xff]  ;;  %v615_v47 = vld [vmem:[#allocation2 + $0x1c] sm:$0xff] }
  0x8c   :  { %v324_v33 = vld [vmem:[#allocation2 + $0x2] sm:$0xff]  ;;  %7319 = vmatmul.mubr.msk.f32.vlgmr.msra.gmra.mxu1 %vm86_vm0, %v140_v32  ;;  %7322 = vmatpush3.msra.mxu0 %v8179_v23  ;;  %v325_v43 = vld [vmem:[#allocation2 + $0xa] sm:$0xff]  ;;  %v431_v46 = vld [vmem:[#allocation2 + $0x1a] sm:$0xff] }
  0x8d   :  { %7343 = vmatpush3.msra.mxu1 %v8054_v4  ;;  %7323 = vmatprep.subr.mxu0 %v8193_v30 }
  0x8e   :  { %7339 = vmatprep.mubr.msk.f32.mxu0 %vm86_vm0, %v324_v33  ;;  %7344 = vmatprep.subr.mxu1 %v8068_v7 }
  0x8f   :  { %7324 = vmatpush3.msra.mxu0 %v8193_v30  ;;  %7345 = vmatpush3.msra.mxu1 %v8068_v7 }
  0x90   :  { %7325 = vmatprep.subr.mxu0 %v6436_v34  ;;  %7346 = vmatprep.subr.mxu1 %v8082_v9 }
  0x91   :  { %7326 = vmatpush3.msra.mxu0 %v6436_v34  ;;  %7347 = vmatpush3.msra.mxu1 %v8082_v9 }
  0x92   :  { %7327 = vmatprep.subr.mxu0 %v6435_v35  ;;  %7348 = vmatprep.subr.mxu1 %v8094_v11 }
  0x93   :  { %7328 = vmatpush3.msra.mxu0 %v6435_v35  ;;  %7349 = vmatpush3.msra.mxu1 %v8094_v11 }
  0x94   :  { %7329 = vmatprep.subr.mxu0 %v6434_v36  ;;  %7350 = vmatprep.subr.mxu1 %v8108_v13 }
  0x95   :  { %7330 = vmatpush3.msra.mxu0 %v6434_v36  ;;  %7351 = vmatpush3.msra.mxu1 %v8108_v13 }
  0x96   :  { %7331 = vmatprep.subr.mxu0 %v6433_v37  ;;  %7352 = vmatprep.subr.mxu1 %v8123_v15 }
  0x97   :  { %7332 = vmatpush3.msra.mxu0 %v6433_v37  ;;  %7353 = vmatpush3.msra.mxu1 %v8123_v15 }
  0x98   :  { %7333 = vmatprep.subr.mxu0 %v6432_v38  ;;  %7354 = vmatprep.subr.mxu1 %v8137_v17 }
  0x99   :  { %7334 = vmatpush3.msra.mxu0 %v6432_v38  ;;  %7355 = vmatpush3.msra.mxu1 %v8137_v17 }
  0x9a   :  { %7335 = vmatprep.subr.mxu0 %v6431_v39  ;;  %7356 = vmatprep.subr.mxu1 %v8151_v19 }
  0x9b   :  { %7336 = vmatpush3.msra.mxu0 %v6431_v39  ;;  %7357 = vmatpush3.msra.mxu1 %v8151_v19 }
  0x9c   :  { %7337 = vmatprep.subr.mxu0 %v6430_v40  ;;  %7358 = vmatprep.subr.mxu1 %v8165_v21 }
  0x9d   :  { %7338 = vmatpush3.msra.mxu0 %v6430_v40  ;;  %7359 = vmatpush3.msra.mxu1 %v8165_v21 }
  0x9e   :  { %7360 = vmatprep.mubr.msk.f32.mxu1 %vm86_vm0, %v441_v41  ;;  %7340 = vmatmul.mubr.msk.f32.vlgmr.msra.gmra.mxu0 %vm86_vm0, %v325_v43 }
  0x9f   :  { %7361 = vmatmul.mubr.msk.f32.vlgmr.msra.gmra.mxu1 %vm86_vm0, %v442_v42  ;;  %7363 = vmatprep.subr.mxu0 %v8063_v6 }
  0xa0   :  { %7384 = vmatprep.subr.mxu1 %v8179_v23  ;;  %7364 = vmatpush3.msra.mxu0 %v8063_v6 }
  0xa1   :  { %7381 = vmatprep.mubr.msk.f32.mxu0 %vm86_vm0, %v430_v44  ;;  %7385 = vmatpush3.msra.mxu1 %v8179_v23 }
  0xa2   :  { %7402 = vmatprep.mubr.msk.f32.mxu1 %vm86_vm0, %v614_v45  ;;  %7365 = vmatprep.subr.mxu0 %v8075_v8 }
  0xa3   :  { %7386 = vmatprep.subr.mxu1 %v8193_v30  ;;  %7366 = vmatpush3.msra.mxu0 %v8075_v8 }
  0xa4   :  { %7387 = vmatpush3.msra.mxu1 %v8193_v30  ;;  %7367 = vmatprep.subr.mxu0 %v8087_v10 }
  0xa5   :  { %7388 = vmatprep.subr.mxu1 %v6436_v34  ;;  %7368 = vmatpush3.msra.mxu0 %v8087_v10 }
  0xa6   :  { %7389 = vmatpush3.msra.mxu1 %v6436_v34  ;;  %7369 = vmatprep.subr.mxu0 %v8101_v12 }
  0xa7   :  { %7390 = vmatprep.subr.mxu1 %v6435_v35  ;;  %7370 = vmatpush3.msra.mxu0 %v8101_v12 }
  0xa8   :  { %7391 = vmatpush3.msra.mxu1 %v6435_v35  ;;  %7371 = vmatprep.subr.mxu0 %v8115_v14 }
  0xa9   :  { %7392 = vmatprep.subr.mxu1 %v6434_v36  ;;  %7372 = vmatpush3.msra.mxu0 %v8115_v14 }
  0xaa   :  { %7393 = vmatpush3.msra.mxu1 %v6434_v36  ;;  %7373 = vmatprep.subr.mxu0 %v8130_v16 }
  0xab   :  { %7394 = vmatprep.subr.mxu1 %v6433_v37  ;;  %7374 = vmatpush3.msra.mxu0 %v8130_v16 }
  0xac   :  { %7395 = vmatpush3.msra.mxu1 %v6433_v37  ;;  %7375 = vmatprep.subr.mxu0 %v8144_v18 }
  0xad   :  { %7396 = vmatprep.subr.mxu1 %v6432_v38  ;;  %7376 = vmatpush3.msra.mxu0 %v8144_v18 }
  0xae   :  { %7397 = vmatpush3.msra.mxu1 %v6432_v38  ;;  %7377 = vmatprep.subr.mxu0 %v8158_v20 }
  0xaf   :  { %7398 = vmatprep.subr.mxu1 %v6431_v39  ;;  %7378 = vmatpush3.msra.mxu0 %v8158_v20 }
  0xb0   :  { %7399 = vmatpush3.msra.mxu1 %v6431_v39  ;;  %7379 = vmatprep.subr.mxu0 %v8172_v22 }
  0xb1   :  { %7400 = vmatprep.subr.mxu1 %v6430_v40  ;;  %7380 = vmatpush3.msra.mxu0 %v8172_v22 }
  0xb2   :  { %7401 = vmatpush3.msra.mxu1 %v6430_v40  ;;  %7382 = vmatmul.mubr.msk.f32.vlgmr.msra.gmra.mxu0 %vm86_vm0, %v431_v46 }
  0xb3   :  { %7403 = vmatmul.mubr.msk.f32.vlgmr.msra.gmra.mxu1 %vm86_vm0, %v615_v47  ;;  %7405 = vmatprep.subr.mxu0 %v7920_v2  ;;  %vm1190_vm0 = vcmask 1048259  }
  0xb4   :  { %7424 = vmatprep.subr.mxu1 %v7920_v2  ;;  %7421 = vmatprep.mubr.msk.f32.mxu0 %vm7922_vm3, %v7920_v2 }
  0xb5   :  { %7440 = vmatprep.mubr.msk.f32.mxu1 %vm7922_vm3, %v7920_v2  ;;  %7406 = vmatpush3.msra.mxu0 %v8273_v48 }
  0xb6   :  { %7425 = vmatpush3.msra.mxu1 %v8273_v48  ;;  %7407 = vmatprep.subr.mxu0 %v7920_v2 }
  0xb7   :  { %7426 = vmatprep.subr.mxu1 %v7920_v2  ;;  %7408 = vmatpush3.msra.mxu0 %v8278_v49 }
  0xb8   :  { %7427 = vmatpush3.msra.mxu1 %v8278_v49  ;;  %7409 = vmatprep.subr.mxu0 %v7920_v2 }
  0xb9   :  { %7428 = vmatprep.subr.mxu1 %v7920_v2  ;;  %7410 = vmatpush3.msra.mxu0 %v8290_v50 }
  0xba   :  { %7429 = vmatpush3.msra.mxu1 %v8290_v50  ;;  %7411 = vmatprep.subr.mxu0 %v7920_v2 }
  0xbb   :  { %7430 = vmatprep.subr.mxu1 %v7920_v2  ;;  %7412 = vmatpush3.msra.mxu0 %v8299_v51 }
  0xbc   :  { %7431 = vmatpush3.msra.mxu1 %v8299_v51  ;;  %7413 = vmatprep.subr.mxu0 %v7920_v2 }
  0xbd   :  { %7432 = vmatprep.subr.mxu1 %v7920_v2  ;;  %7414 = vmatpush3.msra.mxu0 %v8308_v52 }
  0xbe   :  { %7433 = vmatpush3.msra.mxu1 %v8308_v52  ;;  %7415 = vmatprep.subr.mxu0 %v7920_v2 }
  0xbf   :  { %7434 = vmatprep.subr.mxu1 %v7920_v2  ;;  %7416 = vmatpush3.msra.mxu0 %v8317_v53 }
  0xc0   :  { %7435 = vmatpush3.msra.mxu1 %v8317_v53  ;;  %7417 = vmatprep.subr.mxu0 %v7920_v2 }
  0xc1   :  { %7436 = vmatprep.subr.mxu1 %v7920_v2  ;;  %7418 = vmatpush3.msra.mxu0 %v8326_v54 }
  0xc2   :  { %7437 = vmatpush3.msra.mxu1 %v8326_v54  ;;  %7419 = vmatprep.subr.mxu0 %v7920_v2 }
  0xc3   :  { %7438 = vmatprep.subr.mxu1 %v7920_v2  ;;  %7420 = vmatpush3.msra.mxu0 %v8335_v55 }
  0xc4   :  { %7439 = vmatpush3.msra.mxu1 %v8335_v55  ;;  %7443 = vmatprep.subr.mxu0 %v7920_v2 }
  0xc5   :  { %7462 = vmatprep.subr.mxu1 %v7920_v2 }
 0x14b   :  { %v7299_v56 = vpop.f32.mrf.mxu0 }
 0x14c   :  { %v7320_v57 = vpop.f32.mrf.mxu1 }
 0x14d   :  { %v321_v58 = vadd.f32 %v7320_v57, %v7299_v56  ;;  %v234_v59 = vpop.f32.mrf.mxu0  ;;  %v812_v57 = vlaneseq }
 0x14e   :  { %v315_v0 = vpop.f32.mrf.mxu1 }
 0x14f   :  { %v316_v3 = vadd.f32 %v315_v0, %v234_v59 }
 0x15e   :  { %v7341_v61 = vpop.f32.mrf.mxu0 }
 0x15f   :  { %v418_v62 = vadd.f32 %v7341_v61, %v321_v58  ;;  %v7362_v6 = vpop.f32.mrf.mxu1  ;;  %v813_v58 = vshrl.u32 %v812_v57, 7 }
 0x160   :  { %v408_v1 = vpop.f32.mrf.mxu0 }
 0x161   :  { %v8349_v63 = vadd.f32 %v6441_v60, %v418_v62  ;;  %v417_v4 = vadd.f32 %v408_v1, %v316_v3  ;;  %v524_v9 = vpop.f32.mrf.mxu1  ;;  %v8386_v59 = vsub.s32 0, %v813_v58 }
 0x163   :  { %v8351_v5 = vadd.f32 %v6441_v60, %v417_v4 }
 0x165   :  { %v951_v7 = vsel %vm950_vm4, %v8351_v5, 0.0  ;;  %v723_v8 = vsel %vm722_vm5, %v8351_v5, 0.0 }
 0x166   :  { %v952_v12 = vrot.slane %v951_v7, 4  ;;  %v724_v13 = vrot.slane %v723_v8, 4 }
 0x168   :  { %v953_v19 = vadd.f32 %v952_v12, %v951_v7  ;;  %v725_v20 = vadd.f32 %v724_v13, %v723_v8 }
 0x16a   :  { %v954_v24 = vrot.slane %v953_v19, 2  ;;  %v726_v25 = vrot.slane %v725_v20, 2 }
 0x16c   :  { %v955_v30 = vadd.f32 %v954_v24, %v953_v19  ;;  %v727_v32 = vadd.f32 %v726_v25, %v725_v20 }
 0x16e   :  { %v956_v36 = vrot.slane %v955_v30, 1  ;;  %v728_v38 = vrot.slane %v727_v32, 1 }
 0x170   :  { %v957_v42 = vadd.f32 %v956_v36, %v955_v30  ;;  %v729_v44 = vadd.f32 %v728_v38, %v727_v32 }
 0x172   :  { %v7383_v10 = vpop.f32.mrf.mxu0 }
 0x173   :  { %v7404_v11 = vpop.f32.mrf.mxu1  ;;  %v611_v14 = vadd.f32 %v7383_v10, %v7362_v6 }
 0x174   :  { %v605_v15 = vpop.f32.mrf.mxu0 }
 0x175   :  { %v707_v16 = vadd.f32 %v7404_v11, %v611_v14  ;;  %v606_v17 = vadd.f32 %v605_v15, %v524_v9  ;;  %v697_v18 = vpop.f32.mrf.mxu1 }
 0x177   :  { %v8357_v21 = vadd.f32 %v6441_v60, %v707_v16  ;;  %v706_v22 = vadd.f32 %v697_v18, %v606_v17 }
 0x179   :  { %12121 = vst [vmem:[#allocation8_spill] sm:$0xff] %v8357_v21  ;;  %v8359_v23 = vadd.f32 %v6441_v60, %v706_v22 }
 0x17b   :  { %v958_v26 = vsel %vm950_vm4, %v8359_v23, 0.0  ;;  %v730_v27 = vsel %vm722_vm5, %v8359_v23, 0.0 }
 0x17c   :  { %v959_v28 = vrot.slane %v958_v26, 4  ;;  %v731_v29 = vrot.slane %v730_v27, 4 }
 0x17e   :  { %v960_v31 = vadd.f32 %v959_v28, %v958_v26  ;;  %v732_v33 = vadd.f32 %v731_v29, %v730_v27 }
 0x180   :  { %v961_v34 = vrot.slane %v960_v31, 2  ;;  %v733_v35 = vrot.slane %v732_v33, 2 }
 0x182   :  { %v962_v37 = vadd.f32 %v961_v34, %v960_v31  ;;  %v734_v39 = vadd.f32 %v733_v35, %v732_v33 }
 0x184   :  { %v963_v40 = vrot.slane %v962_v37, 1  ;;  %v735_v41 = vrot.slane %v734_v39, 1 }
 0x186   :  { %v964_v43 = vadd.f32 %v963_v40, %v962_v37  ;;  %v736_v45 = vadd.f32 %v735_v41, %v734_v39 }
 0x188   :  { %v965_v46 = vadd.f32 %v964_v43, %v957_v42  ;;  %v737_v47 = vadd.f32 %v736_v45, %v729_v44 }
 0x18a   :  { %967 = vrot.lane.b32.xlu0 %v965_v46, %s7923_s29  ;;  %7422 = vmatmul.mubr.msk.f32.vlgmr.msra.gmra.mxu0 %vm722_vm5, %v737_v47  ;;  %v720_v46 = vld [vmem:[%s12084_s3] sm:$0x1] }
 0x18b   :  { %7444 = vmatpush3.msra.mxu0 %v8273_v48  ;;  %7459 = vmatprep.mubr.msk.f32.mxu0 %vm7922_vm3, %v7920_v2 }
 0x18c   :  { %7445 = vmatprep.subr.mxu0 %v7920_v2 }
 0x18d   :  { %7446 = vmatpush3.msra.mxu0 %v8278_v49 }
 0x18e   :  { %7447 = vmatprep.subr.mxu0 %v7920_v2 }
 0x18f   :  { %7448 = vmatpush3.msra.mxu0 %v8290_v50 }
 0x190   :  { %7449 = vmatprep.subr.mxu0 %v7920_v2 }
 0x191   :  { %7450 = vmatpush3.msra.mxu0 %v8299_v51 }
 0x192   :  { %7451 = vmatprep.subr.mxu0 %v7920_v2 }
 0x193   :  { %7452 = vmatpush3.msra.mxu0 %v8308_v52 }
 0x194   :  { %7453 = vmatprep.subr.mxu0 %v7920_v2 }
 0x195   :  { %7454 = vmatpush3.msra.mxu0 %v8317_v53 }
 0x196   :  { %7455 = vmatprep.subr.mxu0 %v7920_v2 }
 0x197   :  { %7456 = vmatpush3.msra.mxu0 %v8326_v54 }
 0x198   :  { %7457 = vmatprep.subr.mxu0 %v7920_v2 }
 0x199   :  { %7458 = vmatpush3.msra.mxu0 %v8335_v55 }
 0x19a   :  { %1260 = vmatprep.subr.mxu0 %v7920_v2 }
 0x1fc   :  { %v968_v56 = vpop.permute.xlu0 %967 }
 0x1fd   :  { %7460 = vmatmul.mubr.msk.f32.vlgmr.msra.gmra.mxu0 %vm722_vm5, %v968_v56 }
 0x24a   :  { %v807_v60 = vpop.f32.mrf.mxu0 }
 0x24b   :  { %v8388_v61 = vmul.f32 0.0078125, %v807_v60 }
 0x24c   :  { %v7423_v62 = vpop.f32.mrf.mxu0 }
 0x24d   :  { %v815_v0 = vrot.slane %v8388_v61, %v8386_v59 }
 0x24f   :  { %v816_v1 = vsub.f32 %v8351_v5, %v815_v0  ;;  %v825_v3 = vsub.f32 %v8359_v23, %v815_v0  ;;  %v721_v0 = vld [vmem:[%s12085_s4] sm:$0x1] }
 0x251   :  { %v817_v4 = vmul.f32 %v816_v1, %v816_v1  ;;  %v826_v6 = vmul.f32 %v825_v3, %v825_v3 }
 0x253   :  { %v818_v7 = vsel %vm722_vm5, %v817_v4, 0.0  ;;  %v827_v8 = vsel %vm722_vm5, %v826_v6, 0.0 }
 0x254   :  { %v819_v9 = vrot.slane %v818_v7, 4  ;;  %v828_v10 = vrot.slane %v827_v8, 4 }
 0x256   :  { %v820_v11 = vadd.f32 %v819_v9, %v818_v7  ;;  %v829_v12 = vadd.f32 %v828_v10, %v827_v8  ;;  %v948_v7 = vld [vmem:[%s12084_s3 + $0x1] sm:$0x1] }
 0x258   :  { %v821_v13 = vrot.slane %v820_v11, 2  ;;  %v830_v14 = vrot.slane %v829_v12, 2 }
 0x25a   :  { %v822_v15 = vadd.f32 %v821_v13, %v820_v11  ;;  %v831_v16 = vadd.f32 %v830_v14, %v829_v12  ;;  %v949_v11 = vld [vmem:[%s12085_s4 + $0x1] sm:$0x1] }
 0x25c   :  { %v823_v17 = vrot.slane %v822_v15, 1  ;;  %v832_v18 = vrot.slane %v831_v16, 1 }
 0x25e   :  { %v824_v19 = vadd.f32 %v823_v17, %v822_v15  ;;  %v833_v20 = vadd.f32 %v832_v18, %v831_v16 }
 0x260   :  { %v834_v22 = vadd.f32 %v833_v20, %v824_v19  ;;  %v8446_v20 = vld [vmem:[%s12086_s5 + $0x78] sm:$0xff] }
 0x262   :  { %7441 = vmatmul.mubr.msk.f32.vlgmr.msra.gmra.mxu1 %vm722_vm5, %v834_v22  ;;  %v8451_v22 = vld [vmem:[%s12086_s5 + $0x118] sm:$0xff] }
 0x263   :  { %7463 = vmatpush3.msra.mxu1 %v8273_v48  ;;  %7478 = vmatprep.mubr.msk.f32.mxu1 %vm7922_vm3, %v7920_v2 }
 0x264   :  { %7464 = vmatprep.subr.mxu1 %v7920_v2  ;;  %1261 = vmatpush1.msra.mxu0 %v8451_v22 }
 0x265   :  { %7465 = vmatpush3.msra.mxu1 %v8278_v49  ;;  %1262 = vmatprep.subr.mxu0 %v7920_v2 }
 0x266   :  { %7466 = vmatprep.subr.mxu1 %v7920_v2 }
 0x267   :  { %7467 = vmatpush3.msra.mxu1 %v8290_v50 }
 0x268   :  { %7468 = vmatprep.subr.mxu1 %v7920_v2 }
 0x269   :  { %7469 = vmatpush3.msra.mxu1 %v8299_v51 }
 0x26a   :  { %7470 = vmatprep.subr.mxu1 %v7920_v2 }
 0x26b   :  { %7471 = vmatpush3.msra.mxu1 %v8308_v52 }
 0x26c   :  { %7472 = vmatprep.subr.mxu1 %v7920_v2 }
 0x26d   :  { %7473 = vmatpush3.msra.mxu1 %v8317_v53 }
 0x26e   :  { %7474 = vmatprep.subr.mxu1 %v7920_v2 }
 0x26f   :  { %7475 = vmatpush3.msra.mxu1 %v8326_v54 }
 0x270   :  { %7476 = vmatprep.subr.mxu1 %v7920_v2 }
 0x271   :  { %7477 = vmatpush3.msra.mxu1 %v8335_v55 }
 0x272   :  { %1333 = vmatprep.subr.mxu1 %v7920_v2 }
 0x2bd   :  { %v1037_v48 = vpop.f32.mrf.mxu0 }
 0x2be   :  { %v1041_v49 = vmul.f32 0.0078125, %v1037_v48  ;;  %v8461_v48 = vld [vmem:[%s12086_s5 + $0x70] sm:$0xff] }
 0x2bf   :  { %v7461_v50 = vpop.f32.mrf.mxu0 }
 0x2c0   :  { %v1045_v51 = vrot.slane %v1041_v49, %v8386_v59  ;;  %v8476_v50 = vld [vmem:[%s12086_s5 + $0x68] sm:$0xff] }
 0x2c2   :  { %1047 = vrot.lane.b32.xlu1 %v1045_v51, %s7923_s29 }
 0x322   :  { %v904_v52 = vpop.f32.mrf.mxu1 }
 0x323   :  { %v908_v43 = vmul.f32 0.0078125, %v904_v52  ;;  %v8483_v52 = vld [vmem:[%s12086_s5 + $0x108] sm:$0xff] }
 0x324   :  { %v7442_v24 = vpop.f32.mrf.mxu1 }
 0x325   :  { %v909_v44 = vadd.f32 1e-05, %v908_v43  ;;  %v8490_v24 = vld [vmem:[%s12086_s5 + $0x60] sm:$0xff]  ;;  %v8644_v43 = vld [vmem:[%s12086_s5 + $0x8] sm:$0xff] }
 0x327   :  { %7855 = vrsqrt.f32 %v909_v44  ;;  %v8653_v44 = vld [vmem:[%s12086_s5] sm:$0xff] }
 0x334   :  { %v1048_v53 = vpop.permute.xlu1 %1047  ;;  %v7856_v45 = vpop.eup %7855 }
 0x335   :  { %v1050_v25 = vsub.f32 %v8351_v5, %v1048_v53  ;;  %v1059_v54 = vsub.f32 %v8359_v23, %v1048_v53  ;;  %v911_v57 = vmul.f32 %v7856_v45, %v720_v46  ;;  %v8497_v53 = vld [vmem:[%s12086_s5 + $0x100] sm:$0xff]  ;;  %v8656_v45 = vld [vmem:[#allocation6] sm:$0xff]  ;;  %v8670_v46 = vld [vmem:[%s12086_s5 + $0x98] sm:$0xff] }
 0x336   :  { %100 = vst.msk [vmem:[#allocation6 + $0x28] sm:$0xf] %vm99_vm7, %v8656_v45  ;;  %vm12105_vm7 = vcmask 190464  }
 0x337   :  { %v1051_v26 = vmul.f32 %v1050_v25, %v1050_v25  ;;  %v1060_v27 = vmul.f32 %v1059_v54, %v1059_v54  ;;  %v912_v62 = vmul.f32 %v911_v57, %v8388_v61  ;;  %v917_v3 = vrot.slane %v911_v57, %v8386_v59  ;;  %v8504_v25 = vld [vmem:[%s12086_s5 + $0x58] sm:$0xff] }
 0x338   :  { %v8511_v54 = vld [vmem:[%s12086_s5 + $0xf8] sm:$0xff] }
 0x339   :  { %v1052_v55 = vsel %vm950_vm4, %v1051_v26, 0.0  ;;  %v1061_v28 = vsel %vm950_vm4, %v1060_v27, 0.0  ;;  %v913_v1 = vsub.f32 %v721_v0, %v912_v62  ;;  %v918_v6 = vmul.f32 %v917_v3, %v8351_v5  ;;  %v8518_v26 = vld [vmem:[%s12086_s5 + $0x50] sm:$0xff] }
 0x33a   :  { %v1053_v29 = vrot.slane %v1052_v55, 4  ;;  %v1062_v30 = vrot.slane %v1061_v28, 4  ;;  %v934_v61 = vmul.f32 %v917_v3, %v8359_v23  ;;  %v8525_v27 = vld [vmem:[%s12086_s5 + $0xf0] sm:$0xff]  ;;  %v8713_v3 = vld [vmem:[%s12086_s5 + $0x80] sm:$0xff] }
 0x33b   :  { %v922_v4 = vrot.slane %v913_v1, %v8386_v59  ;;  %v8704_v62 = vld [vmem:[%s12086_s5 + $0x130] sm:$0xff] }
 0x33c   :  { %v1054_v31 = vadd.f32 %v1053_v29, %v1052_v55  ;;  %v1063_v32 = vadd.f32 %v1062_v30, %v1061_v28  ;;  %v8532_v55 = vld [vmem:[%s12086_s5 + $0x48] sm:$0xff]  ;;  %v8546_v29 = vld [vmem:[%s12086_s5 + $0x40] sm:$0xff] }
 0x33d   :  { %v923_v8 = vadd.f32 %v922_v4, %v918_v6  ;;  %v935_v15 = vadd.f32 %v934_v61, %v922_v4  ;;  %v8539_v28 = vld [vmem:[%s12086_s5 + $0xe8] sm:$0xff]  ;;  %v8553_v30 = vld [vmem:[%s12086_s5 + $0xe0] sm:$0xff] }
 0x33e   :  { %v1055_v33 = vrot.slane %v1054_v31, 2  ;;  %v1064_v34 = vrot.slane %v1063_v32, 2 }
 0x33f   :  { %v924_v13 = vmax.f32 %v923_v8, 0.0  ;;  %v936_v19 = vmax.f32 %v935_v15, 0.0 }
 0x340   :  { %v1056_v35 = vadd.f32 %v1055_v33, %v1054_v31  ;;  %v1065_v36 = vadd.f32 %v1064_v34, %v1063_v32  ;;  %v8560_v31 = vld [vmem:[%s12086_s5 + $0x38] sm:$0xff]  ;;  %v8574_v33 = vld [vmem:[%s12086_s5 + $0x30] sm:$0xff] }
 0x341   :  { %v926_v17 = vrot.slane %v924_v13, 7  ;;  %v938_v51 = vrot.slane %v936_v19, 5  ;;  %v8567_v32 = vld [vmem:[%s12086_s5 + $0xd8] sm:$0xff]  ;;  %v8581_v34 = vld [vmem:[%s12086_s5 + $0xd0] sm:$0xff] }
 0x342   :  { %v1057_v37 = vrot.slane %v1056_v35, 1  ;;  %v1066_v38 = vrot.slane %v1065_v36, 1 }
 0x344   :  { %v1058_v39 = vadd.f32 %v1057_v37, %v1056_v35  ;;  %v1067_v40 = vadd.f32 %v1066_v38, %v1065_v36  ;;  %v8588_v35 = vld [vmem:[%s12086_s5 + $0x28] sm:$0xff]  ;;  %v8602_v37 = vld [vmem:[%s12086_s5 + $0x20] sm:$0xff] }
 0x345   :  { %v8595_v36 = vld [vmem:[%s12086_s5 + $0xc8] sm:$0xff]  ;;  %v8609_v38 = vld [vmem:[%s12086_s5 + $0xc0] sm:$0xff] }
 0x346   :  { %v1068_v41 = vadd.f32 %v1067_v40, %v1058_v39  ;;  %v8616_v39 = vld [vmem:[%s12086_s5 + $0x18] sm:$0xff] }
 0x347   :  { %v8623_v40 = vld [vmem:[%s12086_s5 + $0xb8] sm:$0xff] }
 0x348   :  { %1070 = vrot.lane.b32.xlu0 %v1068_v41, %s7923_s29  ;;  %v8630_v41 = vld [vmem:[%s12086_s5 + $0x10] sm:$0xff] }
 0x3ba   :  { %v1071_v42 = vpop.permute.xlu0 %1070 }
 0x3bb   :  { %7479 = vmatmul.mubr.msk.f32.vlgmr.msra.gmra.mxu1 %vm722_vm5, %v1071_v42  ;;  %v8637_v42 = vld [vmem:[%s12086_s5 + $0xb0] sm:$0xff] }
 0x3bc   :  { %1334 = vmatpush1.msra.mxu1 %v8446_v20 }
 0x3bd   :  { %1335 = vmatprep.subr.mxu1 %v7920_v2 }
 0x3be   :  { %1336 = vmatpush1.msra.mxu1 %v8461_v48 }
 0x3bf   :  { %1337 = vmatprep.subr.mxu1 %v7920_v2 }
 0x3c0   :  { %1338 = vmatpush1.msra.mxu1 %v8476_v50 }
 0x3c1   :  { %1339 = vmatprep.subr.mxu1 %v7920_v2 }
 0x3c2   :  { %1340 = vmatpush1.msra.mxu1 %v8490_v24 }
 0x3c3   :  { %1341 = vmatprep.subr.mxu1 %v7920_v2 }
 0x3c4   :  { %1342 = vmatpush1.msra.mxu1 %v8504_v25 }
 0x3c5   :  { %1343 = vmatprep.subr.mxu1 %v7920_v2 }
 0x3c6   :  { %1344 = vmatpush1.msra.mxu1 %v8518_v26 }
 0x3c7   :  { %1345 = vmatprep.subr.mxu1 %v7920_v2 }
 0x3c8   :  { %1346 = vmatpush1.msra.mxu1 %v8532_v55 }
 0x3c9   :  { %1347 = vmatprep.subr.mxu1 %v7920_v2 }
 0x3ca   :  { %1348 = vmatpush1.msra.mxu1 %v8546_v29 }
 0x3cb   :  { %1349 = vmatprep.subr.mxu1 %v7920_v2 }
 0x3cc   :  { %1350 = vmatpush1.msra.mxu1 %v8560_v31 }
 0x3cd   :  { %1351 = vmatprep.subr.mxu1 %v7920_v2 }
 0x3ce   :  { %1352 = vmatpush1.msra.mxu1 %v8574_v33 }
 0x3cf   :  { %1353 = vmatprep.subr.mxu1 %v7920_v2 }
 0x3d0   :  { %1354 = vmatpush1.msra.mxu1 %v8588_v35 }
 0x3d1   :  { %1355 = vmatprep.subr.mxu1 %v7920_v2 }
 0x3d2   :  { %1356 = vmatpush1.msra.mxu1 %v8602_v37 }
 0x3d3   :  { %1357 = vmatprep.subr.mxu1 %v7920_v2 }
 0x3d4   :  { %1358 = vmatpush1.msra.mxu1 %v8616_v39 }
 0x3d5   :  { %1359 = vmatprep.subr.mxu1 %v7920_v2 }
 0x3d6   :  { %1360 = vmatpush1.msra.mxu1 %v8630_v41 }
 0x3d7   :  { %1361 = vmatprep.subr.mxu1 %v7920_v2 }
 0x3d8   :  { %1362 = vmatpush1.msra.mxu1 %v8644_v43 }
 0x3d9   :  { %1363 = vmatprep.subr.mxu1 %v8656_v45 }
 0x3da   :  { %1364 = vmatpush1.msra.mxu1 %v8653_v44 }
 0x3db   :  { %1389 = vmatprep.subr.mxu1 %v8656_v45 }
 0x3dc   :  { %1390 = vmatpush2.msra.mxu1 %v8670_v46 }
 0x3dd   :  { %1391 = vmatprep.subr.mxu1 %v8656_v45 }
 0x47b   :  { %v1140_v47 = vpop.f32.mrf.mxu1 }
 0x47c   :  { %v1144_v56 = vmul.f32 0.0078125, %v1140_v47  ;;  %v8675_v47 = vld [vmem:[%s12086_s5 + $0xa0] sm:$0xff] }
 0x47d   :  { %v7480_v58 = vpop.f32.mrf.mxu1 }
 0x47e   :  { %v1145_v60 = vadd.f32 1e-05, %v1144_v56  ;;  %v8682_v56 = vld [vmem:[%s12086_s5 + $0x90] sm:$0xff]  ;;  %v8693_v58 = vld [vmem:[%s12086_s5 + $0x138] sm:$0xff] }
 0x47f   :  { %1392 = vmatpush2.msra.mxu1 %v8682_v56 }
 0x480   :  { %7857 = vrsqrt.f32 %v1145_v60  ;;  %1393 = vmatprep.subr.mxu1 %v8656_v45  ;;  %v8699_v60 = vld [vmem:[%s12086_s5 + $0x88] sm:$0xff] }
 0x481   :  { %1394 = vmatpush2.msra.mxu1 %v8699_v60 }
 0x482   :  { %1395 = vmatprep.subr.mxu1 %v8656_v45 }
 0x483   :  { %1396 = vmatpush2.msra.mxu1 %v8713_v3 }
 0x484   :  { %1582 = vmatprep.subr.mxu1 %v8656_v45 }
 0x48d   :  { %v7858_v9 = vpop.eup %7857 }
 0x48e   :  { %v1147_v10 = vmul.f32 %v7858_v9, %v948_v7  ;;  %v8720_v7 = vld [vmem:[%s12086_s5 + $0x128] sm:$0xff] }
 0x490   :  { %v1153_v12 = vrot.slane %v1147_v10, %v8386_v59  ;;  %v1148_v14 = vmul.f32 %v1147_v10, %v1041_v49  ;;  %v8467_v49 = vld [vmem:[%s12086_s5 + $0x110] sm:$0xff] }
 0x491   :  { %1263 = vmatpush1.msra.mxu0 %v8467_v49 }
 0x492   :  { %1155 = vrot.lane.b32.xlu1 %v1153_v12, %s7923_s29  ;;  %v1149_v16 = vsub.f32 %v949_v11, %v1148_v14  ;;  %1264 = vmatprep.subr.mxu0 %v7920_v2  ;;  %v8733_v11 = vld [vmem:[%s12086_s5 + $0x120] sm:$0xff] }
 0x493   :  { %1265 = vmatpush1.msra.mxu0 %v8483_v52 }
 0x494   :  { %v1162_v18 = vrot.slane %v1149_v16, %v8386_v59  ;;  %1266 = vmatprep.subr.mxu0 %v7920_v2 }
 0x495   :  { %1267 = vmatpush1.msra.mxu0 %v8497_v53 }
 0x496   :  { %927 = vrot.lane.b32.xlu1 %v926_v17, %s7924_s1  ;;  %1164 = vrot.lane.b32.xlu0 %v1162_v18, %s7923_s29 }
 0x497   :  { %1268 = vmatprep.subr.mxu0 %v7920_v2 }
 0x498   :  { %1269 = vmatpush1.msra.mxu0 %v8511_v54 }
 0x499   :  { %1270 = vmatprep.subr.mxu0 %v7920_v2 }
 0x49a   :  { %939 = vrot.lane.b32.xlu1 %v938_v51, %s7924_s1  ;;  %1271 = vmatpush1.msra.mxu0 %v8525_v27 }
 0x49b   :  { %1272 = vmatprep.subr.mxu0 %v7920_v2 }
 0x49c   :  { %1273 = vmatpush1.msra.mxu0 %v8539_v28 }
 0x49d   :  { %1274 = vmatprep.subr.mxu0 %v7920_v2 }
 0x49e   :  { %1275 = vmatpush1.msra.mxu0 %v8553_v30 }
 0x49f   :  { %1276 = vmatprep.subr.mxu0 %v7920_v2 }
 0x4a0   :  { %1277 = vmatpush1.msra.mxu0 %v8567_v32 }
 0x4a1   :  { %1278 = vmatprep.subr.mxu0 %v7920_v2 }
 0x4a2   :  { %1279 = vmatpush1.msra.mxu0 %v8581_v34 }
 0x4a3   :  { %1280 = vmatprep.subr.mxu0 %v7920_v2 }
 0x4a4   :  { %1281 = vmatpush1.msra.mxu0 %v8595_v36 }
 0x4a5   :  { %1282 = vmatprep.subr.mxu0 %v7920_v2 }
 0x4a6   :  { %1283 = vmatpush1.msra.mxu0 %v8609_v38 }
 0x4a7   :  { %1284 = vmatprep.subr.mxu0 %v7920_v2 }
 0x4a8   :  { %1285 = vmatpush1.msra.mxu0 %v8623_v40 }
 0x4a9   :  { %1286 = vmatprep.subr.mxu0 %v7920_v2  ;;  %v8665_v2 = vld [vmem:[%s12086_s5 + $0xa8] sm:$0xff] }
 0x4aa   :  { %1287 = vmatpush1.msra.mxu0 %v8637_v42 }
 0x4ab   :  { %1288 = vmatprep.subr.mxu0 %v8656_v45 }
 0x4ac   :  { %1289 = vmatpush1.msra.mxu0 %v8665_v2 }
 0x4ad   :  { %1290 = vmatprep.subr.mxu0 %v8656_v45 }
 0x4ae   :  { %1291 = vmatpush1.msra.mxu0 %v8675_v47 }
 0x4af   :  { %1316 = vmatprep.subr.mxu0 %v8656_v45 }
 0x4b0   :  { %1317 = vmatpush2.msra.mxu0 %v8693_v58 }
 0x4b1   :  { %1318 = vmatprep.subr.mxu0 %v8656_v45 }
 0x4b2   :  { %1319 = vmatpush2.msra.mxu0 %v8704_v62 }
 0x4b3   :  { %1320 = vmatprep.subr.mxu0 %v8656_v45 }
 0x4b4   :  { %1321 = vmatpush2.msra.mxu0 %v8720_v7 }
 0x4b5   :  { %1322 = vmatprep.subr.mxu0 %v8656_v45 }
 0x4b6   :  { %1323 = vmatpush2.msra.mxu0 %v8733_v11 }
 0x4b7   :  { %1442 = vmatprep.subr.mxu0 %v8656_v45 }
 0x504   :  { %v1156_v57 = vpop.permute.xlu1 %1155 }
 0x505   :  { %v1158_v0 = vmul.f32 %v1156_v57, %v8351_v5  ;;  %v1182_v1 = vmul.f32 %v1156_v57, %v8359_v23 }
 0x508   :  { %v928_v4 = vpop.permute.xlu1 %927  ;;  %v1165_v6 = vpop.permute.xlu0 %1164 }
 0x509   :  { %931 = vst.msk [vmem:[#allocation6] sm:$0xfe] %vm930_vm8, %v928_v4  ;;  %v1167_v8 = vadd.f32 %v1165_v6, %v1158_v0  ;;  %v1183_v9 = vadd.f32 %v1182_v1, %v1165_v6 }
 0x50a   :  { %933 = vst.msk [vmem:[#allocation6 + $0x10] sm:$0x1] %vm12107_vm9, %v928_v4 }
 0x50b   :  { %v1168_v10 = vmax.f32 %v1167_v8, 0.0  ;;  %v1184_v13 = vmax.f32 %v1183_v9, 0.0 }
 0x50c   :  { %v940_v61 = vpop.permute.xlu1 %939 }
 0x50d   :  { %v1170_v12 = vrot.slane %v1168_v10, 7  ;;  %943 = vst.msk [vmem:[#allocation6 + $0x10] sm:$0xf8] %vm12109_vm10, %v940_v61  ;;  %v1186_v14 = vrot.slane %v1184_v13, 5  ;;  %v8756_v13 = vld [vmem:[%s12086_s5 + $0x1b8] sm:$0xff] }
 0x50e   :  { %945 = vst.msk [vmem:[#allocation6 + $0x20] sm:$0x7] %vm12108_vm11, %v940_v61 }
 0x50f   :  { %1171 = vrot.lane.b32.xlu0 %v1170_v12, %s7925_s20 }
 0x513   :  { %1187 = vrot.lane.b32.xlu0 %v1186_v14, %s7925_s20 }
 0x581   :  { %v1172_v15 = vpop.permute.xlu0 %1171 }
 0x582   :  { %1175 = vst.msk [vmem:[#allocation6] sm:$0xfe] %vm1174_vm12, %v1172_v15 }
 0x583   :  { %1177 = vst.msk [vmem:[#allocation6 + $0x8] sm:$0xfe] %vm1176_vm13, %v1172_v15 }
 0x584   :  { %1179 = vst.msk [vmem:[#allocation6 + $0x10] sm:$0x1] %vm1178_vm14, %v1172_v15 }
 0x585   :  { %1181 = vst.msk [vmem:[#allocation6 + $0x18] sm:$0x1] %vm12103_vm15, %v1172_v15  ;;  %v1188_v16 = vpop.permute.xlu0 %1187  ;;  %vm12106_vm15 = vcmask 1046528  }
 0x586   :  { %1191 = vst.msk [vmem:[#allocation6 + $0x10] sm:$0xf8] %vm1190_vm0, %v1188_v16 }
 0x587   :  { %1193 = vst.msk [vmem:[#allocation6 + $0x18] sm:$0xf8] %vm1192_vm1, %v1188_v16 }
 0x588   :  { %1195 = vst.msk [vmem:[#allocation6 + $0x20] sm:$0x7] %vm12104_vm2, %v1188_v16  ;;  %vm1432_vm2 = vcmask 1045504  }
 0x589   :  { %1197 = vst.msk [vmem:[#allocation6 + $0x28] sm:$0x7] %vm12105_vm7, %v1188_v16  ;;  %v1199_v18 = vld [vmem:[#allocation6] sm:$0xff]  ;;  %vm1572_vm7 = vcmask 1044480  }
 0x58a   :  { %v1200_v17 = vld [vmem:[#allocation6 + $0x8] sm:$0xff]  ;;  %v1221_v0 = vld [vmem:[#allocation6] sm:$0xfe] }
 0x58b   :  { %v1222_v19 = vld [vmem:[#allocation6 + $0x8] sm:$0xfe]  ;;  %6492 = vmatprep.mubr.msk.f32.mxu1 %vm94_vm6, %v1200_v17  ;;  %v1223_v4 = vld [vmem:[#allocation6 + $0x10] sm:$0x1]  ;;  %v1251_v6 = vrot.slane %v1221_v0, 1  ;;  %v8785_v0 = vld [vmem:[%s12086_s5 + $0x1a0] sm:$0xff] }
 0x58c   :  { %v1224_v51 = vld [vmem:[#allocation6 + $0x18] sm:$0x1]  ;;  %v1254_v57 = vrot.slane %v1222_v19, 1  ;;  %1398 = vmatmul.mubr.f32.vlgmr.msra.gmra.mxu1 %v1199_v18  ;;  %v1404_v8 = vld [vmem:[#allocation6 + $0x8] sm:$0xfc]  ;;  %v1252_v9 = vrot.slane %v1223_v4, 1 }
 0x58d   :  { %v1255_v1 = vrot.slane %v1224_v51, 1  ;;  %1583 = vmatpush1.msra.mxu1 %v8451_v22  ;;  %v1406_v10 = vld [vmem:[#allocation6 + $0x18] sm:$0x3]  ;;  %v1436_v61 = vrot.slane %v1404_v8, 2  ;;  %v8766_v51 = vld [vmem:[%s12086_s5 + $0x1b0] sm:$0xff] }
 0x58e   :  { %1584 = vmatprep.subr.mxu1 %v8656_v45  ;;  %v1437_v14 = vrot.slane %v1406_v10, 2  ;;  %v1545_v15 = vld [vmem:[#allocation6 + $0x18] sm:$0xf8]  ;;  %v1253_v22 = vsel %vm12106_vm15, %v1251_v6, %v1252_v9 }
 0x58f   :  { %v1256_v12 = vsel %vm12106_vm15, %v1254_v57, %v1255_v1  ;;  %1585 = vmatpush1.msra.mxu1 %v8467_v49  ;;  %v1576_v17 = vrot.slane %v1545_v15, 3  ;;  %v8776_v57 = vld [vmem:[%s12086_s5 + $0x1a8] sm:$0xff]  ;;  %v1544_v1 = vld [vmem:[#allocation6 + $0x10] sm:$0xf8]  ;;  %v1736_v6 = vld [vmem:[#allocation6 + $0x18] sm:$0xf0] }
 0x590   :  { %v1547_v16 = vld [vmem:[#allocation6 + $0x28] sm:$0x7]  ;;  %6491 = vmatprep.mubr.msk.f32.mxu0 %vm94_vm6, %v1256_v12  ;;  %1586 = vmatprep.subr.mxu1 %v8656_v45  ;;  %v1438_v19 = vsel %vm1432_vm2, %v1436_v61, %v1437_v14  ;;  %v1546_v4 = vld [vmem:[#allocation6 + $0x20] sm:$0x7]  ;;  %v1573_v9 = vrot.slane %v1544_v1, 3  ;;  %vm1763_vm15 = vcmask 1043456  }
 0x591   :  { %v1577_v18 = vrot.slane %v1547_v16, 3  ;;  %1325 = vmatmul.mubr.f32.vlgmr.msra.gmra.mxu0 %v1253_v22  ;;  %1587 = vmatpush1.msra.mxu1 %v8483_v52  ;;  %v8794_v52 = vld [vmem:[%s12086_s5 + $0x198] sm:$0xff]  ;;  %v1738_v8 = vld [vmem:[#allocation6 + $0x28] sm:$0xf]  ;;  %v1574_v10 = vrot.slane %v1546_v4, 3  ;;  %v8920_v12 = vld [vmem:[%s12086_s5 + $0x1c8] sm:$0xff] }
 0x592   :  { %1443 = vmatpush1.msra.mxu0 %v8756_v13  ;;  %6513 = vmatprep.mubr.msk.f32.mxu0 %vm94_vm6, %v1438_v19  ;;  %v1405_v61 = vld [vmem:[#allocation6 + $0x10] sm:$0x3]  ;;  %v1768_v14 = vrot.slane %v1738_v8, 4  ;;  %v1521_v15 = vld [vmem:[#allocation6 + $0x18] sm:$0xfc] }
 0x593   :  { %1444 = vmatprep.subr.mxu0 %v8656_v45  ;;  %v1578_v49 = vsel %vm1572_vm7, %v1576_v17, %v1577_v18  ;;  %1588 = vmatprep.subr.mxu1 %v8656_v45  ;;  %v1523_v16 = vld [vmem:[#allocation6 + $0x28] sm:$0x3]  ;;  %v1434_v17 = vrot.slane %v1405_v61, 2  ;;  %v1575_v18 = vsel %vm1572_vm7, %v1573_v9, %v1574_v10  ;;  %v1659_v19 = vrot.slane %v1521_v15, 2 }
 0x594   :  { %1445 = vmatpush1.msra.mxu0 %v8766_v51  ;;  %1589 = vmatpush1.msra.mxu1 %v8497_v53  ;;  %v8803_v53 = vld [vmem:[%s12086_s5 + $0x190] sm:$0xff] }
 0x595   :  { %1446 = vmatprep.subr.mxu0 %v8656_v45  ;;  %6535 = vmatprep.mubr.msk.f32.mxu1 %vm94_vm6, %v1578_v49  ;;  %v1660_v49 = vrot.slane %v1523_v16, 2 }
 0x596   :  { %1447 = vmatpush1.msra.mxu0 %v8776_v57  ;;  %1590 = vmatprep.subr.mxu1 %v8656_v45 }
 0x597   :  { %1448 = vmatprep.subr.mxu0 %v8656_v45  ;;  %1591 = vmatpush1.msra.mxu1 %v8511_v54  ;;  %v8812_v54 = vld [vmem:[%s12086_s5 + $0x188] sm:$0xff]  ;;  %v1661_v4 = vsel %vm1432_vm2, %v1659_v19, %v1660_v49 }
 0x598   :  { %1449 = vmatpush1.msra.mxu0 %v8785_v0  ;;  %1592 = vmatprep.subr.mxu1 %v8656_v45 }
 0x599   :  { %1450 = vmatprep.subr.mxu0 %v8656_v45  ;;  %1593 = vmatpush1.msra.mxu1 %v8525_v27  ;;  %v8821_v27 = vld [vmem:[%s12086_s5 + $0x180] sm:$0xff] }
 0x59a   :  { %1451 = vmatpush1.msra.mxu0 %v8794_v52  ;;  %1594 = vmatprep.subr.mxu1 %v8656_v45 }
 0x59b   :  { %1452 = vmatprep.subr.mxu0 %v8656_v45  ;;  %1595 = vmatpush1.msra.mxu1 %v8539_v28  ;;  %v8830_v28 = vld [vmem:[%s12086_s5 + $0x178] sm:$0xff] }
 0x59c   :  { %1453 = vmatpush1.msra.mxu0 %v8803_v53  ;;  %1596 = vmatprep.subr.mxu1 %v8656_v45 }
 0x59d   :  { %1454 = vmatprep.subr.mxu0 %v8656_v45  ;;  %1597 = vmatpush1.msra.mxu1 %v8553_v30  ;;  %v8839_v30 = vld [vmem:[%s12086_s5 + $0x170] sm:$0xff] }
 0x59e   :  { %1455 = vmatpush1.msra.mxu0 %v8812_v54  ;;  %1598 = vmatprep.subr.mxu1 %v8656_v45 }
 0x59f   :  { %1456 = vmatprep.subr.mxu0 %v8656_v45  ;;  %1599 = vmatpush1.msra.mxu1 %v8567_v32  ;;  %v8848_v32 = vld [vmem:[%s12086_s5 + $0x168] sm:$0xff] }
 0x5a0   :  { %1457 = vmatpush1.msra.mxu0 %v8821_v27  ;;  %1600 = vmatprep.subr.mxu1 %v8656_v45 }
 0x5a1   :  { %1458 = vmatprep.subr.mxu0 %v8656_v45  ;;  %1601 = vmatpush1.msra.mxu1 %v8581_v34  ;;  %v8857_v34 = vld [vmem:[%s12086_s5 + $0x160] sm:$0xff] }
 0x5a2   :  { %1459 = vmatpush1.msra.mxu0 %v8830_v28  ;;  %1602 = vmatprep.subr.mxu1 %v8656_v45 }
 0x5a3   :  { %1460 = vmatprep.subr.mxu0 %v8656_v45  ;;  %1603 = vmatpush1.msra.mxu1 %v8595_v36  ;;  %v8866_v36 = vld [vmem:[%s12086_s5 + $0x158] sm:$0xff] }
 0x5a4   :  { %1461 = vmatpush1.msra.mxu0 %v8839_v30  ;;  %1604 = vmatprep.subr.mxu1 %v8656_v45 }
 0x5a5   :  { %1462 = vmatprep.subr.mxu0 %v8656_v45  ;;  %1605 = vmatpush1.msra.mxu1 %v8609_v38  ;;  %v8875_v38 = vld [vmem:[%s12086_s5 + $0x150] sm:$0xff] }
 0x5a6   :  { %1463 = vmatpush1.msra.mxu0 %v8848_v32  ;;  %1606 = vmatprep.subr.mxu1 %v8656_v45 }
 0x5a7   :  { %1464 = vmatprep.subr.mxu0 %v8656_v45  ;;  %1607 = vmatpush1.msra.mxu1 %v8623_v40  ;;  %v8884_v40 = vld [vmem:[%s12086_s5 + $0x148] sm:$0xff] }
 0x5a8   :  { %1465 = vmatpush1.msra.mxu0 %v8857_v34  ;;  %1608 = vmatprep.subr.mxu1 %v8656_v45 }
 0x5a9   :  { %1466 = vmatprep.subr.mxu0 %v8656_v45  ;;  %1609 = vmatpush1.msra.mxu1 %v8637_v42  ;;  %v8893_v42 = vld [vmem:[%s12086_s5 + $0x140] sm:$0xff] }
 0x5aa   :  { %1467 = vmatpush1.msra.mxu0 %v8866_v36  ;;  %1610 = vmatprep.subr.mxu1 %v8656_v45 }
 0x5ab   :  { %1468 = vmatprep.subr.mxu0 %v8656_v45  ;;  %1611 = vmatpush1.msra.mxu1 %v8665_v2  ;;  %v8902_v2 = vld [vmem:[%s12086_s5 + $0x1d8] sm:$0xff] }
 0x5ac   :  { %1469 = vmatpush1.msra.mxu0 %v8875_v38  ;;  %1612 = vmatprep.subr.mxu1 %v8656_v45 }
 0x5ad   :  { %1470 = vmatprep.subr.mxu0 %v8656_v45  ;;  %1613 = vmatpush1.msra.mxu1 %v8675_v47  ;;  %v8911_v47 = vld [vmem:[%s12086_s5 + $0x1d0] sm:$0xff] }
 0x5ae   :  { %1471 = vmatpush1.msra.mxu0 %v8884_v40  ;;  %1638 = vmatprep.subr.mxu1 %v8656_v45 }
 0x5af   :  { %1472 = vmatprep.subr.mxu0 %v8656_v45  ;;  %1639 = vmatpush2.msra.mxu1 %v8693_v58  ;;  %v1403_v58 = vld [vmem:[#allocation6] sm:$0xfc] }
 0x5b0   :  { %1473 = vmatpush1.msra.mxu0 %v8893_v42  ;;  %1640 = vmatprep.subr.mxu1 %v8656_v45  ;;  %v1433_v22 = vrot.slane %v1403_v58, 2 }
 0x5b1   :  { %1498 = vmatprep.subr.mxu0 %v8656_v45  ;;  %1641 = vmatpush2.msra.mxu1 %v8704_v62  ;;  %v1767_v62 = vrot.slane %v1736_v6, 4 }
 0x5b2   :  { %1499 = vmatpush2.msra.mxu0 %v8902_v2  ;;  %1642 = vmatprep.subr.mxu1 %v8656_v45  ;;  %v1435_v1 = vsel %vm1432_vm2, %v1433_v22, %v1434_v17 }
 0x5b3   :  { %1500 = vmatprep.subr.mxu0 %v8656_v45  ;;  %1643 = vmatpush2.msra.mxu1 %v8720_v7  ;;  %v8932_v7 = vld [vmem:[%s12086_s5 + $0x1c0] sm:$0xff] }
 0x5b4   :  { %1501 = vmatpush2.msra.mxu0 %v8911_v47  ;;  %1644 = vmatprep.subr.mxu1 %v8656_v45 }
 0x5b5   :  { %1502 = vmatprep.subr.mxu0 %v8656_v45  ;;  %1645 = vmatpush2.msra.mxu1 %v8733_v11  ;;  %v1769_v11 = vsel %vm1763_vm15, %v1767_v62, %v1768_v14 }
 0x5b6   :  { %1503 = vmatpush2.msra.mxu0 %v8920_v12  ;;  %1647 = vmatmul.mubr.f32.vlgmr.msra.gmra.mxu1 %v1575_v18 }
 0x5b7   :  { %1773 = vmatprep.subr.mxu1 %v8656_v45  ;;  %1504 = vmatprep.subr.mxu0 %v8656_v45 }
 0x5b8   :  { %1774 = vmatpush1.msra.mxu1 %v8756_v13  ;;  %6557 = vmatprep.mubr.msk.f32.mxu1 %vm94_vm6, %v1769_v11 }
 0x5b9   :  { %1505 = vmatpush2.msra.mxu0 %v8932_v7  ;;  %1775 = vmatprep.subr.mxu1 %v8656_v45 }
 0x5ba   :  { %1507 = vmatmul.mubr.f32.vlgmr.msra.gmra.mxu0 %v1435_v1  ;;  %1665 = vmatprep.subr.mxu0 %v8656_v45 }
 0x5bb   :  { %1776 = vmatpush1.msra.mxu1 %v8766_v51  ;;  %1666 = vmatpush1.msra.mxu0 %v8446_v20  ;;  %v1735_v20 = vld [vmem:[#allocation6 + $0x10] sm:$0xf0] }
 0x5bc   :  { %6536 = vmatprep.mubr.msk.f32.mxu0 %vm94_vm6, %v1661_v4  ;;  %1777 = vmatprep.subr.mxu1 %v8656_v45 }
 0x5bd   :  { %1667 = vmatprep.subr.mxu0 %v8656_v45  ;;  %1778 = vmatpush1.msra.mxu1 %v8776_v57 }
 0x5be   :  { %1668 = vmatpush1.msra.mxu0 %v8461_v48  ;;  %1779 = vmatprep.subr.mxu1 %v8656_v45  ;;  %v1737_v48 = vld [vmem:[#allocation6 + $0x20] sm:$0xf] }
 0x5bf   :  { %1669 = vmatprep.subr.mxu0 %v8656_v45  ;;  %1780 = vmatpush1.msra.mxu1 %v8785_v0 }
 0x5c0   :  { %1670 = vmatpush1.msra.mxu0 %v8476_v50  ;;  %1781 = vmatprep.subr.mxu1 %v8656_v45  ;;  %v1520_v50 = vld [vmem:[#allocation6 + $0x10] sm:$0xfc] }
 0x5c1   :  { %1671 = vmatprep.subr.mxu0 %v8656_v45  ;;  %1782 = vmatpush1.msra.mxu1 %v8794_v52 }
 0x5c2   :  { %1672 = vmatpush1.msra.mxu0 %v8490_v24  ;;  %1783 = vmatprep.subr.mxu1 %v8656_v45  ;;  %v1522_v24 = vld [vmem:[#allocation6 + $0x20] sm:$0x3] }
 0x5c3   :  { %1673 = vmatprep.subr.mxu0 %v8656_v45  ;;  %1784 = vmatpush1.msra.mxu1 %v8803_v53 }
 0x5c4   :  { %1674 = vmatpush1.msra.mxu0 %v8504_v25  ;;  %1785 = vmatprep.subr.mxu1 %v8656_v45  ;;  %v1764_v25 = vrot.slane %v1735_v20, 4 }
 0x5c5   :  { %1675 = vmatprep.subr.mxu0 %v8656_v45  ;;  %1786 = vmatpush1.msra.mxu1 %v8812_v54 }
 0x5c6   :  { %1676 = vmatpush1.msra.mxu0 %v8518_v26  ;;  %1787 = vmatprep.subr.mxu1 %v8656_v45  ;;  %v1765_v26 = vrot.slane %v1737_v48, 4 }
 0x5c7   :  { %1677 = vmatprep.subr.mxu0 %v8656_v45  ;;  %1788 = vmatpush1.msra.mxu1 %v8821_v27 }
 0x5c8   :  { %1678 = vmatpush1.msra.mxu0 %v8532_v55  ;;  %1789 = vmatprep.subr.mxu1 %v8656_v45  ;;  %v1656_v55 = vrot.slane %v1520_v50, 2 }
 0x5c9   :  { %1679 = vmatprep.subr.mxu0 %v8656_v45  ;;  %1790 = vmatpush1.msra.mxu1 %v8830_v28  ;;  %v6514_v28 = vld [vmem:[%s12087_s6] ss:$0 sm:$0xff] }
 0x5ca   :  { %1680 = vmatpush1.msra.mxu0 %v8546_v29  ;;  %1791 = vmatprep.subr.mxu1 %v8656_v45  ;;  %v1657_v29 = vrot.slane %v1522_v24, 2 }
 0x5cb   :  { %1681 = vmatprep.subr.mxu0 %v8656_v45  ;;  %1792 = vmatpush1.msra.mxu1 %v8839_v30 }
 0x5cc   :  { %1682 = vmatpush1.msra.mxu0 %v8560_v31  ;;  %1793 = vmatprep.subr.mxu1 %v8656_v45  ;;  %v1766_v31 = vsel %vm1763_vm15, %v1764_v25, %v1765_v26 }
 0x5cd   :  { %1683 = vmatprep.subr.mxu0 %v8656_v45  ;;  %1794 = vmatpush1.msra.mxu1 %v8848_v32 }
 0x5ce   :  { %1684 = vmatpush1.msra.mxu0 %v8574_v33  ;;  %1795 = vmatprep.subr.mxu1 %v8656_v45  ;;  %v1658_v33 = vsel %vm1432_vm2, %v1656_v55, %v1657_v29 }
 0x5cf   :  { %1685 = vmatprep.subr.mxu0 %v8656_v45  ;;  %1796 = vmatpush1.msra.mxu1 %v8857_v34 }
 0x5d0   :  { %1686 = vmatpush1.msra.mxu0 %v8588_v35  ;;  %1797 = vmatprep.subr.mxu1 %v8656_v45  ;;  %v9028_v35 = vld [vmem:[%s12119_s26 + $0x38] sm:$0xff] }
 0x5d1   :  { %1687 = vmatprep.subr.mxu0 %v8656_v45  ;;  %1798 = vmatpush1.msra.mxu1 %v8866_v36 }
 0x5d2   :  { %1688 = vmatpush1.msra.mxu0 %v8602_v37  ;;  %1799 = vmatprep.subr.mxu1 %v8656_v45  ;;  %v9038_v37 = vld [vmem:[%s12119_s26 + $0x30] sm:$0xff] }
 0x5d3   :  { %1689 = vmatprep.subr.mxu0 %v8656_v45  ;;  %1800 = vmatpush1.msra.mxu1 %v8875_v38 }
 0x5d4   :  { %1690 = vmatpush1.msra.mxu0 %v8616_v39  ;;  %1801 = vmatprep.subr.mxu1 %v8656_v45  ;;  %v9047_v39 = vld [vmem:[%s12119_s26 + $0x28] sm:$0xff] }
 0x5d5   :  { %1691 = vmatprep.subr.mxu0 %v8656_v45  ;;  %1802 = vmatpush1.msra.mxu1 %v8884_v40 }
 0x5d6   :  { %1692 = vmatpush1.msra.mxu0 %v8630_v41  ;;  %1803 = vmatprep.subr.mxu1 %v8656_v45  ;;  %v9056_v41 = vld [vmem:[%s12119_s26 + $0x20] sm:$0xff] }
 0x5d7   :  { %1693 = vmatprep.subr.mxu0 %v8656_v45  ;;  %1804 = vmatpush1.msra.mxu1 %v8893_v42 }
 0x5d8   :  { %1694 = vmatpush1.msra.mxu0 %v8644_v43  ;;  %1829 = vmatprep.subr.mxu1 %v8656_v45  ;;  %v9065_v43 = vld [vmem:[%s12119_s26 + $0x18] sm:$0xff] }
 0x5d9   :  { %1695 = vmatprep.subr.mxu0 %v8656_v45  ;;  %1830 = vmatpush2.msra.mxu1 %v8902_v2 }
 0x5da   :  { %1696 = vmatpush1.msra.mxu0 %v8653_v44  ;;  %1831 = vmatprep.subr.mxu1 %v8656_v45  ;;  %v9074_v44 = vld [vmem:[%s12119_s26 + $0x10] sm:$0xff] }
 0x5db   :  { %1721 = vmatprep.subr.mxu0 %v8656_v45  ;;  %1832 = vmatpush2.msra.mxu1 %v8911_v47 }
 0x5dc   :  { %1722 = vmatpush2.msra.mxu0 %v8670_v46  ;;  %1833 = vmatprep.subr.mxu1 %v8656_v45  ;;  %v9083_v46 = vld [vmem:[%s12119_s26 + $0x8] sm:$0xff] }
 0x5dd   :  { %1723 = vmatprep.subr.mxu0 %v8656_v45  ;;  %1834 = vmatpush2.msra.mxu1 %v8920_v12 }
 0x5de   :  { %1724 = vmatpush2.msra.mxu0 %v8682_v56  ;;  %1835 = vmatprep.subr.mxu1 %v8656_v45  ;;  %v9092_v56 = vld [vmem:[%s12119_s26] sm:$0xff] }
 0x5df   :  { %1725 = vmatprep.subr.mxu0 %v8656_v45  ;;  %1836 = vmatpush2.msra.mxu1 %v8932_v7 }
 0x5e0   :  { %1726 = vmatpush2.msra.mxu0 %v8699_v60  ;;  %1838 = vmatmul.mubr.f32.vlgmr.msra.gmra.mxu1 %v1766_v31 }
 0x5e1   :  { %1727 = vmatprep.subr.mxu0 %v8656_v45  ;;  %7500 = vmatprep.subr.mxu1 %v8656_v45 }
 0x5e2   :  { %1728 = vmatpush2.msra.mxu0 %v8713_v3  ;;  %7501 = vmatpush3.msra.mxu1 %v9028_v35 }
 0x5e3   :  { %1730 = vmatmul.mubr.f32.vlgmr.msra.gmra.mxu0 %v1658_v33  ;;  %7481 = vmatprep.subr.mxu0 %v8656_v45 }
 0x5e4   :  { %7482 = vmatpush3.msra.mxu0 %v9028_v35  ;;  %7497 = vmatprep.mubr.msk.f32.mxu0 %vm7922_vm3, %v8656_v45 }
 0x5e5   :  { %7483 = vmatprep.subr.mxu0 %v8656_v45  ;;  %7502 = vmatprep.subr.mxu1 %v8656_v45 }
 0x5e6   :  { %7484 = vmatpush3.msra.mxu0 %v9038_v37  ;;  %7503 = vmatpush3.msra.mxu1 %v9038_v37 }
 0x5e7   :  { %7485 = vmatprep.subr.mxu0 %v8656_v45  ;;  %7504 = vmatprep.subr.mxu1 %v8656_v45 }
 0x5e8   :  { %7486 = vmatpush3.msra.mxu0 %v9047_v39  ;;  %7505 = vmatpush3.msra.mxu1 %v9047_v39 }
 0x5e9   :  { %7487 = vmatprep.subr.mxu0 %v8656_v45  ;;  %7506 = vmatprep.subr.mxu1 %v8656_v45 }
 0x5ea   :  { %7488 = vmatpush3.msra.mxu0 %v9056_v41  ;;  %7507 = vmatpush3.msra.mxu1 %v9056_v41 }
 0x5eb   :  { %7489 = vmatprep.subr.mxu0 %v8656_v45  ;;  %7508 = vmatprep.subr.mxu1 %v8656_v45 }
 0x5ec   :  { %7490 = vmatpush3.msra.mxu0 %v9065_v43  ;;  %7509 = vmatpush3.msra.mxu1 %v9065_v43 }
 0x5ed   :  { %7491 = vmatprep.subr.mxu0 %v8656_v45  ;;  %7510 = vmatprep.subr.mxu1 %v8656_v45 }
 0x5ee   :  { %7492 = vmatpush3.msra.mxu0 %v9074_v44  ;;  %7511 = vmatpush3.msra.mxu1 %v9074_v44 }
 0x5ef   :  { %7493 = vmatprep.subr.mxu0 %v8656_v45  ;;  %7512 = vmatprep.subr.mxu1 %v8656_v45 }
 0x5f0   :  { %7494 = vmatpush3.msra.mxu0 %v9083_v46  ;;  %7513 = vmatpush3.msra.mxu1 %v9083_v46 }
 0x5f1   :  { %7495 = vmatprep.subr.mxu0 %v8656_v45  ;;  %7514 = vmatprep.subr.mxu1 %v8656_v45 }
 0x5f2   :  { %7496 = vmatpush3.msra.mxu0 %v9092_v56  ;;  %7515 = vmatpush3.msra.mxu1 %v9092_v56 }
 0x5f3   :  { %7519 = vmatprep.subr.mxu0 %v8656_v45  ;;  %7516 = vmatprep.mubr.msk.f32.mxu1 %vm7922_vm3, %v8656_v45 }
 0x5f4   :  { %7538 = vmatprep.subr.mxu1 %v8656_v45 }
 0x64c   :  { %v1399_v60 = vpop.f32.mrf.mxu1 }
 0x64e   :  { %v1401_v3 = vpop.f32.mrf.mxu1 }
 0x651   :  { %v1326_v13 = vpop.f32.mrf.mxu0 }
 0x652   :  { %v1400_v51 = vadd.f32 %v1399_v60, %v1326_v13 }
 0x653   :  { %v1328_v57 = vpop.f32.mrf.mxu0 }
 0x676   :  { %v1648_v0 = vpop.f32.mrf.mxu1 }
 0x678   :  { %v1650_v52 = vpop.f32.mrf.mxu1 }
 0x67a   :  { %v1508_v53 = vpop.f32.mrf.mxu0 }
 0x67b   :  { %v1512_v27 = vadd.f32 %v1508_v53, %v1400_v51 }
 0x67c   :  { %v1510_v54 = vpop.f32.mrf.mxu0 }
 0x67d   :  { %v9104_v30 = vadd.f32 %v6514_v28, %v1512_v27 }
 0x67f   :  { %v2077_v32 = vsel %vm950_vm4, %v9104_v30, 0.0  ;;  %v1854_v34 = vsel %vm722_vm5, %v9104_v30, 0.0 }
 0x680   :  { %v2078_v38 = vrot.slane %v2077_v32, 4  ;;  %v1855_v40 = vrot.slane %v1854_v34, 4 }
 0x682   :  { %v2079_v8 = vadd.f32 %v2078_v38, %v2077_v32  ;;  %v1856_v9 = vadd.f32 %v1855_v40, %v1854_v34 }
 0x684   :  { %v2080_v61 = vrot.slane %v2079_v8, 2  ;;  %v1857_v12 = vrot.slane %v1856_v9, 2 }
 0x686   :  { %v2081_v22 = vadd.f32 %v2080_v61, %v2079_v8  ;;  %v1858_v18 = vadd.f32 %v1857_v12, %v1856_v9 }
 0x688   :  { %v2082_v11 = vrot.slane %v2081_v22, 1  ;;  %v1859_v4 = vrot.slane %v1858_v18, 1 }
 0x68a   :  { %v2083_v24 = vadd.f32 %v2082_v11, %v2081_v22  ;;  %v1860_v26 = vadd.f32 %v1859_v4, %v1858_v18 }
 0x6a0   :  { %v1839_v36 = vpop.f32.mrf.mxu1 }
 0x6a2   :  { %v1841_v42 = vpop.f32.mrf.mxu1 }
 0x6a3   :  { %v1731_v2 = vpop.f32.mrf.mxu0 }
 0x6a4   :  { %v1732_v47 = vadd.f32 %v1731_v2, %v1648_v0 }
 0x6a5   :  { %v1733_v6 = vpop.f32.mrf.mxu0 }
 0x6a6   :  { %v1843_v10 = vadd.f32 %v1839_v36, %v1732_v47 }
 0x6a8   :  { %v9110_v58 = vadd.f32 %v6514_v28, %v1843_v10 }
 0x6aa   :  { %v2084_v62 = vsel %vm950_vm4, %v9110_v58, 0.0  ;;  %v1861_v14 = vsel %vm722_vm5, %v9110_v58, 0.0 }
 0x6ab   :  { %v2085_v15 = vrot.slane %v2084_v62, 4  ;;  %v1862_v16 = vrot.slane %v1861_v14, 4 }
 0x6ad   :  { %v2086_v17 = vadd.f32 %v2085_v15, %v2084_v62  ;;  %v1863_v7 = vadd.f32 %v1862_v16, %v1861_v14 }
 0x6af   :  { %v2087_v19 = vrot.slane %v2086_v17, 2  ;;  %v1864_v49 = vrot.slane %v1863_v7, 2 }
 0x6b1   :  { %v2088_v1 = vadd.f32 %v2087_v19, %v2086_v17  ;;  %v1865_v20 = vadd.f32 %v1864_v49, %v1863_v7 }
 0x6b3   :  { %v2089_v48 = vrot.slane %v2088_v1, 1  ;;  %v1866_v50 = vrot.slane %v1865_v20, 1 }
 0x6b5   :  { %v2090_v25 = vadd.f32 %v2089_v48, %v2088_v1  ;;  %v1867_v55 = vadd.f32 %v1866_v50, %v1865_v20 }
 0x6b7   :  { %v2091_v29 = vadd.f32 %v2090_v25, %v2083_v24  ;;  %v1868_v31 = vadd.f32 %v1867_v55, %v1860_v26  ;;  %v1852_v55 = vld [vmem:[%s12088_s7] sm:$0x1] }
 0x6b9   :  { %2093 = vrot.lane.b32.xlu1 %v2091_v29, %s7923_s29  ;;  %7498 = vmatmul.mubr.msk.f32.vlgmr.msra.gmra.mxu0 %vm722_vm5, %v1868_v31 }
 0x6ba   :  { %7520 = vmatpush3.msra.mxu0 %v9028_v35  ;;  %7535 = vmatprep.mubr.msk.f32.mxu0 %vm7922_vm3, %v8656_v45 }
 0x6bb   :  { %7521 = vmatprep.subr.mxu0 %v8656_v45 }
 0x6bc   :  { %7522 = vmatpush3.msra.mxu0 %v9038_v37 }
 0x6bd   :  { %7523 = vmatprep.subr.mxu0 %v8656_v45 }
 0x6be   :  { %7524 = vmatpush3.msra.mxu0 %v9047_v39 }
 0x6bf   :  { %7525 = vmatprep.subr.mxu0 %v8656_v45 }
 0x6c0   :  { %7526 = vmatpush3.msra.mxu0 %v9056_v41 }
 0x6c1   :  { %7527 = vmatprep.subr.mxu0 %v8656_v45 }
 0x6c2   :  { %7528 = vmatpush3.msra.mxu0 %v9065_v43 }
 0x6c3   :  { %7529 = vmatprep.subr.mxu0 %v8656_v45 }
 0x6c4   :  { %7530 = vmatpush3.msra.mxu0 %v9074_v44 }
 0x6c5   :  { %7531 = vmatprep.subr.mxu0 %v8656_v45 }
 0x6c6   :  { %7532 = vmatpush3.msra.mxu0 %v9083_v46 }
 0x6c7   :  { %7533 = vmatprep.subr.mxu0 %v8656_v45 }
 0x6c8   :  { %7534 = vmatpush3.msra.mxu0 %v9092_v56 }
 0x6c9   :  { %2377 = vmatprep.subr.mxu0 %v8656_v45 }
 0x72b   :  { %v2094_v33 = vpop.permute.xlu1 %2093 }
 0x72c   :  { %7536 = vmatmul.mubr.msk.f32.vlgmr.msra.gmra.mxu0 %vm722_vm5, %v2094_v33 }
 0x779   :  { %v1938_v60 = vpop.f32.mrf.mxu0 }
 0x77a   :  { %v9137_v3 = vmul.f32 0.0078125, %v1938_v60 }
 0x77b   :  { %v7499_v13 = vpop.f32.mrf.mxu0 }
 0x77c   :  { %v1946_v51 = vrot.slane %v9137_v3, %v8386_v59 }
 0x77e   :  { %v1947_v57 = vsub.f32 %v9104_v30, %v1946_v51  ;;  %v1956_v0 = vsub.f32 %v9110_v58, %v1946_v51 }
 0x780   :  { %v1948_v52 = vmul.f32 %v1947_v57, %v1947_v57  ;;  %v1957_v53 = vmul.f32 %v1956_v0, %v1956_v0  ;;  %v3198_v57 = vsel %vm950_vm4, %v8357_v21, 0.0  ;;  %v1853_v0 = vld [vmem:[%s12089_s8] sm:$0x1] }
 0x782   :  { %v1949_v54 = vsel %vm722_vm5, %v1948_v52, 0.0  ;;  %v1958_v27 = vsel %vm722_vm5, %v1957_v53, 0.0  ;;  %v3191_v52 = vsel %vm950_vm4, %v8349_v63, 0.0  ;;  %v3199_v53 = vrot.slane %v3198_v57, 4 }
 0x783   :  { %v1950_v28 = vrot.slane %v1949_v54, 4  ;;  %v1959_v32 = vrot.slane %v1958_v27, 4 }
 0x785   :  { %v1951_v34 = vadd.f32 %v1950_v28, %v1949_v54  ;;  %v1960_v36 = vadd.f32 %v1959_v32, %v1958_v27  ;;  %v3192_v28 = vrot.slane %v3191_v52, 4  ;;  %v3200_v32 = vadd.f32 %v3199_v53, %v3198_v57  ;;  %v9352_v57 = vld [vmem:[%s12090_s9 + $0x20] sm:$0xff] }
 0x786   :  { %v9371_v53 = vld [vmem:[%s12090_s9 + $0xc0] sm:$0xff] }
 0x787   :  { %v1952_v38 = vrot.slane %v1951_v34, 2  ;;  %v1961_v40 = vrot.slane %v1960_v36, 2 }
 0x789   :  { %v1953_v42 = vadd.f32 %v1952_v38, %v1951_v34  ;;  %v1962_v2 = vadd.f32 %v1961_v40, %v1960_v36  ;;  %v3193_v36 = vadd.f32 %v3192_v28, %v3191_v52  ;;  %v2075_v38 = vld [vmem:[%s12088_s7 + $0x1] sm:$0x1]  ;;  %v3201_v40 = vrot.slane %v3200_v32, 2  ;;  %v9366_v52 = vld [vmem:[%s12090_s9 + $0x18] sm:$0xff]  ;;  %v9394_v28 = vld [vmem:[%s12090_s9 + $0x8] sm:$0xff] }
 0x78b   :  { %v1954_v47 = vrot.slane %v1953_v42, 1  ;;  %v1963_v6 = vrot.slane %v1962_v2, 1 }
 0x78d   :  { %v1955_v8 = vadd.f32 %v1954_v47, %v1953_v42  ;;  %v1964_v9 = vadd.f32 %v1963_v6, %v1962_v2 }
 0x78f   :  { %v1965_v10 = vadd.f32 %v1964_v9, %v1955_v8  ;;  %v3194_v8 = vrot.slane %v3193_v36, 2  ;;  %v2076_v9 = vld [vmem:[%s12089_s8 + $0x1] sm:$0x1] }
 0x791   :  { %7517 = vmatmul.mubr.msk.f32.vlgmr.msra.gmra.mxu1 %vm722_vm5, %v1965_v10  ;;  %v3202_v10 = vadd.f32 %v3201_v40, %v3200_v32  ;;  %v9399_v32 = vld [vmem:[%s12090_s9 + $0xb0] sm:$0xff] }
 0x792   :  { %7539 = vmatpush3.msra.mxu1 %v9028_v35  ;;  %7554 = vmatprep.mubr.msk.f32.mxu1 %vm7922_vm3, %v8656_v45  ;;  %v9436_v40 = vld [vmem:[%s12090_s9 + $0x90] sm:$0xff] }
 0x793   :  { %7540 = vmatprep.subr.mxu1 %v8656_v45 }
 0x794   :  { %7541 = vmatpush3.msra.mxu1 %v9038_v37 }
 0x795   :  { %7542 = vmatprep.subr.mxu1 %v8656_v45 }
 0x796   :  { %7543 = vmatpush3.msra.mxu1 %v9047_v39 }
 0x797   :  { %7544 = vmatprep.subr.mxu1 %v8656_v45 }
 0x798   :  { %7545 = vmatpush3.msra.mxu1 %v9056_v41 }
 0x799   :  { %7546 = vmatprep.subr.mxu1 %v8656_v45 }
 0x79a   :  { %7547 = vmatpush3.msra.mxu1 %v9065_v43 }
 0x79b   :  { %7548 = vmatprep.subr.mxu1 %v8656_v45 }
 0x79c   :  { %7549 = vmatpush3.msra.mxu1 %v9074_v44 }
 0x79d   :  { %7550 = vmatprep.subr.mxu1 %v8656_v45 }
 0x79e   :  { %7551 = vmatpush3.msra.mxu1 %v9083_v46 }
 0x79f   :  { %7552 = vmatprep.subr.mxu1 %v8656_v45 }
 0x7a0   :  { %7553 = vmatpush3.msra.mxu1 %v9092_v56 }
 0x7a1   :  { %2450 = vmatprep.subr.mxu1 %v8656_v45 }
 0x7ec   :  { %v2163_v35 = vpop.f32.mrf.mxu0 }
 0x7ed   :  { %v9164_v37 = vmul.f32 0.0078125, %v2163_v35 }
 0x7ee   :  { %v7537_v39 = vpop.f32.mrf.mxu0 }
 0x7ef   :  { %v2171_v41 = vrot.slane %v9164_v37, %v8386_v59 }
 0x7f1   :  { %2173 = vrot.lane.b32.xlu0 %v2171_v41, %s7923_s29 }
 0x851   :  { %v2035_v43 = vpop.f32.mrf.mxu1 }
 0x852   :  { %v2039_v24 = vmul.f32 0.0078125, %v2035_v43 }
 0x853   :  { %v7518_v44 = vpop.f32.mrf.mxu1 }
 0x854   :  { %v2040_v25 = vadd.f32 1e-05, %v2039_v24  ;;  %v9282_v24 = vld [vmem:[%s12090_s9 + $0x48] sm:$0xff] }
 0x856   :  { %7859 = vrsqrt.f32 %v2040_v25  ;;  %v9287_v25 = vld [vmem:[%s12090_s9 + $0xf0] sm:$0xff] }
 0x863   :  { %v2174_v61 = vpop.permute.xlu0 %2173  ;;  %v7860_v26 = vpop.eup %7859 }
 0x864   :  { %v2176_v46 = vsub.f32 %v9104_v30, %v2174_v61  ;;  %v2185_v12 = vsub.f32 %v9110_v58, %v2174_v61  ;;  %v2042_v33 = vmul.f32 %v7860_v26, %v1852_v55  ;;  %v3195_v61 = vadd.f32 %v3194_v8, %v3193_v36  ;;  %v9296_v26 = vld [vmem:[%s12090_s9 + $0x40] sm:$0xff]  ;;  %v9301_v55 = vld [vmem:[%s12090_s9 + $0xe8] sm:$0xff]  ;;  %v9424_v36 = vld [vmem:[%s12090_s9 + $0x98] sm:$0xff] }
 0x866   :  { %v2177_v62 = vmul.f32 %v2176_v46, %v2176_v46  ;;  %v2186_v56 = vmul.f32 %v2185_v12, %v2185_v12  ;;  %v2043_v51 = vmul.f32 %v2042_v33, %v9137_v3  ;;  %v2048_v27 = vrot.slane %v2042_v33, %v8386_v59  ;;  %v9324_v33 = vld [vmem:[%s12090_s9 + $0x30] sm:$0xff] }
 0x868   :  { %v2178_v45 = vsel %vm950_vm4, %v2177_v62, 0.0  ;;  %v2187_v14 = vsel %vm950_vm4, %v2186_v56, 0.0  ;;  %v2044_v54 = vsub.f32 %v1853_v0, %v2043_v51  ;;  %v2049_v3 = vmul.f32 %v2048_v27, %v9104_v30  ;;  %v9343_v51 = vld [vmem:[%s12090_s9 + $0xd0] sm:$0xff]  ;;  %v9357_v0 = vld [vmem:[%s12090_s9 + $0xc8] sm:$0xff] }
 0x869   :  { %v2179_v15 = vrot.slane %v2178_v45, 4  ;;  %v2188_v16 = vrot.slane %v2187_v14, 4  ;;  %v2063_v6 = vmul.f32 %v2048_v27, %v9110_v58  ;;  %v3203_v56 = vrot.slane %v3202_v10, 1  ;;  %v9385_v27 = vld [vmem:[%s12090_s9 + $0xb8] sm:$0xff] }
 0x86a   :  { %v2053_v34 = vrot.slane %v2044_v54, %v8386_v59  ;;  %v9380_v54 = vld [vmem:[%s12090_s9 + $0x10] sm:$0xff] }
 0x86b   :  { %v2180_v22 = vadd.f32 %v2179_v15, %v2178_v45  ;;  %v2189_v17 = vadd.f32 %v2188_v16, %v2187_v14  ;;  %v9203_v45 = vld [vmem:[%s12090_s9 + $0x78] sm:$0xff]  ;;  %v9220_v15 = vld [vmem:[%s12090_s9 + $0x110] sm:$0xff]  ;;  %v3196_v16 = vrot.slane %v3195_v61, 1 }
 0x86c   :  { %v2054_v42 = vadd.f32 %v2053_v34, %v2049_v3  ;;  %v2064_v43 = vadd.f32 %v2063_v6, %v2053_v34  ;;  %v9208_v14 = vld [vmem:[%s12090_s9 + $0x118] sm:$0xff]  ;;  %v9408_v34 = vld [vmem:[%s12090_s9] sm:$0xff]  ;;  %v9419_v3 = vld [vmem:[%s12090_s9 + $0xa8] sm:$0xff] }
 0x86d   :  { %v2181_v18 = vrot.slane %v2180_v22, 2  ;;  %v2190_v7 = vrot.slane %v2189_v17, 2  ;;  %2378 = vmatpush1.msra.mxu0 %v9208_v14  ;;  %v9457_v6 = vld [vmem:[%s12090_s9 + $0x130] sm:$0xff] }
 0x86e   :  { %v2055_v39 = vmax.f32 %v2054_v42, 0.0  ;;  %v2065_v62 = vmax.f32 %v2064_v43, 0.0 }
 0x86f   :  { %v2182_v19 = vadd.f32 %v2181_v18, %v2180_v22  ;;  %v2191_v49 = vadd.f32 %v2190_v7, %v2189_v17  ;;  %v9224_v22 = vld [vmem:[#allocation7] sm:$0xff]  ;;  %v9231_v17 = vld [vmem:[%s12090_s9 + $0x68] sm:$0xff]  ;;  %v3204_v7 = vadd.f32 %v3203_v56, %v3202_v10  ;;  %v9466_v10 = vld [vmem:[%s12090_s9 + $0x80] sm:$0xff] }
 0x870   :  { %v2057_v46 = vrot.slane %v2055_v39, 7  ;;  %2379 = vmatprep.subr.mxu0 %v9224_v22  ;;  %v2067_v18 = vrot.slane %v2065_v62, 5 }
 0x871   :  { %v2183_v11 = vrot.slane %v2182_v19, 1  ;;  %v2192_v1 = vrot.slane %v2191_v49, 1  ;;  %2380 = vmatpush1.msra.mxu0 %v9220_v15 }
 0x872   :  { %2381 = vmatprep.subr.mxu0 %v9224_v22 }
 0x873   :  { %v2184_v4 = vadd.f32 %v2183_v11, %v2182_v19  ;;  %v2193_v20 = vadd.f32 %v2192_v1, %v2191_v49  ;;  %v9238_v19 = vld [vmem:[%s12090_s9 + $0x108] sm:$0xff]  ;;  %v9245_v49 = vld [vmem:[%s12090_s9 + $0x60] sm:$0xff]  ;;  %v3197_v11 = vadd.f32 %v3196_v16, %v3195_v61 }
 0x874   :  { %v9252_v1 = vld [vmem:[%s12090_s9 + $0x100] sm:$0xff]  ;;  %2382 = vmatpush1.msra.mxu0 %v9238_v19 }
 0x875   :  { %v2194_v48 = vadd.f32 %v2193_v20, %v2184_v4  ;;  %v9259_v4 = vld [vmem:[%s12090_s9 + $0x58] sm:$0xff]  ;;  %v3205_v20 = vadd.f32 %v3204_v7, %v3197_v11  ;;  %2383 = vmatprep.subr.mxu0 %v9224_v22 }
 0x876   :  { %2384 = vmatpush1.msra.mxu0 %v9252_v1 }
 0x877   :  { %2196 = vrot.lane.b32.xlu1 %v2194_v48, %s7923_s29  ;;  %v9268_v48 = vld [vmem:[%s12090_s9 + $0x50] sm:$0xff]  ;;  %2385 = vmatprep.subr.mxu0 %v9224_v22 }
 0x8e9   :  { %v2197_v50 = vpop.permute.xlu1 %2196 }
 0x8ea   :  { %7555 = vmatmul.mubr.msk.f32.vlgmr.msra.gmra.mxu1 %vm722_vm5, %v2197_v50  ;;  %v9273_v50 = vld [vmem:[%s12090_s9 + $0xf8] sm:$0xff] }
 0x8eb   :  { %2451 = vmatpush1.msra.mxu1 %v9203_v45  ;;  %2386 = vmatpush1.msra.mxu0 %v9273_v50 }
 0x8ec   :  { %2452 = vmatprep.subr.mxu1 %v9224_v22  ;;  %2387 = vmatprep.subr.mxu0 %v9224_v22 }
 0x8ed   :  { %2388 = vmatpush1.msra.mxu0 %v9287_v25 }
 0x8ee   :  { %2389 = vmatprep.subr.mxu0 %v9224_v22 }
 0x8ef   :  { %2390 = vmatpush1.msra.mxu0 %v9301_v55 }
 0x8f0   :  { %2391 = vmatprep.subr.mxu0 %v9224_v22 }
 0x9aa   :  { %v2266_v29 = vpop.f32.mrf.mxu1 }
 0x9ab   :  { %v2270_v31 = vmul.f32 0.0078125, %v2266_v29  ;;  %v9310_v29 = vld [vmem:[%s12090_s9 + $0x38] sm:$0xff] }
 0x9ac   :  { %v7556_v60 = vpop.f32.mrf.mxu1 }
 0x9ad   :  { %v2271_v13 = vadd.f32 1e-05, %v2270_v31  ;;  %v9315_v31 = vld [vmem:[%s12090_s9 + $0xe0] sm:$0xff]  ;;  %v9329_v60 = vld [vmem:[%s12090_s9 + $0xd8] sm:$0xff] }
 0x9ae   :  { %2392 = vmatpush1.msra.mxu0 %v9315_v31 }
 0x9af   :  { %7861 = vrsqrt.f32 %v2271_v13  ;;  %2393 = vmatprep.subr.mxu0 %v9224_v22  ;;  %v9338_v13 = vld [vmem:[%s12090_s9 + $0x28] sm:$0xff] }
 0x9b0   :  { %2394 = vmatpush1.msra.mxu0 %v9329_v60 }
 0x9b1   :  { %2395 = vmatprep.subr.mxu0 %v9224_v22 }
 0x9b2   :  { %2396 = vmatpush1.msra.mxu0 %v9343_v51 }
 0x9b3   :  { %2397 = vmatprep.subr.mxu0 %v9224_v22 }
 0x9b4   :  { %2398 = vmatpush1.msra.mxu0 %v9357_v0 }
 0x9b5   :  { %2399 = vmatprep.subr.mxu0 %v9224_v22 }
 0x9b6   :  { %2400 = vmatpush1.msra.mxu0 %v9371_v53 }
 0x9b7   :  { %2401 = vmatprep.subr.mxu0 %v9224_v22 }
 0x9b8   :  { %2402 = vmatpush1.msra.mxu0 %v9385_v27 }
 0x9b9   :  { %2403 = vmatprep.subr.mxu0 %v9224_v22 }
 0x9ba   :  { %2404 = vmatpush1.msra.mxu0 %v9399_v32 }
 0x9bb   :  { %2405 = vmatprep.subr.mxu0 %v9224_v22 }
 0x9bc   :  { %v7862_v2 = vpop.eup %7861  ;;  %2406 = vmatpush1.msra.mxu0 %v9419_v3 }
 0x9bd   :  { %v2273_v47 = vmul.f32 %v7862_v2, %v2075_v38  ;;  %v9429_v38 = vld [vmem:[%s12090_s9 + $0xa0] sm:$0xff]  ;;  %2407 = vmatprep.subr.mxu0 %v9224_v22  ;;  %v9446_v2 = vld [vmem:[%s12090_s9 + $0x138] sm:$0xff] }
 0x9be   :  { %2408 = vmatpush1.msra.mxu0 %v9429_v38 }
 0x9bf   :  { %v2279_v35 = vrot.slane %v2273_v47, %v8386_v59  ;;  %v2274_v41 = vmul.f32 %v2273_v47, %v9164_v37  ;;  %v9214_v37 = vld [vmem:[%s12090_s9 + $0x70] sm:$0xff]  ;;  %2433 = vmatprep.subr.mxu0 %v9224_v22  ;;  %v9452_v47 = vld [vmem:[%s12090_s9 + $0x88] sm:$0xff] }
 0x9c0   :  { %2453 = vmatpush1.msra.mxu1 %v9214_v37  ;;  %2434 = vmatpush2.msra.mxu0 %v9446_v2 }
 0x9c1   :  { %2281 = vrot.lane.b32.xlu0 %v2279_v35, %s7923_s29  ;;  %v2275_v44 = vsub.f32 %v2076_v9, %v2274_v41  ;;  %2454 = vmatprep.subr.mxu1 %v9224_v22  ;;  %v9473_v41 = vld [vmem:[%s12090_s9 + $0x128] sm:$0xff] }
 0x9c2   :  { %2455 = vmatpush1.msra.mxu1 %v9231_v17  ;;  %2435 = vmatprep.subr.mxu0 %v9224_v22 }
 0x9c3   :  { %v2288_v12 = vrot.slane %v2275_v44, %v8386_v59  ;;  %2456 = vmatprep.subr.mxu1 %v9224_v22  ;;  %2436 = vmatpush2.msra.mxu0 %v9457_v6 }
 0x9c4   :  { %2457 = vmatpush1.msra.mxu1 %v9245_v49  ;;  %2437 = vmatprep.subr.mxu0 %v9224_v22 }
 0x9c5   :  { %2058 = vrot.lane.b32.xlu0 %v2057_v46, %s7924_s1  ;;  %2290 = vrot.lane.b32.xlu1 %v2288_v12, %s7923_s29  ;;  %v9486_v12 = vld [vmem:[%s12090_s9 + $0x120] sm:$0xff] }
 0x9c6   :  { %2458 = vmatprep.subr.mxu1 %v9224_v22  ;;  %2438 = vmatpush2.msra.mxu0 %v9473_v41 }
 0x9c7   :  { %2459 = vmatpush1.msra.mxu1 %v9259_v4  ;;  %2439 = vmatprep.subr.mxu0 %v9224_v22 }
 0x9c8   :  { %2460 = vmatprep.subr.mxu1 %v9224_v22  ;;  %2440 = vmatpush2.msra.mxu0 %v9486_v12 }
 0x9c9   :  { %2068 = vrot.lane.b32.xlu0 %v2067_v18, %s7924_s1  ;;  %2461 = vmatpush1.msra.mxu1 %v9268_v48 }
 0x9ca   :  { %2462 = vmatprep.subr.mxu1 %v9224_v22  ;;  %2558 = vmatprep.subr.mxu0 %v9224_v22 }
 0x9cb   :  { %2463 = vmatpush1.msra.mxu1 %v9282_v24 }
 0x9cc   :  { %2464 = vmatprep.subr.mxu1 %v9224_v22 }
 0x9cd   :  { %3207 = vrot.lane.b32.xlu0 %v3205_v20, %s7923_s29  ;;  %2465 = vmatpush1.msra.mxu1 %v9296_v26 }
 0x9ce   :  { %2466 = vmatprep.subr.mxu1 %v9224_v22 }
 0x9cf   :  { %2467 = vmatpush1.msra.mxu1 %v9310_v29 }
 0x9d0   :  { %2468 = vmatprep.subr.mxu1 %v9224_v22 }
 0x9d1   :  { %2469 = vmatpush1.msra.mxu1 %v9324_v33 }
 0x9d2   :  { %2470 = vmatprep.subr.mxu1 %v9224_v22 }
 0x9d3   :  { %2471 = vmatpush1.msra.mxu1 %v9338_v13 }
 0x9d4   :  { %2472 = vmatprep.subr.mxu1 %v9224_v22 }
 0x9d5   :  { %2473 = vmatpush1.msra.mxu1 %v9352_v57 }
 0x9d6   :  { %2474 = vmatprep.subr.mxu1 %v9224_v22 }
 0x9d7   :  { %2475 = vmatpush1.msra.mxu1 %v9366_v52 }
 0x9d8   :  { %2476 = vmatprep.subr.mxu1 %v9224_v22 }
 0x9d9   :  { %2477 = vmatpush1.msra.mxu1 %v9380_v54 }
 0x9da   :  { %2478 = vmatprep.subr.mxu1 %v9224_v22 }
 0x9db   :  { %2479 = vmatpush1.msra.mxu1 %v9394_v28 }
 0x9dc   :  { %2480 = vmatprep.subr.mxu1 %v9224_v22 }
 0x9dd   :  { %2481 = vmatpush1.msra.mxu1 %v9408_v34 }
 0x9de   :  { %2506 = vmatprep.subr.mxu1 %v9224_v22 }
 0x9df   :  { %2507 = vmatpush2.msra.mxu1 %v9424_v36 }
 0x9e0   :  { %2508 = vmatprep.subr.mxu1 %v9224_v22 }
 0x9e1   :  { %2509 = vmatpush2.msra.mxu1 %v9436_v40 }
 0x9e2   :  { %2510 = vmatprep.subr.mxu1 %v9224_v22 }
 0x9e3   :  { %2511 = vmatpush2.msra.mxu1 %v9452_v47 }
 0x9e4   :  { %2512 = vmatprep.subr.mxu1 %v9224_v22 }
 0x9e5   :  { %2513 = vmatpush2.msra.mxu1 %v9466_v10 }
 0x9e6   :  { %2697 = vmatprep.subr.mxu1 %v9224_v22 }
 0xa33   :  { %v2282_v42 = vpop.permute.xlu0 %2281 }
 0xa34   :  { %v2284_v8 = vmul.f32 %v2282_v42, %v9104_v30  ;;  %v2304_v9 = vmul.f32 %v2282_v42, %v9110_v58 }
 0xa37   :  { %v2059_v35 = vpop.permute.xlu0 %2058  ;;  %v2291_v39 = vpop.permute.xlu1 %2290 }
 0xa38   :  { %2061 = vst.msk [vmem:[#allocation6] sm:$0xfe] %vm930_vm8, %v2059_v35  ;;  %v2293_v43 = vadd.f32 %v2291_v39, %v2284_v8  ;;  %v2305_v44 = vadd.f32 %v2304_v9, %v2291_v39 }
 0xa39   :  { %2062 = vst.msk [vmem:[#allocation6 + $0x10] sm:$0x1] %vm12107_vm9, %v2059_v35  ;;  %vm12122_vm9 = vcmask 188416  }
 0xa3a   :  { %v2294_v61 = vmax.f32 %v2293_v43, 0.0  ;;  %v2306_v56 = vmax.f32 %v2305_v44, 0.0 }
 0xa3b   :  { %v2069_v46 = vpop.permute.xlu0 %2068 }
 0xa3c   :  { %v2296_v62 = vrot.slane %v2294_v61, 7  ;;  %2071 = vst.msk [vmem:[#allocation6 + $0x10] sm:$0xf8] %vm12109_vm10, %v2069_v46  ;;  %v2308_v16 = vrot.slane %v2306_v56, 5  ;;  %vm12124_vm10 = vcmask 190464  }
 0xa3d   :  { %2072 = vst.msk [vmem:[#allocation6 + $0x20] sm:$0x7] %vm12108_vm11, %v2069_v46  ;;  %vm12123_vm11 = vcmask 1043136  }
 0xa3e   :  { %2297 = vrot.lane.b32.xlu1 %v2296_v62, %s7925_s20 }
 0xa42   :  { %2309 = vrot.lane.b32.xlu1 %v2308_v16, %s7925_s20 }
 0xab0   :  { %v2298_v18 = vpop.permute.xlu1 %2297 }
 0xab1   :  { %2300 = vst.msk [vmem:[#allocation6] sm:$0xfe] %vm1174_vm12, %v2298_v18 }
 0xab2   :  { %2301 = vst.msk [vmem:[#allocation6 + $0x8] sm:$0xfe] %vm1176_vm13, %v2298_v18 }
 0xab3   :  { %2302 = vst.msk [vmem:[#allocation6 + $0x10] sm:$0x1] %vm1178_vm14, %v2298_v18 }
 0xab4   :  { %2303 = vst.msk [vmem:[#allocation6 + $0x18] sm:$0x1] %vm12122_vm9, %v2298_v18  ;;  %v2310_v7 = vpop.permute.xlu1 %2309  ;;  %vm12125_vm9 = vcmask 1046528   ;;  %v9509_v18 = vld [vmem:[%s12090_s9 + $0x1b8] sm:$0xff] }
 0xab5   :  { %2312 = vst.msk [vmem:[#allocation6 + $0x10] sm:$0xf8] %vm1190_vm0, %v2310_v7 }
 0xab6   :  { %2313 = vst.msk [vmem:[#allocation6 + $0x18] sm:$0xf8] %vm1192_vm1, %v2310_v7 }
 0xab7   :  { %2314 = vst.msk [vmem:[#allocation6 + $0x20] sm:$0x7] %vm12123_vm11, %v2310_v7  ;;  %vm12127_vm11 = vcmask 581696  }
 0xab8   :  { %2315 = vst.msk [vmem:[#allocation6 + $0x28] sm:$0x7] %vm12124_vm10, %v2310_v7  ;;  %v2317_v20 = vld [vmem:[#allocation6] sm:$0xff]  ;;  %vm12126_vm10 = vmmov %vm12125_vm9 }
 0xab9   :  { %v2318_v11 = vld [vmem:[#allocation6 + $0x8] sm:$0xff]  ;;  %v2339_v35 = vld [vmem:[#allocation6] sm:$0xfe] }
 0xaba   :  { %v2340_v42 = vld [vmem:[#allocation6 + $0x8] sm:$0xfe]  ;;  %6584 = vmatprep.mubr.msk.f32.mxu1 %vm94_vm6, %v2318_v11  ;;  %v2341_v43 = vld [vmem:[#allocation6 + $0x10] sm:$0x1]  ;;  %v2368_v44 = vrot.slane %v2339_v35, 1 }
 0xabb   :  { %v2342_v8 = vld [vmem:[#allocation6 + $0x18] sm:$0x1]  ;;  %v2371_v9 = vrot.slane %v2340_v42, 1  ;;  %2515 = vmatmul.mubr.f32.vlgmr.msra.gmra.mxu1 %v2317_v20  ;;  %v2521_v61 = vld [vmem:[#allocation6 + $0x8] sm:$0xfc]  ;;  %v2369_v46 = vrot.slane %v2341_v43, 1 }
 0xabc   :  { %v2372_v39 = vrot.slane %v2342_v8, 1  ;;  %2698 = vmatpush1.msra.mxu1 %v9208_v14  ;;  %v2523_v62 = vld [vmem:[#allocation6 + $0x18] sm:$0x3]  ;;  %v2552_v56 = vrot.slane %v2521_v61, 2  ;;  %v9519_v35 = vld [vmem:[%s12090_s9 + $0x1b0] sm:$0xff] }
 0xabd   :  { %2699 = vmatprep.subr.mxu1 %v9224_v22  ;;  %v2553_v7 = vrot.slane %v2523_v62, 2  ;;  %v2661_v11 = vld [vmem:[#allocation6 + $0x18] sm:$0xf8]  ;;  %v2370_v14 = vsel %vm12126_vm10, %v2368_v44, %v2369_v46  ;;  %v2660_v44 = vld [vmem:[#allocation6 + $0x10] sm:$0xf8]  ;;  %vm12129_vm10 = vcmask 583744  }
 0xabe   :  { %v2373_v16 = vsel %vm12125_vm9, %v2371_v9, %v2372_v39  ;;  %2700 = vmatpush1.msra.mxu1 %v9220_v15  ;;  %v2691_v42 = vrot.slane %v2661_v11, 3  ;;  %v9529_v39 = vld [vmem:[%s12090_s9 + $0x1a8] sm:$0xff]  ;;  %v9538_v43 = vld [vmem:[%s12090_s9 + $0x1a0] sm:$0xff]  ;;  %vm12128_vm9 = vcmask 588867  }
 0xabf   :  { %v2663_v20 = vld [vmem:[#allocation6 + $0x28] sm:$0x7]  ;;  %6583 = vmatprep.mubr.msk.f32.mxu0 %vm94_vm6, %v2373_v16  ;;  %2701 = vmatprep.subr.mxu1 %v9224_v22  ;;  %v2554_v9 = vsel %vm1432_vm2, %v2552_v56, %v2553_v7  ;;  %v2662_v61 = vld [vmem:[#allocation6 + $0x20] sm:$0x7]  ;;  %v2851_v46 = vld [vmem:[#allocation6 + $0x18] sm:$0xf0] }
 0xac0   :  { %v2692_v8 = vrot.slane %v2663_v20, 3  ;;  %2442 = vmatmul.mubr.f32.vlgmr.msra.gmra.mxu0 %v2370_v14  ;;  %2702 = vmatpush1.msra.mxu1 %v9238_v19  ;;  %v9547_v19 = vld [vmem:[%s12090_s9 + $0x198] sm:$0xff]  ;;  %v2853_v62 = vld [vmem:[#allocation6 + $0x28] sm:$0xf]  ;;  %v2688_v56 = vrot.slane %v2660_v44, 3  ;;  %v2689_v16 = vrot.slane %v2662_v61, 3 }
 0xac1   :  { %2559 = vmatpush1.msra.mxu0 %v9509_v18  ;;  %6605 = vmatprep.mubr.msk.f32.mxu0 %vm94_vm6, %v2554_v9  ;;  %v2522_v7 = vld [vmem:[#allocation6 + $0x10] sm:$0x3]  ;;  %v9673_v11 = vld [vmem:[%s12090_s9 + $0x1c8] sm:$0xff]  ;;  %v2882_v20 = vrot.slane %v2853_v62, 4  ;;  %v2637_v14 = vld [vmem:[#allocation6 + $0x18] sm:$0xfc] }
 0xac2   :  { %2560 = vmatprep.subr.mxu0 %v9224_v22  ;;  %v2693_v15 = vsel %vm1572_vm7, %v2691_v42, %v2692_v8  ;;  %2703 = vmatprep.subr.mxu1 %v9224_v22  ;;  %v2639_v42 = vld [vmem:[#allocation6 + $0x28] sm:$0x3]  ;;  %v2550_v9 = vrot.slane %v2522_v7, 2  ;;  %v2774_v44 = vrot.slane %v2637_v14, 2 }
 0xac3   :  { %2561 = vmatpush1.msra.mxu0 %v9519_v35  ;;  %2704 = vmatpush1.msra.mxu1 %v9252_v1  ;;  %v9556_v1 = vld [vmem:[%s12090_s9 + $0x190] sm:$0xff]  ;;  %v2775_v61 = vrot.slane %v2639_v42, 2 }
 0xac4   :  { %2562 = vmatprep.subr.mxu0 %v9224_v22  ;;  %6627 = vmatprep.mubr.msk.f32.mxu1 %vm94_vm6, %v2693_v15  ;;  %v2690_v15 = vsel %vm1572_vm7, %v2688_v56, %v2689_v16 }
 0xac5   :  { %2563 = vmatpush1.msra.mxu0 %v9529_v39  ;;  %2705 = vmatprep.subr.mxu1 %v9224_v22  ;;  %v2776_v62 = vsel %vm1432_vm2, %v2774_v44, %v2775_v61 }
 0xac6   :  { %2564 = vmatprep.subr.mxu0 %v9224_v22  ;;  %2706 = vmatpush1.msra.mxu1 %v9273_v50  ;;  %v9565_v50 = vld [vmem:[%s12090_s9 + $0x188] sm:$0xff] }
 0xac7   :  { %2565 = vmatpush1.msra.mxu0 %v9538_v43  ;;  %2707 = vmatprep.subr.mxu1 %v9224_v22 }
 0xac8   :  { %2566 = vmatprep.subr.mxu0 %v9224_v22  ;;  %2708 = vmatpush1.msra.mxu1 %v9287_v25  ;;  %v9574_v25 = vld [vmem:[%s12090_s9 + $0x180] sm:$0xff] }
 0xac9   :  { %2567 = vmatpush1.msra.mxu0 %v9547_v19  ;;  %2709 = vmatprep.subr.mxu1 %v9224_v22 }
 0xaca   :  { %2568 = vmatprep.subr.mxu0 %v9224_v22  ;;  %2710 = vmatpush1.msra.mxu1 %v9301_v55  ;;  %v9583_v55 = vld [vmem:[%s12090_s9 + $0x178] sm:$0xff] }
 0xacb   :  { %2569 = vmatpush1.msra.mxu0 %v9556_v1  ;;  %2711 = vmatprep.subr.mxu1 %v9224_v22 }
 0xacc   :  { %2570 = vmatprep.subr.mxu0 %v9224_v22  ;;  %2712 = vmatpush1.msra.mxu1 %v9315_v31  ;;  %v9592_v31 = vld [vmem:[%s12090_s9 + $0x170] sm:$0xff] }
 0xacd   :  { %2571 = vmatpush1.msra.mxu0 %v9565_v50  ;;  %2713 = vmatprep.subr.mxu1 %v9224_v22 }
 0xace   :  { %2572 = vmatprep.subr.mxu0 %v9224_v22  ;;  %2714 = vmatpush1.msra.mxu1 %v9329_v60  ;;  %v9601_v60 = vld [vmem:[%s12090_s9 + $0x168] sm:$0xff] }
 0xacf   :  { %2573 = vmatpush1.msra.mxu0 %v9574_v25  ;;  %2715 = vmatprep.subr.mxu1 %v9224_v22 }
 0xad0   :  { %2574 = vmatprep.subr.mxu0 %v9224_v22  ;;  %2716 = vmatpush1.msra.mxu1 %v9343_v51  ;;  %v9610_v51 = vld [vmem:[%s12090_s9 + $0x160] sm:$0xff] }
 0xad1   :  { %2575 = vmatpush1.msra.mxu0 %v9583_v55  ;;  %2717 = vmatprep.subr.mxu1 %v9224_v22 }
 0xad2   :  { %2576 = vmatprep.subr.mxu0 %v9224_v22  ;;  %2718 = vmatpush1.msra.mxu1 %v9357_v0  ;;  %v9619_v0 = vld [vmem:[%s12090_s9 + $0x158] sm:$0xff] }
 0xad3   :  { %2577 = vmatpush1.msra.mxu0 %v9592_v31  ;;  %2719 = vmatprep.subr.mxu1 %v9224_v22 }
 0xad4   :  { %2578 = vmatprep.subr.mxu0 %v9224_v22  ;;  %2720 = vmatpush1.msra.mxu1 %v9371_v53  ;;  %v9628_v53 = vld [vmem:[%s12090_s9 + $0x150] sm:$0xff] }
 0xad5   :  { %2579 = vmatpush1.msra.mxu0 %v9601_v60  ;;  %2721 = vmatprep.subr.mxu1 %v9224_v22 }
 0xad6   :  { %2580 = vmatprep.subr.mxu0 %v9224_v22  ;;  %2722 = vmatpush1.msra.mxu1 %v9385_v27  ;;  %v9637_v27 = vld [vmem:[%s12090_s9 + $0x148] sm:$0xff] }
 0xad7   :  { %2581 = vmatpush1.msra.mxu0 %v9610_v51  ;;  %2723 = vmatprep.subr.mxu1 %v9224_v22 }
 0xad8   :  { %2582 = vmatprep.subr.mxu0 %v9224_v22  ;;  %2724 = vmatpush1.msra.mxu1 %v9399_v32  ;;  %v9646_v32 = vld [vmem:[%s12090_s9 + $0x140] sm:$0xff] }
 0xad9   :  { %2583 = vmatpush1.msra.mxu0 %v9619_v0  ;;  %2725 = vmatprep.subr.mxu1 %v9224_v22 }
 0xada   :  { %2584 = vmatprep.subr.mxu0 %v9224_v22  ;;  %2726 = vmatpush1.msra.mxu1 %v9419_v3  ;;  %v9655_v3 = vld [vmem:[%s12090_s9 + $0x1d8] sm:$0xff] }
 0xadb   :  { %2585 = vmatpush1.msra.mxu0 %v9628_v53  ;;  %2727 = vmatprep.subr.mxu1 %v9224_v22 }
 0xadc   :  { %2586 = vmatprep.subr.mxu0 %v9224_v22  ;;  %2728 = vmatpush1.msra.mxu1 %v9429_v38  ;;  %v9664_v38 = vld [vmem:[%s12090_s9 + $0x1d0] sm:$0xff] }
 0xadd   :  { %2587 = vmatpush1.msra.mxu0 %v9637_v27  ;;  %2753 = vmatprep.subr.mxu1 %v9224_v22 }
 0xade   :  { %2588 = vmatprep.subr.mxu0 %v9224_v22  ;;  %2754 = vmatpush2.msra.mxu1 %v9446_v2  ;;  %v2520_v2 = vld [vmem:[#allocation6] sm:$0xfc] }
 0xadf   :  { %2589 = vmatpush1.msra.mxu0 %v9646_v32  ;;  %2755 = vmatprep.subr.mxu1 %v9224_v22  ;;  %v2549_v8 = vrot.slane %v2520_v2, 2 }
 0xae0   :  { %2614 = vmatprep.subr.mxu0 %v9224_v22  ;;  %2756 = vmatpush2.msra.mxu1 %v9457_v6  ;;  %v2881_v6 = vrot.slane %v2851_v46, 4 }
 0xae1   :  { %2615 = vmatpush2.msra.mxu0 %v9655_v3  ;;  %2757 = vmatprep.subr.mxu1 %v9224_v22  ;;  %v2551_v46 = vsel %vm1432_vm2, %v2549_v8, %v2550_v9 }
 0xae2   :  { %2616 = vmatprep.subr.mxu0 %v9224_v22  ;;  %2758 = vmatpush2.msra.mxu1 %v9473_v41  ;;  %v9685_v41 = vld [vmem:[%s12090_s9 + $0x1c0] sm:$0xff] }
 0xae3   :  { %2617 = vmatpush2.msra.mxu0 %v9664_v38  ;;  %2759 = vmatprep.subr.mxu1 %v9224_v22 }
 0xae4   :  { %2618 = vmatprep.subr.mxu0 %v9224_v22  ;;  %2760 = vmatpush2.msra.mxu1 %v9486_v12  ;;  %v2883_v12 = vsel %vm1763_vm15, %v2881_v6, %v2882_v20 }
 0xae5   :  { %2619 = vmatpush2.msra.mxu0 %v9673_v11  ;;  %2762 = vmatmul.mubr.f32.vlgmr.msra.gmra.mxu1 %v2690_v15 }
 0xae6   :  { %2887 = vmatprep.subr.mxu1 %v9224_v22  ;;  %2620 = vmatprep.subr.mxu0 %v9224_v22 }
 0xae7   :  { %2888 = vmatpush1.msra.mxu1 %v9509_v18  ;;  %6649 = vmatprep.mubr.msk.f32.mxu1 %vm94_vm6, %v2883_v12  ;;  %v9795_v18 = vld [vmem:[%s12119_s26 + $0x30] sm:$0xff] }
 0xae8   :  { %2621 = vmatpush2.msra.mxu0 %v9685_v41  ;;  %2889 = vmatprep.subr.mxu1 %v9224_v22 }
 0xae9   :  { %2623 = vmatmul.mubr.f32.vlgmr.msra.gmra.mxu0 %v2551_v46  ;;  %2780 = vmatprep.subr.mxu0 %v9224_v22 }
 0xaea   :  { %2890 = vmatpush1.msra.mxu1 %v9519_v35  ;;  %2781 = vmatpush1.msra.mxu0 %v9203_v45  ;;  %v2975_v45 = vsel %vm722_vm5, %v8357_v21, 0.0 }
 0xaeb   :  { %6628 = vmatprep.mubr.msk.f32.mxu0 %vm94_vm6, %v2776_v62  ;;  %2891 = vmatprep.subr.mxu1 %v9224_v22 }
 0xaec   :  { %2782 = vmatprep.subr.mxu0 %v9224_v22  ;;  %2892 = vmatpush1.msra.mxu1 %v9529_v39  ;;  %v9804_v39 = vld [vmem:[%s12119_s26 + $0x28] sm:$0xff] }
 0xaed   :  { %2783 = vmatpush1.msra.mxu0 %v9214_v37  ;;  %2893 = vmatprep.subr.mxu1 %v9224_v22  ;;  %v2968_v37 = vsel %vm722_vm5, %v8349_v63, 0.0 }
 0xaee   :  { %2784 = vmatprep.subr.mxu0 %v9224_v22  ;;  %2894 = vmatpush1.msra.mxu1 %v9538_v43 }
 0xaef   :  { %2785 = vmatpush1.msra.mxu0 %v9231_v17  ;;  %2895 = vmatprep.subr.mxu1 %v9224_v22  ;;  %v2850_v17 = vld [vmem:[#allocation6 + $0x10] sm:$0xf0] }
 0xaf0   :  { %2786 = vmatprep.subr.mxu0 %v9224_v22  ;;  %2896 = vmatpush1.msra.mxu1 %v9547_v19  ;;  %v9813_v19 = vld [vmem:[%s12119_s26 + $0x20] sm:$0xff] }
 0xaf1   :  { %2787 = vmatpush1.msra.mxu0 %v9245_v49  ;;  %2897 = vmatprep.subr.mxu1 %v9224_v22  ;;  %v2852_v49 = vld [vmem:[#allocation6 + $0x20] sm:$0xf] }
 0xaf2   :  { %2788 = vmatprep.subr.mxu0 %v9224_v22  ;;  %2898 = vmatpush1.msra.mxu1 %v9556_v1 }
 0xaf3   :  { %2789 = vmatpush1.msra.mxu0 %v9259_v4  ;;  %2899 = vmatprep.subr.mxu1 %v9224_v22  ;;  %v2976_v4 = vrot.slane %v2975_v45, 4 }
 0xaf4   :  { %2790 = vmatprep.subr.mxu0 %v9224_v22  ;;  %2900 = vmatpush1.msra.mxu1 %v9565_v50  ;;  %v9822_v50 = vld [vmem:[%s12119_s26 + $0x18] sm:$0xff] }
 0xaf5   :  { %2791 = vmatpush1.msra.mxu0 %v9268_v48  ;;  %2901 = vmatprep.subr.mxu1 %v9224_v22  ;;  %v2636_v48 = vld [vmem:[#allocation6 + $0x10] sm:$0xfc] }
 0xaf6   :  { %2792 = vmatprep.subr.mxu0 %v9224_v22  ;;  %2902 = vmatpush1.msra.mxu1 %v9574_v25 }
 0xaf7   :  { %2793 = vmatpush1.msra.mxu0 %v9282_v24  ;;  %2903 = vmatprep.subr.mxu1 %v9224_v22  ;;  %v2638_v24 = vld [vmem:[#allocation6 + $0x20] sm:$0x3] }
 0xaf8   :  { %2794 = vmatprep.subr.mxu0 %v9224_v22  ;;  %2904 = vmatpush1.msra.mxu1 %v9583_v55  ;;  %v9831_v55 = vld [vmem:[%s12119_s26 + $0x10] sm:$0xff] }
 0xaf9   :  { %2795 = vmatpush1.msra.mxu0 %v9296_v26  ;;  %2905 = vmatprep.subr.mxu1 %v9224_v22  ;;  %v2969_v26 = vrot.slane %v2968_v37, 4 }
 0xafa   :  { %2796 = vmatprep.subr.mxu0 %v9224_v22  ;;  %2906 = vmatpush1.msra.mxu1 %v9592_v31 }
 0xafb   :  { %2797 = vmatpush1.msra.mxu0 %v9310_v29  ;;  %2907 = vmatprep.subr.mxu1 %v9224_v22  ;;  %v2878_v29 = vrot.slane %v2850_v17, 4 }
 0xafc   :  { %2798 = vmatprep.subr.mxu0 %v9224_v22  ;;  %2908 = vmatpush1.msra.mxu1 %v9601_v60  ;;  %v9840_v60 = vld [vmem:[%s12119_s26 + $0x8] sm:$0xff] }
 0xafd   :  { %2799 = vmatpush1.msra.mxu0 %v9324_v33  ;;  %2909 = vmatprep.subr.mxu1 %v9224_v22  ;;  %v2879_v33 = vrot.slane %v2852_v49, 4 }
 0xafe   :  { %2800 = vmatprep.subr.mxu0 %v9224_v22  ;;  %2910 = vmatpush1.msra.mxu1 %v9610_v51 }
 0xaff   :  { %2801 = vmatpush1.msra.mxu0 %v9338_v13  ;;  %2911 = vmatprep.subr.mxu1 %v9224_v22  ;;  %v2977_v13 = vadd.f32 %v2976_v4, %v2975_v45 }
 0xb00   :  { %2802 = vmatprep.subr.mxu0 %v9224_v22  ;;  %2912 = vmatpush1.msra.mxu1 %v9619_v0  ;;  %v9849_v0 = vld [vmem:[%s12119_s26] sm:$0xff] }
 0xb01   :  { %2803 = vmatpush1.msra.mxu0 %v9352_v57  ;;  %2913 = vmatprep.subr.mxu1 %v9224_v22  ;;  %v2771_v57 = vrot.slane %v2636_v48, 2 }
 0xb02   :  { %2804 = vmatprep.subr.mxu0 %v9224_v22  ;;  %2914 = vmatpush1.msra.mxu1 %v9628_v53  ;;  %v3208_v53 = vpop.permute.xlu0 %3207 }
 0xb03   :  { %2805 = vmatpush1.msra.mxu0 %v9366_v52  ;;  %2915 = vmatprep.subr.mxu1 %v9224_v22  ;;  %v2772_v52 = vrot.slane %v2638_v24, 2 }
 0xb04   :  { %2806 = vmatprep.subr.mxu0 %v9224_v22  ;;  %2916 = vmatpush1.msra.mxu1 %v9637_v27 }
 0xb05   :  { %2807 = vmatpush1.msra.mxu0 %v9380_v54  ;;  %2917 = vmatprep.subr.mxu1 %v9224_v22  ;;  %v2970_v54 = vadd.f32 %v2969_v26, %v2968_v37 }
 0xb06   :  { %2808 = vmatprep.subr.mxu0 %v9224_v22  ;;  %2918 = vmatpush1.msra.mxu1 %v9646_v32 }
 0xb07   :  { %2809 = vmatpush1.msra.mxu0 %v9394_v28  ;;  %2943 = vmatprep.subr.mxu1 %v9224_v22  ;;  %v2880_v28 = vsel %vm1763_vm15, %v2878_v29, %v2879_v33 }
 0xb08   :  { %2810 = vmatprep.subr.mxu0 %v9224_v22  ;;  %2944 = vmatpush2.msra.mxu1 %v9655_v3 }
 0xb09   :  { %2811 = vmatpush1.msra.mxu0 %v9408_v34  ;;  %2945 = vmatprep.subr.mxu1 %v9224_v22  ;;  %v2978_v34 = vrot.slane %v2977_v13, 2 }
 0xb0a   :  { %2836 = vmatprep.subr.mxu0 %v9224_v22  ;;  %2946 = vmatpush2.msra.mxu1 %v9664_v38 }
 0xb0b   :  { %2837 = vmatpush2.msra.mxu0 %v9424_v36  ;;  %2947 = vmatprep.subr.mxu1 %v9224_v22  ;;  %v2773_v36 = vsel %vm1432_vm2, %v2771_v57, %v2772_v52 }
 0xb0c   :  { %2838 = vmatprep.subr.mxu0 %v9224_v22  ;;  %2948 = vmatpush2.msra.mxu1 %v9673_v11 }
 0xb0d   :  { %2839 = vmatpush2.msra.mxu0 %v9436_v40  ;;  %2949 = vmatprep.subr.mxu1 %v9224_v22  ;;  %v2971_v40 = vrot.slane %v2970_v54, 2 }
 0xb0e   :  { %2840 = vmatprep.subr.mxu0 %v9224_v22  ;;  %2950 = vmatpush2.msra.mxu1 %v9685_v41 }
 0xb0f   :  { %2841 = vmatpush2.msra.mxu0 %v9452_v47  ;;  %2952 = vmatmul.mubr.f32.vlgmr.msra.gmra.mxu1 %v2880_v28  ;;  %v9785_v47 = vld [vmem:[%s12119_s26 + $0x38] sm:$0xff]  ;;  %v2972_v35 = vadd.f32 %v2971_v40, %v2970_v54 }
 0xb10   :  { %2842 = vmatprep.subr.mxu0 %v9224_v22  ;;  %7576 = vmatprep.subr.mxu1 %v9224_v22 }
 0xb11   :  { %2843 = vmatpush2.msra.mxu0 %v9466_v10  ;;  %v2979_v10 = vadd.f32 %v2978_v34, %v2977_v13  ;;  %7577 = vmatpush3.msra.mxu1 %v9785_v47  ;;  %v2973_v1 = vrot.slane %v2972_v35, 1 }
 0xb12   :  { %2845 = vmatmul.mubr.f32.vlgmr.msra.gmra.mxu0 %v2773_v36  ;;  %7557 = vmatprep.subr.mxu0 %v9224_v22 }
 0xb13   :  { %7558 = vmatpush3.msra.mxu0 %v9785_v47  ;;  %7573 = vmatprep.mubr.msk.f32.mxu0 %vm7922_vm3, %v9224_v22  ;;  %v2980_v43 = vrot.slane %v2979_v10, 1  ;;  %v2974_v31 = vadd.f32 %v2973_v1, %v2972_v35  ;;  %v9903_v1 = vld [vmem:[#allocation7] sm:$0xff] }
 0xb14   :  { %7559 = vmatprep.subr.mxu0 %v9224_v22  ;;  %7578 = vmatprep.subr.mxu1 %v9224_v22 }
 0xb15   :  { %7560 = vmatpush3.msra.mxu0 %v9795_v18  ;;  %7579 = vmatpush3.msra.mxu1 %v9795_v18  ;;  %v2981_v25 = vadd.f32 %v2980_v43, %v2979_v10 }
 0xb16   :  { %7561 = vmatprep.subr.mxu0 %v9224_v22  ;;  %7580 = vmatprep.subr.mxu1 %v9224_v22 }
 0xb17   :  { %7562 = vmatpush3.msra.mxu0 %v9804_v39  ;;  %7581 = vmatpush3.msra.mxu1 %v9804_v39  ;;  %v2982_v51 = vadd.f32 %v2981_v25, %v2974_v31 }
 0xb18   :  { %7563 = vmatprep.subr.mxu0 %v9224_v22  ;;  %7582 = vmatprep.subr.mxu1 %v9224_v22 }
 0xb19   :  { %7564 = vmatpush3.msra.mxu0 %v9813_v19  ;;  %7583 = vmatpush3.msra.mxu1 %v9813_v19 }
 0xb1a   :  { %7565 = vmatprep.subr.mxu0 %v9224_v22  ;;  %7584 = vmatprep.subr.mxu1 %v9224_v22 }
 0xb1b   :  { %7566 = vmatpush3.msra.mxu0 %v9822_v50  ;;  %7585 = vmatpush3.msra.mxu1 %v9822_v50 }
 0xb1c   :  { %7567 = vmatprep.subr.mxu0 %v9224_v22  ;;  %7586 = vmatprep.subr.mxu1 %v9224_v22 }
 0xb1d   :  { %7568 = vmatpush3.msra.mxu0 %v9831_v55  ;;  %7587 = vmatpush3.msra.mxu1 %v9831_v55 }
 0xb1e   :  { %7569 = vmatprep.subr.mxu0 %v9224_v22  ;;  %7588 = vmatprep.subr.mxu1 %v9224_v22 }
 0xb1f   :  { %7570 = vmatpush3.msra.mxu0 %v9840_v60  ;;  %7589 = vmatpush3.msra.mxu1 %v9840_v60 }
 0xb20   :  { %7571 = vmatprep.subr.mxu0 %v9224_v22  ;;  %7590 = vmatprep.subr.mxu1 %v9224_v22 }
 0xb21   :  { %7572 = vmatpush3.msra.mxu0 %v9849_v0  ;;  %7591 = vmatpush3.msra.mxu1 %v9849_v0 }
 0xb22   :  { %7574 = vmatmul.mubr.msk.f32.vlgmr.msra.gmra.mxu0 %vm722_vm5, %v2982_v51  ;;  %7595 = vmatprep.subr.mxu0 %v9224_v22 }
 0xb23   :  { %7596 = vmatpush3.msra.mxu0 %v9785_v47  ;;  %7611 = vmatprep.mubr.msk.f32.mxu0 %vm7922_vm3, %v9224_v22 }
 0xb24   :  { %7597 = vmatprep.subr.mxu0 %v9224_v22  ;;  %7592 = vmatprep.mubr.msk.f32.mxu1 %vm7922_vm3, %v9224_v22 }
 0xb25   :  { %7598 = vmatpush3.msra.mxu0 %v9795_v18  ;;  %7614 = vmatprep.subr.mxu1 %v9224_v22 }
 0xb26   :  { %7599 = vmatprep.subr.mxu0 %v9224_v22 }
 0xb27   :  { %7600 = vmatpush3.msra.mxu0 %v9804_v39 }
 0xb28   :  { %7601 = vmatprep.subr.mxu0 %v9224_v22 }
 0xb29   :  { %7602 = vmatpush3.msra.mxu0 %v9813_v19 }
 0xb2a   :  { %7603 = vmatprep.subr.mxu0 %v9224_v22 }
 0xb2b   :  { %7604 = vmatpush3.msra.mxu0 %v9822_v50 }
 0xb2c   :  { %7605 = vmatprep.subr.mxu0 %v9224_v22 }
 0xb2d   :  { %7606 = vmatpush3.msra.mxu0 %v9831_v55 }
 0xb2e   :  { %7607 = vmatprep.subr.mxu0 %v9224_v22 }
 0xb2f   :  { %7608 = vmatpush3.msra.mxu0 %v9840_v60 }
 0xb30   :  { %7609 = vmatprep.subr.mxu0 %v9224_v22 }
 0xb31   :  { %7610 = vmatpush3.msra.mxu0 %v9849_v0 }
 0xb32   :  { %7612 = vmatmul.mubr.msk.f32.vlgmr.msra.gmra.mxu0 %vm722_vm5, %v3208_v53  ;;  %3492 = vmatprep.subr.mxu0 %v9224_v22 }
 0xb7b   :  { %v2516_v27 = vpop.f32.mrf.mxu1 }
 0xb7d   :  { %v2518_v32 = vpop.f32.mrf.mxu1 }
 0xb80   :  { %v2443_v3 = vpop.f32.mrf.mxu0 }
 0xb81   :  { %v2517_v38 = vadd.f32 %v2516_v27, %v2443_v3 }
 0xb82   :  { %v2445_v56 = vpop.f32.mrf.mxu0 }
 0xba5   :  { %v2763_v16 = vpop.f32.mrf.mxu1 }
 0xba7   :  { %v2765_v2 = vpop.f32.mrf.mxu1 }
 0xba9   :  { %v2624_v7 = vpop.f32.mrf.mxu0 }
 0xbaa   :  { %v9878_v11 = vadd.f32 %v2624_v7, %v2517_v38 }
 0xbab   :  { %v2626_v6 = vpop.f32.mrf.mxu0 }
 0xbcf   :  { %v2953_v20 = vpop.f32.mrf.mxu1 }
 0xbd1   :  { %v2955_v14 = vpop.f32.mrf.mxu1 }
 0xbd2   :  { %v2846_v42 = vpop.f32.mrf.mxu0 }
 0xbd3   :  { %v2847_v8 = vadd.f32 %v2846_v42, %v2763_v16 }
 0xbd4   :  { %v2848_v9 = vpop.f32.mrf.mxu0 }
 0xbd5   :  { %v9880_v15 = vadd.f32 %v2953_v20, %v2847_v8  ;;  %v2966_v9 = vld [vmem:[%s12084_s3 + $0x2] sm:$0x1] }
 0xbe2   :  { %v3052_v41 = vpop.f32.mrf.mxu0 }
 0xbe3   :  { %v9882_v44 = vmul.f32 0.0078125, %v3052_v41 }
 0xbe4   :  { %v7575_v61 = vpop.f32.mrf.mxu0 }
 0xbe5   :  { %v3060_v12 = vrot.slane %v9882_v44, %v8386_v59 }
 0xbe7   :  { %v3061_v46 = vsub.f32 %v8349_v63, %v3060_v12  ;;  %v3070_v62 = vsub.f32 %v8357_v21, %v3060_v12 }
 0xbe9   :  { %v3062_v45 = vmul.f32 %v3061_v46, %v3061_v46  ;;  %v3071_v37 = vmul.f32 %v3070_v62, %v3070_v62 }
 0xbeb   :  { %v3063_v17 = vsel %vm722_vm5, %v3062_v45, 0.0  ;;  %v3072_v49 = vsel %vm722_vm5, %v3071_v37, 0.0  ;;  %v2967_v37 = vld [vmem:[%s12085_s4 + $0x2] sm:$0x1] }
 0xbec   :  { %v3064_v4 = vrot.slane %v3063_v17, 4  ;;  %v3073_v48 = vrot.slane %v3072_v49, 4 }
 0xbee   :  { %v3065_v24 = vadd.f32 %v3064_v4, %v3063_v17  ;;  %v3074_v26 = vadd.f32 %v3073_v48, %v3072_v49 }
 0xbf0   :  { %v3066_v29 = vrot.slane %v3065_v24, 2  ;;  %v3075_v33 = vrot.slane %v3074_v26, 2 }
 0xbf2   :  { %v3067_v13 = vadd.f32 %v3066_v29, %v3065_v24  ;;  %v3076_v57 = vadd.f32 %v3075_v33, %v3074_v26  ;;  %v3277_v52 = vpop.f32.mrf.mxu0  ;;  %v3189_v24 = vld [vmem:[%s12084_s3 + $0x3] sm:$0x1] }
 0xbf3   :  { %v9890_v54 = vmul.f32 0.0078125, %v3277_v52 }
 0xbf4   :  { %v3068_v28 = vrot.slane %v3067_v13, 1  ;;  %v3077_v34 = vrot.slane %v3076_v57, 1  ;;  %v7613_v36 = vpop.f32.mrf.mxu0 }
 0xbf5   :  { %v3285_v40 = vrot.slane %v9890_v54, %v8386_v59 }
 0xbf6   :  { %v3069_v10 = vadd.f32 %v3068_v28, %v3067_v13  ;;  %v3078_v35 = vadd.f32 %v3077_v34, %v3076_v57  ;;  %v3190_v13 = vld [vmem:[%s12085_s4 + $0x3] sm:$0x1] }
 0xbf7   :  { %3287 = vrot.lane.b32.xlu1 %v3285_v40, %s7923_s29  ;;  %v9945_v40 = vld [vmem:[%s12086_s5 + $0x258] sm:$0xff] }
 0xbf8   :  { %v3079_v43 = vadd.f32 %v3078_v35, %v3069_v10  ;;  %v9950_v10 = vld [vmem:[%s12086_s5 + $0x2f8] sm:$0xff] }
 0xbf9   :  { %3493 = vmatpush1.msra.mxu0 %v9950_v10 }
 0xbfa   :  { %7593 = vmatmul.mubr.msk.f32.vlgmr.msra.gmra.mxu1 %vm722_vm5, %v3079_v43  ;;  %3494 = vmatprep.subr.mxu0 %v9903_v1 }
 0xbfb   :  { %7615 = vmatpush3.msra.mxu1 %v9785_v47  ;;  %7630 = vmatprep.mubr.msk.f32.mxu1 %vm7922_vm3, %v9224_v22 }
 0xbfc   :  { %7616 = vmatprep.subr.mxu1 %v9224_v22 }
 0xbfd   :  { %7617 = vmatpush3.msra.mxu1 %v9795_v18 }
 0xbfe   :  { %7618 = vmatprep.subr.mxu1 %v9224_v22 }
 0xbff   :  { %7619 = vmatpush3.msra.mxu1 %v9804_v39 }
 0xc00   :  { %7620 = vmatprep.subr.mxu1 %v9903_v1 }
 0xc01   :  { %7621 = vmatpush3.msra.mxu1 %v9813_v19 }
 0xc02   :  { %7622 = vmatprep.subr.mxu1 %v9903_v1 }
 0xc03   :  { %7623 = vmatpush3.msra.mxu1 %v9822_v50 }
 0xc04   :  { %7624 = vmatprep.subr.mxu1 %v9903_v1 }
 0xc05   :  { %7625 = vmatpush3.msra.mxu1 %v9831_v55 }
 0xc06   :  { %7626 = vmatprep.subr.mxu1 %v9903_v1 }
 0xc07   :  { %7627 = vmatpush3.msra.mxu1 %v9840_v60 }
 0xc08   :  { %7628 = vmatprep.subr.mxu1 %v9903_v1 }
 0xc09   :  { %7629 = vmatpush3.msra.mxu1 %v9849_v0 }
 0xc0a   :  { %3565 = vmatprep.subr.mxu1 %v9903_v1 }
 0xc69   :  { %v3288_v22 = vpop.permute.xlu1 %3287 }
 0xc6a   :  { %v3290_v47 = vsub.f32 %v8349_v63, %v3288_v22  ;;  %v3299_v18 = vsub.f32 %v8357_v21, %v3288_v22 }
 0xc6c   :  { %v3291_v39 = vmul.f32 %v3290_v47, %v3290_v47  ;;  %v3300_v19 = vmul.f32 %v3299_v18, %v3299_v18  ;;  %v9963_v47 = vld [vmem:[%s12086_s5 + $0x2f0] sm:$0xff]  ;;  %v9972_v18 = vld [vmem:[%s12086_s5 + $0x248] sm:$0xff] }
 0xc6d   :  { %3495 = vmatpush1.msra.mxu0 %v9963_v47 }
 0xc6e   :  { %v3292_v50 = vsel %vm950_vm4, %v3291_v39, 0.0  ;;  %v3301_v25 = vsel %vm950_vm4, %v3300_v19, 0.0  ;;  %v9977_v39 = vld [vmem:[%s12086_s5 + $0x2e8] sm:$0xff]  ;;  %3496 = vmatprep.subr.mxu0 %v9903_v1 }
 0xc6f   :  { %v3293_v55 = vrot.slane %v3292_v50, 4  ;;  %v3302_v31 = vrot.slane %v3301_v25, 4  ;;  %3497 = vmatpush1.msra.mxu0 %v9977_v39 }
 0xc70   :  { %3498 = vmatprep.subr.mxu0 %v9903_v1 }
 0xc71   :  { %v3294_v60 = vadd.f32 %v3293_v55, %v3292_v50  ;;  %v3303_v51 = vadd.f32 %v3302_v31, %v3301_v25  ;;  %v9986_v50 = vld [vmem:[%s12086_s5 + $0x240] sm:$0xff]  ;;  %v10000_v55 = vld [vmem:[%s12086_s5 + $0x238] sm:$0xff] }
 0xc72   :  { %v9993_v25 = vld [vmem:[%s12086_s5 + $0x2e0] sm:$0xff]  ;;  %v10007_v31 = vld [vmem:[%s12086_s5 + $0x2d8] sm:$0xff] }
 0xc73   :  { %v3295_v53 = vrot.slane %v3294_v60, 2  ;;  %v3304_v27 = vrot.slane %v3303_v51, 2  ;;  %3499 = vmatpush1.msra.mxu0 %v9993_v25 }
 0xc74   :  { %3500 = vmatprep.subr.mxu0 %v9903_v1 }
 0xc75   :  { %v3296_v0 = vadd.f32 %v3295_v53, %v3294_v60  ;;  %v3305_v32 = vadd.f32 %v3304_v27, %v3303_v51  ;;  %v10014_v60 = vld [vmem:[%s12086_s5 + $0x230] sm:$0xff]  ;;  %3501 = vmatpush1.msra.mxu0 %v10007_v31  ;;  %v10028_v53 = vld [vmem:[%s12086_s5 + $0x228] sm:$0xff] }
 0xc76   :  { %v10021_v51 = vld [vmem:[%s12086_s5 + $0x2d0] sm:$0xff]  ;;  %3502 = vmatprep.subr.mxu0 %v9903_v1  ;;  %v10035_v27 = vld [vmem:[%s12086_s5 + $0x2c8] sm:$0xff] }
 0xc77   :  { %v3297_v3 = vrot.slane %v3296_v0, 1  ;;  %v3306_v38 = vrot.slane %v3305_v32, 1  ;;  %3503 = vmatpush1.msra.mxu0 %v10021_v51 }
 0xc78   :  { %3504 = vmatprep.subr.mxu0 %v9903_v1 }
 0xc79   :  { %v3298_v56 = vadd.f32 %v3297_v3, %v3296_v0  ;;  %v3307_v16 = vadd.f32 %v3306_v38, %v3305_v32  ;;  %v10042_v0 = vld [vmem:[%s12086_s5 + $0x220] sm:$0xff]  ;;  %3505 = vmatpush1.msra.mxu0 %v10035_v27  ;;  %v10056_v3 = vld [vmem:[%s12086_s5 + $0x218] sm:$0xff] }
 0xc7a   :  { %v10049_v32 = vld [vmem:[%s12086_s5 + $0x2c0] sm:$0xff]  ;;  %3506 = vmatprep.subr.mxu0 %v9903_v1  ;;  %v10063_v38 = vld [vmem:[%s12086_s5 + $0x2b8] sm:$0xff] }
 0xc7b   :  { %v3308_v2 = vadd.f32 %v3307_v16, %v3298_v56  ;;  %3507 = vmatpush1.msra.mxu0 %v10049_v32  ;;  %v10070_v56 = vld [vmem:[%s12086_s5 + $0x210] sm:$0xff] }
 0xc7c   :  { %3508 = vmatprep.subr.mxu0 %v9903_v1  ;;  %v10077_v16 = vld [vmem:[%s12086_s5 + $0x2b0] sm:$0xff] }
 0xc7d   :  { %3310 = vrot.lane.b32.xlu0 %v3308_v2, %s7923_s29  ;;  %3509 = vmatpush1.msra.mxu0 %v10063_v38  ;;  %v10084_v2 = vld [vmem:[%s12086_s5 + $0x208] sm:$0xff] }
 0xc7e   :  { %3510 = vmatprep.subr.mxu0 %v9903_v1 }
 0xc7f   :  { %3511 = vmatpush1.msra.mxu0 %v10077_v16 }
 0xc80   :  { %3512 = vmatprep.subr.mxu0 %v9903_v1 }
 0xcba   :  { %v3149_v7 = vpop.f32.mrf.mxu1 }
 0xcbb   :  { %v3153_v14 = vmul.f32 0.0078125, %v3149_v7  ;;  %v10091_v7 = vld [vmem:[%s12086_s5 + $0x2a8] sm:$0xff] }
 0xcbc   :  { %v7594_v6 = vpop.f32.mrf.mxu1  ;;  %3513 = vmatpush1.msra.mxu0 %v10091_v7 }
 0xcbd   :  { %v3154_v42 = vadd.f32 1e-05, %v3153_v14  ;;  %v10098_v6 = vld [vmem:[%s12086_s5 + $0x200] sm:$0xff]  ;;  %v10112_v14 = vld [vmem:[%s12086_s5 + $0x1f8] sm:$0xff]  ;;  %3514 = vmatprep.subr.mxu0 %v9903_v1 }
 0xcbf   :  { %7863 = vrsqrt.f32 %v3154_v42  ;;  %v10119_v42 = vld [vmem:[%s12086_s5 + $0x298] sm:$0xff] }
 0xccc   :  { %v7864_v8 = vpop.eup %7863 }
 0xccd   :  { %v3156_v12 = vmul.f32 %v7864_v8, %v2966_v9  ;;  %v10126_v8 = vld [vmem:[%s12086_s5 + $0x1f0] sm:$0xff] }
 0xcce   :  { %v10133_v9 = vld [vmem:[%s12086_s5 + $0x290] sm:$0xff] }
 0xccf   :  { %v3157_v45 = vmul.f32 %v3156_v12, %v9882_v44  ;;  %v3162_v49 = vrot.slane %v3156_v12, %v8386_v59  ;;  %v10159_v12 = vld [vmem:[%s12086_s5 + $0x288] sm:$0xff] }
 0xcd1   :  { %v3158_v17 = vsub.f32 %v2967_v37, %v3157_v45  ;;  %v3163_v48 = vmul.f32 %v3162_v49, %v8349_v63  ;;  %v3177_v44 = vmul.f32 %v3162_v49, %v8357_v21  ;;  %v10176_v45 = vld [vmem:[%s12086_s5 + $0x270] sm:$0xff]  ;;  %v10192_v49 = vld [vmem:[%s12086_s5 + $0x268] sm:$0xff] }
 0xcd3   :  { %v3167_v4 = vrot.slane %v3158_v17, %v8386_v59  ;;  %v10186_v17 = vld [vmem:[%s12086_s5 + $0x318] sm:$0xff] }
 0xcd5   :  { %v3168_v26 = vadd.f32 %v3167_v4, %v3163_v48  ;;  %v3178_v34 = vadd.f32 %v3177_v44, %v3167_v4  ;;  %v10197_v4 = vld [vmem:[%s12086_s5 + $0x310] sm:$0xff]  ;;  %v10213_v44 = vld [vmem:[%s12086_s5 + $0x308] sm:$0xff] }
 0xcd7   :  { %v3169_v52 = vmax.f32 %v3168_v26, 0.0  ;;  %v3179_v22 = vmax.f32 %v3178_v34, 0.0  ;;  %v10206_v26 = vld [vmem:[%s12086_s5 + $0x260] sm:$0xff] }
 0xcd8   :  { %v10226_v34 = vld [vmem:[%s12086_s5 + $0x300] sm:$0xff] }
 0xcd9   :  { %v3171_v35 = vrot.slane %v3169_v52, 7  ;;  %v3181_v19 = vrot.slane %v3179_v22, 5 }
 0xcef   :  { %v3311_v20 = vpop.permute.xlu0 %3310 }
 0xcf0   :  { %7631 = vmatmul.mubr.msk.f32.vlgmr.msra.gmra.mxu1 %vm722_vm5, %v3311_v20  ;;  %v10105_v20 = vld [vmem:[%s12086_s5 + $0x2a0] sm:$0xff] }
 0xcf1   :  { %3566 = vmatpush1.msra.mxu1 %v9945_v40  ;;  %3515 = vmatpush1.msra.mxu0 %v10105_v20 }
 0xcf2   :  { %3567 = vmatprep.subr.mxu1 %v9903_v1  ;;  %3516 = vmatprep.subr.mxu0 %v9903_v1 }
 0xcf3   :  { %3517 = vmatpush1.msra.mxu0 %v10119_v42 }
 0xcf4   :  { %3518 = vmatprep.subr.mxu0 %v9903_v1 }
 0xcf5   :  { %3519 = vmatpush1.msra.mxu0 %v10133_v9 }
 0xcf6   :  { %3520 = vmatprep.subr.mxu0 %v9903_v1 }
 0xcf7   :  { %3521 = vmatpush1.msra.mxu0 %v10159_v12 }
 0xcf8   :  { %3522 = vmatprep.subr.mxu0 %v9903_v1 }
 0xdb0   :  { %v3380_v41 = vpop.f32.mrf.mxu1 }
 0xdb1   :  { %v3384_v61 = vmul.f32 0.0078125, %v3380_v41  ;;  %v10140_v41 = vld [vmem:[%s12086_s5 + $0x1e8] sm:$0xff] }
 0xdb2   :  { %v7632_v46 = vpop.f32.mrf.mxu1 }
 0xdb3   :  { %v3385_v62 = vadd.f32 1e-05, %v3384_v61  ;;  %v10149_v61 = vld [vmem:[%s12086_s5 + $0x1e0] sm:$0xff]  ;;  %v10164_v46 = vld [vmem:[%s12086_s5 + $0x278] sm:$0xff] }
 0xdb5   :  { %7865 = vrsqrt.f32 %v3385_v62  ;;  %v10169_v62 = vld [vmem:[%s12086_s5 + $0x280] sm:$0xff] }
 0xdb6   :  { %3523 = vmatpush1.msra.mxu0 %v10169_v62 }
 0xdb7   :  { %3548 = vmatprep.subr.mxu0 %v9903_v1 }
 0xdb8   :  { %3549 = vmatpush2.msra.mxu0 %v10186_v17 }
 0xdb9   :  { %3550 = vmatprep.subr.mxu0 %v9903_v1 }
 0xdba   :  { %3551 = vmatpush2.msra.mxu0 %v10197_v4 }
 0xdbb   :  { %3552 = vmatprep.subr.mxu0 %v9903_v1 }
 0xdbc   :  { %3553 = vmatpush2.msra.mxu0 %v10213_v44 }
 0xdbd   :  { %3554 = vmatprep.subr.mxu0 %v9903_v1 }
 0xdbe   :  { %3555 = vmatpush2.msra.mxu0 %v10226_v34 }
 0xdbf   :  { %3673 = vmatprep.subr.mxu0 %v9903_v1 }
 0xdc2   :  { %v7866_v29 = vpop.eup %7865 }
 0xdc3   :  { %v3387_v33 = vmul.f32 %v7866_v29, %v3189_v24 }
 0xdc5   :  { %v3393_v57 = vrot.slane %v3387_v33, %v8386_v59  ;;  %v3388_v28 = vmul.f32 %v3387_v33, %v9890_v54  ;;  %v9957_v54 = vld [vmem:[%s12086_s5 + $0x250] sm:$0xff] }
 0xdc6   :  { %3568 = vmatpush1.msra.mxu1 %v9957_v54 }
 0xdc7   :  { %3395 = vrot.lane.b32.xlu1 %v3393_v57, %s7923_s29  ;;  %v3389_v36 = vsub.f32 %v3190_v13, %v3388_v28  ;;  %3569 = vmatprep.subr.mxu1 %v9903_v1 }
 0xdc8   :  { %3570 = vmatpush1.msra.mxu1 %v9972_v18 }
 0xdc9   :  { %v3402_v43 = vrot.slane %v3389_v36, %v8386_v59  ;;  %3571 = vmatprep.subr.mxu1 %v9903_v1 }
 0xdca   :  { %3572 = vmatpush1.msra.mxu1 %v9986_v50 }
 0xdcb   :  { %3172 = vrot.lane.b32.xlu1 %v3171_v35, %s7924_s1  ;;  %3404 = vrot.lane.b32.xlu0 %v3402_v43, %s7923_s29 }
 0xdcc   :  { %3573 = vmatprep.subr.mxu1 %v9903_v1 }
 0xdcd   :  { %3574 = vmatpush1.msra.mxu1 %v10000_v55 }
 0xdce   :  { %3575 = vmatprep.subr.mxu1 %v9903_v1 }
 0xdcf   :  { %3182 = vrot.lane.b32.xlu1 %v3181_v19, %s7924_s1  ;;  %3576 = vmatpush1.msra.mxu1 %v10014_v60 }
 0xdd0   :  { %3577 = vmatprep.subr.mxu1 %v9903_v1 }
 0xdd1   :  { %3578 = vmatpush1.msra.mxu1 %v10028_v53 }
 0xdd2   :  { %3579 = vmatprep.subr.mxu1 %v9903_v1 }
 0xdd3   :  { %3580 = vmatpush1.msra.mxu1 %v10042_v0 }
 0xdd4   :  { %3581 = vmatprep.subr.mxu1 %v9903_v1 }
 0xdd5   :  { %3582 = vmatpush1.msra.mxu1 %v10056_v3 }
 0xdd6   :  { %3583 = vmatprep.subr.mxu1 %v9903_v1 }
 0xdd7   :  { %3584 = vmatpush1.msra.mxu1 %v10070_v56 }
 0xdd8   :  { %3585 = vmatprep.subr.mxu1 %v9903_v1 }
 0xdd9   :  { %3586 = vmatpush1.msra.mxu1 %v10084_v2 }
 0xdda   :  { %3587 = vmatprep.subr.mxu1 %v9903_v1 }
 0xddb   :  { %3588 = vmatpush1.msra.mxu1 %v10098_v6 }
 0xddc   :  { %3589 = vmatprep.subr.mxu1 %v9903_v1 }
 0xddd   :  { %3590 = vmatpush1.msra.mxu1 %v10112_v14 }
 0xdde   :  { %3591 = vmatprep.subr.mxu1 %v9903_v1 }
 0xddf   :  { %3592 = vmatpush1.msra.mxu1 %v10126_v8 }
 0xde0   :  { %3593 = vmatprep.subr.mxu1 %v9903_v1 }
 0xde1   :  { %3594 = vmatpush1.msra.mxu1 %v10140_v41 }
 0xde2   :  { %3595 = vmatprep.subr.mxu1 %v9903_v1 }
 0xde3   :  { %3596 = vmatpush1.msra.mxu1 %v10149_v61 }
 0xde4   :  { %3621 = vmatprep.subr.mxu1 %v9903_v1 }
 0xde5   :  { %3622 = vmatpush2.msra.mxu1 %v10164_v46 }
 0xde6   :  { %3623 = vmatprep.subr.mxu1 %v9903_v1 }
 0xde7   :  { %3624 = vmatpush2.msra.mxu1 %v10176_v45 }
 0xde8   :  { %3625 = vmatprep.subr.mxu1 %v9903_v1 }
 0xde9   :  { %3626 = vmatpush2.msra.mxu1 %v10192_v49 }
 0xdea   :  { %3627 = vmatprep.subr.mxu1 %v9903_v1 }
 0xdeb   :  { %3628 = vmatpush2.msra.mxu1 %v10206_v26 }
 0xdec   :  { %3812 = vmatprep.subr.mxu1 %v9903_v1 }
 0xe39   :  { %v3396_v37 = vpop.permute.xlu1 %3395 }
 0xe3a   :  { %v3398_v48 = vmul.f32 %v3396_v37, %v8349_v63  ;;  %v3418_v24 = vmul.f32 %v3396_v37, %v8357_v21 }
 0xe3d   :  { %v3173_v29 = vpop.permute.xlu1 %3172  ;;  %v3405_v33 = vpop.permute.xlu0 %3404 }
 0xe3e   :  { %3175 = vst.msk [vmem:[#allocation6] sm:$0xfe] %vm930_vm8, %v3173_v29  ;;  %v3407_v13 = vadd.f32 %v3405_v33, %v3398_v48  ;;  %v3419_v57 = vadd.f32 %v3418_v24, %v3405_v33 }
 0xe3f   :  { %3176 = vst.msk [vmem:[#allocation6 + $0x10] sm:$0x1] %vm12127_vm11, %v3173_v29  ;;  %vm12130_vm11 = vcmask 188416  }
 0xe40   :  { %v3408_v52 = vmax.f32 %v3407_v13, 0.0  ;;  %v3420_v35 = vmax.f32 %v3419_v57, 0.0 }
 0xe41   :  { %v3183_v28 = vpop.permute.xlu1 %3182 }
 0xe42   :  { %v3410_v36 = vrot.slane %v3408_v52, 7  ;;  %3185 = vst.msk [vmem:[#allocation6 + $0x10] sm:$0xf8] %vm12128_vm9, %v3183_v28  ;;  %v3422_v43 = vrot.slane %v3420_v35, 5  ;;  %vm12131_vm9 = vcmask 1043136  }
 0xe43   :  { %3186 = vst.msk [vmem:[#allocation6 + $0x20] sm:$0x7] %vm12129_vm10, %v3183_v28  ;;  %vm12132_vm10 = vcmask 190464  }
 0xe44   :  { %3411 = vrot.lane.b32.xlu0 %v3410_v36, %s7925_s20 }
 0xe48   :  { %3423 = vrot.lane.b32.xlu0 %v3422_v43, %s7925_s20 }
 0xeb6   :  { %v3412_v22 = vpop.permute.xlu0 %3411 }
 0xeb7   :  { %3414 = vst.msk [vmem:[#allocation6] sm:$0xfe] %vm1174_vm12, %v3412_v22 }
 0xeb8   :  { %3415 = vst.msk [vmem:[#allocation6 + $0x8] sm:$0xfe] %vm1176_vm13, %v3412_v22 }
 0xeb9   :  { %3416 = vst.msk [vmem:[#allocation6 + $0x10] sm:$0x1] %vm1178_vm14, %v3412_v22 }
 0xeba   :  { %3417 = vst.msk [vmem:[#allocation6 + $0x18] sm:$0x1] %vm12130_vm11, %v3412_v22  ;;  %v3424_v19 = vpop.permute.xlu0 %3423  ;;  %vm12133_vm11 = vcmask 1046528  }
 0xebb   :  { %3426 = vst.msk [vmem:[#allocation6 + $0x10] sm:$0xf8] %vm1190_vm0, %v3424_v19 }
 0xebc   :  { %3427 = vst.msk [vmem:[#allocation6 + $0x18] sm:$0xf8] %vm1192_vm1, %v3424_v19 }
 0xebd   :  { %3428 = vst.msk [vmem:[#allocation6 + $0x20] sm:$0x7] %vm12131_vm9, %v3424_v19  ;;  %vm12134_vm9 = vmmov %vm12133_vm11 }
 0xebe   :  { %3429 = vst.msk [vmem:[#allocation6 + $0x28] sm:$0x7] %vm12132_vm10, %v3424_v19  ;;  %v3431_v48 = vld [vmem:[#allocation6] sm:$0xff]  ;;  %vm12139_vm10 = vcmask 188416  }
 0xebf   :  { %v3432_v37 = vld [vmem:[#allocation6 + $0x8] sm:$0xff]  ;;  %v3454_v13 = vld [vmem:[#allocation6] sm:$0xfe] }
 0xec0   :  { %v3455_v24 = vld [vmem:[#allocation6 + $0x8] sm:$0xfe]  ;;  %6696 = vmatprep.mubr.msk.f32.mxu1 %vm94_vm6, %v3432_v37  ;;  %v3456_v52 = vld [vmem:[#allocation6 + $0x10] sm:$0x1]  ;;  %v3483_v28 = vrot.slane %v3454_v13, 1 }
 0xec1   :  { %v3457_v29 = vld [vmem:[#allocation6 + $0x18] sm:$0x1]  ;;  %v3486_v33 = vrot.slane %v3455_v24, 1  ;;  %3630 = vmatmul.mubr.f32.vlgmr.msra.gmra.mxu1 %v3431_v48  ;;  %v3636_v36 = vld [vmem:[#allocation6 + $0x8] sm:$0xfc]  ;;  %v3484_v35 = vrot.slane %v3456_v52, 1 }
 0xec2   :  { %v3487_v57 = vrot.slane %v3457_v29, 1  ;;  %3813 = vmatpush1.msra.mxu1 %v9950_v10  ;;  %v3638_v43 = vld [vmem:[#allocation6 + $0x18] sm:$0x3]  ;;  %v3667_v22 = vrot.slane %v3636_v36, 2  ;;  %v10249_v37 = vld [vmem:[%s12086_s5 + $0x398] sm:$0xff] }
 0xec3   :  { %3814 = vmatprep.subr.mxu1 %v9903_v1  ;;  %v3668_v24 = vrot.slane %v3638_v43, 2  ;;  %v3776_v48 = vld [vmem:[#allocation6 + $0x18] sm:$0xf8]  ;;  %v3485_v10 = vsel %vm12134_vm9, %v3483_v28, %v3484_v35  ;;  %v10269_v28 = vld [vmem:[%s12086_s5 + $0x388] sm:$0xff]  ;;  %v3775_v35 = vld [vmem:[#allocation6 + $0x10] sm:$0xf8] }
 0xec4   :  { %v3488_v19 = vsel %vm12133_vm11, %v3486_v33, %v3487_v57  ;;  %3815 = vmatpush1.msra.mxu1 %v9963_v47  ;;  %v3806_v13 = vrot.slane %v3776_v48, 3  ;;  %v10259_v57 = vld [vmem:[%s12086_s5 + $0x390] sm:$0xff]  ;;  %v10278_v36 = vld [vmem:[%s12086_s5 + $0x380] sm:$0xff]  ;;  %v3777_v43 = vld [vmem:[#allocation6 + $0x20] sm:$0x7]  ;;  %vm12140_vm11 = vcmask 1043136  }
 0xec5   :  { %v3778_v29 = vld [vmem:[#allocation6 + $0x28] sm:$0x7]  ;;  %6695 = vmatprep.mubr.msk.f32.mxu0 %vm94_vm6, %v3488_v19  ;;  %3816 = vmatprep.subr.mxu1 %v9903_v1  ;;  %v3669_v33 = vsel %vm1432_vm2, %v3667_v22, %v3668_v24  ;;  %v3966_v22 = vld [vmem:[#allocation6 + $0x18] sm:$0xf0]  ;;  %v3803_v24 = vrot.slane %v3775_v35, 3  ;;  %v3804_v48 = vrot.slane %v3777_v43, 3 }
 0xec6   :  { %v3807_v52 = vrot.slane %v3778_v29, 3  ;;  %3557 = vmatmul.mubr.f32.vlgmr.msra.gmra.mxu0 %v3485_v10  ;;  %3817 = vmatpush1.msra.mxu1 %v9977_v39  ;;  %v10287_v39 = vld [vmem:[%s12086_s5 + $0x378] sm:$0xff]  ;;  %v3968_v19 = vld [vmem:[#allocation6 + $0x28] sm:$0xf]  ;;  %v10413_v10 = vld [vmem:[%s12086_s5 + $0x3a8] sm:$0xff]  ;;  %vm12141_vm9 = vcmask 190464  }
 0xec7   :  { %3674 = vmatpush1.msra.mxu0 %v10249_v37  ;;  %6717 = vmatprep.mubr.msk.f32.mxu0 %vm94_vm6, %v3669_v33  ;;  %v3637_v29 = vld [vmem:[#allocation6 + $0x10] sm:$0x3]  ;;  %v3754_v33 = vld [vmem:[#allocation6 + $0x28] sm:$0x3]  ;;  %v3805_v43 = vsel %vm1572_vm7, %v3803_v24, %v3804_v48 }
 0xec8   :  { %3675 = vmatprep.subr.mxu0 %v9903_v1  ;;  %v3808_v47 = vsel %vm1572_vm7, %v3806_v13, %v3807_v52  ;;  %3818 = vmatprep.subr.mxu1 %v9903_v1  ;;  %v3997_v13 = vrot.slane %v3968_v19, 4  ;;  %v3752_v52 = vld [vmem:[#allocation6 + $0x18] sm:$0xfc]  ;;  %v3665_v35 = vrot.slane %v3637_v29, 2  ;;  %v3890_v19 = vrot.slane %v3754_v33, 2 }
 0xec9   :  { %3676 = vmatpush1.msra.mxu0 %v10259_v57  ;;  %3819 = vmatpush1.msra.mxu1 %v9993_v25  ;;  %v10296_v25 = vld [vmem:[%s12086_s5 + $0x370] sm:$0xff] }
 0xeca   :  { %3677 = vmatprep.subr.mxu0 %v9903_v1  ;;  %6759 = vmatprep.mubr.msk.f32.mxu1 %vm94_vm6, %v3808_v47 }
 0xecb   :  { %3678 = vmatpush1.msra.mxu0 %v10269_v28  ;;  %3820 = vmatprep.subr.mxu1 %v9903_v1 }
 0xecc   :  { %3679 = vmatprep.subr.mxu0 %v9903_v1  ;;  %3821 = vmatpush1.msra.mxu1 %v10007_v31  ;;  %v10305_v31 = vld [vmem:[%s12086_s5 + $0x368] sm:$0xff] }
 0xecd   :  { %3680 = vmatpush1.msra.mxu0 %v10278_v36  ;;  %3822 = vmatprep.subr.mxu1 %v9903_v1 }
 0xece   :  { %3681 = vmatprep.subr.mxu0 %v9903_v1  ;;  %3823 = vmatpush1.msra.mxu1 %v10021_v51  ;;  %v10314_v51 = vld [vmem:[%s12086_s5 + $0x360] sm:$0xff] }
 0xecf   :  { %3682 = vmatpush1.msra.mxu0 %v10287_v39  ;;  %3824 = vmatprep.subr.mxu1 %v9903_v1 }
 0xed0   :  { %3683 = vmatprep.subr.mxu0 %v9903_v1  ;;  %3825 = vmatpush1.msra.mxu1 %v10035_v27  ;;  %v10323_v27 = vld [vmem:[%s12086_s5 + $0x358] sm:$0xff] }
 0xed1   :  { %3684 = vmatpush1.msra.mxu0 %v10296_v25  ;;  %3826 = vmatprep.subr.mxu1 %v9903_v1 }
 0xed2   :  { %3685 = vmatprep.subr.mxu0 %v9903_v1  ;;  %3827 = vmatpush1.msra.mxu1 %v10049_v32  ;;  %v10332_v32 = vld [vmem:[%s12086_s5 + $0x350] sm:$0xff] }
 0xed3   :  { %3686 = vmatpush1.msra.mxu0 %v10305_v31  ;;  %3828 = vmatprep.subr.mxu1 %v9903_v1 }
 0xed4   :  { %3687 = vmatprep.subr.mxu0 %v9903_v1  ;;  %3829 = vmatpush1.msra.mxu1 %v10063_v38  ;;  %v10341_v38 = vld [vmem:[%s12086_s5 + $0x348] sm:$0xff] }
 0xed5   :  { %3688 = vmatpush1.msra.mxu0 %v10314_v51  ;;  %3830 = vmatprep.subr.mxu1 %v9903_v1 }
 0xed6   :  { %3689 = vmatprep.subr.mxu0 %v9903_v1  ;;  %3831 = vmatpush1.msra.mxu1 %v10077_v16  ;;  %v10350_v16 = vld [vmem:[%s12086_s5 + $0x340] sm:$0xff] }
 0xed7   :  { %3690 = vmatpush1.msra.mxu0 %v10323_v27  ;;  %3832 = vmatprep.subr.mxu1 %v9903_v1 }
 0xed8   :  { %3691 = vmatprep.subr.mxu0 %v9903_v1  ;;  %3833 = vmatpush1.msra.mxu1 %v10091_v7  ;;  %v10359_v7 = vld [vmem:[%s12086_s5 + $0x338] sm:$0xff] }
 0xed9   :  { %3692 = vmatpush1.msra.mxu0 %v10332_v32  ;;  %3834 = vmatprep.subr.mxu1 %v9903_v1 }
 0xeda   :  { %3693 = vmatprep.subr.mxu0 %v9903_v1  ;;  %3835 = vmatpush1.msra.mxu1 %v10105_v20  ;;  %v10368_v20 = vld [vmem:[%s12086_s5 + $0x330] sm:$0xff] }
 0xedb   :  { %3694 = vmatpush1.msra.mxu0 %v10341_v38  ;;  %3836 = vmatprep.subr.mxu1 %v9903_v1 }
 0xedc   :  { %3695 = vmatprep.subr.mxu0 %v9903_v1  ;;  %3837 = vmatpush1.msra.mxu1 %v10119_v42  ;;  %v10377_v42 = vld [vmem:[%s12086_s5 + $0x328] sm:$0xff] }
 0xedd   :  { %3696 = vmatpush1.msra.mxu0 %v10350_v16  ;;  %3838 = vmatprep.subr.mxu1 %v9903_v1 }
 0xede   :  { %3697 = vmatprep.subr.mxu0 %v9903_v1  ;;  %3839 = vmatpush1.msra.mxu1 %v10133_v9  ;;  %v10386_v9 = vld [vmem:[%s12086_s5 + $0x320] sm:$0xff] }
 0xedf   :  { %3698 = vmatpush1.msra.mxu0 %v10359_v7  ;;  %3840 = vmatprep.subr.mxu1 %v9903_v1 }
 0xee0   :  { %3699 = vmatprep.subr.mxu0 %v9903_v1  ;;  %3841 = vmatpush1.msra.mxu1 %v10159_v12  ;;  %v10395_v12 = vld [vmem:[%s12086_s5 + $0x3b8] sm:$0xff] }
 0xee1   :  { %3700 = vmatpush1.msra.mxu0 %v10368_v20  ;;  %3842 = vmatprep.subr.mxu1 %v9903_v1 }
 0xee2   :  { %3701 = vmatprep.subr.mxu0 %v9903_v1  ;;  %3843 = vmatpush1.msra.mxu1 %v10169_v62  ;;  %v10404_v62 = vld [vmem:[%s12086_s5 + $0x3b0] sm:$0xff] }
 0xee3   :  { %3702 = vmatpush1.msra.mxu0 %v10377_v42  ;;  %3868 = vmatprep.subr.mxu1 %v9903_v1 }
 0xee4   :  { %3703 = vmatprep.subr.mxu0 %v9903_v1  ;;  %3869 = vmatpush2.msra.mxu1 %v10186_v17  ;;  %v3635_v17 = vld [vmem:[#allocation6] sm:$0xfc] }
 0xee5   :  { %3704 = vmatpush1.msra.mxu0 %v10386_v9  ;;  %3870 = vmatprep.subr.mxu1 %v9903_v1  ;;  %v3664_v47 = vrot.slane %v3635_v17, 2 }
 0xee6   :  { %3729 = vmatprep.subr.mxu0 %v9903_v1  ;;  %3871 = vmatpush2.msra.mxu1 %v10197_v4  ;;  %v3996_v4 = vrot.slane %v3966_v22, 4  ;;  %v3889_v22 = vrot.slane %v3752_v52, 2 }
 0xee7   :  { %3730 = vmatpush2.msra.mxu0 %v10395_v12  ;;  %3872 = vmatprep.subr.mxu1 %v9903_v1  ;;  %v3666_v24 = vsel %vm1432_vm2, %v3664_v47, %v3665_v35 }
 0xee8   :  { %3731 = vmatprep.subr.mxu0 %v9903_v1  ;;  %3873 = vmatpush2.msra.mxu1 %v10213_v44  ;;  %v10425_v44 = vld [vmem:[%s12086_s5 + $0x3a0] sm:$0xff]  ;;  %v3891_v48 = vsel %vm1432_vm2, %v3889_v22, %v3890_v19 }
 0xee9   :  { %3732 = vmatpush2.msra.mxu0 %v10404_v62  ;;  %3874 = vmatprep.subr.mxu1 %v9903_v1 }
 0xeea   :  { %3733 = vmatprep.subr.mxu0 %v9903_v1  ;;  %3875 = vmatpush2.msra.mxu1 %v10226_v34  ;;  %v3998_v34 = vsel %vm1763_vm15, %v3996_v4, %v3997_v13 }
 0xeeb   :  { %3734 = vmatpush2.msra.mxu0 %v10413_v10  ;;  %3877 = vmatmul.mubr.f32.vlgmr.msra.gmra.mxu1 %v3805_v43 }
 0xeec   :  { %4002 = vmatprep.subr.mxu1 %v9903_v1  ;;  %3735 = vmatprep.subr.mxu0 %v9903_v1 }
 0xeed   :  { %4003 = vmatpush1.msra.mxu1 %v10249_v37  ;;  %6781 = vmatprep.mubr.msk.f32.mxu1 %vm94_vm6, %v3998_v34 }
 0xeee   :  { %3736 = vmatpush2.msra.mxu0 %v10425_v44  ;;  %4004 = vmatprep.subr.mxu1 %v9903_v1 }
 0xeef   :  { %3738 = vmatmul.mubr.f32.vlgmr.msra.gmra.mxu0 %v3666_v24  ;;  %3895 = vmatprep.subr.mxu0 %v9903_v1 }
 0xef0   :  { %4005 = vmatpush1.msra.mxu1 %v10259_v57  ;;  %3896 = vmatpush1.msra.mxu0 %v9945_v40  ;;  %v3965_v40 = vld [vmem:[#allocation6 + $0x10] sm:$0xf0] }
 0xef1   :  { %6760 = vmatprep.mubr.msk.f32.mxu0 %vm94_vm6, %v3891_v48  ;;  %4006 = vmatprep.subr.mxu1 %v9903_v1 }
 0xef2   :  { %3897 = vmatprep.subr.mxu0 %v9903_v1  ;;  %4007 = vmatpush1.msra.mxu1 %v10269_v28 }
 0xef3   :  { %3898 = vmatpush1.msra.mxu0 %v9957_v54  ;;  %4008 = vmatprep.subr.mxu1 %v9903_v1  ;;  %v3967_v54 = vld [vmem:[#allocation6 + $0x20] sm:$0xf] }
 0xef4   :  { %3899 = vmatprep.subr.mxu0 %v9903_v1  ;;  %4009 = vmatpush1.msra.mxu1 %v10278_v36 }
 0xef5   :  { %3900 = vmatpush1.msra.mxu0 %v9972_v18  ;;  %4010 = vmatprep.subr.mxu1 %v9903_v1  ;;  %v3751_v18 = vld [vmem:[#allocation6 + $0x10] sm:$0xfc] }
 0xef6   :  { %3901 = vmatprep.subr.mxu0 %v9903_v1  ;;  %4011 = vmatpush1.msra.mxu1 %v10287_v39 }
 0xef7   :  { %3902 = vmatpush1.msra.mxu0 %v9986_v50  ;;  %4012 = vmatprep.subr.mxu1 %v9903_v1  ;;  %v3753_v50 = vld [vmem:[#allocation6 + $0x20] sm:$0x3] }
 0xef8   :  { %3903 = vmatprep.subr.mxu0 %v9903_v1  ;;  %4013 = vmatpush1.msra.mxu1 %v10296_v25 }
 0xef9   :  { %3904 = vmatpush1.msra.mxu0 %v10000_v55  ;;  %4014 = vmatprep.subr.mxu1 %v9903_v1  ;;  %v3993_v55 = vrot.slane %v3965_v40, 4 }
 0xefa   :  { %3905 = vmatprep.subr.mxu0 %v9903_v1  ;;  %4015 = vmatpush1.msra.mxu1 %v10305_v31 }
 0xefb   :  { %3906 = vmatpush1.msra.mxu0 %v10014_v60  ;;  %4016 = vmatprep.subr.mxu1 %v9903_v1  ;;  %v3994_v60 = vrot.slane %v3967_v54, 4 }
 0xefc   :  { %3907 = vmatprep.subr.mxu0 %v9903_v1  ;;  %4017 = vmatpush1.msra.mxu1 %v10314_v51 }
 0xefd   :  { %3908 = vmatpush1.msra.mxu0 %v10028_v53  ;;  %4018 = vmatprep.subr.mxu1 %v9903_v1  ;;  %v3886_v53 = vrot.slane %v3751_v18, 2 }
 0xefe   :  { %3909 = vmatprep.subr.mxu0 %v9903_v1  ;;  %4019 = vmatpush1.msra.mxu1 %v10323_v27  ;;  %v6718_v27 = vld [vmem:[%s12087_s6 + $0x1] ss:$0 sm:$0xff] }
 0xeff   :  { %3910 = vmatpush1.msra.mxu0 %v10042_v0  ;;  %4020 = vmatprep.subr.mxu1 %v9903_v1  ;;  %v3887_v0 = vrot.slane %v3753_v50, 2 }
 0xf00   :  { %3911 = vmatprep.subr.mxu0 %v9903_v1  ;;  %4021 = vmatpush1.msra.mxu1 %v10332_v32 }
 0xf01   :  { %3912 = vmatpush1.msra.mxu0 %v10056_v3  ;;  %4022 = vmatprep.subr.mxu1 %v9903_v1  ;;  %v3995_v3 = vsel %vm1763_vm15, %v3993_v55, %v3994_v60 }
 0xf02   :  { %3913 = vmatprep.subr.mxu0 %v9903_v1  ;;  %4023 = vmatpush1.msra.mxu1 %v10341_v38 }
 0xf03   :  { %3914 = vmatpush1.msra.mxu0 %v10070_v56  ;;  %4024 = vmatprep.subr.mxu1 %v9903_v1  ;;  %v3888_v56 = vsel %vm1432_vm2, %v3886_v53, %v3887_v0 }
 0xf04   :  { %3915 = vmatprep.subr.mxu0 %v9903_v1  ;;  %4025 = vmatpush1.msra.mxu1 %v10350_v16 }
 0xf05   :  { %3916 = vmatpush1.msra.mxu0 %v10084_v2  ;;  %4026 = vmatprep.subr.mxu1 %v9903_v1  ;;  %v10521_v2 = vld [vmem:[%s12119_s26 + $0x38] sm:$0xff] }
 0xf06   :  { %3917 = vmatprep.subr.mxu0 %v9903_v1  ;;  %4027 = vmatpush1.msra.mxu1 %v10359_v7 }
 0xf07   :  { %3918 = vmatpush1.msra.mxu0 %v10098_v6  ;;  %4028 = vmatprep.subr.mxu1 %v9903_v1  ;;  %v10531_v6 = vld [vmem:[%s12119_s26 + $0x30] sm:$0xff] }
 0xf08   :  { %3919 = vmatprep.subr.mxu0 %v9903_v1  ;;  %4029 = vmatpush1.msra.mxu1 %v10368_v20 }
 0xf09   :  { %3920 = vmatpush1.msra.mxu0 %v10112_v14  ;;  %4030 = vmatprep.subr.mxu1 %v9903_v1  ;;  %v10540_v14 = vld [vmem:[%s12119_s26 + $0x28] sm:$0xff] }
 0xf0a   :  { %3921 = vmatprep.subr.mxu0 %v9903_v1  ;;  %4031 = vmatpush1.msra.mxu1 %v10377_v42 }
 0xf0b   :  { %3922 = vmatpush1.msra.mxu0 %v10126_v8  ;;  %4032 = vmatprep.subr.mxu1 %v9903_v1  ;;  %v10549_v8 = vld [vmem:[%s12119_s26 + $0x20] sm:$0xff] }
 0xf0c   :  { %3923 = vmatprep.subr.mxu0 %v9903_v1  ;;  %4033 = vmatpush1.msra.mxu1 %v10386_v9 }
 0xf0d   :  { %3924 = vmatpush1.msra.mxu0 %v10140_v41  ;;  %4058 = vmatprep.subr.mxu1 %v9903_v1  ;;  %v10558_v41 = vld [vmem:[%s12119_s26 + $0x18] sm:$0xff] }
 0xf0e   :  { %3925 = vmatprep.subr.mxu0 %v9903_v1  ;;  %4059 = vmatpush2.msra.mxu1 %v10395_v12 }
 0xf0f   :  { %3926 = vmatpush1.msra.mxu0 %v10149_v61  ;;  %4060 = vmatprep.subr.mxu1 %v9903_v1  ;;  %v10567_v61 = vld [vmem:[%s12119_s26 + $0x10] sm:$0xff] }
 0xf10   :  { %3951 = vmatprep.subr.mxu0 %v9903_v1  ;;  %4061 = vmatpush2.msra.mxu1 %v10404_v62 }
 0xf11   :  { %3952 = vmatpush2.msra.mxu0 %v10164_v46  ;;  %4062 = vmatprep.subr.mxu1 %v9903_v1  ;;  %v10576_v46 = vld [vmem:[%s12119_s26 + $0x8] sm:$0xff] }
 0xf12   :  { %3953 = vmatprep.subr.mxu0 %v9903_v1  ;;  %4063 = vmatpush2.msra.mxu1 %v10413_v10 }
 0xf13   :  { %3954 = vmatpush2.msra.mxu0 %v10176_v45  ;;  %4064 = vmatprep.subr.mxu1 %v9903_v1  ;;  %v10585_v45 = vld [vmem:[%s12119_s26] sm:$0xff] }
 0xf14   :  { %3955 = vmatprep.subr.mxu0 %v9903_v1  ;;  %4065 = vmatpush2.msra.mxu1 %v10425_v44 }
 0xf15   :  { %3956 = vmatpush2.msra.mxu0 %v10192_v49  ;;  %4067 = vmatmul.mubr.f32.vlgmr.msra.gmra.mxu1 %v3995_v3 }
 0xf16   :  { %3957 = vmatprep.subr.mxu0 %v9903_v1  ;;  %7652 = vmatprep.subr.mxu1 %v9903_v1 }
 0xf17   :  { %3958 = vmatpush2.msra.mxu0 %v10206_v26  ;;  %7653 = vmatpush3.msra.mxu1 %v10521_v2 }
 0xf18   :  { %3960 = vmatmul.mubr.f32.vlgmr.msra.gmra.mxu0 %v3888_v56  ;;  %7633 = vmatprep.subr.mxu0 %v9903_v1 }
 0xf19   :  { %7634 = vmatpush3.msra.mxu0 %v10521_v2  ;;  %7649 = vmatprep.mubr.msk.f32.mxu0 %vm7922_vm3, %v9903_v1 }
 0xf1a   :  { %7635 = vmatprep.subr.mxu0 %v9903_v1  ;;  %7654 = vmatprep.subr.mxu1 %v9903_v1 }
 0xf1b   :  { %7636 = vmatpush3.msra.mxu0 %v10531_v6  ;;  %7655 = vmatpush3.msra.mxu1 %v10531_v6 }
 0xf1c   :  { %7637 = vmatprep.subr.mxu0 %v9903_v1  ;;  %7656 = vmatprep.subr.mxu1 %v9903_v1 }
 0xf1d   :  { %7638 = vmatpush3.msra.mxu0 %v10540_v14  ;;  %7657 = vmatpush3.msra.mxu1 %v10540_v14 }
 0xf1e   :  { %7639 = vmatprep.subr.mxu0 %v9903_v1  ;;  %7658 = vmatprep.subr.mxu1 %v9903_v1 }
 0xf1f   :  { %7640 = vmatpush3.msra.mxu0 %v10549_v8  ;;  %7659 = vmatpush3.msra.mxu1 %v10549_v8 }
 0xf20   :  { %7641 = vmatprep.subr.mxu0 %v9903_v1  ;;  %7660 = vmatprep.subr.mxu1 %v9903_v1 }
 0xf21   :  { %7642 = vmatpush3.msra.mxu0 %v10558_v41  ;;  %7661 = vmatpush3.msra.mxu1 %v10558_v41 }
 0xf22   :  { %7643 = vmatprep.subr.mxu0 %v9903_v1  ;;  %7662 = vmatprep.subr.mxu1 %v9903_v1 }
 0xf23   :  { %7644 = vmatpush3.msra.mxu0 %v10567_v61  ;;  %7663 = vmatpush3.msra.mxu1 %v10567_v61 }
 0xf24   :  { %7645 = vmatprep.subr.mxu0 %v9903_v1  ;;  %7664 = vmatprep.subr.mxu1 %v9903_v1 }
 0xf25   :  { %7646 = vmatpush3.msra.mxu0 %v10576_v46  ;;  %7665 = vmatpush3.msra.mxu1 %v10576_v46 }
 0xf26   :  { %7647 = vmatprep.subr.mxu0 %v9903_v1  ;;  %7666 = vmatprep.subr.mxu1 %v9903_v1 }
 0xf27   :  { %7648 = vmatpush3.msra.mxu0 %v10585_v45  ;;  %7667 = vmatpush3.msra.mxu1 %v10585_v45 }
 0xf28   :  { %7671 = vmatprep.subr.mxu0 %v9903_v1  ;;  %7668 = vmatprep.mubr.msk.f32.mxu1 %vm7922_vm3, %v9903_v1 }
 0xf29   :  { %7690 = vmatprep.subr.mxu1 %v9903_v1 }
 0xf81   :  { %v3631_v49 = vpop.f32.mrf.mxu1 }
 0xf83   :  { %v3633_v26 = vpop.f32.mrf.mxu1 }
 0xf86   :  { %v3558_v37 = vpop.f32.mrf.mxu0 }
 0xf87   :  { %v3632_v57 = vadd.f32 %v3631_v49, %v3558_v37  ;;  %v10612_v37 = vld [vmem:[#allocation7] sm:$0xff] }
 0xf88   :  { %v3560_v28 = vpop.f32.mrf.mxu0 }
 0xfab   :  { %v3878_v36 = vpop.f32.mrf.mxu1 }
 0xfad   :  { %v3880_v39 = vpop.f32.mrf.mxu1 }
 0xfaf   :  { %v3739_v25 = vpop.f32.mrf.mxu0 }
 0xfb0   :  { %v3743_v51 = vadd.f32 %v3739_v25, %v3632_v57 }
 0xfb1   :  { %v3741_v31 = vpop.f32.mrf.mxu0 }
 0xfb2   :  { %v10597_v32 = vadd.f32 %v6718_v27, %v3743_v51 }
 0xfb4   :  { %v4306_v38 = vsel %vm950_vm4, %v10597_v32, 0.0  ;;  %v4083_v1 = vsel %vm722_vm5, %v10597_v32, 0.0 }
 0xfb5   :  { %v4307_v7 = vrot.slane %v4306_v38, 4  ;;  %v4084_v20 = vrot.slane %v4083_v1, 4 }
 0xfb7   :  { %v4308_v17 = vadd.f32 %v4307_v7, %v4306_v38  ;;  %v4085_v29 = vadd.f32 %v4084_v20, %v4083_v1 }
 0xfb9   :  { %v4309_v13 = vrot.slane %v4308_v17, 2  ;;  %v4086_v52 = vrot.slane %v4085_v29, 2 }
 0xfbb   :  { %v4310_v44 = vadd.f32 %v4309_v13, %v4308_v17  ;;  %v4087_v19 = vadd.f32 %v4086_v52, %v4085_v29 }
 0xfbd   :  { %v4311_v40 = vrot.slane %v4310_v44, 1  ;;  %v4088_v18 = vrot.slane %v4087_v19, 1 }
 0xfbf   :  { %v4312_v53 = vadd.f32 %v4311_v40, %v4310_v44  ;;  %v4089_v3 = vadd.f32 %v4088_v18, %v4087_v19 }
 0xfd5   :  { %v4068_v16 = vpop.f32.mrf.mxu1 }
 0xfd7   :  { %v4070_v42 = vpop.f32.mrf.mxu1 }
 0xfd8   :  { %v3961_v9 = vpop.f32.mrf.mxu0 }
 0xfd9   :  { %v3962_v12 = vadd.f32 %v3961_v9, %v3878_v36 }
 0xfda   :  { %v3963_v62 = vpop.f32.mrf.mxu0 }
 0xfdb   :  { %v4072_v10 = vadd.f32 %v4068_v16, %v3962_v12 }
 0xfdd   :  { %v10603_v4 = vadd.f32 %v6718_v27, %v4072_v10 }
 0xfdf   :  { %12135 = vst [vmem:[#allocation9_spill] sm:$0xff] %v10603_v4  ;;  %v4313_v33 = vsel %vm950_vm4, %v10603_v4, 0.0  ;;  %v4090_v47 = vsel %vm722_vm5, %v10603_v4, 0.0 }
 0xfe0   :  { %v4314_v35 = vrot.slane %v4313_v33, 4  ;;  %v4091_v43 = vrot.slane %v4090_v47, 4 }
 0xfe2   :  { %v4315_v22 = vadd.f32 %v4314_v35, %v4313_v33  ;;  %v4092_v34 = vadd.f32 %v4091_v43, %v4090_v47 }
 0xfe4   :  { %v4316_v24 = vrot.slane %v4315_v22, 2  ;;  %v4093_v48 = vrot.slane %v4092_v34, 2 }
 0xfe6   :  { %v4317_v54 = vadd.f32 %v4316_v24, %v4315_v22  ;;  %v4094_v50 = vadd.f32 %v4093_v48, %v4092_v34 }
 0xfe8   :  { %v4318_v55 = vrot.slane %v4317_v54, 1  ;;  %v4095_v60 = vrot.slane %v4094_v50, 1 }
 0xfea   :  { %v4319_v0 = vadd.f32 %v4318_v55, %v4317_v54  ;;  %v4096_v56 = vadd.f32 %v4095_v60, %v4094_v50 }
 0xfec   :  { %v4320_v49 = vadd.f32 %v4319_v0, %v4312_v53  ;;  %v4097_v26 = vadd.f32 %v4096_v56, %v4089_v3 }
 0xfee   :  { %4322 = vrot.lane.b32.xlu1 %v4320_v49, %s7923_s29  ;;  %7650 = vmatmul.mubr.msk.f32.vlgmr.msra.gmra.mxu0 %vm722_vm5, %v4097_v26 }
 0xfef   :  { %7672 = vmatpush3.msra.mxu0 %v10521_v2  ;;  %7687 = vmatprep.mubr.msk.f32.mxu0 %vm7922_vm3, %v10612_v37 }
 0xff0   :  { %7673 = vmatprep.subr.mxu0 %v10612_v37 }
 0xff1   :  { %7674 = vmatpush3.msra.mxu0 %v10531_v6 }
 0xff2   :  { %7675 = vmatprep.subr.mxu0 %v10612_v37 }
 0xff3   :  { %7676 = vmatpush3.msra.mxu0 %v10540_v14 }
 0xff4   :  { %7677 = vmatprep.subr.mxu0 %v10612_v37 }
 0xff5   :  { %7678 = vmatpush3.msra.mxu0 %v10549_v8 }
 0xff6   :  { %7679 = vmatprep.subr.mxu0 %v10612_v37 }
 0xff7   :  { %7680 = vmatpush3.msra.mxu0 %v10558_v41 }
 0xff8   :  { %7681 = vmatprep.subr.mxu0 %v10612_v37 }
 0xff9   :  { %7682 = vmatpush3.msra.mxu0 %v10567_v61 }
 0xffa   :  { %7683 = vmatprep.subr.mxu0 %v10612_v37 }
 0xffb   :  { %7684 = vmatpush3.msra.mxu0 %v10576_v46 }
 0xffc   :  { %7685 = vmatprep.subr.mxu0 %v10612_v37 }
 0xffd   :  { %7686 = vmatpush3.msra.mxu0 %v10585_v45 }
 0xffe   :  { %4607 = vmatprep.subr.mxu0 %v10612_v37 }
0x1060   :  { %v4323_v57 = vpop.permute.xlu1 %4322 }
0x1061   :  { %7688 = vmatmul.mubr.msk.f32.vlgmr.msra.gmra.mxu0 %vm722_vm5, %v4323_v57 }
0x10ae   :  { %v4167_v28 = vpop.f32.mrf.mxu0 }
0x10af   :  { %v10632_v36 = vmul.f32 0.0078125, %v4167_v28 }
0x10b0   :  { %v7651_v39 = vpop.f32.mrf.mxu0 }
0x10b1   :  { %v4175_v25 = vrot.slane %v10632_v36, %v8386_v59  ;;  %v4081_v39 = vld [vmem:[%s12088_s7 + $0x2] sm:$0x1] }
0x10b3   :  { %v4176_v31 = vsub.f32 %v10597_v32, %v4175_v25  ;;  %v4185_v51 = vsub.f32 %v10603_v4, %v4175_v25 }
0x10b5   :  { %v4177_v27 = vmul.f32 %v4176_v31, %v4176_v31  ;;  %v4186_v38 = vmul.f32 %v4185_v51, %v4185_v51 }
0x10b7   :  { %v4178_v1 = vsel %vm722_vm5, %v4177_v27, 0.0  ;;  %v4187_v16 = vsel %vm722_vm5, %v4186_v38, 0.0 }
0x10b8   :  { %v4179_v7 = vrot.slane %v4178_v1, 4  ;;  %v4188_v20 = vrot.slane %v4187_v16, 4 }
0x10ba   :  { %v4180_v42 = vadd.f32 %v4179_v7, %v4178_v1  ;;  %v4189_v9 = vadd.f32 %v4188_v20, %v4187_v16  ;;  %v4082_v16 = vld [vmem:[%s12089_s8 + $0x2] sm:$0x1] }
0x10bc   :  { %v4181_v12 = vrot.slane %v4180_v42, 2  ;;  %v4190_v62 = vrot.slane %v4189_v9, 2 }
0x10be   :  { %v4182_v17 = vadd.f32 %v4181_v12, %v4180_v42  ;;  %v4191_v29 = vadd.f32 %v4190_v62, %v4189_v9  ;;  %v4304_v12 = vld [vmem:[%s12088_s7 + $0x3] sm:$0x1] }
0x10c0   :  { %v4183_v10 = vrot.slane %v4182_v17, 1  ;;  %v4192_v13 = vrot.slane %v4191_v29, 1 }
0x10c2   :  { %v4184_v52 = vadd.f32 %v4183_v10, %v4182_v17  ;;  %v4193_v33 = vadd.f32 %v4192_v13, %v4191_v29  ;;  %v4305_v10 = vld [vmem:[%s12089_s8 + $0x3] sm:$0x1] }
0x10c4   :  { %v4194_v47 = vadd.f32 %v4193_v33, %v4184_v52 }
0x10c6   :  { %7669 = vmatmul.mubr.msk.f32.vlgmr.msra.gmra.mxu1 %vm722_vm5, %v4194_v47 }
0x10c7   :  { %7691 = vmatpush3.msra.mxu1 %v10521_v2  ;;  %7706 = vmatprep.mubr.msk.f32.mxu1 %vm7922_vm3, %v10612_v37 }
0x10c8   :  { %7692 = vmatprep.subr.mxu1 %v10612_v37 }
0x10c9   :  { %7693 = vmatpush3.msra.mxu1 %v10531_v6 }
0x10ca   :  { %7694 = vmatprep.subr.mxu1 %v10612_v37 }
0x10cb   :  { %7695 = vmatpush3.msra.mxu1 %v10540_v14 }
0x10cc   :  { %7696 = vmatprep.subr.mxu1 %v10612_v37 }
0x10cd   :  { %7697 = vmatpush3.msra.mxu1 %v10549_v8 }
0x10ce   :  { %7698 = vmatprep.subr.mxu1 %v10612_v37 }
0x10cf   :  { %7699 = vmatpush3.msra.mxu1 %v10558_v41 }
0x10d0   :  { %7700 = vmatprep.subr.mxu1 %v10612_v37 }
0x10d1   :  { %7701 = vmatpush3.msra.mxu1 %v10567_v61 }
0x10d2   :  { %7702 = vmatprep.subr.mxu1 %v10612_v37 }
0x10d3   :  { %7703 = vmatpush3.msra.mxu1 %v10576_v46 }
0x10d4   :  { %7704 = vmatprep.subr.mxu1 %v10612_v37 }
0x10d5   :  { %7705 = vmatpush3.msra.mxu1 %v10585_v45 }
0x10d6   :  { %4680 = vmatprep.subr.mxu1 %v10612_v37 }
0x1121   :  { %v4392_v2 = vpop.f32.mrf.mxu0 }
0x1122   :  { %v4396_v6 = vmul.f32 0.0078125, %v4392_v2 }
0x1123   :  { %v7689_v14 = vpop.f32.mrf.mxu0 }
0x1124   :  { %v4400_v8 = vrot.slane %v4396_v6, %v8386_v59  ;;  %v10689_v14 = vld [vmem:[%s12090_s9 + $0x258] sm:$0xff] }
0x1126   :  { %4402 = vrot.lane.b32.xlu0 %v4400_v8, %s7923_s29  ;;  %v10694_v8 = vld [vmem:[%s12090_s9 + $0x2f8] sm:$0xff] }
0x1127   :  { %4608 = vmatpush1.msra.mxu0 %v10694_v8 }
0x1128   :  { %4609 = vmatprep.subr.mxu0 %v10612_v37 }
0x1186   :  { %v4264_v41 = vpop.f32.mrf.mxu1 }
0x1187   :  { %v4268_v26 = vmul.f32 0.0078125, %v4264_v41 }
0x1188   :  { %v7670_v35 = vpop.f32.mrf.mxu1 }
0x1189   :  { %v4269_v57 = vadd.f32 1e-05, %v4268_v26  ;;  %v10842_v26 = vld [vmem:[%s12090_s9 + $0x200] sm:$0xff] }
0x118b   :  { %7867 = vrsqrt.f32 %v4269_v57  ;;  %v10849_v57 = vld [vmem:[%s12090_s9 + $0x2a0] sm:$0xff] }
0x1198   :  { %v4403_v61 = vpop.permute.xlu0 %4402  ;;  %v7868_v28 = vpop.eup %7867 }
0x1199   :  { %v4405_v43 = vsub.f32 %v10597_v32, %v4403_v61  ;;  %v4414_v46 = vsub.f32 %v10603_v4, %v4403_v61  ;;  %v4271_v51 = vmul.f32 %v7868_v28, %v4081_v39  ;;  %v10856_v28 = vld [vmem:[%s12090_s9 + $0x1f8] sm:$0xff] }
0x119a   :  { %v10863_v39 = vld [vmem:[%s12090_s9 + $0x298] sm:$0xff] }
0x119b   :  { %v4406_v44 = vmul.f32 %v4405_v43, %v4405_v43  ;;  %v4415_v22 = vmul.f32 %v4414_v46, %v4414_v46  ;;  %v4272_v1 = vmul.f32 %v4271_v51, %v10632_v36  ;;  %v4277_v20 = vrot.slane %v4271_v51, %v8386_v59  ;;  %v10707_v43 = vld [vmem:[%s12090_s9 + $0x2f0] sm:$0xff]  ;;  %v10716_v46 = vld [vmem:[%s12090_s9 + $0x248] sm:$0xff] }
0x119c   :  { %4610 = vmatpush1.msra.mxu0 %v10707_v43  ;;  %v10884_v51 = vld [vmem:[%s12090_s9 + $0x1e8] sm:$0xff] }
0x119d   :  { %v4407_v45 = vsel %vm950_vm4, %v4406_v44, 0.0  ;;  %v4416_v19 = vsel %vm950_vm4, %v4415_v22, 0.0  ;;  %v4273_v7 = vsub.f32 %v4082_v16, %v4272_v1  ;;  %v4278_v9 = vmul.f32 %v4277_v20, %v10597_v32  ;;  %v10721_v44 = vld [vmem:[%s12090_s9 + $0x2e8] sm:$0xff]  ;;  %4611 = vmatprep.subr.mxu0 %v10612_v37  ;;  %v10908_v1 = vld [vmem:[%s12090_s9 + $0x278] sm:$0xff]  ;;  %v10913_v16 = vld [vmem:[%s12090_s9 + $0x280] sm:$0xff] }
0x119e   :  { %v4408_v34 = vrot.slane %v4407_v45, 4  ;;  %v4417_v24 = vrot.slane %v4416_v19, 4  ;;  %v4292_v36 = vmul.f32 %v4277_v20, %v10603_v4  ;;  %4612 = vmatpush1.msra.mxu0 %v10721_v44  ;;  %vm12136_vm4 = vcmask 581696  }
0x119f   :  { %v4282_v42 = vrot.slane %v4273_v7, %v8386_v59  ;;  %4613 = vmatprep.subr.mxu0 %v10612_v37  ;;  %v10920_v7 = vld [vmem:[%s12090_s9 + $0x270] sm:$0xff] }
0x11a0   :  { %v4409_v48 = vadd.f32 %v4408_v34, %v4407_v45  ;;  %v4418_v40 = vadd.f32 %v4417_v24, %v4416_v19  ;;  %v10730_v45 = vld [vmem:[%s12090_s9 + $0x240] sm:$0xff]  ;;  %v10744_v34 = vld [vmem:[%s12090_s9 + $0x238] sm:$0xff] }
0x11a1   :  { %v4283_v62 = vadd.f32 %v4282_v42, %v4278_v9  ;;  %v4293_v47 = vadd.f32 %v4292_v36, %v4282_v42  ;;  %v10737_v19 = vld [vmem:[%s12090_s9 + $0x2e0] sm:$0xff]  ;;  %v10751_v24 = vld [vmem:[%s12090_s9 + $0x2d8] sm:$0xff]  ;;  %v10936_v9 = vld [vmem:[%s12090_s9 + $0x268] sm:$0xff] }
0x11a2   :  { %v4410_v54 = vrot.slane %v4409_v48, 2  ;;  %v4419_v18 = vrot.slane %v4418_v40, 2  ;;  %4614 = vmatpush1.msra.mxu0 %v10737_v19  ;;  %v10930_v42 = vld [vmem:[%s12090_s9 + $0x318] sm:$0xff] }
0x11a3   :  { %v4284_v52 = vmax.f32 %v4283_v62, 0.0  ;;  %v4294_v61 = vmax.f32 %v4293_v47, 0.0  ;;  %4615 = vmatprep.subr.mxu0 %v10612_v37 }
0x11a4   :  { %v4411_v50 = vadd.f32 %v4410_v54, %v4409_v48  ;;  %v4420_v55 = vadd.f32 %v4419_v18, %v4418_v40  ;;  %v10758_v48 = vld [vmem:[%s12090_s9 + $0x230] sm:$0xff]  ;;  %4616 = vmatpush1.msra.mxu0 %v10751_v24  ;;  %v10772_v54 = vld [vmem:[%s12090_s9 + $0x228] sm:$0xff] }
0x11a5   :  { %v4286_v41 = vrot.slane %v4284_v52, 7  ;;  %v4296_v22 = vrot.slane %v4294_v61, 5  ;;  %v10765_v40 = vld [vmem:[%s12090_s9 + $0x2d0] sm:$0xff]  ;;  %4617 = vmatprep.subr.mxu0 %v10612_v37  ;;  %v10779_v18 = vld [vmem:[%s12090_s9 + $0x2c8] sm:$0xff] }
0x11a6   :  { %v4412_v60 = vrot.slane %v4411_v50, 1  ;;  %v4421_v53 = vrot.slane %v4420_v55, 1  ;;  %4618 = vmatpush1.msra.mxu0 %v10765_v40 }
0x11a7   :  { %4619 = vmatprep.subr.mxu0 %v10612_v37 }
0x11a8   :  { %v4413_v0 = vadd.f32 %v4412_v60, %v4411_v50  ;;  %v4422_v3 = vadd.f32 %v4421_v53, %v4420_v55  ;;  %v10786_v50 = vld [vmem:[%s12090_s9 + $0x220] sm:$0xff]  ;;  %4620 = vmatpush1.msra.mxu0 %v10779_v18  ;;  %v10800_v60 = vld [vmem:[%s12090_s9 + $0x218] sm:$0xff] }
0x11a9   :  { %v10793_v55 = vld [vmem:[%s12090_s9 + $0x2c0] sm:$0xff]  ;;  %4621 = vmatprep.subr.mxu0 %v10612_v37  ;;  %v10807_v53 = vld [vmem:[%s12090_s9 + $0x2b8] sm:$0xff] }
0x11aa   :  { %v4423_v56 = vadd.f32 %v4422_v3, %v4413_v0  ;;  %4622 = vmatpush1.msra.mxu0 %v10793_v55  ;;  %v10814_v0 = vld [vmem:[%s12090_s9 + $0x210] sm:$0xff] }
0x11ab   :  { %4623 = vmatprep.subr.mxu0 %v10612_v37  ;;  %v10821_v3 = vld [vmem:[%s12090_s9 + $0x2b0] sm:$0xff] }
0x11ac   :  { %4425 = vrot.lane.b32.xlu1 %v4423_v56, %s7923_s29  ;;  %4624 = vmatpush1.msra.mxu0 %v10807_v53  ;;  %v10828_v56 = vld [vmem:[%s12090_s9 + $0x208] sm:$0xff] }
0x11ad   :  { %4625 = vmatprep.subr.mxu0 %v10612_v37 }
0x11ae   :  { %4626 = vmatpush1.msra.mxu0 %v10821_v3 }
0x11af   :  { %4627 = vmatprep.subr.mxu0 %v10612_v37 }
0x121e   :  { %v4426_v49 = vpop.permute.xlu1 %4425 }
0x121f   :  { %7707 = vmatmul.mubr.msk.f32.vlgmr.msra.gmra.mxu1 %vm722_vm5, %v4426_v49  ;;  %v10835_v49 = vld [vmem:[%s12090_s9 + $0x2a8] sm:$0xff]  ;;  %vm12137_vm5 = vcmask 588867  }
0x1220   :  { %4681 = vmatpush1.msra.mxu1 %v10689_v14  ;;  %4628 = vmatpush1.msra.mxu0 %v10835_v49 }
0x1221   :  { %4682 = vmatprep.subr.mxu1 %v10612_v37  ;;  %4629 = vmatprep.subr.mxu0 %v10612_v37 }
0x1222   :  { %4630 = vmatpush1.msra.mxu0 %v10849_v57 }
0x1223   :  { %4631 = vmatprep.subr.mxu0 %v10612_v37 }
0x1224   :  { %4632 = vmatpush1.msra.mxu0 %v10863_v39 }
0x1225   :  { %4633 = vmatprep.subr.mxu0 %v10612_v37 }
0x12df   :  { %v4495_v25 = vpop.f32.mrf.mxu1 }
0x12e0   :  { %v4499_v31 = vmul.f32 0.0078125, %v4495_v25  ;;  %v10870_v25 = vld [vmem:[%s12090_s9 + $0x1f0] sm:$0xff] }
0x12e1   :  { %v7708_v27 = vpop.f32.mrf.mxu1 }
0x12e2   :  { %v4500_v38 = vadd.f32 1e-05, %v4499_v31  ;;  %v10877_v31 = vld [vmem:[%s12090_s9 + $0x290] sm:$0xff]  ;;  %v10893_v27 = vld [vmem:[%s12090_s9 + $0x1e0] sm:$0xff] }
0x12e3   :  { %4634 = vmatpush1.msra.mxu0 %v10877_v31 }
0x12e4   :  { %7869 = vrsqrt.f32 %v4500_v38  ;;  %4635 = vmatprep.subr.mxu0 %v10612_v37  ;;  %v10903_v38 = vld [vmem:[%s12090_s9 + $0x288] sm:$0xff] }
0x12e5   :  { %4636 = vmatpush1.msra.mxu0 %v10903_v38 }
0x12e6   :  { %4637 = vmatprep.subr.mxu0 %v10612_v37 }
0x12e7   :  { %4638 = vmatpush1.msra.mxu0 %v10913_v16 }
0x12e8   :  { %4663 = vmatprep.subr.mxu0 %v10612_v37 }
0x12e9   :  { %4664 = vmatpush2.msra.mxu0 %v10930_v42 }
0x12ea   :  { %4665 = vmatprep.subr.mxu0 %v10612_v37 }
0x12f1   :  { %v7870_v17 = vpop.eup %7869 }
0x12f2   :  { %v4502_v29 = vmul.f32 %v7870_v17, %v4304_v12  ;;  %v10941_v12 = vld [vmem:[%s12090_s9 + $0x310] sm:$0xff] }
0x12f3   :  { %4666 = vmatpush2.msra.mxu0 %v10941_v12 }
0x12f4   :  { %v4508_v13 = vrot.slane %v4502_v29, %v8386_v59  ;;  %v4503_v33 = vmul.f32 %v4502_v29, %v4396_v6  ;;  %v10701_v6 = vld [vmem:[%s12090_s9 + $0x250] sm:$0xff]  ;;  %v10950_v29 = vld [vmem:[%s12090_s9 + $0x260] sm:$0xff]  ;;  %4667 = vmatprep.subr.mxu0 %v10612_v37 }
0x12f5   :  { %4683 = vmatpush1.msra.mxu1 %v10701_v6 }
0x12f6   :  { %4510 = vrot.lane.b32.xlu0 %v4508_v13, %s7923_s29  ;;  %v4504_v2 = vsub.f32 %v4305_v10, %v4503_v33  ;;  %4684 = vmatprep.subr.mxu1 %v10612_v37  ;;  %v10957_v13 = vld [vmem:[%s12090_s9 + $0x308] sm:$0xff] }
0x12f7   :  { %4685 = vmatpush1.msra.mxu1 %v10716_v46  ;;  %4668 = vmatpush2.msra.mxu0 %v10957_v13 }
0x12f8   :  { %v4517_v35 = vrot.slane %v4504_v2, %v8386_v59  ;;  %4686 = vmatprep.subr.mxu1 %v10612_v37  ;;  %4669 = vmatprep.subr.mxu0 %v10612_v37 }
0x12f9   :  { %4687 = vmatpush1.msra.mxu1 %v10730_v45 }
0x12fa   :  { %4287 = vrot.lane.b32.xlu0 %v4286_v41, %s7924_s1  ;;  %4519 = vrot.lane.b32.xlu1 %v4517_v35, %s7923_s29  ;;  %v10970_v41 = vld [vmem:[%s12090_s9 + $0x300] sm:$0xff] }
0x12fb   :  { %4688 = vmatprep.subr.mxu1 %v10612_v37  ;;  %4670 = vmatpush2.msra.mxu0 %v10970_v41 }
0x12fc   :  { %4689 = vmatpush1.msra.mxu1 %v10744_v34  ;;  %4788 = vmatprep.subr.mxu0 %v10612_v37 }
0x12fd   :  { %4690 = vmatprep.subr.mxu1 %v10612_v37 }
0x12fe   :  { %4297 = vrot.lane.b32.xlu0 %v4296_v22, %s7924_s1  ;;  %4691 = vmatpush1.msra.mxu1 %v10758_v48 }
0x12ff   :  { %4692 = vmatprep.subr.mxu1 %v10612_v37 }
0x1300   :  { %4693 = vmatpush1.msra.mxu1 %v10772_v54 }
0x1301   :  { %4694 = vmatprep.subr.mxu1 %v10612_v37 }
0x1302   :  { %4695 = vmatpush1.msra.mxu1 %v10786_v50 }
0x1303   :  { %4696 = vmatprep.subr.mxu1 %v10612_v37 }
0x1304   :  { %4697 = vmatpush1.msra.mxu1 %v10800_v60 }
0x1305   :  { %4698 = vmatprep.subr.mxu1 %v10612_v37 }
0x1306   :  { %4699 = vmatpush1.msra.mxu1 %v10814_v0 }
0x1307   :  { %4700 = vmatprep.subr.mxu1 %v10612_v37 }
0x1308   :  { %4701 = vmatpush1.msra.mxu1 %v10828_v56 }
0x1309   :  { %4702 = vmatprep.subr.mxu1 %v10612_v37 }
0x130a   :  { %4703 = vmatpush1.msra.mxu1 %v10842_v26 }
0x130b   :  { %4704 = vmatprep.subr.mxu1 %v10612_v37 }
0x130c   :  { %4705 = vmatpush1.msra.mxu1 %v10856_v28 }
0x130d   :  { %4706 = vmatprep.subr.mxu1 %v10612_v37 }
0x130e   :  { %4707 = vmatpush1.msra.mxu1 %v10870_v25 }
0x130f   :  { %4708 = vmatprep.subr.mxu1 %v10612_v37 }
0x1310   :  { %4709 = vmatpush1.msra.mxu1 %v10884_v51 }
0x1311   :  { %4710 = vmatprep.subr.mxu1 %v10612_v37 }
0x1312   :  { %4711 = vmatpush1.msra.mxu1 %v10893_v27 }
0x1313   :  { %4736 = vmatprep.subr.mxu1 %v10612_v37 }
0x1314   :  { %4737 = vmatpush2.msra.mxu1 %v10908_v1 }
0x1315   :  { %4738 = vmatprep.subr.mxu1 %v10612_v37 }
0x1316   :  { %4739 = vmatpush2.msra.mxu1 %v10920_v7 }
0x1317   :  { %4740 = vmatprep.subr.mxu1 %v10612_v37 }
0x1318   :  { %4741 = vmatpush2.msra.mxu1 %v10936_v9 }
0x1319   :  { %4742 = vmatprep.subr.mxu1 %v10612_v37 }
0x131a   :  { %4743 = vmatpush2.msra.mxu1 %v10950_v29 }
0x131b   :  { %4927 = vmatprep.subr.mxu1 %v10612_v37 }
0x1368   :  { %v4511_v20 = vpop.permute.xlu0 %4510 }
0x1369   :  { %v4513_v62 = vmul.f32 %v4511_v20, %v10597_v32  ;;  %v4533_v17 = vmul.f32 %v4511_v20, %v10603_v4 }
0x136c   :  { %v4288_v36 = vpop.permute.xlu0 %4287  ;;  %v4520_v10 = vpop.permute.xlu1 %4519 }
0x136d   :  { %4290 = vst.msk [vmem:[#allocation6] sm:$0xfe] %vm930_vm8, %v4288_v36  ;;  %v4522_v52 = vadd.f32 %v4520_v10, %v4513_v62  ;;  %v4534_v33 = vadd.f32 %v4533_v17, %v4520_v10  ;;  %vm12138_vm8 = vcmask 583744  }
0x136e   :  { %4291 = vst.msk [vmem:[#allocation6 + $0x10] sm:$0x1] %vm12136_vm4, %v4288_v36  ;;  %vm5412_vm4 = vcmask 1047617  }
0x136f   :  { %v4523_v47 = vmax.f32 %v4522_v52, 0.0  ;;  %v4535_v61 = vmax.f32 %v4534_v33, 0.0 }
0x1370   :  { %v4298_v2 = vpop.permute.xlu0 %4297 }
0x1371   :  { %v4525_v35 = vrot.slane %v4523_v47, 7  ;;  %4300 = vst.msk [vmem:[#allocation6 + $0x10] sm:$0xf8] %vm12137_vm5, %v4298_v2  ;;  %v4537_v22 = vrot.slane %v4535_v61, 5  ;;  %vm5414_vm5 = vcmask 64513  }
0x1372   :  { %4301 = vst.msk [vmem:[#allocation6 + $0x20] sm:$0x7] %vm12138_vm8, %v4298_v2  ;;  %vm5416_vm8 = vcmask 1047616  }
0x1373   :  { %4526 = vrot.lane.b32.xlu1 %v4525_v35, %s7925_s20 }
0x1377   :  { %4538 = vrot.lane.b32.xlu1 %v4537_v22, %s7925_s20 }
0x13e5   :  { %v4527_v20 = vpop.permute.xlu1 %4526 }
0x13e6   :  { %4531 = vst.msk [vmem:[#allocation6 + $0x10] sm:$0x1] %vm1178_vm14, %v4527_v20  ;;  %vm111_vm14 = vcmask 125952  }
0x13e7   :  { %4532 = vst.msk [vmem:[#allocation6 + $0x18] sm:$0x1] %vm12139_vm10, %v4527_v20  ;;  %vm5418_vm10 = vcmask 64512  }
0x13e8   :  { %4529 = vst.msk [vmem:[#allocation6] sm:$0xfe] %vm1174_vm12, %v4527_v20  ;;  %vm12142_vm12 = vcmask 1046528  }
0x13e9   :  { %4530 = vst.msk [vmem:[#allocation6 + $0x8] sm:$0xfe] %vm1176_vm13, %v4527_v20  ;;  %v4539_v62 = vpop.permute.xlu1 %4538  ;;  %vm12143_vm13 = vmmov %vm12142_vm12 }
0x13ea   :  { %4541 = vst.msk [vmem:[#allocation6 + $0x10] sm:$0xf8] %vm1190_vm0, %v4539_v62  ;;  %vm5399_vm0 = vcmask 1040384  }
0x13eb   :  { %4542 = vst.msk [vmem:[#allocation6 + $0x18] sm:$0xf8] %vm1192_vm1, %v4539_v62  ;;  %vm5434_vm1 = vcmask 1042432  }
0x13ec   :  { %4543 = vst.msk [vmem:[#allocation6 + $0x20] sm:$0x7] %vm12140_vm11, %v4539_v62  ;;  %vm5420_vm11 = vcmask 1040448  }
0x13ed   :  { %4544 = vst.msk [vmem:[#allocation6 + $0x28] sm:$0x7] %vm12141_vm9, %v4539_v62  ;;  %v4571_v35 = vld [vmem:[#allocation6 + $0x10] sm:$0x1]  ;;  %vm5422_vm9 = vcmask 57344  }
0x13ee   :  { %v4572_v52 = vld [vmem:[#allocation6 + $0x18] sm:$0x1]  ;;  %v4599_v20 = vrot.slane %v4571_v35, 1 }
0x13ef   :  { %v4546_v36 = vld [vmem:[#allocation6] sm:$0xff]  ;;  %v4602_v2 = vrot.slane %v4572_v52, 1  ;;  %v4753_v4 = vld [vmem:[#allocation6 + $0x18] sm:$0x3] }
0x13f0   :  { %v4547_v17 = vld [vmem:[#allocation6 + $0x8] sm:$0xff]  ;;  %v4569_v47 = vld [vmem:[#allocation6] sm:$0xfe] }
0x13f1   :  { %v4570_v10 = vld [vmem:[#allocation6 + $0x8] sm:$0xfe]  ;;  %6828 = vmatprep.mubr.msk.f32.mxu1 %vm94_vm6, %v4547_v17  ;;  %v4598_v61 = vrot.slane %v4569_v47, 1  ;;  %v10993_v17 = vld [vmem:[%s12090_s9 + $0x398] sm:$0xff] }
0x13f2   :  { %v4601_v33 = vrot.slane %v4570_v10, 1  ;;  %4745 = vmatmul.mubr.f32.vlgmr.msra.gmra.mxu1 %v4546_v36  ;;  %v4751_v22 = vld [vmem:[#allocation6 + $0x8] sm:$0xfc]  ;;  %v4783_v10 = vrot.slane %v4753_v4, 2  ;;  %v4891_v36 = vld [vmem:[#allocation6 + $0x18] sm:$0xf8] }
0x13f3   :  { %4928 = vmatpush1.msra.mxu1 %v10694_v8  ;;  %v4782_v21 = vrot.slane %v4751_v22, 2  ;;  %v4600_v8 = vsel %vm12143_vm13, %v4598_v61, %v4599_v20  ;;  %v4921_v47 = vrot.slane %v4891_v36, 3  ;;  %v4890_v61 = vld [vmem:[#allocation6 + $0x10] sm:$0xf8]  ;;  %v4892_v22 = vld [vmem:[#allocation6 + $0x20] sm:$0x7] }
0x13f4   :  { %4929 = vmatprep.subr.mxu1 %v10612_v37  ;;  %v4603_v62 = vsel %vm12142_vm12, %v4601_v33, %v4602_v2  ;;  %v4893_v52 = vld [vmem:[#allocation6 + $0x28] sm:$0x7]  ;;  %v5081_v20 = vld [vmem:[#allocation6 + $0x18] sm:$0xf0]  ;;  %v4919_v36 = vrot.slane %v4892_v22, 3  ;;  %vm5447_vm12 = vcmask 1047619  }
0x13f5   :  { %6827 = vmatprep.mubr.msk.f32.mxu0 %vm94_vm6, %v4603_v62  ;;  %4930 = vmatpush1.msra.mxu1 %v10707_v43  ;;  %v4922_v35 = vrot.slane %v4893_v52, 3  ;;  %v4784_v33 = vsel %vm1432_vm2, %v4782_v21, %v4783_v10  ;;  %v11003_v2 = vld [vmem:[%s12090_s9 + $0x390] sm:$0xff]  ;;  %v11013_v43 = vld [vmem:[%s12090_s9 + $0x388] sm:$0xff]  ;;  %v11022_v21 = vld [vmem:[%s12090_s9 + $0x380] sm:$0xff]  ;;  %v4918_v10 = vrot.slane %v4890_v61, 3  ;;  %vm5449_vm13 = vcmask 64515  }
0x13f6   :  { %4672 = vmatmul.mubr.f32.vlgmr.msra.gmra.mxu0 %v4600_v8  ;;  %4931 = vmatprep.subr.mxu1 %v10612_v37  ;;  %v5083_v62 = vld [vmem:[#allocation6 + $0x28] sm:$0xf]  ;;  %v4752_v52 = vld [vmem:[#allocation6 + $0x10] sm:$0x3]  ;;  %v11157_v8 = vld [vmem:[%s12090_s9 + $0x3a8] sm:$0xff] }
0x13f7   :  { %4789 = vmatpush1.msra.mxu0 %v10993_v17  ;;  %6849 = vmatprep.mubr.msk.f32.mxu0 %vm94_vm6, %v4784_v33  ;;  %v4923_v4 = vsel %vm1572_vm7, %v4921_v47, %v4922_v35  ;;  %v5112_v47 = vrot.slane %v5083_v62, 4  ;;  %v4867_v35 = vld [vmem:[#allocation6 + $0x18] sm:$0xfc]  ;;  %v4869_v33 = vld [vmem:[#allocation6 + $0x28] sm:$0x3]  ;;  %v4780_v61 = vrot.slane %v4752_v52, 2  ;;  %v4920_v22 = vsel %vm1572_vm7, %v4918_v10, %v4919_v36 }
0x13f8   :  { %4790 = vmatprep.subr.mxu0 %v10612_v37  ;;  %4932 = vmatpush1.msra.mxu1 %v10721_v44  ;;  %v11031_v44 = vld [vmem:[%s12090_s9 + $0x378] sm:$0xff]  ;;  %v5005_v62 = vrot.slane %v4869_v33, 2 }
0x13f9   :  { %4791 = vmatpush1.msra.mxu0 %v11003_v2  ;;  %4933 = vmatprep.subr.mxu1 %v10612_v37 }
0x13fa   :  { %4792 = vmatprep.subr.mxu0 %v10612_v37  ;;  %4934 = vmatpush1.msra.mxu1 %v10737_v19  ;;  %v11040_v19 = vld [vmem:[%s12090_s9 + $0x370] sm:$0xff] }
0x13fb   :  { %6891 = vmatprep.mubr.msk.f32.mxu1 %vm94_vm6, %v4923_v4  ;;  %4793 = vmatpush1.msra.mxu0 %v11013_v43 }
0x13fc   :  { %4935 = vmatprep.subr.mxu1 %v10612_v37  ;;  %4794 = vmatprep.subr.mxu0 %v10612_v37 }
0x13fd   :  { %4936 = vmatpush1.msra.mxu1 %v10751_v24  ;;  %4795 = vmatpush1.msra.mxu0 %v11022_v21  ;;  %v11049_v24 = vld [vmem:[%s12090_s9 + $0x368] sm:$0xff] }
0x13fe   :  { %4937 = vmatprep.subr.mxu1 %v10612_v37  ;;  %4796 = vmatprep.subr.mxu0 %v10612_v37 }
0x13ff   :  { %4938 = vmatpush1.msra.mxu1 %v10765_v40  ;;  %4797 = vmatpush1.msra.mxu0 %v11031_v44  ;;  %v11058_v40 = vld [vmem:[%s12090_s9 + $0x360] sm:$0xff] }
0x1400   :  { %4939 = vmatprep.subr.mxu1 %v10612_v37  ;;  %4798 = vmatprep.subr.mxu0 %v10612_v37 }
0x1401   :  { %4940 = vmatpush1.msra.mxu1 %v10779_v18  ;;  %4799 = vmatpush1.msra.mxu0 %v11040_v19  ;;  %v11067_v18 = vld [vmem:[%s12090_s9 + $0x358] sm:$0xff] }
0x1402   :  { %4941 = vmatprep.subr.mxu1 %v10612_v37  ;;  %4800 = vmatprep.subr.mxu0 %v10612_v37 }
0x1403   :  { %4942 = vmatpush1.msra.mxu1 %v10793_v55  ;;  %4801 = vmatpush1.msra.mxu0 %v11049_v24  ;;  %v11076_v55 = vld [vmem:[%s12090_s9 + $0x350] sm:$0xff] }
0x1404   :  { %4943 = vmatprep.subr.mxu1 %v10612_v37  ;;  %4802 = vmatprep.subr.mxu0 %v10612_v37 }
0x1405   :  { %4944 = vmatpush1.msra.mxu1 %v10807_v53  ;;  %4803 = vmatpush1.msra.mxu0 %v11058_v40  ;;  %v11085_v53 = vld [vmem:[%s12090_s9 + $0x348] sm:$0xff] }
0x1406   :  { %4945 = vmatprep.subr.mxu1 %v10612_v37  ;;  %4804 = vmatprep.subr.mxu0 %v10612_v37 }
0x1407   :  { %4946 = vmatpush1.msra.mxu1 %v10821_v3  ;;  %4805 = vmatpush1.msra.mxu0 %v11067_v18  ;;  %v11094_v3 = vld [vmem:[%s12090_s9 + $0x340] sm:$0xff] }
0x1408   :  { %4947 = vmatprep.subr.mxu1 %v10612_v37  ;;  %4806 = vmatprep.subr.mxu0 %v10612_v37 }
0x1409   :  { %4948 = vmatpush1.msra.mxu1 %v10835_v49  ;;  %4807 = vmatpush1.msra.mxu0 %v11076_v55  ;;  %v11103_v49 = vld [vmem:[%s12090_s9 + $0x338] sm:$0xff] }
0x140a   :  { %4949 = vmatprep.subr.mxu1 %v10612_v37  ;;  %4808 = vmatprep.subr.mxu0 %v10612_v37 }
0x140b   :  { %4950 = vmatpush1.msra.mxu1 %v10849_v57  ;;  %4809 = vmatpush1.msra.mxu0 %v11085_v53  ;;  %v11112_v57 = vld [vmem:[%s12090_s9 + $0x330] sm:$0xff] }
0x140c   :  { %4951 = vmatprep.subr.mxu1 %v10612_v37  ;;  %4810 = vmatprep.subr.mxu0 %v10612_v37 }
0x140d   :  { %4952 = vmatpush1.msra.mxu1 %v10863_v39  ;;  %4811 = vmatpush1.msra.mxu0 %v11094_v3  ;;  %v11121_v39 = vld [vmem:[%s12090_s9 + $0x328] sm:$0xff] }
0x140e   :  { %4953 = vmatprep.subr.mxu1 %v10612_v37  ;;  %4812 = vmatprep.subr.mxu0 %v10612_v37 }
0x140f   :  { %4954 = vmatpush1.msra.mxu1 %v10877_v31  ;;  %4813 = vmatpush1.msra.mxu0 %v11103_v49  ;;  %v11130_v31 = vld [vmem:[%s12090_s9 + $0x320] sm:$0xff] }
0x1410   :  { %4955 = vmatprep.subr.mxu1 %v10612_v37  ;;  %4814 = vmatprep.subr.mxu0 %v10612_v37 }
0x1411   :  { %4956 = vmatpush1.msra.mxu1 %v10903_v38  ;;  %4815 = vmatpush1.msra.mxu0 %v11112_v57  ;;  %v11139_v38 = vld [vmem:[%s12090_s9 + $0x3b8] sm:$0xff] }
0x1412   :  { %4957 = vmatprep.subr.mxu1 %v10612_v37  ;;  %4816 = vmatprep.subr.mxu0 %v10612_v37 }
0x1413   :  { %4958 = vmatpush1.msra.mxu1 %v10913_v16  ;;  %4817 = vmatpush1.msra.mxu0 %v11121_v39  ;;  %v11148_v16 = vld [vmem:[%s12090_s9 + $0x3b0] sm:$0xff] }
0x1414   :  { %4983 = vmatprep.subr.mxu1 %v10612_v37  ;;  %4818 = vmatprep.subr.mxu0 %v10612_v37 }
0x1415   :  { %4984 = vmatpush2.msra.mxu1 %v10930_v42  ;;  %4819 = vmatpush1.msra.mxu0 %v11130_v31  ;;  %v4750_v42 = vld [vmem:[#allocation6] sm:$0xfc] }
0x1416   :  { %4985 = vmatprep.subr.mxu1 %v10612_v37  ;;  %4844 = vmatprep.subr.mxu0 %v10612_v37  ;;  %v4779_v4 = vrot.slane %v4750_v42, 2 }
0x1417   :  { %4986 = vmatpush2.msra.mxu1 %v10941_v12  ;;  %4845 = vmatpush2.msra.mxu0 %v11139_v38  ;;  %v5111_v12 = vrot.slane %v5081_v20, 4  ;;  %v5004_v20 = vrot.slane %v4867_v35, 2 }
0x1418   :  { %4987 = vmatprep.subr.mxu1 %v10612_v37  ;;  %4846 = vmatprep.subr.mxu0 %v10612_v37  ;;  %v4781_v10 = vsel %vm1432_vm2, %v4779_v4, %v4780_v61 }
0x1419   :  { %4988 = vmatpush2.msra.mxu1 %v10957_v13  ;;  %4847 = vmatpush2.msra.mxu0 %v11148_v16  ;;  %v11169_v13 = vld [vmem:[%s12090_s9 + $0x3a0] sm:$0xff]  ;;  %v5006_v36 = vsel %vm1432_vm2, %v5004_v20, %v5005_v62 }
0x141a   :  { %4989 = vmatprep.subr.mxu1 %v10612_v37  ;;  %4848 = vmatprep.subr.mxu0 %v10612_v37 }
0x141b   :  { %4990 = vmatpush2.msra.mxu1 %v10970_v41  ;;  %4849 = vmatpush2.msra.mxu0 %v11157_v8  ;;  %v5113_v41 = vsel %vm1763_vm15, %v5111_v12, %v5112_v47 }
0x141c   :  { %4992 = vmatmul.mubr.f32.vlgmr.msra.gmra.mxu1 %v4920_v22  ;;  %5117 = vmatprep.subr.mxu1 %v10612_v37 }
0x141d   :  { %4850 = vmatprep.subr.mxu0 %v10612_v37  ;;  %5118 = vmatpush1.msra.mxu1 %v10993_v17  ;;  %v75_v17 = vld [vmem:[%s12091_s18 + $0x28] sm:$0xff] }
0x141e   :  { %6913 = vmatprep.mubr.msk.f32.mxu1 %vm94_vm6, %v5113_v41  ;;  %4851 = vmatpush2.msra.mxu0 %v11169_v13 }
0x141f   :  { %5119 = vmatprep.subr.mxu1 %v10612_v37  ;;  %4853 = vmatmul.mubr.f32.vlgmr.msra.gmra.mxu0 %v4781_v10 }
0x1420   :  { %5010 = vmatprep.subr.mxu0 %v10612_v37  ;;  %5120 = vmatpush1.msra.mxu1 %v11003_v2  ;;  %v74_v2 = vld [vmem:[%s12091_s18 + $0x20] sm:$0xff] }
0x1421   :  { %5011 = vmatpush1.msra.mxu0 %v10689_v14  ;;  %6892 = vmatprep.mubr.msk.f32.mxu0 %vm94_vm6, %v5006_v36  ;;  %v5080_v14 = vld [vmem:[#allocation6 + $0x10] sm:$0xf0]  ;;  %vm102_vm6 = vcmask 130048  }
0x1422   :  { %5121 = vmatprep.subr.mxu1 %v10612_v37  ;;  %5012 = vmatprep.subr.mxu0 %v10612_v37 }
0x1423   :  { %5122 = vmatpush1.msra.mxu1 %v11013_v43  ;;  %5013 = vmatpush1.msra.mxu0 %v10701_v6  ;;  %v5082_v6 = vld [vmem:[#allocation6 + $0x20] sm:$0xf]  ;;  %v73_v43 = vld [vmem:[%s12091_s18 + $0x18] sm:$0xff] }
0x1424   :  { %5123 = vmatprep.subr.mxu1 %v10612_v37  ;;  %5014 = vmatprep.subr.mxu0 %v10612_v37 }
0x1425   :  { %5124 = vmatpush1.msra.mxu1 %v11022_v21  ;;  %5015 = vmatpush1.msra.mxu0 %v10716_v46  ;;  %v4866_v46 = vld [vmem:[#allocation6 + $0x10] sm:$0xfc]  ;;  %v72_v21 = vld [vmem:[%s12091_s18 + $0x10] sm:$0xff] }
0x1426   :  { %5125 = vmatprep.subr.mxu1 %v10612_v37  ;;  %5016 = vmatprep.subr.mxu0 %v10612_v37 }
0x1427   :  { %5126 = vmatpush1.msra.mxu1 %v11031_v44  ;;  %5017 = vmatpush1.msra.mxu0 %v10730_v45  ;;  %v4868_v45 = vld [vmem:[#allocation6 + $0x20] sm:$0x3] }
0x1428   :  { %5127 = vmatprep.subr.mxu1 %v10612_v37  ;;  %5018 = vmatprep.subr.mxu0 %v10612_v37  ;;  %v71_v44 = vld [vmem:[%s12091_s18 + $0x8] sm:$0xff] }
0x1429   :  { %5128 = vmatpush1.msra.mxu1 %v11040_v19  ;;  %5019 = vmatpush1.msra.mxu0 %v10744_v34  ;;  %v5108_v34 = vrot.slane %v5080_v14, 4  ;;  %v70_v19 = vld [vmem:[%s12091_s18] sm:$0xff] }
0x142a   :  { %5129 = vmatprep.subr.mxu1 %v10612_v37  ;;  %5020 = vmatprep.subr.mxu0 %v10612_v37 }
0x142b   :  { %5130 = vmatpush1.msra.mxu1 %v11049_v24  ;;  %5021 = vmatpush1.msra.mxu0 %v10758_v48  ;;  %v5109_v48 = vrot.slane %v5082_v6, 4 }
0x142c   :  { %5131 = vmatprep.subr.mxu1 %v10612_v37  ;;  %5022 = vmatprep.subr.mxu0 %v10612_v37 }
0x142d   :  { %5132 = vmatpush1.msra.mxu1 %v11058_v40  ;;  %5023 = vmatpush1.msra.mxu0 %v10772_v54  ;;  %v5001_v54 = vrot.slane %v4866_v46, 2 }
0x142e   :  { %5133 = vmatprep.subr.mxu1 %v10612_v37  ;;  %5024 = vmatprep.subr.mxu0 %v10612_v37 }
0x142f   :  { %5134 = vmatpush1.msra.mxu1 %v11067_v18  ;;  %5025 = vmatpush1.msra.mxu0 %v10786_v50  ;;  %v5002_v50 = vrot.slane %v4868_v45, 2 }
0x1430   :  { %5135 = vmatprep.subr.mxu1 %v10612_v37  ;;  %5026 = vmatprep.subr.mxu0 %v10612_v37 }
0x1431   :  { %5136 = vmatpush1.msra.mxu1 %v11076_v55  ;;  %5027 = vmatpush1.msra.mxu0 %v10800_v60  ;;  %v5110_v60 = vsel %vm1763_vm15, %v5108_v34, %v5109_v48 }
0x1432   :  { %5137 = vmatprep.subr.mxu1 %v10612_v37  ;;  %5028 = vmatprep.subr.mxu0 %v10612_v37 }
0x1433   :  { %5138 = vmatpush1.msra.mxu1 %v11085_v53  ;;  %5029 = vmatpush1.msra.mxu0 %v10814_v0  ;;  %v5003_v0 = vsel %vm1432_vm2, %v5001_v54, %v5002_v50 }
0x1434   :  { %5139 = vmatprep.subr.mxu1 %v10612_v37  ;;  %5030 = vmatprep.subr.mxu0 %v10612_v37 }
0x1435   :  { %5140 = vmatpush1.msra.mxu1 %v11094_v3  ;;  %5031 = vmatpush1.msra.mxu0 %v10828_v56  ;;  %v11260_v56 = vld [vmem:[#allocation7] sm:$0xff] }
0x1436   :  { %5141 = vmatprep.subr.mxu1 %v10612_v37  ;;  %5032 = vmatprep.subr.mxu0 %v10612_v37  ;;  %103 = vst.msk [vmem:[#allocation7 + $0x8] sm:$0xff] %vm102_vm6, %v11260_v56  ;;  %105 = vst.msk [vmem:[#allocation7 + $0x18] sm:$0xff] %vm102_vm6, %v11260_v56 }
0x1437   :  { %5142 = vmatpush1.msra.mxu1 %v11103_v49  ;;  %5033 = vmatpush1.msra.mxu0 %v10842_v26  ;;  %v84_v26 = vld [vmem:[%s12091_s18 + $0x70] sm:$0xff]  ;;  %107 = vst.msk [vmem:[#allocation7 + $0x28] sm:$0xff] %vm102_vm6, %v11260_v56  ;;  %109 = vst.msk [vmem:[#allocation7 + $0x38] sm:$0xff] %vm102_vm6, %v11260_v56 }
0x1438   :  { %5143 = vmatprep.subr.mxu1 %v10612_v37  ;;  %5034 = vmatprep.subr.mxu0 %v10612_v37  ;;  %112 = vst.msk [vmem:[#allocation7 + $0x48] sm:$0xf] %vm111_vm14, %v11260_v56  ;;  %vm5453_vm14 = vcmask 1042496  }
0x1439   :  { %5144 = vmatpush1.msra.mxu1 %v11112_v57  ;;  %5035 = vmatpush1.msra.mxu0 %v10856_v28  ;;  %v83_v28 = vld [vmem:[%s12091_s18 + $0x68] sm:$0xff] }
0x143a   :  { %5145 = vmatprep.subr.mxu1 %v10612_v37  ;;  %5036 = vmatprep.subr.mxu0 %v10612_v37 }
0x143b   :  { %5146 = vmatpush1.msra.mxu1 %v11121_v39  ;;  %5037 = vmatpush1.msra.mxu0 %v10870_v25  ;;  %v82_v25 = vld [vmem:[%s12091_s18 + $0x60] sm:$0xff] }
0x143c   :  { %5147 = vmatprep.subr.mxu1 %v10612_v37  ;;  %5038 = vmatprep.subr.mxu0 %v10612_v37 }
0x143d   :  { %5148 = vmatpush1.msra.mxu1 %v11130_v31  ;;  %5039 = vmatpush1.msra.mxu0 %v10884_v51  ;;  %v81_v51 = vld [vmem:[%s12091_s18 + $0x58] sm:$0xff] }
0x143e   :  { %5173 = vmatprep.subr.mxu1 %v10612_v37  ;;  %5040 = vmatprep.subr.mxu0 %v10612_v37 }
0x143f   :  { %5174 = vmatpush2.msra.mxu1 %v11139_v38  ;;  %5041 = vmatpush1.msra.mxu0 %v10893_v27  ;;  %v80_v27 = vld [vmem:[%s12091_s18 + $0x50] sm:$0xff]  ;;  %v6850_v38 = vld [vmem:[%s12092_s10 + $0x1] ss:$0 sm:$0xff] }
0x1440   :  { %5175 = vmatprep.subr.mxu1 %v10612_v37  ;;  %5066 = vmatprep.subr.mxu0 %v10612_v37 }
0x1441   :  { %5176 = vmatpush2.msra.mxu1 %v11148_v16  ;;  %5067 = vmatpush2.msra.mxu0 %v10908_v1  ;;  %v79_v1 = vld [vmem:[%s12091_s18 + $0x48] sm:$0xff]  ;;  %v6606_v16 = vld [vmem:[%s12092_s10] ss:$0 sm:$0xff] }
0x1442   :  { %5177 = vmatprep.subr.mxu1 %v10612_v37  ;;  %5068 = vmatprep.subr.mxu0 %v10612_v37  ;;  %v11362_v61 = vadd.f32 %v6606_v16, %v9880_v15 }
0x1443   :  { %5178 = vmatpush2.msra.mxu1 %v11157_v8  ;;  %5069 = vmatpush2.msra.mxu0 %v10920_v7  ;;  %v78_v7 = vld [vmem:[%s12091_s18 + $0x40] sm:$0xff]  ;;  %v11357_v8 = vadd.f32 %v6606_v16, %v9878_v11  ;;  %v11486_v16 = vld [vmem:[%s12093_s13 + $0xd0] sm:$0xff] }
0x1444   :  { %5179 = vmatprep.subr.mxu1 %v10612_v37  ;;  %5070 = vmatprep.subr.mxu0 %v10612_v37 }
0x1445   :  { %5180 = vmatpush2.msra.mxu1 %v11169_v13  ;;  %5071 = vmatpush2.msra.mxu0 %v10936_v9  ;;  %v77_v9 = vld [vmem:[%s12091_s18 + $0x38] sm:$0xff] }
0x1446   :  { %5182 = vmatmul.mubr.f32.vlgmr.msra.gmra.mxu1 %v5110_v60  ;;  %5072 = vmatprep.subr.mxu0 %v10612_v37  ;;  %v85_v37 = vld [vmem:[%s12091_s18 + $0x78] sm:$0xff] }
0x1447   :  { %5073 = vmatpush2.msra.mxu0 %v10950_v29  ;;  %7744 = vmatprep.subr.mxu1 %v11260_v56  ;;  %v76_v29 = vld [vmem:[%s12091_s18 + $0x30] sm:$0xff] }
0x1448   :  { %5075 = vmatmul.mubr.f32.vlgmr.msra.gmra.mxu0 %v5003_v0  ;;  %7709 = vmatprep.subr.mxu0 %v11260_v56 }
0x1449   :  { %7741 = vmatprep.mubr.msk.f32.mxu0 %vm7922_vm3, %v11260_v56  ;;  %7776 = vmatprep.mubr.msk.f32.mxu1 %vm7922_vm3, %v11260_v56 }
0x144a   :  { %7710 = vmatpush3.msra.mxu0 %v85_v37  ;;  %7745 = vmatpush3.msra.mxu1 %v85_v37 }
0x144b   :  { %7711 = vmatprep.subr.mxu0 %v11260_v56  ;;  %7746 = vmatprep.subr.mxu1 %v11260_v56 }
0x144c   :  { %7712 = vmatpush3.msra.mxu0 %v84_v26  ;;  %7747 = vmatpush3.msra.mxu1 %v84_v26 }
0x144d   :  { %7713 = vmatprep.subr.mxu0 %v11260_v56  ;;  %7748 = vmatprep.subr.mxu1 %v11260_v56 }
0x144e   :  { %7714 = vmatpush3.msra.mxu0 %v83_v28  ;;  %7749 = vmatpush3.msra.mxu1 %v83_v28 }
0x144f   :  { %7715 = vmatprep.subr.mxu0 %v11260_v56  ;;  %7750 = vmatprep.subr.mxu1 %v11260_v56 }
0x1450   :  { %7716 = vmatpush3.msra.mxu0 %v82_v25  ;;  %7751 = vmatpush3.msra.mxu1 %v82_v25 }
0x1451   :  { %7717 = vmatprep.subr.mxu0 %v11260_v56  ;;  %7752 = vmatprep.subr.mxu1 %v11260_v56 }
0x1452   :  { %7718 = vmatpush3.msra.mxu0 %v81_v51  ;;  %7753 = vmatpush3.msra.mxu1 %v81_v51 }
0x1453   :  { %7719 = vmatprep.subr.mxu0 %v11260_v56  ;;  %7754 = vmatprep.subr.mxu1 %v11260_v56 }
0x1454   :  { %7720 = vmatpush3.msra.mxu0 %v80_v27  ;;  %7755 = vmatpush3.msra.mxu1 %v80_v27 }
0x1455   :  { %7721 = vmatprep.subr.mxu0 %v11260_v56  ;;  %7756 = vmatprep.subr.mxu1 %v11260_v56 }
0x1456   :  { %7722 = vmatpush3.msra.mxu0 %v79_v1  ;;  %7757 = vmatpush3.msra.mxu1 %v79_v1 }
0x1457   :  { %7723 = vmatprep.subr.mxu0 %v11260_v56  ;;  %7758 = vmatprep.subr.mxu1 %v11260_v56 }
0x1458   :  { %7724 = vmatpush3.msra.mxu0 %v78_v7  ;;  %7759 = vmatpush3.msra.mxu1 %v78_v7 }
0x1459   :  { %7725 = vmatprep.subr.mxu0 %v11260_v56  ;;  %7760 = vmatprep.subr.mxu1 %v11260_v56 }
0x145a   :  { %7726 = vmatpush3.msra.mxu0 %v77_v9  ;;  %7761 = vmatpush3.msra.mxu1 %v77_v9 }
0x145b   :  { %7727 = vmatprep.subr.mxu0 %v11260_v56  ;;  %7762 = vmatprep.subr.mxu1 %v11260_v56 }
0x145c   :  { %7728 = vmatpush3.msra.mxu0 %v76_v29  ;;  %7763 = vmatpush3.msra.mxu1 %v76_v29 }
0x145d   :  { %7729 = vmatprep.subr.mxu0 %v11260_v56  ;;  %7764 = vmatprep.subr.mxu1 %v11260_v56 }
0x145e   :  { %7730 = vmatpush3.msra.mxu0 %v75_v17  ;;  %7765 = vmatpush3.msra.mxu1 %v75_v17 }
0x145f   :  { %7731 = vmatprep.subr.mxu0 %v11260_v56  ;;  %7766 = vmatprep.subr.mxu1 %v11260_v56 }
0x1460   :  { %7732 = vmatpush3.msra.mxu0 %v74_v2  ;;  %7767 = vmatpush3.msra.mxu1 %v74_v2 }
0x1461   :  { %7733 = vmatprep.subr.mxu0 %v11260_v56  ;;  %7768 = vmatprep.subr.mxu1 %v11260_v56 }
0x1462   :  { %7734 = vmatpush3.msra.mxu0 %v73_v43  ;;  %7769 = vmatpush3.msra.mxu1 %v73_v43  ;;  %v11379_v43 = vld [vmem:[%s12093_s13 + $0x78] sm:$0xff] }
0x1463   :  { %7735 = vmatprep.subr.mxu0 %v11260_v56  ;;  %7770 = vmatprep.subr.mxu1 %v11260_v56 }
0x1464   :  { %7736 = vmatpush3.msra.mxu0 %v72_v21  ;;  %7771 = vmatpush3.msra.mxu1 %v72_v21  ;;  %v11384_v21 = vld [vmem:[%s12093_s13 + $0x70] sm:$0xff] }
0x1465   :  { %7737 = vmatprep.subr.mxu0 %v11260_v56  ;;  %7772 = vmatprep.subr.mxu1 %v11260_v56 }
0x1466   :  { %7738 = vmatpush3.msra.mxu0 %v71_v44  ;;  %7773 = vmatpush3.msra.mxu1 %v71_v44  ;;  %v11389_v44 = vld [vmem:[%s12093_s13 + $0x108] sm:$0xff] }
0x1467   :  { %7739 = vmatprep.subr.mxu0 %v11260_v56  ;;  %7774 = vmatprep.subr.mxu1 %v11260_v56 }
0x1468   :  { %7740 = vmatpush3.msra.mxu0 %v70_v19  ;;  %7775 = vmatpush3.msra.mxu1 %v70_v19  ;;  %v11404_v19 = vld [vmem:[%s12093_s13 + $0x100] sm:$0xff] }
0x1469   :  { %5605 = vmatprep.subr.mxu1 %v11260_v56  ;;  %5525 = vmatprep.subr.mxu0 %v11260_v56 }
0x14b2   :  { %v4746_v24 = vpop.f32.mrf.mxu1 }
0x14b4   :  { %v4748_v40 = vpop.f32.mrf.mxu1 }
0x14b5   :  { %v11416_v40 = vld [vmem:[%s12093_s13 + $0xf8] sm:$0xff] }
0x14b6   :  { %v4673_v18 = vpop.f32.mrf.mxu0 }
0x14b7   :  { %v4747_v55 = vadd.f32 %v4746_v24, %v4673_v18  ;;  %v11410_v24 = vld [vmem:[%s12093_s13 + $0x68] sm:$0xff]  ;;  %v11424_v18 = vld [vmem:[%s12093_s13 + $0x60] sm:$0xff] }
0x14b8   :  { %v4675_v53 = vpop.f32.mrf.mxu0 }
0x14b9   :  { %v11438_v53 = vld [vmem:[%s12093_s13 + $0x58] sm:$0xff] }
0x14dc   :  { %v4993_v3 = vpop.f32.mrf.mxu1 }
0x14de   :  { %v4995_v49 = vpop.f32.mrf.mxu1 }
0x14df   :  { %v4854_v57 = vpop.f32.mrf.mxu0  ;;  %v11452_v49 = vld [vmem:[%s12093_s13 + $0x50] sm:$0xff] }
0x14e0   :  { %v4858_v31 = vadd.f32 %v4854_v57, %v4747_v55  ;;  %v11430_v55 = vld [vmem:[%s12093_s13 + $0xf0] sm:$0xff]  ;;  %v11458_v57 = vld [vmem:[%s12093_s13 + $0xe0] sm:$0xff] }
0x14e1   :  { %v4856_v39 = vpop.f32.mrf.mxu0 }
0x14e2   :  { %v11354_v42 = vadd.f32 %v6850_v38, %v4858_v31  ;;  %v11466_v39 = vld [vmem:[%s12093_s13 + $0x48] sm:$0xff]  ;;  %v11472_v31 = vld [vmem:[%s12093_s13 + $0xd8] sm:$0xff] }
0x14e4   :  { %v5200_v35 = vadd.f32 %v11354_v42, %v11357_v8 }
0x14e6   :  { %v5201_v13 = vadd.f32 %v5200_v35, %v11362_v61  ;;  %v11514_v35 = vld [vmem:[%s12093_s13 + $0xc0] sm:$0xff] }
0x1506   :  { %v5183_v52 = vpop.f32.mrf.mxu1 }
0x1508   :  { %v5185_v12 = vpop.f32.mrf.mxu1  ;;  %v5076_v47 = vpop.f32.mrf.mxu0 }
0x1509   :  { %v5077_v33 = vadd.f32 %v5076_v47, %v4993_v3  ;;  %v11444_v3 = vld [vmem:[%s12093_s13 + $0xe8] sm:$0xff]  ;;  %v11508_v47 = vld [vmem:[%s12093_s13 + $0x30] sm:$0xff] }
0x150a   :  { %v5078_v4 = vpop.f32.mrf.mxu0  ;;  %v11500_v12 = vld [vmem:[%s12093_s13 + $0xc8] sm:$0xff] }
0x150b   :  { %v5187_v22 = vadd.f32 %v5183_v52, %v5077_v33  ;;  %v11494_v52 = vld [vmem:[%s12093_s13 + $0x38] sm:$0xff]  ;;  %v11522_v33 = vld [vmem:[%s12093_s13 + $0x28] sm:$0xff] }
0x150c   :  { %v11528_v4 = vld [vmem:[%s12093_s13 + $0xb8] sm:$0xff] }
0x150d   :  { %v11365_v20 = vadd.f32 %v6850_v38, %v5187_v22  ;;  %v11480_v38 = vld [vmem:[%s12093_s13 + $0x40] sm:$0xff] }
0x150e   :  { %v11536_v22 = vld [vmem:[%s12093_s13 + $0x20] sm:$0xff] }
0x150f   :  { %v5202_v62 = vadd.f32 %v5201_v13, %v11365_v20  ;;  %v11542_v13 = vld [vmem:[%s12093_s13 + $0xb0] sm:$0xff] }
0x1511   :  { %v5203_v41 = vrot.slane %v5202_v62, 4 }
0x1513   :  { %v5204_v11 = vadd.f32 %v5203_v41, %v5202_v62  ;;  %v11550_v62 = vld [vmem:[%s12093_s13 + $0x18] sm:$0xff]  ;;  %v11559_v41 = vld [vmem:[%s12093_s13 + $0x10] sm:$0xff] }
0x1515   :  { %v5205_v10 = vrot.slane %v5204_v11, 2 }
0x1517   :  { %v5206_v36 = vadd.f32 %v5205_v10, %v5204_v11 }
0x1519   :  { %v5207_v14 = vrot.slane %v5206_v36, 1 }
0x151b   :  { %v5208_v6 = vadd.f32 %v5207_v14, %v5206_v36 }
0x151d   :  { %7742 = vmatmul.mubr.f32.vlgmr.msra.gmra.mxu0 %v5208_v6  ;;  %v5198_v6 = vld [vmem:[%s12094_s11] sm:$0x1] }
0x151e   :  { %5526 = vmatpush1.msra.mxu0 %v11389_v44 }
0x151f   :  { %5527 = vmatprep.subr.mxu0 %v11260_v56 }
0x1520   :  { %5528 = vmatpush1.msra.mxu0 %v11404_v19 }
0x1521   :  { %5529 = vmatprep.subr.mxu0 %v11260_v56 }
0x1522   :  { %5530 = vmatpush1.msra.mxu0 %v11416_v40 }
0x1523   :  { %5531 = vmatprep.subr.mxu0 %v11260_v56 }
0x1524   :  { %5532 = vmatpush1.msra.mxu0 %v11430_v55 }
0x1525   :  { %5533 = vmatprep.subr.mxu0 %v11260_v56 }
0x1526   :  { %5534 = vmatpush1.msra.mxu0 %v11444_v3 }
0x1527   :  { %5535 = vmatprep.subr.mxu0 %v11260_v56 }
0x1528   :  { %5536 = vmatpush1.msra.mxu0 %v11458_v57 }
0x1529   :  { %5537 = vmatprep.subr.mxu0 %v11260_v56 }
0x152a   :  { %5538 = vmatpush1.msra.mxu0 %v11472_v31 }
0x152b   :  { %5539 = vmatprep.subr.mxu0 %v11260_v56 }
0x152c   :  { %5540 = vmatpush1.msra.mxu0 %v11486_v16 }
0x152d   :  { %5541 = vmatprep.subr.mxu0 %v11260_v56 }
0x152e   :  { %5542 = vmatpush1.msra.mxu0 %v11500_v12 }
0x152f   :  { %5543 = vmatprep.subr.mxu0 %v11260_v56 }
0x1530   :  { %5544 = vmatpush1.msra.mxu0 %v11514_v35 }
0x1531   :  { %5545 = vmatprep.subr.mxu0 %v11260_v56 }
0x1532   :  { %5546 = vmatpush1.msra.mxu0 %v11528_v4 }
0x1533   :  { %5547 = vmatprep.subr.mxu0 %v11260_v56 }
0x1534   :  { %5548 = vmatpush1.msra.mxu0 %v11542_v13 }
0x1535   :  { %5549 = vmatprep.subr.mxu0 %v11260_v56 }
0x15dd   :  { %v5275_v46 = vpop.f32.mrf.mxu0 }
0x15de   :  { %v11368_v45 = vmul.f32 0.001953125, %v5275_v46 }
0x15df   :  { %v7743_v34 = vpop.f32.mrf.mxu0 }
0x15e0   :  { %v5283_v15 = vrot.slane %v11368_v45, %v8386_v59 }
0x15e2   :  { %v5284_v48 = vsub.f32 %v11357_v8, %v5283_v15  ;;  %v5285_v54 = vsub.f32 %v11354_v42, %v5283_v15  ;;  %v5286_v50 = vsub.f32 %v11362_v61, %v5283_v15  ;;  %v5287_v60 = vsub.f32 %v11365_v20, %v5283_v15  ;;  %v5199_v15 = vld [vmem:[%s12095_s12] sm:$0x1] }
0x15e4   :  { %v5288_v0 = vmul.f32 %v5284_v48, %v5284_v48  ;;  %v5289_v37 = vmul.f32 %v5285_v54, %v5285_v54  ;;  %v5290_v26 = vmul.f32 %v5286_v50, %v5286_v50  ;;  %v5291_v25 = vmul.f32 %v5287_v60, %v5287_v60  ;;  %v11577_v50 = vld [vmem:[%s12093_s13 + $0xa8] sm:$0xff] }
0x15e5   :  { %v11582_v60 = vld [vmem:[%s12093_s13 + $0x8] sm:$0xff]  ;;  %5550 = vmatpush1.msra.mxu0 %v11577_v50 }
0x15e6   :  { %v5292_v28 = vadd.f32 %v5289_v37, %v5288_v0  ;;  %v11587_v0 = vld [vmem:[%s12093_s13 + $0xa0] sm:$0xff]  ;;  %5551 = vmatprep.subr.mxu0 %v11260_v56 }
0x15e7   :  { %5552 = vmatpush1.msra.mxu0 %v11587_v0 }
0x15e8   :  { %v5293_v51 = vadd.f32 %v5292_v28, %v5290_v26  ;;  %5553 = vmatprep.subr.mxu0 %v11260_v56 }
0x15ea   :  { %v5294_v27 = vadd.f32 %v5293_v51, %v5291_v25  ;;  %v11607_v51 = vld [vmem:[%s12093_s13 + $0x98] sm:$0xff] }
0x15eb   :  { %5554 = vmatpush1.msra.mxu0 %v11607_v51 }
0x15ec   :  { %v5295_v1 = vrot.slane %v5294_v27, 4  ;;  %5555 = vmatprep.subr.mxu0 %v11260_v56 }
0x15ee   :  { %v5296_v7 = vadd.f32 %v5295_v1, %v5294_v27  ;;  %v11612_v27 = vld [vmem:[%s12093_s13 + $0x88] sm:$0xff] }
0x15f0   :  { %v5297_v9 = vrot.slane %v5296_v7, 2 }
0x15f2   :  { %v5298_v29 = vadd.f32 %v5297_v9, %v5296_v7  ;;  %v11621_v9 = vld [vmem:[%s12093_s13 + $0x90] sm:$0xff] }
0x15f3   :  { %5556 = vmatpush1.msra.mxu0 %v11621_v9 }
0x15f4   :  { %v5299_v17 = vrot.slane %v5298_v29, 1  ;;  %5585 = vmatprep.subr.mxu0 %v11260_v56 }
0x15f6   :  { %v5300_v2 = vadd.f32 %v5299_v17, %v5298_v29  ;;  %v11626_v29 = vld [vmem:[%s12093_s13 + $0x80] sm:$0xff] }
0x15f8   :  { %7777 = vmatmul.mubr.f32.vlgmr.msra.gmra.mxu1 %v5300_v2 }
0x15f9   :  { %5606 = vmatpush1.msra.mxu1 %v11379_v43 }
0x15fa   :  { %5607 = vmatprep.subr.mxu1 %v11260_v56 }
0x15fb   :  { %5608 = vmatpush1.msra.mxu1 %v11384_v21 }
0x15fc   :  { %5609 = vmatprep.subr.mxu1 %v11260_v56 }
0x15fd   :  { %5610 = vmatpush1.msra.mxu1 %v11410_v24 }
0x15fe   :  { %5611 = vmatprep.subr.mxu1 %v11260_v56 }
0x15ff   :  { %5612 = vmatpush1.msra.mxu1 %v11424_v18 }
0x1600   :  { %5613 = vmatprep.subr.mxu1 %v11260_v56 }
0x1601   :  { %5614 = vmatpush1.msra.mxu1 %v11438_v53 }
0x1602   :  { %5615 = vmatprep.subr.mxu1 %v11260_v56 }
0x1603   :  { %5616 = vmatpush1.msra.mxu1 %v11452_v49 }
0x1604   :  { %5617 = vmatprep.subr.mxu1 %v11260_v56 }
0x1605   :  { %5618 = vmatpush1.msra.mxu1 %v11466_v39 }
0x1606   :  { %5619 = vmatprep.subr.mxu1 %v11260_v56 }
0x1607   :  { %5620 = vmatpush1.msra.mxu1 %v11480_v38 }
0x1608   :  { %5621 = vmatprep.subr.mxu1 %v11260_v56 }
0x1609   :  { %5622 = vmatpush1.msra.mxu1 %v11494_v52 }
0x160a   :  { %5623 = vmatprep.subr.mxu1 %v11260_v56 }
0x160b   :  { %5624 = vmatpush1.msra.mxu1 %v11508_v47 }
0x160c   :  { %5625 = vmatprep.subr.mxu1 %v11260_v56 }
0x160d   :  { %5626 = vmatpush1.msra.mxu1 %v11522_v33 }
0x160e   :  { %5627 = vmatprep.subr.mxu1 %v11260_v56 }
0x160f   :  { %5628 = vmatpush1.msra.mxu1 %v11536_v22 }
0x1610   :  { %5629 = vmatprep.subr.mxu1 %v11260_v56 }
0x1611   :  { %5630 = vmatpush1.msra.mxu1 %v11550_v62 }
0x1612   :  { %5631 = vmatprep.subr.mxu1 %v11260_v56 }
0x1613   :  { %5632 = vmatpush1.msra.mxu1 %v11559_v41 }
0x1614   :  { %5633 = vmatprep.subr.mxu1 %v11260_v56 }
0x1615   :  { %5634 = vmatpush1.msra.mxu1 %v11582_v60 }
0x1616   :  { %5635 = vmatprep.subr.mxu1 %v11260_v56 }
0x16b8   :  { %v5367_v11 = vpop.f32.mrf.mxu1 }
0x16b9   :  { %v5371_v10 = vmul.f32 0.001953125, %v5367_v11 }
0x16ba   :  { %v7778_v36 = vpop.f32.mrf.mxu1 }
0x16bb   :  { %v5372_v14 = vadd.f32 1e-05, %v5371_v10 }
0x16bd   :  { %7871 = vrsqrt.f32 %v5372_v14 }
0x16ca   :  { %v7872_v46 = vpop.eup %7871 }
0x16cb   :  { %v5374_v34 = vmul.f32 %v7872_v46, %v5198_v6  ;;  %v11637_v6 = vld [vmem:[%s12093_s13 + $0x118] sm:$0xff] }
0x16cc   :  { %5586 = vmatpush2.msra.mxu0 %v11637_v6 }
0x16cd   :  { %v5375_v48 = vmul.f32 %v5374_v34, %v11368_v45  ;;  %v5383_v54 = vrot.slane %v5374_v34, %v8386_v59  ;;  %v11594_v45 = vld [vmem:[%s12093_s13] sm:$0xff]  ;;  %5587 = vmatprep.subr.mxu0 %v11260_v56 }
0x16ce   :  { %5636 = vmatpush1.msra.mxu1 %v11594_v45 }
0x16cf   :  { %v5376_v37 = vsub.f32 %v5199_v15, %v5375_v48  ;;  %v5385_v26 = vmul.f32 %v5383_v54, %v11357_v8  ;;  %v5386_v25 = vmul.f32 %v5383_v54, %v11354_v42  ;;  %v5426_v1 = vmul.f32 %v5383_v54, %v11362_v61  ;;  %5665 = vmatprep.subr.mxu1 %v11260_v56  ;;  %v11645_v15 = vld [vmem:[%s12093_s13 + $0x110] sm:$0xff] }
0x16d0   :  { %v5427_v7 = vmul.f32 %v5383_v54, %v11365_v20  ;;  %5666 = vmatpush2.msra.mxu1 %v11612_v27  ;;  %5588 = vmatpush2.msra.mxu0 %v11645_v15 }
0x16d1   :  { %v5391_v28 = vrot.slane %v5376_v37, %v8386_v59  ;;  %5667 = vmatprep.subr.mxu1 %v11260_v56  ;;  %5723 = vmatprep.subr.mxu0 %v11260_v56 }
0x16d2   :  { %5668 = vmatpush2.msra.mxu1 %v11626_v29 }
0x16d3   :  { %v5393_v17 = vadd.f32 %v5391_v28, %v5385_v26  ;;  %v5394_v2 = vadd.f32 %v5391_v28, %v5386_v25  ;;  %v5428_v11 = vadd.f32 %v5426_v1, %v5391_v28  ;;  %v5429_v10 = vadd.f32 %v5427_v7, %v5391_v28  ;;  %5891 = vmatprep.subr.mxu1 %v11260_v56 }
0x16d5   :  { %v5395_v36 = vmax.f32 %v5393_v17, 0.0  ;;  %v5396_v14 = vmax.f32 %v5394_v2, 0.0  ;;  %v5430_v48 = vmax.f32 %v5428_v11, 0.0  ;;  %v5431_v54 = vmax.f32 %v5429_v10, 0.0 }
0x16d7   :  { %v5400_v46 = vrot.slane %v5395_v36, 7  ;;  %v5401_v34 = vrot.slane %v5396_v14, 7  ;;  %v5435_v26 = vrot.slane %v5430_v48, 5  ;;  %v5436_v28 = vrot.slane %v5431_v54, 5 }
0x16d9   :  { %5403 = vrot.lane.b32.xlu0 %v5400_v46, %s7924_s1  ;;  %v5402_v37 = vsel %vm5399_vm0, %v5400_v46, %v5401_v34  ;;  %v5437_v25 = vsel %vm5434_vm1, %v5435_v26, %v5436_v28  ;;  %vm5455_vm0 = vcmask 59392   ;;  %vm12144_vm1 = vcmask 1046528  }
0x16da   :  { %5405 = vrot.lane.b32.xlu1 %v5402_v37, %s7924_s1 }
0x16dd   :  { %5407 = vrot.lane.b32.xlu0 %v5401_v34, %s7924_s1 }
0x16de   :  { %5438 = vrot.lane.b32.xlu1 %v5435_v26, %s7924_s1 }
0x16e1   :  { %5440 = vrot.lane.b32.xlu0 %v5437_v25, %s7924_s1 }
0x16e2   :  { %5442 = vrot.lane.b32.xlu1 %v5436_v28, %s7924_s1 }
0x174b   :  { %v5404_v1 = vpop.permute.xlu0 %5403 }
0x174c   :  { %5413 = vst.msk [vmem:[#allocation7] sm:$0xfe] %vm5412_vm4, %v5404_v1  ;;  %v5406_v7 = vpop.permute.xlu1 %5405  ;;  %vm12145_vm4 = vmmov %vm12144_vm1 }
0x174d   :  { %5415 = vst.msk [vmem:[#allocation7 + $0x8] sm:$0xfe] %vm5414_vm5, %v5404_v1  ;;  %vm12146_vm5 = vmmov %vm12144_vm1 }
0x174e   :  { %5417 = vst.msk [vmem:[#allocation7 + $0x10] sm:$0xff] %vm5416_vm8, %v5406_v7 }
0x174f   :  { %5419 = vst.msk [vmem:[#allocation7 + $0x18] sm:$0xff] %vm5418_vm10, %v5406_v7  ;;  %v5408_v17 = vpop.permute.xlu0 %5407 }
0x1750   :  { %5421 = vst.msk [vmem:[#allocation7 + $0x20] sm:$0x1] %vm5420_vm11, %v5408_v17  ;;  %v5439_v2 = vpop.permute.xlu1 %5438 }
0x1751   :  { %5423 = vst.msk [vmem:[#allocation7 + $0x28] sm:$0x1] %vm5422_vm9, %v5408_v17  ;;  %v11676_v17 = vld [vmem:[%s12093_s13 + $0x198] sm:$0xff] }
0x1752   :  { %5448 = vst.msk [vmem:[#allocation7 + $0x20] sm:$0xf8] %vm5447_vm12, %v5439_v2 }
0x1753   :  { %5450 = vst.msk [vmem:[#allocation7 + $0x28] sm:$0xf8] %vm5449_vm13, %v5439_v2  ;;  %v5441_v11 = vpop.permute.xlu0 %5440  ;;  %v5458_v36 = vld [vmem:[#allocation7] sm:$0xff] }
0x1754   :  { %v5459_v10 = vld [vmem:[#allocation7 + $0x8] sm:$0xff]  ;;  %5451 = vst.msk [vmem:[#allocation7 + $0x30] sm:$0xff] %vm5416_vm8, %v5441_v11  ;;  %v5443_v46 = vpop.permute.xlu1 %5442  ;;  %v5480_v37 = vld [vmem:[#allocation7] sm:$0xfe]  ;;  %vm12147_vm8 = vmmov %vm12144_vm1 }
0x1755   :  { %v5481_v14 = vld [vmem:[#allocation7 + $0x8] sm:$0xfe]  ;;  %5452 = vst.msk [vmem:[#allocation7 + $0x38] sm:$0xff] %vm5418_vm10, %v5441_v11  ;;  %6935 = vmatprep.mubr.msk.f32.mxu1 %vm102_vm6, %v5459_v10  ;;  %v11663_v54 = vld [vmem:[#allocation7 + $0x10] sm:$0xff]  ;;  %v5509_v28 = vrot.slane %v5480_v37, 1 }
0x1756   :  { %v11661_v34 = vld [vmem:[#allocation7 + $0x18] sm:$0xff]  ;;  %v5512_v48 = vrot.slane %v5481_v14, 1  ;;  %5454 = vst.msk [vmem:[#allocation7 + $0x40] sm:$0x7] %vm5453_vm14, %v5443_v46  ;;  %5670 = vmatmul.mubr.f32.vlgmr.msra.gmra.mxu1 %v5458_v36  ;;  %v5510_v25 = vrot.slane %v11663_v54, 1 }
0x1757   :  { %5456 = vst.msk [vmem:[#allocation7 + $0x48] sm:$0x7] %vm5455_vm0, %v5443_v46  ;;  %v5513_v26 = vrot.slane %v11661_v34, 1  ;;  %5892 = vmatpush1.msra.mxu1 %v11389_v44  ;;  %6936 = vmatprep.mubr.msk.f32.mxu1 %vm102_vm6, %v11661_v34  ;;  %v5482_v11 = vld [vmem:[#allocation7 + $0x20] sm:$0x1]  ;;  %v11687_v14 = vld [vmem:[%s12093_s13 + $0x190] sm:$0xff] }
0x1758   :  { %5893 = vmatprep.subr.mxu1 %v11260_v56  ;;  %v5511_v7 = vsel %vm12145_vm4, %v5509_v28, %v5510_v25  ;;  %v5483_v2 = vld [vmem:[#allocation7 + $0x28] sm:$0x1]  ;;  %v5681_v10 = vld [vmem:[#allocation7 + $0x8] sm:$0xfc]  ;;  %v5515_v46 = vrot.slane %v5482_v11, 1  ;;  %v11735_v11 = vld [vmem:[%s12093_s13 + $0x170] sm:$0xff] }
0x1759   :  { %v5514_v1 = vsel %vm12144_vm1, %v5512_v48, %v5513_v26  ;;  %5894 = vmatpush1.msra.mxu1 %v11404_v19  ;;  %v5517_v44 = vrot.slane %v5483_v2, 1  ;;  %v12112_v19 = vrot.slane %v11661_v34, 2  ;;  %v5710_v48 = vrot.slane %v5681_v10, 2 }
0x175a   :  { %6933 = vmatprep.mubr.msk.f32.mxu0 %vm102_vm6, %v5514_v1  ;;  %5895 = vmatprep.subr.mxu1 %v11260_v56  ;;  %v5848_v28 = vld [vmem:[#allocation7 + $0x28] sm:$0xf8]  ;;  %v5516_v1 = vsel %vm12147_vm8, %v5510_v25, %v5515_v46 }
0x175b   :  { %5590 = vmatmul.mubr.f32.vlgmr.msra.gmra.mxu0 %v5511_v7  ;;  %5675 = vmatmul.mubr.f32.gmra.mxu1 %v11663_v54  ;;  %v5518_v36 = vsel %vm12146_vm5, %v5513_v26, %v5517_v44  ;;  %v5878_v7 = vrot.slane %v5848_v28, 3  ;;  %v5712_v2 = vsel %vm1432_vm2, %v5710_v48, %v12112_v19  ;;  %v11753_v44 = vld [vmem:[%s12093_s13 + $0x160] sm:$0xff]  ;;  %v5680_v28 = vld [vmem:[#allocation7] sm:$0xfc] }
0x175c   :  { %5724 = vmatpush1.msra.mxu0 %v11676_v17  ;;  %5896 = vmatpush1.msra.mxu1 %v11416_v40  ;;  %v11692_v37 = vld [vmem:[#allocation7 + $0x38] sm:$0xff]  ;;  %v11702_v40 = vld [vmem:[%s12093_s13 + $0x188] sm:$0xff]  ;;  %v11852_v19 = vld [vmem:[%s12093_s13 + $0x1a0] sm:$0xff] }
0x175d   :  { %5725 = vmatprep.subr.mxu0 %v11260_v56  ;;  %5897 = vmatprep.subr.mxu1 %v11260_v56  ;;  %v5879_v26 = vrot.slane %v11692_v37, 3 }
0x175e   :  { %6934 = vmatprep.mubr.msk.f32.mxu0 %vm102_vm6, %v5518_v36  ;;  %5726 = vmatpush1.msra.mxu0 %v11687_v14  ;;  %v5850_v10 = vld [vmem:[#allocation7 + $0x48] sm:$0x7]  ;;  %v5847_v36 = vld [vmem:[#allocation7 + $0x20] sm:$0xf8] }
0x175f   :  { %5898 = vmatpush1.msra.mxu1 %v11430_v55  ;;  %5727 = vmatprep.subr.mxu0 %v11260_v56  ;;  %v11714_v55 = vld [vmem:[%s12093_s13 + $0x180] sm:$0xff]  ;;  %v5880_v25 = vsel %vm1572_vm7, %v5878_v7, %v5879_v26  ;;  %v5883_v48 = vrot.slane %v5850_v10, 3  ;;  %v11839_v7 = vld [vmem:[%s12093_s13 + $0x1a8] sm:$0xff]  ;;  %v5708_v10 = vrot.slane %v11663_v54, 2 }
0x1760   :  { %5899 = vmatprep.subr.mxu1 %v11260_v56  ;;  %5595 = vmatmul.mubr.f32.gmra.mxu0 %v5516_v1  ;;  %v5849_v1 = vld [vmem:[#allocation7 + $0x40] sm:$0x7]  ;;  %v6062_v54 = vld [vmem:[#allocation7 + $0x28] sm:$0xf0] }
0x1761   :  { %5900 = vmatpush1.msra.mxu1 %v11444_v3  ;;  %5728 = vmatpush1.msra.mxu0 %v11702_v40  ;;  %v11726_v3 = vld [vmem:[%s12093_s13 + $0x178] sm:$0xff] }
0x1762   :  { %6955 = vmatprep.mubr.msk.f32.mxu0 %vm102_vm6, %v5712_v2  ;;  %5729 = vmatprep.subr.mxu0 %v11260_v56  ;;  %v5683_v2 = vld [vmem:[#allocation7 + $0x28] sm:$0x3] }
0x1763   :  { %5901 = vmatprep.subr.mxu1 %v11260_v56  ;;  %5730 = vmatpush1.msra.mxu0 %v11714_v55 }
0x1764   :  { %5902 = vmatpush1.msra.mxu1 %v11458_v57  ;;  %6976 = vmatprep.mubr.msk.f32.mxu1 %vm102_vm6, %v5880_v25  ;;  %v11744_v57 = vld [vmem:[%s12093_s13 + $0x168] sm:$0xff]  ;;  %v5707_v25 = vrot.slane %v5680_v28, 2  ;;  %v5715_v28 = vrot.slane %v5683_v2, 2 }
0x1765   :  { %5731 = vmatprep.subr.mxu0 %v11260_v56  ;;  %5903 = vmatprep.subr.mxu1 %v11260_v56 }
0x1766   :  { %5732 = vmatpush1.msra.mxu0 %v11726_v3  ;;  %5904 = vmatpush1.msra.mxu1 %v11472_v31  ;;  %v11762_v31 = vld [vmem:[%s12093_s13 + $0x158] sm:$0xff] }
0x1767   :  { %5733 = vmatprep.subr.mxu0 %v11260_v56  ;;  %5905 = vmatprep.subr.mxu1 %v11260_v56 }
0x1768   :  { %5734 = vmatpush1.msra.mxu0 %v11735_v11  ;;  %5906 = vmatpush1.msra.mxu1 %v11486_v16  ;;  %v11771_v16 = vld [vmem:[%s12093_s13 + $0x150] sm:$0xff] }
0x1769   :  { %5735 = vmatprep.subr.mxu0 %v11260_v56  ;;  %5907 = vmatprep.subr.mxu1 %v11260_v56 }
0x176a   :  { %5736 = vmatpush1.msra.mxu0 %v11744_v57  ;;  %5908 = vmatpush1.msra.mxu1 %v11500_v12  ;;  %v11780_v12 = vld [vmem:[%s12093_s13 + $0x148] sm:$0xff] }
0x176b   :  { %5737 = vmatprep.subr.mxu0 %v11260_v56  ;;  %5909 = vmatprep.subr.mxu1 %v11260_v56 }
0x176c   :  { %5738 = vmatpush1.msra.mxu0 %v11753_v44  ;;  %5910 = vmatpush1.msra.mxu1 %v11514_v35  ;;  %v11789_v35 = vld [vmem:[%s12093_s13 + $0x140] sm:$0xff] }
0x176d   :  { %5739 = vmatprep.subr.mxu0 %v11260_v56  ;;  %5911 = vmatprep.subr.mxu1 %v11260_v56 }
0x176e   :  { %5740 = vmatpush1.msra.mxu0 %v11762_v31  ;;  %5912 = vmatpush1.msra.mxu1 %v11528_v4  ;;  %v11798_v4 = vld [vmem:[%s12093_s13 + $0x138] sm:$0xff] }
0x176f   :  { %5741 = vmatprep.subr.mxu0 %v11260_v56  ;;  %5913 = vmatprep.subr.mxu1 %v11260_v56 }
0x1770   :  { %5742 = vmatpush1.msra.mxu0 %v11771_v16  ;;  %5914 = vmatpush1.msra.mxu1 %v11542_v13  ;;  %v11807_v13 = vld [vmem:[%s12093_s13 + $0x130] sm:$0xff] }
0x1771   :  { %5743 = vmatprep.subr.mxu0 %v11260_v56  ;;  %5915 = vmatprep.subr.mxu1 %v11260_v56 }
0x1772   :  { %5744 = vmatpush1.msra.mxu0 %v11780_v12  ;;  %5916 = vmatpush1.msra.mxu1 %v11577_v50  ;;  %v11811_v50 = vld [vmem:[#allocation7 + $0x30] sm:$0xff] }
0x1773   :  { %5745 = vmatprep.subr.mxu0 %v11260_v56  ;;  %5917 = vmatprep.subr.mxu1 %v11260_v56  ;;  %v5876_v46 = vrot.slane %v11811_v50, 3 }
0x1774   :  { %5746 = vmatpush1.msra.mxu0 %v11789_v35  ;;  %5918 = vmatpush1.msra.mxu1 %v11587_v0  ;;  %v11818_v0 = vld [vmem:[%s12093_s13 + $0x128] sm:$0xff] }
0x1775   :  { %5747 = vmatprep.subr.mxu0 %v11260_v56  ;;  %5919 = vmatprep.subr.mxu1 %v11260_v56 }
0x1776   :  { %5748 = vmatpush1.msra.mxu0 %v11798_v4  ;;  %5920 = vmatpush1.msra.mxu1 %v11607_v51  ;;  %v11827_v51 = vld [vmem:[%s12093_s13 + $0x120] sm:$0xff] }
0x1777   :  { %5749 = vmatprep.subr.mxu0 %v11260_v56  ;;  %5921 = vmatprep.subr.mxu1 %v11260_v56 }
0x1778   :  { %5750 = vmatpush1.msra.mxu0 %v11807_v13  ;;  %5922 = vmatpush1.msra.mxu1 %v11621_v9  ;;  %v5875_v9 = vrot.slane %v5847_v36, 3  ;;  %v5884_v36 = vsel %vm1572_vm7, %v5879_v26, %v5883_v48  ;;  %v5709_v26 = vsel %vm1432_vm2, %v5707_v25, %v5708_v10  ;;  %v6091_v48 = vrot.slane %v11692_v37, 4  ;;  %v5824_v25 = vld [vmem:[#allocation7 + $0x28] sm:$0xfc] }
0x1779   :  { %5751 = vmatprep.subr.mxu0 %v11260_v56  ;;  %5951 = vmatprep.subr.mxu1 %v11260_v56 }
0x177a   :  { %5752 = vmatpush1.msra.mxu0 %v11818_v0  ;;  %5952 = vmatpush2.msra.mxu1 %v11637_v6  ;;  %v5877_v6 = vsel %vm1572_vm7, %v5875_v9, %v5876_v46  ;;  %v5682_v9 = vld [vmem:[#allocation7 + $0x20] sm:$0x3] }
0x177b   :  { %5753 = vmatprep.subr.mxu0 %v11260_v56  ;;  %5953 = vmatprep.subr.mxu1 %v11260_v56 }
0x177c   :  { %5754 = vmatpush1.msra.mxu0 %v11827_v51  ;;  %5954 = vmatpush2.msra.mxu1 %v11645_v15  ;;  %v5881_v15 = vrot.slane %v5849_v1, 3 }
0x177d   :  { %5783 = vmatprep.subr.mxu0 %v11260_v56  ;;  %5956 = vmatmul.mubr.f32.vlgmr.msra.gmra.mxu1 %v5877_v6  ;;  %v6090_v6 = vrot.slane %v6062_v54, 4 }
0x177e   :  { %6103 = vmatprep.subr.mxu1 %v11260_v56  ;;  %5784 = vmatpush2.msra.mxu0 %v11839_v7  ;;  %v5882_v1 = vsel %vm1572_vm7, %v5876_v46, %v5881_v15  ;;  %v5974_v46 = vrot.slane %v11692_v37, 2  ;;  %v5973_v15 = vrot.slane %v5824_v25, 2  ;;  %v7905_v37 = vld [vmem:[%s12091_s18 + $0x70] sm:$0xff] }
0x177f   :  { %6977 = vmatprep.mubr.msk.f32.mxu1 %vm102_vm6, %v5884_v36  ;;  %6104 = vmatpush1.msra.mxu1 %v11676_v17  ;;  %v12148_v17 = vrot.slane %v11661_v34, 2  ;;  %v5713_v36 = vrot.slane %v5682_v9, 2 }
0x1780   :  { %5785 = vmatprep.subr.mxu0 %v11260_v56  ;;  %6105 = vmatprep.subr.mxu1 %v11260_v56 }
0x1781   :  { %5786 = vmatpush2.msra.mxu0 %v11852_v19  ;;  %6106 = vmatpush1.msra.mxu1 %v11687_v14  ;;  %v5716_v2 = vsel %vm1432_vm2, %v12148_v17, %v5715_v28  ;;  %v6092_v14 = vsel %vm1763_vm15, %v6090_v6, %v6091_v48  ;;  %v5714_v34 = vsel %vm1432_vm2, %v5708_v10, %v5713_v36  ;;  %v7919_v10 = vld [vmem:[%s12091_s18] sm:$0xff] }
0x1782   :  { %5788 = vmatmul.mubr.f32.vlgmr.msra.gmra.mxu0 %v5709_v26  ;;  %5961 = vmatmul.mubr.f32.gmra.mxu1 %v5882_v1 }
0x1783   :  { %5986 = vmatprep.subr.mxu0 %v11260_v56  ;;  %6107 = vmatprep.subr.mxu1 %v11260_v56 }
0x1784   :  { %6956 = vmatprep.mubr.msk.f32.mxu0 %vm102_vm6, %v5716_v2  ;;  %5987 = vmatpush1.msra.mxu0 %v11379_v43  ;;  %v5975_v43 = vsel %vm1432_vm2, %v5973_v15, %v5974_v46 }
0x1785   :  { %6108 = vmatpush1.msra.mxu1 %v11702_v40  ;;  %6998 = vmatprep.mubr.msk.f32.mxu1 %vm102_vm6, %v6092_v14 }
0x1786   :  { %5988 = vmatprep.subr.mxu0 %v11260_v56  ;;  %6109 = vmatprep.subr.mxu1 %v11260_v56 }
0x1787   :  { %5989 = vmatpush1.msra.mxu0 %v11384_v21  ;;  %6110 = vmatpush1.msra.mxu1 %v11714_v55  ;;  %v6064_v21 = vld [vmem:[#allocation7 + $0x48] sm:$0xf] }
0x1788   :  { %5793 = vmatmul.mubr.f32.gmra.mxu0 %v5714_v34  ;;  %5990 = vmatprep.subr.mxu0 %v11260_v56 }
0x1789   :  { %6111 = vmatprep.subr.mxu1 %v11260_v56  ;;  %5991 = vmatpush1.msra.mxu0 %v11410_v24  ;;  %v6061_v24 = vld [vmem:[#allocation7 + $0x20] sm:$0xf0] }
0x178a   :  { %6978 = vmatprep.mubr.msk.f32.mxu0 %vm102_vm6, %v5975_v43  ;;  %6112 = vmatpush1.msra.mxu1 %v11726_v3 }
0x178b   :  { %5992 = vmatprep.subr.mxu0 %v11260_v56  ;;  %6113 = vmatprep.subr.mxu1 %v11260_v56 }
0x178c   :  { %5993 = vmatpush1.msra.mxu0 %v11424_v18  ;;  %6114 = vmatpush1.msra.mxu1 %v11735_v11  ;;  %v6088_v18 = vrot.slane %v11811_v50, 4  ;;  %v7906_v11 = vld [vmem:[%s12091_s18 + $0x68] sm:$0xff] }
0x178d   :  { %5994 = vmatprep.subr.mxu0 %v11260_v56  ;;  %6115 = vmatprep.subr.mxu1 %v11260_v56 }
0x178e   :  { %5995 = vmatpush1.msra.mxu0 %v11438_v53  ;;  %6116 = vmatpush1.msra.mxu1 %v11744_v57  ;;  %v6095_v53 = vrot.slane %v6064_v21, 4  ;;  %v7907_v57 = vld [vmem:[%s12091_s18 + $0x60] sm:$0xff] }
0x178f   :  { %5996 = vmatprep.subr.mxu0 %v11260_v56  ;;  %6117 = vmatprep.subr.mxu1 %v11260_v56 }
0x1790   :  { %5997 = vmatpush1.msra.mxu0 %v11452_v49  ;;  %6118 = vmatpush1.msra.mxu1 %v11753_v44  ;;  %v6063_v49 = vld [vmem:[#allocation7 + $0x40] sm:$0xf] }
0x1791   :  { %5998 = vmatprep.subr.mxu0 %v11260_v56  ;;  %6119 = vmatprep.subr.mxu1 %v11260_v56  ;;  %v7908_v44 = vld [vmem:[%s12091_s18 + $0x58] sm:$0xff] }
0x1792   :  { %5999 = vmatpush1.msra.mxu0 %v11466_v39  ;;  %6120 = vmatpush1.msra.mxu1 %v11762_v31  ;;  %v5828_v39 = vld [vmem:[#allocation7 + $0x48] sm:$0x3]  ;;  %v7909_v31 = vld [vmem:[%s12091_s18 + $0x50] sm:$0xff] }
0x1793   :  { %6000 = vmatprep.subr.mxu0 %v11260_v56  ;;  %6121 = vmatprep.subr.mxu1 %v11260_v56 }
0x1794   :  { %6001 = vmatpush1.msra.mxu0 %v11480_v38  ;;  %6122 = vmatpush1.msra.mxu1 %v11771_v16  ;;  %v6087_v38 = vrot.slane %v6061_v24, 4  ;;  %v7910_v16 = vld [vmem:[%s12091_s18 + $0x48] sm:$0xff] }
0x1795   :  { %6002 = vmatprep.subr.mxu0 %v11260_v56  ;;  %6123 = vmatprep.subr.mxu1 %v11260_v56 }
0x1796   :  { %6003 = vmatpush1.msra.mxu0 %v11494_v52  ;;  %6124 = vmatpush1.msra.mxu1 %v11780_v12  ;;  %v5823_v52 = vld [vmem:[#allocation7 + $0x20] sm:$0xfc]  ;;  %v7911_v12 = vld [vmem:[%s12091_s18 + $0x40] sm:$0xff] }
0x1797   :  { %6004 = vmatprep.subr.mxu0 %v11260_v56  ;;  %6125 = vmatprep.subr.mxu1 %v11260_v56  ;;  %v5970_v40 = vrot.slane %v5823_v52, 2 }
0x1798   :  { %6005 = vmatpush1.msra.mxu0 %v11508_v47  ;;  %6126 = vmatpush1.msra.mxu1 %v11789_v35  ;;  %v5971_v47 = vrot.slane %v11811_v50, 2  ;;  %v7912_v35 = vld [vmem:[%s12091_s18 + $0x38] sm:$0xff]  ;;  %v7915_v50 = vld [vmem:[%s12091_s18 + $0x20] sm:$0xff] }
0x1799   :  { %6006 = vmatprep.subr.mxu0 %v11260_v56  ;;  %6127 = vmatprep.subr.mxu1 %v11260_v56 }
0x179a   :  { %6007 = vmatpush1.msra.mxu0 %v11522_v33  ;;  %6128 = vmatpush1.msra.mxu1 %v11798_v4  ;;  %v6089_v33 = vsel %vm1763_vm15, %v6087_v38, %v6088_v18  ;;  %v7913_v4 = vld [vmem:[%s12091_s18 + $0x30] sm:$0xff] }
0x179b   :  { %6008 = vmatprep.subr.mxu0 %v11260_v56  ;;  %6129 = vmatprep.subr.mxu1 %v11260_v56 }
0x179c   :  { %6009 = vmatpush1.msra.mxu0 %v11536_v22  ;;  %6130 = vmatpush1.msra.mxu1 %v11807_v13  ;;  %v6093_v22 = vrot.slane %v6063_v49, 4  ;;  %v7914_v13 = vld [vmem:[%s12091_s18 + $0x28] sm:$0xff] }
0x179d   :  { %6010 = vmatprep.subr.mxu0 %v11260_v56  ;;  %6131 = vmatprep.subr.mxu1 %v11260_v56 }
0x179e   :  { %6011 = vmatpush1.msra.mxu0 %v11550_v62  ;;  %6132 = vmatpush1.msra.mxu1 %v11818_v0  ;;  %v5978_v62 = vrot.slane %v5828_v39, 2  ;;  %v6094_v55 = vsel %vm1763_vm15, %v6088_v18, %v6093_v22  ;;  %v7916_v0 = vld [vmem:[%s12091_s18 + $0x18] sm:$0xff]  ;;  %v6957_v39 = vld [vmem:[%s12096_s14] ss:$0 sm:$0xff] }
0x179f   :  { %6012 = vmatprep.subr.mxu0 %v11260_v56  ;;  %6133 = vmatprep.subr.mxu1 %v11260_v56 }
0x17a0   :  { %6013 = vmatpush1.msra.mxu0 %v11559_v41  ;;  %6134 = vmatpush1.msra.mxu1 %v11827_v51  ;;  %v5827_v41 = vld [vmem:[#allocation7 + $0x40] sm:$0x3]  ;;  %v7917_v51 = vld [vmem:[%s12091_s18 + $0x10] sm:$0xff] }
0x17a1   :  { %6014 = vmatprep.subr.mxu0 %v11260_v56  ;;  %6163 = vmatprep.subr.mxu1 %v11260_v56 }
0x17a2   :  { %6015 = vmatpush1.msra.mxu0 %v11582_v60  ;;  %6164 = vmatpush2.msra.mxu1 %v11839_v7  ;;  %v6096_v60 = vsel %vm1763_vm15, %v6091_v48, %v6095_v53  ;;  %v7918_v7 = vld [vmem:[%s12091_s18 + $0x8] sm:$0xff] }
0x17a3   :  { %6016 = vmatprep.subr.mxu0 %v11260_v56  ;;  %6165 = vmatprep.subr.mxu1 %v11260_v56 }
0x17a4   :  { %6017 = vmatpush1.msra.mxu0 %v11594_v45  ;;  %6166 = vmatpush2.msra.mxu1 %v11852_v19  ;;  %v5972_v45 = vsel %vm1432_vm2, %v5970_v40, %v5971_v47  ;;  %v5976_v19 = vrot.slane %v5827_v41, 2 }
0x17a5   :  { %6046 = vmatprep.subr.mxu0 %v11260_v56  ;;  %6168 = vmatmul.mubr.f32.vlgmr.msra.gmra.mxu1 %v6089_v33 }
0x17a6   :  { %6047 = vmatpush2.msra.mxu0 %v11612_v27  ;;  %6999 = vmatprep.mubr.msk.f32.mxu1 %vm102_vm6, %v6096_v60  ;;  %v5979_v27 = vsel %vm1432_vm2, %v5974_v46, %v5978_v62  ;;  %v5977_v3 = vsel %vm1432_vm2, %v5971_v47, %v5976_v19  ;;  %v5813_v47 = vadd.f32 %v10597_v32, %v8349_v63 }
0x17a7   :  { %6048 = vmatprep.subr.mxu0 %v11260_v56  ;;  %7814 = vmatprep.subr.mxu1 %v11260_v56  ;;  %v5812_v62 = vadd.f32 %v9104_v30, %v8351_v5  ;;  %v6192_v19 = vadd.f32 %v9110_v58, %v8359_v23 }
0x17a8   :  { %6049 = vmatpush2.msra.mxu0 %v11626_v29  ;;  %v7904_v29 = vld [vmem:[%s12091_s18 + $0x78] sm:$0xff]  ;;  %v5817_v40 = vadd.f32 %v5813_v47, %v11354_v42  ;;  %v6207_v47 = vld [vmem:[%s12098_s16] sm:$0x1] }
0x17a9   :  { %6051 = vmatmul.mubr.f32.vlgmr.msra.gmra.mxu0 %v5972_v45  ;;  %7779 = vmatprep.subr.mxu0 %v11260_v56  ;;  %v6196_v63 = vadd.f32 %v6192_v19, %v11362_v61 }
0x17aa   :  { %6173 = vmatmul.mubr.f32.gmra.mxu1 %v6094_v55  ;;  %6979 = vmatprep.mubr.msk.f32.mxu0 %vm102_vm6, %v5979_v27  ;;  %v5816_v27 = vadd.f32 %v5812_v62, %v11357_v8 }
0x17ab   :  { %7780 = vmatpush3.msra.mxu0 %v7904_v29  ;;  %7815 = vmatpush3.msra.mxu1 %v7904_v29 }
0x17ac   :  { %7781 = vmatprep.subr.mxu0 %v11260_v56  ;;  %7816 = vmatprep.subr.mxu1 %v11260_v56 }
0x17ad   :  { %6056 = vmatmul.mubr.f32.gmra.mxu0 %v5977_v3  ;;  %7817 = vmatpush3.msra.mxu1 %v7905_v37 }
0x17ae   :  { %7782 = vmatpush3.msra.mxu0 %v7905_v37  ;;  %7811 = vmatprep.mubr.msk.f32.mxu0 %vm7922_vm3, %v11260_v56 }
0x17af   :  { %7783 = vmatprep.subr.mxu0 %v11260_v56  ;;  %7818 = vmatprep.subr.mxu1 %v11260_v56 }
0x17b0   :  { %7784 = vmatpush3.msra.mxu0 %v7906_v11  ;;  %7819 = vmatpush3.msra.mxu1 %v7906_v11 }
0x17b1   :  { %7785 = vmatprep.subr.mxu0 %v11260_v56  ;;  %7820 = vmatprep.subr.mxu1 %v11260_v56 }
0x17b2   :  { %7786 = vmatpush3.msra.mxu0 %v7907_v57  ;;  %7821 = vmatpush3.msra.mxu1 %v7907_v57 }
0x17b3   :  { %7787 = vmatprep.subr.mxu0 %v11260_v56  ;;  %7822 = vmatprep.subr.mxu1 %v11260_v56 }
0x17b4   :  { %7788 = vmatpush3.msra.mxu0 %v7908_v44  ;;  %7823 = vmatpush3.msra.mxu1 %v7908_v44  ;;  %v12149_v44 = vld [vmem:[#allocation8_spill] sm:$0xff] }
0x17b5   :  { %7789 = vmatprep.subr.mxu0 %v11260_v56  ;;  %7824 = vmatprep.subr.mxu1 %v11260_v56 }
0x17b6   :  { %7790 = vmatpush3.msra.mxu0 %v7909_v31  ;;  %7825 = vmatpush3.msra.mxu1 %v7909_v31  ;;  %v12150_v31 = vld [vmem:[#allocation9_spill] sm:$0xff] }
0x17b7   :  { %7791 = vmatprep.subr.mxu0 %v11260_v56  ;;  %7826 = vmatprep.subr.mxu1 %v11260_v56  ;;  %v6193_v42 = vadd.f32 %v12150_v31, %v12149_v44 }
0x17b8   :  { %7792 = vmatpush3.msra.mxu0 %v7910_v16  ;;  %7827 = vmatpush3.msra.mxu1 %v7910_v16 }
0x17b9   :  { %7793 = vmatprep.subr.mxu0 %v11260_v56  ;;  %7828 = vmatprep.subr.mxu1 %v11260_v56 }
0x17ba   :  { %7794 = vmatpush3.msra.mxu0 %v7911_v12  ;;  %7829 = vmatpush3.msra.mxu1 %v7911_v12  ;;  %v6197_v12 = vadd.f32 %v6193_v42, %v11365_v20 }
0x17bb   :  { %7795 = vmatprep.subr.mxu0 %v11260_v56  ;;  %7830 = vmatprep.subr.mxu1 %v11260_v56 }
0x17bc   :  { %7796 = vmatpush3.msra.mxu0 %v7912_v35  ;;  %7831 = vmatpush3.msra.mxu1 %v7912_v35 }
0x17bd   :  { %7797 = vmatprep.subr.mxu0 %v11260_v56  ;;  %7832 = vmatprep.subr.mxu1 %v11260_v56 }
0x17be   :  { %7798 = vmatpush3.msra.mxu0 %v7913_v4  ;;  %7833 = vmatpush3.msra.mxu1 %v7913_v4 }
0x17bf   :  { %7799 = vmatprep.subr.mxu0 %v11260_v56  ;;  %7834 = vmatprep.subr.mxu1 %v11260_v56 }
0x17c0   :  { %7800 = vmatpush3.msra.mxu0 %v7914_v13  ;;  %7835 = vmatpush3.msra.mxu1 %v7914_v13 }
0x17c1   :  { %7801 = vmatprep.subr.mxu0 %v11260_v56  ;;  %7836 = vmatprep.subr.mxu1 %v11260_v56 }
0x17c2   :  { %7802 = vmatpush3.msra.mxu0 %v7915_v50  ;;  %7837 = vmatpush3.msra.mxu1 %v7915_v50 }
0x17c3   :  { %7803 = vmatprep.subr.mxu0 %v11260_v56  ;;  %7838 = vmatprep.subr.mxu1 %v11260_v56 }
0x17c4   :  { %7804 = vmatpush3.msra.mxu0 %v7916_v0  ;;  %7839 = vmatpush3.msra.mxu1 %v7916_v0 }
0x17c5   :  { %7805 = vmatprep.subr.mxu0 %v11260_v56  ;;  %7840 = vmatprep.subr.mxu1 %v11260_v56 }
0x17c6   :  { %7806 = vmatpush3.msra.mxu0 %v7917_v51  ;;  %7841 = vmatpush3.msra.mxu1 %v7917_v51 }
0x17c7   :  { %7807 = vmatprep.subr.mxu0 %v11260_v56  ;;  %7842 = vmatprep.subr.mxu1 %v11260_v56 }
0x17c8   :  { %7808 = vmatpush3.msra.mxu0 %v7918_v7  ;;  %7843 = vmatpush3.msra.mxu1 %v7918_v7 }
0x17c9   :  { %7809 = vmatprep.subr.mxu0 %v11260_v56  ;;  %7844 = vmatprep.subr.mxu1 %v11260_v56 }
0x17ca   :  { %7810 = vmatpush3.msra.mxu0 %v7919_v10  ;;  %7845 = vmatpush3.msra.mxu1 %v7919_v10 }
0x17cb   :  { %7846 = vmatprep.mubr.msk.f32.mxu1 %vm7922_vm3, %v11260_v56 }
0x1816   :  { %v5671_v28 = vpop.f32.mrf.mxu1 }
0x1818   :  { %v5673_v54 = vpop.f32.mrf.mxu1 }
0x181b   :  { %v5591_v9 = vpop.f32.mrf.mxu0  ;;  %v5676_v48 = vpop.f32.mrf.mxu1 }
0x181c   :  { %v5672_v26 = vadd.f32 %v5671_v28, %v5591_v9 }
0x181d   :  { %v5593_v1 = vpop.f32.mrf.mxu0  ;;  %v5678_v17 = vpop.f32.mrf.mxu1 }
0x1820   :  { %v5596_v2 = vpop.f32.mrf.mxu0 }
0x1821   :  { %v5677_v6 = vadd.f32 %v5676_v48, %v5596_v2 }
0x1822   :  { %v5598_v36 = vpop.f32.mrf.mxu0 }
0x183d   :  { %v5957_v25 = vpop.f32.mrf.mxu1 }
0x183f   :  { %v5959_v14 = vpop.f32.mrf.mxu1 }
0x1842   :  { %v5789_v46 = vpop.f32.mrf.mxu0  ;;  %v5962_v34 = vpop.f32.mrf.mxu1 }
0x1843   :  { %v5798_v53 = vadd.f32 %v5789_v46, %v5672_v26 }
0x1844   :  { %v5791_v15 = vpop.f32.mrf.mxu0  ;;  %v5964_v43 = vpop.f32.mrf.mxu1 }
0x1845   :  { %v5806_v60 = vadd.f32 %v6957_v39, %v5798_v53 }
0x1847   :  { %v5818_v57 = vadd.f32 %v5816_v27, %v5806_v60 }
0x1848   :  { %v5794_v21 = vpop.f32.mrf.mxu0 }
0x1849   :  { %v5799_v18 = vadd.f32 %v5794_v21, %v5677_v6 }
0x184a   :  { %v5796_v24 = vpop.f32.mrf.mxu0 }
0x184b   :  { %v5807_v52 = vadd.f32 %v6957_v39, %v5799_v18 }
0x184d   :  { %v5819_v3 = vadd.f32 %v5817_v40, %v5807_v52 }
0x184f   :  { %v6208_v23 = vadd.f32 %v5819_v3, %v5818_v57 }
0x1865   :  { %v6169_v56 = vpop.f32.mrf.mxu1 }
0x1867   :  { %v6171_v49 = vpop.f32.mrf.mxu1 }
0x1869   :  { %v6052_v38 = vpop.f32.mrf.mxu0 }
0x186a   :  { %v6053_v33 = vadd.f32 %v6052_v38, %v5957_v25  ;;  %v6174_v22 = vpop.f32.mrf.mxu1 }
0x186b   :  { %v6054_v41 = vpop.f32.mrf.mxu0 }
0x186c   :  { %v6178_v45 = vadd.f32 %v6169_v56, %v6053_v33  ;;  %v6176_v55 = vpop.f32.mrf.mxu1 }
0x186d   :  { %v6057_v29 = vpop.f32.mrf.mxu0 }
0x186e   :  { %v6186_v37 = vadd.f32 %v6957_v39, %v6178_v45  ;;  %v6058_v32 = vadd.f32 %v6057_v29, %v5962_v34 }
0x186f   :  { %v6059_v11 = vpop.f32.mrf.mxu0 }
0x1870   :  { %v6198_v5 = vadd.f32 %v6196_v63, %v6186_v37  ;;  %v6179_v30 = vadd.f32 %v6174_v22, %v6058_v32 }
0x1872   :  { %v6187_v16 = vadd.f32 %v6957_v39, %v6179_v30  ;;  %v6209_v35 = vadd.f32 %v6208_v23, %v6198_v5  ;;  %v6206_v39 = vld [vmem:[%s12097_s15] sm:$0x1] }
0x1874   :  { %v6199_v58 = vadd.f32 %v6197_v12, %v6187_v16 }
0x1876   :  { %v6210_v8 = vadd.f32 %v6209_v35, %v6199_v58 }
0x1878   :  { %v6211_v4 = vrot.slane %v6210_v8, 4 }
0x187a   :  { %v6212_v13 = vadd.f32 %v6211_v4, %v6210_v8 }
0x187c   :  { %v6213_v50 = vrot.slane %v6212_v13, 2 }
0x187e   :  { %v6214_v0 = vadd.f32 %v6213_v50, %v6212_v13 }
0x1880   :  { %v6215_v61 = vrot.slane %v6214_v0, 1 }
0x1882   :  { %v6216_v51 = vadd.f32 %v6215_v61, %v6214_v0 }
0x1884   :  { %7812 = vmatmul.mubr.f32.vlgmr.msra.gmra.mxu0 %v6216_v51 }
0x1944   :  { %v6283_v7 = vpop.f32.mrf.mxu0 }
0x1945   :  { %v6287_v10 = vmul.f32 0.001953125, %v6283_v7 }
0x1946   :  { %v7813_v28 = vpop.f32.mrf.mxu0 }
0x1947   :  { %v6291_v54 = vrot.slane %v6287_v10, %v8386_v59 }
0x1949   :  { %v6292_v9 = vsub.f32 %v5818_v57, %v6291_v54  ;;  %v6293_v26 = vsub.f32 %v5819_v3, %v6291_v54  ;;  %v6294_v48 = vsub.f32 %v6198_v5, %v6291_v54  ;;  %v6295_v20 = vsub.f32 %v6199_v58, %v6291_v54 }
0x194b   :  { %v6296_v1 = vmul.f32 %v6292_v9, %v6292_v9  ;;  %v6297_v17 = vmul.f32 %v6293_v26, %v6293_v26  ;;  %v6298_v2 = vmul.f32 %v6294_v48, %v6294_v48  ;;  %v6299_v36 = vmul.f32 %v6295_v20, %v6295_v20 }
0x194d   :  { %v6300_v6 = vadd.f32 %v6297_v17, %v6296_v1 }
0x194f   :  { %v6301_v25 = vadd.f32 %v6300_v6, %v6298_v2 }
0x1951   :  { %v6302_v14 = vadd.f32 %v6301_v25, %v6299_v36 }
0x1953   :  { %v6303_v46 = vrot.slane %v6302_v14, 4 }
0x1955   :  { %v6304_v34 = vadd.f32 %v6303_v46, %v6302_v14 }
0x1957   :  { %v6305_v15 = vrot.slane %v6304_v34, 2 }
0x1959   :  { %v6306_v43 = vadd.f32 %v6305_v15, %v6304_v34 }
0x195b   :  { %v6307_v21 = vrot.slane %v6306_v43, 1 }
0x195d   :  { %v6308_v24 = vadd.f32 %v6307_v21, %v6306_v43 }
0x195f   :  { %7847 = vmatmul.mubr.f32.vlgmr.msra.gmra.mxu1 %v6308_v24 }
0x1a1f   :  { %v6375_v18 = vpop.f32.mrf.mxu1 }
0x1a20   :  { %v6379_v56 = vmul.f32 0.001953125, %v6375_v18 }
0x1a21   :  { %v7848_v53 = vpop.f32.mrf.mxu1 }
0x1a22   :  { %v6380_v49 = vadd.f32 1e-05, %v6379_v56 }
0x1a24   :  { %7873 = vrsqrt.f32 %v6380_v49 }
0x1a31   :  { %v7874_v38 = vpop.eup %7873 }
0x1a32   :  { %v6382_v52 = vmul.f32 %v7874_v38, %v6206_v39 }
0x1a34   :  { %v6383_v33 = vmul.f32 %v6382_v52, %v6287_v10  ;;  %v6389_v22 = vrot.slane %v6382_v52, %v8386_v59 }
0x1a36   :  { %v6384_v62 = vsub.f32 %v6207_v47, %v6383_v33  ;;  %v6391_v41 = vmul.f32 %v6389_v22, %v5818_v57  ;;  %v6392_v60 = vmul.f32 %v6389_v22, %v5819_v3  ;;  %v6393_v40 = vmul.f32 %v6389_v22, %v6198_v5 }
0x1a37   :  { %v6394_v45 = vmul.f32 %v6389_v22, %v6199_v58 }
0x1a38   :  { %v6399_v19 = vrot.slane %v6384_v62, %v8386_v59 }
0x1a3a   :  { %v6401_v55 = vadd.f32 %v6399_v19, %v6391_v41  ;;  %v6402_v27 = vadd.f32 %v6399_v19, %v6392_v60  ;;  %v6403_v29 = vadd.f32 %v6399_v19, %v6393_v40  ;;  %v6404_v37 = vadd.f32 %v6399_v19, %v6394_v45 }
0x1a3c   :  { %v6405_v63 = vmax.f32 %v6401_v55, 0.0  ;;  %v6406_v32 = vmax.f32 %v6402_v27, 0.0  ;;  %v6407_v11 = vmax.f32 %v6403_v29, 0.0  ;;  %v6408_v30 = vmax.f32 %v6404_v37, 0.0 }
0x1a3e   :  { %6409 = vst [vmem:[%s12099_s19] sm:$0xff] %v6405_v63  ;;  %6410 = vst [vmem:[%s12099_s19 + $0x8] sm:$0xff] %v6406_v32 }
0x1a3f   :  { %6411 = vst [vmem:[%s12099_s19 + $0x10] sm:$0xff] %v6407_v11  ;;  %6412 = vst [vmem:[%s12099_s19 + $0x18] sm:$0xff] %v6408_v30 }

</bundles_post_ra>
